<compile_context>
chip_gen: v7x
topology: tpu7x:2x2x1
jax: 0.10.0
libtpu: 0.0.40
codegen_flags: <defaults>
</compile_context>

<pallas_src>
import jax
import jax.numpy as jnp
from jax.experimental import pallas as pl
from jax.experimental.pallas import tpu as pltpu


# ----------------------------------------------------------------------------
# Fused whole-network kernel: one grid step == one block of B images.
# ----------------------------------------------------------------------------
def _net_kernel(x_ref, w1_ref, b1_ref, w2_ref, b2_ref, w3_ref, b3_ref,
                wf1_ref, bf1_ref, wf2_ref, bf2_ref, sel1_ref, sel2_ref, o_ref):
    B = x_ref.shape[0]

    # Small constants hoisted out of the per-image loop (a few vregs).
    w1 = w1_ref[...]          # (9, 32)    conv1 taps, k = di*3 + dj
    b1 = b1_ref[...]          # (1, 32)
    b2 = b2_ref[...]          # (1, 64)
    b3 = b3_ref[...]          # (1, 128)
    sel1 = sel1_ref[...]      # (13, 25)   even-position selector for pool1
    sel2 = sel2_ref[...]      # (5, 10)    even-position selector for pool2
    row_ids = jax.lax.broadcasted_iota(jnp.int32, (B, 128), 0)   # hoisted iota

    def pool_w(ym, sel):
        # ym: (W, C) after the H-direction max.  Neighbour max on the VPU, then a
        # single 0/1 selection matmul picks even positions (floor-mode W pool).
        y2 = jnp.maximum(ym[:-1, :], ym[1:, :])          # y2[m] = max(ym[m], ym[m+1])
        return jnp.dot(sel, y2, preferred_element_type=jnp.float32)

    def per_image(b, feats):
        xt = x_ref[b]                                     # (28, 28): [W, H]

        # ---- conv1 (3x3, 1->32, VPU broadcast-MACs) + ReLU + 2x2 max-pool ----
        # Only pooled rows 0..9 are ever consumed downstream (floor-mode pools).
        e1 = []                                           # e1[r]: (11, 96) dj-expanded row
        for p in range(10):
            # 12 distinct (26,1) input columns feed the two conv rows 2p, 2p+1.
            cols = {}
            for h in range(4):                            # input H index = 2p + h
                for dj in range(3):
                    cols[(h, dj)] = xt[dj:dj + 26, 2 * p + h:2 * p + h + 1]

            def conv1_row(r, cols=cols):
                acc = b1                                  # (1,32): broadcasts on add
                for di in range(3):
                    for dj in range(3):
                        k = 3 * di + dj
                        acc = acc + cols[(r + di, dj)] * w1[k:k + 1, :]
                return jnp.maximum(acc, 0.0)              # (26, 32)

            ym = jnp.maximum(conv1_row(0), conv1_row(1))  # H-pool of the row pair
            pr = pool_w(ym, sel1)                         # (13, 32) pooled1 row p
            # dj-expansion reused by all three di taps of conv2's im2col.
            e1.append(jnp.concatenate([pr[0:11], pr[1:12], pr[2:13]], axis=-1))

        # ---- conv2 (3x3, 32->64): one K=288 im2col matmul per row + pool ----
        def conv2_row(i):
            xi = jnp.concatenate([e1[i], e1[i + 1], e1[i + 2]], axis=-1)   # (11, 288)
            y = jnp.dot(xi, w2_ref[...], preferred_element_type=jnp.float32)
            return jnp.maximum(y + b2, 0.0)               # (11, 64)

        e2 = []                                           # e2[q]: (3, 192)
        for q in range(4):                                # pooled2 rows 0..3 only
            ym = jnp.maximum(conv2_row(2 * q), conv2_row(2 * q + 1))
            pq = pool_w(ym, sel2)                         # (5, 64)
            e2.append(jnp.concatenate([pq[0:3], pq[1:4], pq[2:5]], axis=-1))

        # ---- conv3 (3x3, 64->128): one K=576 im2col matmul per row + pool ----
        def conv3_row(i):
            xi = jnp.concatenate([e2[i], e2[i + 1], e2[i + 2]], axis=-1)   # (3, 576)
            y = jnp.dot(xi, w3_ref[...], preferred_element_type=jnp.float32)
            return jnp.maximum(y + b3, 0.0)               # (3, 128)

        ym = jnp.maximum(conv3_row(0), conv3_row(1))      # (3, 128)
        pooled3 = jnp.maximum(ym[0:1, :], ym[1:2, :])     # (1, 128) == post-pool3 map

        # Scatter this image's feature row into the (B,128) carry (pure VPU
        # select; avoids a dynamic sublane store).
        return jnp.where(row_ids == b, jnp.broadcast_to(pooled3, (B, 128)), feats)

    feats = jax.lax.fori_loop(0, B, per_image, jnp.zeros((B, 128), jnp.float32))

    # ---- batched FC tail + log_softmax (adaptive-avg-pool folded into wf1) ----
    h = jnp.maximum(
        jnp.dot(feats, wf1_ref[...], preferred_element_type=jnp.float32)
        + bf1_ref[...], 0.0)                              # (B, 512)
    logits = (jnp.dot(h, wf2_ref[...], preferred_element_type=jnp.float32)
              + bf2_ref[...])                             # (B, 10)
    m = jnp.max(logits, axis=-1, keepdims=True)
    s = logits - m
    lse = jnp.log(jnp.sum(jnp.exp(s), axis=-1, keepdims=True))
    o_ref[...] = (s - lse).astype(o_ref.dtype)


# ----------------------------------------------------------------------------
# Host-side wrapper: layout-only weight prep + a single batch-blocked pallas_call
# ----------------------------------------------------------------------------
def net_forward(params, x_nchw, *, batch_block=8):
    """Forward pass of `Net` for NCHW float32 input of shape (N, 1, 28, 28)."""
    N, C, H, W = x_nchw.shape
    # TODO(synk): only the 28x28 (MNIST) geometry is supported; other sizes change
    # the post-pool shapes and the adaptive-pool folding below.
    assert (C, H, W) == (1, 28, 28), (C, H, W)

    B = batch_block
    n_pad = int(pl.cdiv(N, B)) * B

    # (N,1,28,28) -> (N, W, H): W in sublanes, H in lanes (lane-dense layout).
    xt = jnp.swapaxes(x_nchw.reshape(N, 28, 28), 1, 2)
    if n_pad != N:
        xt = jnp.pad(xt, ((0, n_pad - N), (0, 0), (0, 0)))

    # One-time layout prep (outside the kernel):
    w1 = params["conv1_w"].reshape(9, 32)                 # taps k = di*3 + dj
    b1 = params["conv1_b"].reshape(1, 32)
    w2 = params["conv2_w"].reshape(288, 64)               # (di,dj,cin)-major im2col order
    b2 = params["conv2_b"].reshape(1, 64)
    w3 = params["conv3_w"].reshape(576, 128)
    b3 = params["conv3_b"].reshape(1, 128)
    # After pool3 the map is 1x1; AdaptiveAvgPool2d((3,3)) replicates it 9x and the
    # C-major flatten means fc1 collapses to a sum over the 9 copies.
    wf1 = params["fc1_w"].reshape(128, 9, 512).sum(axis=1)    # (128, 512)
    bf1 = params["fc1_b"].reshape(1, 512)
    wf2 = params["fc2_w"]                                     # (512, 10)
    bf2 = params["fc2_b"].reshape(1, 10)

    # Constant 0/1 even-position selectors for the W-direction of the max pools
    # (hoisted here so they are not re-materialized from iota every grid step).
    def even_selector(wo, wi):
        r = jnp.arange(wo)[:, None]
        c = jnp.arange(wi)[None, :]
        return (c == 2 * r).astype(jnp.float32)

    sel1 = even_selector(13, 25)
    sel2 = even_selector(5, 10)

    def const2d(shape):
        return pl.BlockSpec(shape, lambda g: (0, 0))

    out = pl.pallas_call(
        _net_kernel,
        out_shape=jax.ShapeDtypeStruct((n_pad, 10), jnp.float32),
        grid=(n_pad // B,),
        in_specs=[
            pl.BlockSpec((B, 28, 28), lambda g: (g, 0, 0)),    # B images per step
            const2d((9, 32)),        # weights: constant index maps -> DMA'd once,
            const2d((1, 32)),        # VMEM-resident across the whole grid
            const2d((288, 64)),
            const2d((1, 64)),
            const2d((576, 128)),
            const2d((1, 128)),
            const2d((128, 512)),
            const2d((1, 512)),
            const2d((512, 10)),
            const2d((1, 10)),
            const2d((13, 25)),
            const2d((5, 10)),
        ],
        out_specs=pl.BlockSpec((B, 10), lambda g: (g, 0)),
        compiler_params=pltpu.CompilerParams(
            dimension_semantics=("parallel",),    # shard batch blocks across TCs
            vmem_limit_bytes=32 * 1024 * 1024,    # working set ~2 MiB; safe everywhere
        ),
    )(xt, w1, b1, w2, b2, w3, b3, wf1, bf1, wf2, bf2, sel1, sel2)
    return out[:N]


# ----------------------------------------------------------------------------
# Pure-JAX reference of the PyTorch forward pass (for in-script verification).
# ----------------------------------------------------------------------------
def _net_forward_reference(params, x_nchw):
    hi = jax.lax.Precision.HIGHEST
    dn = ("NHWC", "HWIO", "NHWC")
    x = jnp.transpose(x_nchw, (0, 2, 3, 1))                       # NHWC

    def conv_relu(x, w, b):
        y = jax.lax.conv_general_dilated(x, w, (1, 1), "VALID",
                                         dimension_numbers=dn, precision=hi)
        return jnp.maximum(y + b, 0.0)

    def max_pool(x):
        return jax.lax.reduce_window(x, -jnp.inf, jax.lax.max,
                                     (1, 2, 2, 1), (1, 2, 2, 1), "VALID")

    x = max_pool(conv_relu(x, params["conv1_w"], params["conv1_b"]))
    x = max_pool(conv_relu(x, params["conv2_w"], params["conv2_b"]))
    x = max_pool(conv_relu(x, params["conv3_w"], params["conv3_b"]))   # (N,1,1,128)
    n = x.shape[0]
    x = jnp.broadcast_to(x, (n, 3, 3, 128))                        # adaptive avg pool (1x1 -> 3x3)
    x = jnp.transpose(x, (0, 3, 1, 2)).reshape(n, 128 * 9)         # C,H,W flatten order
    h = jnp.maximum(jnp.dot(x, params["fc1_w"], precision=hi) + params["fc1_b"], 0.0)
    logits = jnp.dot(h, params["fc2_w"], precision=hi) + params["fc2_b"]
    return jax.nn.log_softmax(logits, axis=-1)


# ----------------------------------------------------------------------------
# Parameters (deterministic, PyTorch-default-like uniform init; HWIO conv layout)
# ----------------------------------------------------------------------------
def init_params(key):
    ks = jax.random.split(key, 10)

    def u(k, shape, fan_in):
        bound = 1.0 / (fan_in ** 0.5)
        return jax.random.uniform(k, shape, jnp.float32, -bound, bound)

    return {
        "conv1_w": u(ks[0], (3, 3, 1, 32), 3 * 3 * 1),
        "conv1_b": u(ks[1], (32,), 3 * 3 * 1),
        "conv2_w": u(ks[2], (3, 3, 32, 64), 3 * 3 * 32),
        "conv2_b": u(ks[3], (64,), 3 * 3 * 32),
        "conv3_w": u(ks[4], (3, 3, 64, 128), 3 * 3 * 64),
        "conv3_b": u(ks[5], (128,), 3 * 3 * 64),
        "fc1_w": u(ks[6], (128 * 3 * 3, 512), 128 * 3 * 3),
        "fc1_b": u(ks[7], (512,), 128 * 3 * 3),
        "fc2_w": u(ks[8], (512, 10), 512),
        "fc2_b": u(ks[9], (10,), 512),
    }


if __name__ == "__main__":
    root = jax.random.PRNGKey(0)
    k_x, k_params = jax.random.split(root)
    x = jax.random.normal(k_x, (16, 1, 28, 28), dtype=jnp.float32)   # NCHW, MNIST-sized
    params = init_params(k_params)

    fwd = jax.jit(net_forward)
    out = jax.block_until_ready(fwd(params, x))

    assert out.shape == (16, 10), out.shape
    # rows of exp(log_softmax) must sum to 1
    assert bool(jnp.allclose(jnp.exp(out).sum(axis=1), 1.0, atol=1e-4))
    # must match a pure-JAX reference of the PyTorch forward pass
    ref = _net_forward_reference(params, x)
    assert bool(jnp.allclose(out, ref, atol=3e-2, rtol=3e-2)), \
        float(jnp.max(jnp.abs(out - ref)))
    print("KERNEL_OK")
</pallas_src>

<mosaic_0001>
module attributes {stable_mosaic.version = 11 : i64} {
  func.func @_net_kernel(%arg0: i32, %arg1: memref<8x28x28xf32, #tpu.memory_space<vmem>>, %arg2: memref<9x32xf32, #tpu.memory_space<vmem>>, %arg3: memref<1x32xf32, #tpu.memory_space<vmem>>, %arg4: memref<288x64xf32, #tpu.memory_space<vmem>>, %arg5: memref<1x64xf32, #tpu.memory_space<vmem>>, %arg6: memref<576x128xf32, #tpu.memory_space<vmem>>, %arg7: memref<1x128xf32, #tpu.memory_space<vmem>>, %arg8: memref<128x512xf32, #tpu.memory_space<vmem>>, %arg9: memref<1x512xf32, #tpu.memory_space<vmem>>, %arg10: memref<512x10xf32, #tpu.memory_space<vmem>>, %arg11: memref<1x10xf32, #tpu.memory_space<vmem>>, %arg12: memref<13x25xf32, #tpu.memory_space<vmem>>, %arg13: memref<5x10xf32, #tpu.memory_space<vmem>>, %arg14: memref<8x10xf32, #tpu.memory_space<vmem>>) attributes {dimension_semantics = [#tpu.dimension_semantics<parallel>], iteration_bounds = array<i64: 2>, scalar_prefetch = 0 : i64, scratch_operands = 0 : i64, tpu.core_type = #tpu.core_type<tc>, window_params = [{transform_indices = @transform_0, window_bounds = array<i64: 8, 28, 28>}, {pipeline_mode = #tpu.pipeline_mode<synchronous>, transform_indices = @transform_1, window_bounds = array<i64: 9, 32>}, {pipeline_mode = #tpu.pipeline_mode<synchronous>, transform_indices = @transform_2, window_bounds = array<i64: 1, 32>}, {pipeline_mode = #tpu.pipeline_mode<synchronous>, transform_indices = @transform_3, window_bounds = array<i64: 288, 64>}, {pipeline_mode = #tpu.pipeline_mode<synchronous>, transform_indices = @transform_4, window_bounds = array<i64: 1, 64>}, {pipeline_mode = #tpu.pipeline_mode<synchronous>, transform_indices = @transform_5, window_bounds = array<i64: 576, 128>}, {pipeline_mode = #tpu.pipeline_mode<synchronous>, transform_indices = @transform_6, window_bounds = array<i64: 1, 128>}, {pipeline_mode = #tpu.pipeline_mode<synchronous>, transform_indices = @transform_7, window_bounds = array<i64: 128, 512>}, {pipeline_mode = #tpu.pipeline_mode<synchronous>, transform_indices = @transform_8, window_bounds = array<i64: 1, 512>}, {pipeline_mode = #tpu.pipeline_mode<synchronous>, transform_indices = @transform_9, window_bounds = array<i64: 512, 10>}, {pipeline_mode = #tpu.pipeline_mode<synchronous>, transform_indices = @transform_10, window_bounds = array<i64: 1, 10>}, {pipeline_mode = #tpu.pipeline_mode<synchronous>, transform_indices = @transform_11, window_bounds = array<i64: 13, 25>}, {pipeline_mode = #tpu.pipeline_mode<synchronous>, transform_indices = @transform_12, window_bounds = array<i64: 5, 10>}, {transform_indices = @transform_13, window_bounds = array<i64: 8, 10>}]} {
    %c0 = arith.constant 0 : index
    %c0_0 = arith.constant 0 : index
    %0 = vector.load %arg2[%c0, %c0_0] : memref<9x32xf32, #tpu.memory_space<vmem>>, vector<9x32xf32>
    %c0_1 = arith.constant 0 : index
    %c0_2 = arith.constant 0 : index
    %1 = vector.load %arg3[%c0_1, %c0_2] : memref<1x32xf32, #tpu.memory_space<vmem>>, vector<1x32xf32>
    %c0_3 = arith.constant 0 : index
    %c0_4 = arith.constant 0 : index
    %2 = vector.load %arg5[%c0_3, %c0_4] : memref<1x64xf32, #tpu.memory_space<vmem>>, vector<1x64xf32>
    %c0_5 = arith.constant 0 : index
    %c0_6 = arith.constant 0 : index
    %3 = vector.load %arg7[%c0_5, %c0_6] : memref<1x128xf32, #tpu.memory_space<vmem>>, vector<1x128xf32>
    %c0_7 = arith.constant 0 : index
    %c0_8 = arith.constant 0 : index
    %4 = vector.load %arg12[%c0_7, %c0_8] : memref<13x25xf32, #tpu.memory_space<vmem>>, vector<13x25xf32>
    %c0_9 = arith.constant 0 : index
    %c0_10 = arith.constant 0 : index
    %5 = vector.load %arg13[%c0_9, %c0_10] : memref<5x10xf32, #tpu.memory_space<vmem>>, vector<5x10xf32>
    %6 = tpu.iota {dimensions = array<i32: 0>} : vector<8x128xi32>
    %cst = arith.constant 0.000000e+00 : f32
    %7 = vector.broadcast %cst : f32 to vector<8x128xf32>
    %c0_i32 = arith.constant 0 : i32
    %c8_i32 = arith.constant 8 : i32
    %8 = arith.addi %c0_i32, %c8_i32 : i32
    %c1_i32 = arith.constant 1 : i32
    %9 = scf.for %arg15 = %c0_i32 to %8 step %c1_i32 iter_args(%arg16 = %7) -> (vector<8x128xf32>)  : i32 {
      %33 = arith.index_cast %arg15 : i32 to index
      %c0_27 = arith.constant 0 : index
      %c0_28 = arith.constant 0 : index
      %34 = vector.load %arg1[%33, %c0_27, %c0_28] : memref<8x28x28xf32, #tpu.memory_space<vmem>>, vector<1x28x28xf32>
      %35 = vector.shape_cast %34 : vector<1x28x28xf32> to vector<28x28xf32>
      %36 = vector.extract_strided_slice %35 {offsets = [0, 0], sizes = [26, 1], strides = [1, 1]} : vector<28x28xf32> to vector<26x1xf32>
      %37 = vector.extract_strided_slice %35 {offsets = [1, 0], sizes = [26, 1], strides = [1, 1]} : vector<28x28xf32> to vector<26x1xf32>
      %38 = vector.extract_strided_slice %35 {offsets = [2, 0], sizes = [26, 1], strides = [1, 1]} : vector<28x28xf32> to vector<26x1xf32>
      %39 = vector.extract_strided_slice %35 {offsets = [0, 1], sizes = [26, 1], strides = [1, 1]} : vector<28x28xf32> to vector<26x1xf32>
      %40 = vector.extract_strided_slice %35 {offsets = [1, 1], sizes = [26, 1], strides = [1, 1]} : vector<28x28xf32> to vector<26x1xf32>
      %41 = vector.extract_strided_slice %35 {offsets = [2, 1], sizes = [26, 1], strides = [1, 1]} : vector<28x28xf32> to vector<26x1xf32>
      %42 = vector.extract_strided_slice %35 {offsets = [0, 2], sizes = [26, 1], strides = [1, 1]} : vector<28x28xf32> to vector<26x1xf32>
      %43 = vector.extract_strided_slice %35 {offsets = [1, 2], sizes = [26, 1], strides = [1, 1]} : vector<28x28xf32> to vector<26x1xf32>
      %44 = vector.extract_strided_slice %35 {offsets = [2, 2], sizes = [26, 1], strides = [1, 1]} : vector<28x28xf32> to vector<26x1xf32>
      %45 = vector.extract_strided_slice %35 {offsets = [0, 3], sizes = [26, 1], strides = [1, 1]} : vector<28x28xf32> to vector<26x1xf32>
      %46 = vector.extract_strided_slice %35 {offsets = [1, 3], sizes = [26, 1], strides = [1, 1]} : vector<28x28xf32> to vector<26x1xf32>
      %47 = vector.extract_strided_slice %35 {offsets = [2, 3], sizes = [26, 1], strides = [1, 1]} : vector<28x28xf32> to vector<26x1xf32>
      %48 = vector.extract_strided_slice %0 {offsets = [0, 0], sizes = [1, 32], strides = [1, 1]} : vector<9x32xf32> to vector<1x32xf32>
      %49 = vector.broadcast %36 : vector<26x1xf32> to vector<26x32xf32>
      %50 = vector.broadcast %48 : vector<1x32xf32> to vector<26x32xf32>
      %51 = arith.mulf %49, %50 : vector<26x32xf32>
      %52 = vector.broadcast %1 : vector<1x32xf32> to vector<26x32xf32>
      %53 = arith.addf %52, %51 : vector<26x32xf32>
      %54 = vector.extract_strided_slice %0 {offsets = [1, 0], sizes = [1, 32], strides = [1, 1]} : vector<9x32xf32> to vector<1x32xf32>
      %55 = vector.broadcast %37 : vector<26x1xf32> to vector<26x32xf32>
      %56 = vector.broadcast %54 : vector<1x32xf32> to vector<26x32xf32>
      %57 = arith.mulf %55, %56 : vector<26x32xf32>
      %58 = arith.addf %53, %57 : vector<26x32xf32>
      %59 = vector.extract_strided_slice %0 {offsets = [2, 0], sizes = [1, 32], strides = [1, 1]} : vector<9x32xf32> to vector<1x32xf32>
      %60 = vector.broadcast %38 : vector<26x1xf32> to vector<26x32xf32>
      %61 = vector.broadcast %59 : vector<1x32xf32> to vector<26x32xf32>
      %62 = arith.mulf %60, %61 : vector<26x32xf32>
      %63 = arith.addf %58, %62 : vector<26x32xf32>
      %64 = vector.extract_strided_slice %0 {offsets = [3, 0], sizes = [1, 32], strides = [1, 1]} : vector<9x32xf32> to vector<1x32xf32>
      %65 = vector.broadcast %39 : vector<26x1xf32> to vector<26x32xf32>
      %66 = vector.broadcast %64 : vector<1x32xf32> to vector<26x32xf32>
      %67 = arith.mulf %65, %66 : vector<26x32xf32>
      %68 = arith.addf %63, %67 : vector<26x32xf32>
      %69 = vector.extract_strided_slice %0 {offsets = [4, 0], sizes = [1, 32], strides = [1, 1]} : vector<9x32xf32> to vector<1x32xf32>
      %70 = vector.broadcast %40 : vector<26x1xf32> to vector<26x32xf32>
      %71 = vector.broadcast %69 : vector<1x32xf32> to vector<26x32xf32>
      %72 = arith.mulf %70, %71 : vector<26x32xf32>
      %73 = arith.addf %68, %72 : vector<26x32xf32>
      %74 = vector.extract_strided_slice %0 {offsets = [5, 0], sizes = [1, 32], strides = [1, 1]} : vector<9x32xf32> to vector<1x32xf32>
      %75 = vector.broadcast %41 : vector<26x1xf32> to vector<26x32xf32>
      %76 = vector.broadcast %74 : vector<1x32xf32> to vector<26x32xf32>
      %77 = arith.mulf %75, %76 : vector<26x32xf32>
      %78 = arith.addf %73, %77 : vector<26x32xf32>
      %79 = vector.extract_strided_slice %0 {offsets = [6, 0], sizes = [1, 32], strides = [1, 1]} : vector<9x32xf32> to vector<1x32xf32>
      %80 = vector.broadcast %42 : vector<26x1xf32> to vector<26x32xf32>
      %81 = vector.broadcast %79 : vector<1x32xf32> to vector<26x32xf32>
      %82 = arith.mulf %80, %81 : vector<26x32xf32>
      %83 = arith.addf %78, %82 : vector<26x32xf32>
      %84 = vector.extract_strided_slice %0 {offsets = [7, 0], sizes = [1, 32], strides = [1, 1]} : vector<9x32xf32> to vector<1x32xf32>
      %85 = vector.broadcast %43 : vector<26x1xf32> to vector<26x32xf32>
      %86 = vector.broadcast %84 : vector<1x32xf32> to vector<26x32xf32>
      %87 = arith.mulf %85, %86 : vector<26x32xf32>
      %88 = arith.addf %83, %87 : vector<26x32xf32>
      %89 = vector.extract_strided_slice %0 {offsets = [8, 0], sizes = [1, 32], strides = [1, 1]} : vector<9x32xf32> to vector<1x32xf32>
      %90 = vector.broadcast %44 : vector<26x1xf32> to vector<26x32xf32>
      %91 = vector.broadcast %89 : vector<1x32xf32> to vector<26x32xf32>
      %92 = arith.mulf %90, %91 : vector<26x32xf32>
      %93 = arith.addf %88, %92 : vector<26x32xf32>
      %cst_29 = arith.constant 0.000000e+00 : f32
      %94 = vector.broadcast %cst_29 : f32 to vector<26x32xf32>
      %95 = arith.maximumf %93, %94 : vector<26x32xf32>
      %96 = vector.extract_strided_slice %0 {offsets = [0, 0], sizes = [1, 32], strides = [1, 1]} : vector<9x32xf32> to vector<1x32xf32>
      %97 = vector.broadcast %39 : vector<26x1xf32> to vector<26x32xf32>
      %98 = vector.broadcast %96 : vector<1x32xf32> to vector<26x32xf32>
      %99 = arith.mulf %97, %98 : vector<26x32xf32>
      %100 = vector.broadcast %1 : vector<1x32xf32> to vector<26x32xf32>
      %101 = arith.addf %100, %99 : vector<26x32xf32>
      %102 = vector.extract_strided_slice %0 {offsets = [1, 0], sizes = [1, 32], strides = [1, 1]} : vector<9x32xf32> to vector<1x32xf32>
      %103 = vector.broadcast %40 : vector<26x1xf32> to vector<26x32xf32>
      %104 = vector.broadcast %102 : vector<1x32xf32> to vector<26x32xf32>
      %105 = arith.mulf %103, %104 : vector<26x32xf32>
      %106 = arith.addf %101, %105 : vector<26x32xf32>
      %107 = vector.extract_strided_slice %0 {offsets = [2, 0], sizes = [1, 32], strides = [1, 1]} : vector<9x32xf32> to vector<1x32xf32>
      %108 = vector.broadcast %41 : vector<26x1xf32> to vector<26x32xf32>
      %109 = vector.broadcast %107 : vector<1x32xf32> to vector<26x32xf32>
      %110 = arith.mulf %108, %109 : vector<26x32xf32>
      %111 = arith.addf %106, %110 : vector<26x32xf32>
      %112 = vector.extract_strided_slice %0 {offsets = [3, 0], sizes = [1, 32], strides = [1, 1]} : vector<9x32xf32> to vector<1x32xf32>
      %113 = vector.broadcast %42 : vector<26x1xf32> to vector<26x32xf32>
      %114 = vector.broadcast %112 : vector<1x32xf32> to vector<26x32xf32>
      %115 = arith.mulf %113, %114 : vector<26x32xf32>
      %116 = arith.addf %111, %115 : vector<26x32xf32>
      %117 = vector.extract_strided_slice %0 {offsets = [4, 0], sizes = [1, 32], strides = [1, 1]} : vector<9x32xf32> to vector<1x32xf32>
      %118 = vector.broadcast %43 : vector<26x1xf32> to vector<26x32xf32>
      %119 = vector.broadcast %117 : vector<1x32xf32> to vector<26x32xf32>
      %120 = arith.mulf %118, %119 : vector<26x32xf32>
      %121 = arith.addf %116, %120 : vector<26x32xf32>
      %122 = vector.extract_strided_slice %0 {offsets = [5, 0], sizes = [1, 32], strides = [1, 1]} : vector<9x32xf32> to vector<1x32xf32>
      %123 = vector.broadcast %44 : vector<26x1xf32> to vector<26x32xf32>
      %124 = vector.broadcast %122 : vector<1x32xf32> to vector<26x32xf32>
      %125 = arith.mulf %123, %124 : vector<26x32xf32>
      %126 = arith.addf %121, %125 : vector<26x32xf32>
      %127 = vector.extract_strided_slice %0 {offsets = [6, 0], sizes = [1, 32], strides = [1, 1]} : vector<9x32xf32> to vector<1x32xf32>
      %128 = vector.broadcast %45 : vector<26x1xf32> to vector<26x32xf32>
      %129 = vector.broadcast %127 : vector<1x32xf32> to vector<26x32xf32>
      %130 = arith.mulf %128, %129 : vector<26x32xf32>
      %131 = arith.addf %126, %130 : vector<26x32xf32>
      %132 = vector.extract_strided_slice %0 {offsets = [7, 0], sizes = [1, 32], strides = [1, 1]} : vector<9x32xf32> to vector<1x32xf32>
      %133 = vector.broadcast %46 : vector<26x1xf32> to vector<26x32xf32>
      %134 = vector.broadcast %132 : vector<1x32xf32> to vector<26x32xf32>
      %135 = arith.mulf %133, %134 : vector<26x32xf32>
      %136 = arith.addf %131, %135 : vector<26x32xf32>
      %137 = vector.extract_strided_slice %0 {offsets = [8, 0], sizes = [1, 32], strides = [1, 1]} : vector<9x32xf32> to vector<1x32xf32>
      %138 = vector.broadcast %47 : vector<26x1xf32> to vector<26x32xf32>
      %139 = vector.broadcast %137 : vector<1x32xf32> to vector<26x32xf32>
      %140 = arith.mulf %138, %139 : vector<26x32xf32>
      %141 = arith.addf %136, %140 : vector<26x32xf32>
      %cst_30 = arith.constant 0.000000e+00 : f32
      %142 = vector.broadcast %cst_30 : f32 to vector<26x32xf32>
      %143 = arith.maximumf %141, %142 : vector<26x32xf32>
      %144 = arith.maximumf %95, %143 : vector<26x32xf32>
      %145 = vector.extract_strided_slice %144 {offsets = [0, 0], sizes = [25, 32], strides = [1, 1]} : vector<26x32xf32> to vector<25x32xf32>
      %146 = vector.extract_strided_slice %144 {offsets = [1, 0], sizes = [25, 32], strides = [1, 1]} : vector<26x32xf32> to vector<25x32xf32>
      %147 = arith.maximumf %145, %146 : vector<25x32xf32>
      %cst_31 = arith.constant dense<0.000000e+00> : vector<13x32xf32>
      %148 = tpu.matmul %4, %147, %cst_31 {dimension_numbers = #tpu.dot_dimension_numbers<[1], [0], [0], [1], [0, 0, 1, 1], [], []>} : vector<13x25xf32>, vector<25x32xf32>, vector<13x32xf32> -> vector<13x32xf32>
      %149 = vector.extract_strided_slice %148 {offsets = [0, 0], sizes = [11, 32], strides = [1, 1]} : vector<13x32xf32> to vector<11x32xf32>
      %150 = vector.extract_strided_slice %148 {offsets = [1, 0], sizes = [11, 32], strides = [1, 1]} : vector<13x32xf32> to vector<11x32xf32>
      %151 = vector.extract_strided_slice %148 {offsets = [2, 0], sizes = [11, 32], strides = [1, 1]} : vector<13x32xf32> to vector<11x32xf32>
      %152 = tpu.concatenate %149, %150, %151 in 1 : vector<11x32xf32>, vector<11x32xf32>, vector<11x32xf32> -> vector<11x96xf32>
      %153 = vector.extract_strided_slice %35 {offsets = [0, 2], sizes = [26, 1], strides = [1, 1]} : vector<28x28xf32> to vector<26x1xf32>
      %154 = vector.extract_strided_slice %35 {offsets = [1, 2], sizes = [26, 1], strides = [1, 1]} : vector<28x28xf32> to vector<26x1xf32>
      %155 = vector.extract_strided_slice %35 {offsets = [2, 2], sizes = [26, 1], strides = [1, 1]} : vector<28x28xf32> to vector<26x1xf32>
      %156 = vector.extract_strided_slice %35 {offsets = [0, 3], sizes = [26, 1], strides = [1, 1]} : vector<28x28xf32> to vector<26x1xf32>
      %157 = vector.extract_strided_slice %35 {offsets = [1, 3], sizes = [26, 1], strides = [1, 1]} : vector<28x28xf32> to vector<26x1xf32>
      %158 = vector.extract_strided_slice %35 {offsets = [2, 3], sizes = [26, 1], strides = [1, 1]} : vector<28x28xf32> to vector<26x1xf32>
      %159 = vector.extract_strided_slice %35 {offsets = [0, 4], sizes = [26, 1], strides = [1, 1]} : vector<28x28xf32> to vector<26x1xf32>
      %160 = vector.extract_strided_slice %35 {offsets = [1, 4], sizes = [26, 1], strides = [1, 1]} : vector<28x28xf32> to vector<26x1xf32>
      %161 = vector.extract_strided_slice %35 {offsets = [2, 4], sizes = [26, 1], strides = [1, 1]} : vector<28x28xf32> to vector<26x1xf32>
      %162 = vector.extract_strided_slice %35 {offsets = [0, 5], sizes = [26, 1], strides = [1, 1]} : vector<28x28xf32> to vector<26x1xf32>
      %163 = vector.extract_strided_slice %35 {offsets = [1, 5], sizes = [26, 1], strides = [1, 1]} : vector<28x28xf32> to vector<26x1xf32>
      %164 = vector.extract_strided_slice %35 {offsets = [2, 5], sizes = [26, 1], strides = [1, 1]} : vector<28x28xf32> to vector<26x1xf32>
      %165 = vector.extract_strided_slice %0 {offsets = [0, 0], sizes = [1, 32], strides = [1, 1]} : vector<9x32xf32> to vector<1x32xf32>
      %166 = vector.broadcast %153 : vector<26x1xf32> to vector<26x32xf32>
      %167 = vector.broadcast %165 : vector<1x32xf32> to vector<26x32xf32>
      %168 = arith.mulf %166, %167 : vector<26x32xf32>
      %169 = vector.broadcast %1 : vector<1x32xf32> to vector<26x32xf32>
      %170 = arith.addf %169, %168 : vector<26x32xf32>
      %171 = vector.extract_strided_slice %0 {offsets = [1, 0], sizes = [1, 32], strides = [1, 1]} : vector<9x32xf32> to vector<1x32xf32>
      %172 = vector.broadcast %154 : vector<26x1xf32> to vector<26x32xf32>
      %173 = vector.broadcast %171 : vector<1x32xf32> to vector<26x32xf32>
      %174 = arith.mulf %172, %173 : vector<26x32xf32>
      %175 = arith.addf %170, %174 : vector<26x32xf32>
      %176 = vector.extract_strided_slice %0 {offsets = [2, 0], sizes = [1, 32], strides = [1, 1]} : vector<9x32xf32> to vector<1x32xf32>
      %177 = vector.broadcast %155 : vector<26x1xf32> to vector<26x32xf32>
      %178 = vector.broadcast %176 : vector<1x32xf32> to vector<26x32xf32>
      %179 = arith.mulf %177, %178 : vector<26x32xf32>
      %180 = arith.addf %175, %179 : vector<26x32xf32>
      %181 = vector.extract_strided_slice %0 {offsets = [3, 0], sizes = [1, 32], strides = [1, 1]} : vector<9x32xf32> to vector<1x32xf32>
      %182 = vector.broadcast %156 : vector<26x1xf32> to vector<26x32xf32>
      %183 = vector.broadcast %181 : vector<1x32xf32> to vector<26x32xf32>
      %184 = arith.mulf %182, %183 : vector<26x32xf32>
      %185 = arith.addf %180, %184 : vector<26x32xf32>
      %186 = vector.extract_strided_slice %0 {offsets = [4, 0], sizes = [1, 32], strides = [1, 1]} : vector<9x32xf32> to vector<1x32xf32>
      %187 = vector.broadcast %157 : vector<26x1xf32> to vector<26x32xf32>
      %188 = vector.broadcast %186 : vector<1x32xf32> to vector<26x32xf32>
      %189 = arith.mulf %187, %188 : vector<26x32xf32>
      %190 = arith.addf %185, %189 : vector<26x32xf32>
      %191 = vector.extract_strided_slice %0 {offsets = [5, 0], sizes = [1, 32], strides = [1, 1]} : vector<9x32xf32> to vector<1x32xf32>
      %192 = vector.broadcast %158 : vector<26x1xf32> to vector<26x32xf32>
      %193 = vector.broadcast %191 : vector<1x32xf32> to vector<26x32xf32>
      %194 = arith.mulf %192, %193 : vector<26x32xf32>
      %195 = arith.addf %190, %194 : vector<26x32xf32>
      %196 = vector.extract_strided_slice %0 {offsets = [6, 0], sizes = [1, 32], strides = [1, 1]} : vector<9x32xf32> to vector<1x32xf32>
      %197 = vector.broadcast %159 : vector<26x1xf32> to vector<26x32xf32>
      %198 = vector.broadcast %196 : vector<1x32xf32> to vector<26x32xf32>
      %199 = arith.mulf %197, %198 : vector<26x32xf32>
      %200 = arith.addf %195, %199 : vector<26x32xf32>
      %201 = vector.extract_strided_slice %0 {offsets = [7, 0], sizes = [1, 32], strides = [1, 1]} : vector<9x32xf32> to vector<1x32xf32>
      %202 = vector.broadcast %160 : vector<26x1xf32> to vector<26x32xf32>
      %203 = vector.broadcast %201 : vector<1x32xf32> to vector<26x32xf32>
      %204 = arith.mulf %202, %203 : vector<26x32xf32>
      %205 = arith.addf %200, %204 : vector<26x32xf32>
      %206 = vector.extract_strided_slice %0 {offsets = [8, 0], sizes = [1, 32], strides = [1, 1]} : vector<9x32xf32> to vector<1x32xf32>
      %207 = vector.broadcast %161 : vector<26x1xf32> to vector<26x32xf32>
      %208 = vector.broadcast %206 : vector<1x32xf32> to vector<26x32xf32>
      %209 = arith.mulf %207, %208 : vector<26x32xf32>
      %210 = arith.addf %205, %209 : vector<26x32xf32>
      %cst_32 = arith.constant 0.000000e+00 : f32
      %211 = vector.broadcast %cst_32 : f32 to vector<26x32xf32>
      %212 = arith.maximumf %210, %211 : vector<26x32xf32>
      %213 = vector.extract_strided_slice %0 {offsets = [0, 0], sizes = [1, 32], strides = [1, 1]} : vector<9x32xf32> to vector<1x32xf32>
      %214 = vector.broadcast %156 : vector<26x1xf32> to vector<26x32xf32>
      %215 = vector.broadcast %213 : vector<1x32xf32> to vector<26x32xf32>
      %216 = arith.mulf %214, %215 : vector<26x32xf32>
      %217 = vector.broadcast %1 : vector<1x32xf32> to vector<26x32xf32>
      %218 = arith.addf %217, %216 : vector<26x32xf32>
      %219 = vector.extract_strided_slice %0 {offsets = [1, 0], sizes = [1, 32], strides = [1, 1]} : vector<9x32xf32> to vector<1x32xf32>
      %220 = vector.broadcast %157 : vector<26x1xf32> to vector<26x32xf32>
      %221 = vector.broadcast %219 : vector<1x32xf32> to vector<26x32xf32>
      %222 = arith.mulf %220, %221 : vector<26x32xf32>
      %223 = arith.addf %218, %222 : vector<26x32xf32>
      %224 = vector.extract_strided_slice %0 {offsets = [2, 0], sizes = [1, 32], strides = [1, 1]} : vector<9x32xf32> to vector<1x32xf32>
      %225 = vector.broadcast %158 : vector<26x1xf32> to vector<26x32xf32>
      %226 = vector.broadcast %224 : vector<1x32xf32> to vector<26x32xf32>
      %227 = arith.mulf %225, %226 : vector<26x32xf32>
      %228 = arith.addf %223, %227 : vector<26x32xf32>
      %229 = vector.extract_strided_slice %0 {offsets = [3, 0], sizes = [1, 32], strides = [1, 1]} : vector<9x32xf32> to vector<1x32xf32>
      %230 = vector.broadcast %159 : vector<26x1xf32> to vector<26x32xf32>
      %231 = vector.broadcast %229 : vector<1x32xf32> to vector<26x32xf32>
      %232 = arith.mulf %230, %231 : vector<26x32xf32>
      %233 = arith.addf %228, %232 : vector<26x32xf32>
      %234 = vector.extract_strided_slice %0 {offsets = [4, 0], sizes = [1, 32], strides = [1, 1]} : vector<9x32xf32> to vector<1x32xf32>
      %235 = vector.broadcast %160 : vector<26x1xf32> to vector<26x32xf32>
      %236 = vector.broadcast %234 : vector<1x32xf32> to vector<26x32xf32>
      %237 = arith.mulf %235, %236 : vector<26x32xf32>
      %238 = arith.addf %233, %237 : vector<26x32xf32>
      %239 = vector.extract_strided_slice %0 {offsets = [5, 0], sizes = [1, 32], strides = [1, 1]} : vector<9x32xf32> to vector<1x32xf32>
      %240 = vector.broadcast %161 : vector<26x1xf32> to vector<26x32xf32>
      %241 = vector.broadcast %239 : vector<1x32xf32> to vector<26x32xf32>
      %242 = arith.mulf %240, %241 : vector<26x32xf32>
      %243 = arith.addf %238, %242 : vector<26x32xf32>
      %244 = vector.extract_strided_slice %0 {offsets = [6, 0], sizes = [1, 32], strides = [1, 1]} : vector<9x32xf32> to vector<1x32xf32>
      %245 = vector.broadcast %162 : vector<26x1xf32> to vector<26x32xf32>
      %246 = vector.broadcast %244 : vector<1x32xf32> to vector<26x32xf32>
      %247 = arith.mulf %245, %246 : vector<26x32xf32>
      %248 = arith.addf %243, %247 : vector<26x32xf32>
      %249 = vector.extract_strided_slice %0 {offsets = [7, 0], sizes = [1, 32], strides = [1, 1]} : vector<9x32xf32> to vector<1x32xf32>
      %250 = vector.broadcast %163 : vector<26x1xf32> to vector<26x32xf32>
      %251 = vector.broadcast %249 : vector<1x32xf32> to vector<26x32xf32>
      %252 = arith.mulf %250, %251 : vector<26x32xf32>
      %253 = arith.addf %248, %252 : vector<26x32xf32>
      %254 = vector.extract_strided_slice %0 {offsets = [8, 0], sizes = [1, 32], strides = [1, 1]} : vector<9x32xf32> to vector<1x32xf32>
      %255 = vector.broadcast %164 : vector<26x1xf32> to vector<26x32xf32>
      %256 = vector.broadcast %254 : vector<1x32xf32> to vector<26x32xf32>
      %257 = arith.mulf %255, %256 : vector<26x32xf32>
      %258 = arith.addf %253, %257 : vector<26x32xf32>
      %cst_33 = arith.constant 0.000000e+00 : f32
      %259 = vector.broadcast %cst_33 : f32 to vector<26x32xf32>
      %260 = arith.maximumf %258, %259 : vector<26x32xf32>
      %261 = arith.maximumf %212, %260 : vector<26x32xf32>
      %262 = vector.extract_strided_slice %261 {offsets = [0, 0], sizes = [25, 32], strides = [1, 1]} : vector<26x32xf32> to vector<25x32xf32>
      %263 = vector.extract_strided_slice %261 {offsets = [1, 0], sizes = [25, 32], strides = [1, 1]} : vector<26x32xf32> to vector<25x32xf32>
      %264 = arith.maximumf %262, %263 : vector<25x32xf32>
      %cst_34 = arith.constant dense<0.000000e+00> : vector<13x32xf32>
      %265 = tpu.matmul %4, %264, %cst_34 {dimension_numbers = #tpu.dot_dimension_numbers<[1], [0], [0], [1], [0, 0, 1, 1], [], []>} : vector<13x25xf32>, vector<25x32xf32>, vector<13x32xf32> -> vector<13x32xf32>
      %266 = vector.extract_strided_slice %265 {offsets = [0, 0], sizes = [11, 32], strides = [1, 1]} : vector<13x32xf32> to vector<11x32xf32>
      %267 = vector.extract_strided_slice %265 {offsets = [1, 0], sizes = [11, 32], strides = [1, 1]} : vector<13x32xf32> to vector<11x32xf32>
      %268 = vector.extract_strided_slice %265 {offsets = [2, 0], sizes = [11, 32], strides = [1, 1]} : vector<13x32xf32> to vector<11x32xf32>
      %269 = tpu.concatenate %266, %267, %268 in 1 : vector<11x32xf32>, vector<11x32xf32>, vector<11x32xf32> -> vector<11x96xf32>
      %270 = vector.extract_strided_slice %35 {offsets = [0, 4], sizes = [26, 1], strides = [1, 1]} : vector<28x28xf32> to vector<26x1xf32>
      %271 = vector.extract_strided_slice %35 {offsets = [1, 4], sizes = [26, 1], strides = [1, 1]} : vector<28x28xf32> to vector<26x1xf32>
      %272 = vector.extract_strided_slice %35 {offsets = [2, 4], sizes = [26, 1], strides = [1, 1]} : vector<28x28xf32> to vector<26x1xf32>
      %273 = vector.extract_strided_slice %35 {offsets = [0, 5], sizes = [26, 1], strides = [1, 1]} : vector<28x28xf32> to vector<26x1xf32>
      %274 = vector.extract_strided_slice %35 {offsets = [1, 5], sizes = [26, 1], strides = [1, 1]} : vector<28x28xf32> to vector<26x1xf32>
      %275 = vector.extract_strided_slice %35 {offsets = [2, 5], sizes = [26, 1], strides = [1, 1]} : vector<28x28xf32> to vector<26x1xf32>
      %276 = vector.extract_strided_slice %35 {offsets = [0, 6], sizes = [26, 1], strides = [1, 1]} : vector<28x28xf32> to vector<26x1xf32>
      %277 = vector.extract_strided_slice %35 {offsets = [1, 6], sizes = [26, 1], strides = [1, 1]} : vector<28x28xf32> to vector<26x1xf32>
      %278 = vector.extract_strided_slice %35 {offsets = [2, 6], sizes = [26, 1], strides = [1, 1]} : vector<28x28xf32> to vector<26x1xf32>
      %279 = vector.extract_strided_slice %35 {offsets = [0, 7], sizes = [26, 1], strides = [1, 1]} : vector<28x28xf32> to vector<26x1xf32>
      %280 = vector.extract_strided_slice %35 {offsets = [1, 7], sizes = [26, 1], strides = [1, 1]} : vector<28x28xf32> to vector<26x1xf32>
      %281 = vector.extract_strided_slice %35 {offsets = [2, 7], sizes = [26, 1], strides = [1, 1]} : vector<28x28xf32> to vector<26x1xf32>
      %282 = vector.extract_strided_slice %0 {offsets = [0, 0], sizes = [1, 32], strides = [1, 1]} : vector<9x32xf32> to vector<1x32xf32>
      %283 = vector.broadcast %270 : vector<26x1xf32> to vector<26x32xf32>
      %284 = vector.broadcast %282 : vector<1x32xf32> to vector<26x32xf32>
      %285 = arith.mulf %283, %284 : vector<26x32xf32>
      %286 = vector.broadcast %1 : vector<1x32xf32> to vector<26x32xf32>
      %287 = arith.addf %286, %285 : vector<26x32xf32>
      %288 = vector.extract_strided_slice %0 {offsets = [1, 0], sizes = [1, 32], strides = [1, 1]} : vector<9x32xf32> to vector<1x32xf32>
      %289 = vector.broadcast %271 : vector<26x1xf32> to vector<26x32xf32>
      %290 = vector.broadcast %288 : vector<1x32xf32> to vector<26x32xf32>
      %291 = arith.mulf %289, %290 : vector<26x32xf32>
      %292 = arith.addf %287, %291 : vector<26x32xf32>
      %293 = vector.extract_strided_slice %0 {offsets = [2, 0], sizes = [1, 32], strides = [1, 1]} : vector<9x32xf32> to vector<1x32xf32>
      %294 = vector.broadcast %272 : vector<26x1xf32> to vector<26x32xf32>
      %295 = vector.broadcast %293 : vector<1x32xf32> to vector<26x32xf32>
      %296 = arith.mulf %294, %295 : vector<26x32xf32>
      %297 = arith.addf %292, %296 : vector<26x32xf32>
      %298 = vector.extract_strided_slice %0 {offsets = [3, 0], sizes = [1, 32], strides = [1, 1]} : vector<9x32xf32> to vector<1x32xf32>
      %299 = vector.broadcast %273 : vector<26x1xf32> to vector<26x32xf32>
      %300 = vector.broadcast %298 : vector<1x32xf32> to vector<26x32xf32>
      %301 = arith.mulf %299, %300 : vector<26x32xf32>
      %302 = arith.addf %297, %301 : vector<26x32xf32>
      %303 = vector.extract_strided_slice %0 {offsets = [4, 0], sizes = [1, 32], strides = [1, 1]} : vector<9x32xf32> to vector<1x32xf32>
      %304 = vector.broadcast %274 : vector<26x1xf32> to vector<26x32xf32>
      %305 = vector.broadcast %303 : vector<1x32xf32> to vector<26x32xf32>
      %306 = arith.mulf %304, %305 : vector<26x32xf32>
      %307 = arith.addf %302, %306 : vector<26x32xf32>
      %308 = vector.extract_strided_slice %0 {offsets = [5, 0], sizes = [1, 32], strides = [1, 1]} : vector<9x32xf32> to vector<1x32xf32>
      %309 = vector.broadcast %275 : vector<26x1xf32> to vector<26x32xf32>
      %310 = vector.broadcast %308 : vector<1x32xf32> to vector<26x32xf32>
      %311 = arith.mulf %309, %310 : vector<26x32xf32>
      %312 = arith.addf %307, %311 : vector<26x32xf32>
      %313 = vector.extract_strided_slice %0 {offsets = [6, 0], sizes = [1, 32], strides = [1, 1]} : vector<9x32xf32> to vector<1x32xf32>
      %314 = vector.broadcast %276 : vector<26x1xf32> to vector<26x32xf32>
      %315 = vector.broadcast %313 : vector<1x32xf32> to vector<26x32xf32>
      %316 = arith.mulf %314, %315 : vector<26x32xf32>
      %317 = arith.addf %312, %316 : vector<26x32xf32>
      %318 = vector.extract_strided_slice %0 {offsets = [7, 0], sizes = [1, 32], strides = [1, 1]} : vector<9x32xf32> to vector<1x32xf32>
      %319 = vector.broadcast %277 : vector<26x1xf32> to vector<26x32xf32>
      %320 = vector.broadcast %318 : vector<1x32xf32> to vector<26x32xf32>
      %321 = arith.mulf %319, %320 : vector<26x32xf32>
      %322 = arith.addf %317, %321 : vector<26x32xf32>
      %323 = vector.extract_strided_slice %0 {offsets = [8, 0], sizes = [1, 32], strides = [1, 1]} : vector<9x32xf32> to vector<1x32xf32>
      %324 = vector.broadcast %278 : vector<26x1xf32> to vector<26x32xf32>
      %325 = vector.broadcast %323 : vector<1x32xf32> to vector<26x32xf32>
      %326 = arith.mulf %324, %325 : vector<26x32xf32>
      %327 = arith.addf %322, %326 : vector<26x32xf32>
      %cst_35 = arith.constant 0.000000e+00 : f32
      %328 = vector.broadcast %cst_35 : f32 to vector<26x32xf32>
      %329 = arith.maximumf %327, %328 : vector<26x32xf32>
      %330 = vector.extract_strided_slice %0 {offsets = [0, 0], sizes = [1, 32], strides = [1, 1]} : vector<9x32xf32> to vector<1x32xf32>
      %331 = vector.broadcast %273 : vector<26x1xf32> to vector<26x32xf32>
      %332 = vector.broadcast %330 : vector<1x32xf32> to vector<26x32xf32>
      %333 = arith.mulf %331, %332 : vector<26x32xf32>
      %334 = vector.broadcast %1 : vector<1x32xf32> to vector<26x32xf32>
      %335 = arith.addf %334, %333 : vector<26x32xf32>
      %336 = vector.extract_strided_slice %0 {offsets = [1, 0], sizes = [1, 32], strides = [1, 1]} : vector<9x32xf32> to vector<1x32xf32>
      %337 = vector.broadcast %274 : vector<26x1xf32> to vector<26x32xf32>
      %338 = vector.broadcast %336 : vector<1x32xf32> to vector<26x32xf32>
      %339 = arith.mulf %337, %338 : vector<26x32xf32>
      %340 = arith.addf %335, %339 : vector<26x32xf32>
      %341 = vector.extract_strided_slice %0 {offsets = [2, 0], sizes = [1, 32], strides = [1, 1]} : vector<9x32xf32> to vector<1x32xf32>
      %342 = vector.broadcast %275 : vector<26x1xf32> to vector<26x32xf32>
      %343 = vector.broadcast %341 : vector<1x32xf32> to vector<26x32xf32>
      %344 = arith.mulf %342, %343 : vector<26x32xf32>
      %345 = arith.addf %340, %344 : vector<26x32xf32>
      %346 = vector.extract_strided_slice %0 {offsets = [3, 0], sizes = [1, 32], strides = [1, 1]} : vector<9x32xf32> to vector<1x32xf32>
      %347 = vector.broadcast %276 : vector<26x1xf32> to vector<26x32xf32>
      %348 = vector.broadcast %346 : vector<1x32xf32> to vector<26x32xf32>
      %349 = arith.mulf %347, %348 : vector<26x32xf32>
      %350 = arith.addf %345, %349 : vector<26x32xf32>
      %351 = vector.extract_strided_slice %0 {offsets = [4, 0], sizes = [1, 32], strides = [1, 1]} : vector<9x32xf32> to vector<1x32xf32>
      %352 = vector.broadcast %277 : vector<26x1xf32> to vector<26x32xf32>
      %353 = vector.broadcast %351 : vector<1x32xf32> to vector<26x32xf32>
      %354 = arith.mulf %352, %353 : vector<26x32xf32>
      %355 = arith.addf %350, %354 : vector<26x32xf32>
      %356 = vector.extract_strided_slice %0 {offsets = [5, 0], sizes = [1, 32], strides = [1, 1]} : vector<9x32xf32> to vector<1x32xf32>
      %357 = vector.broadcast %278 : vector<26x1xf32> to vector<26x32xf32>
      %358 = vector.broadcast %356 : vector<1x32xf32> to vector<26x32xf32>
      %359 = arith.mulf %357, %358 : vector<26x32xf32>
      %360 = arith.addf %355, %359 : vector<26x32xf32>
      %361 = vector.extract_strided_slice %0 {offsets = [6, 0], sizes = [1, 32], strides = [1, 1]} : vector<9x32xf32> to vector<1x32xf32>
      %362 = vector.broadcast %279 : vector<26x1xf32> to vector<26x32xf32>
      %363 = vector.broadcast %361 : vector<1x32xf32> to vector<26x32xf32>
      %364 = arith.mulf %362, %363 : vector<26x32xf32>
      %365 = arith.addf %360, %364 : vector<26x32xf32>
      %366 = vector.extract_strided_slice %0 {offsets = [7, 0], sizes = [1, 32], strides = [1, 1]} : vector<9x32xf32> to vector<1x32xf32>
      %367 = vector.broadcast %280 : vector<26x1xf32> to vector<26x32xf32>
      %368 = vector.broadcast %366 : vector<1x32xf32> to vector<26x32xf32>
      %369 = arith.mulf %367, %368 : vector<26x32xf32>
      %370 = arith.addf %365, %369 : vector<26x32xf32>
      %371 = vector.extract_strided_slice %0 {offsets = [8, 0], sizes = [1, 32], strides = [1, 1]} : vector<9x32xf32> to vector<1x32xf32>
      %372 = vector.broadcast %281 : vector<26x1xf32> to vector<26x32xf32>
      %373 = vector.broadcast %371 : vector<1x32xf32> to vector<26x32xf32>
      %374 = arith.mulf %372, %373 : vector<26x32xf32>
      %375 = arith.addf %370, %374 : vector<26x32xf32>
      %cst_36 = arith.constant 0.000000e+00 : f32
      %376 = vector.broadcast %cst_36 : f32 to vector<26x32xf32>
      %377 = arith.maximumf %375, %376 : vector<26x32xf32>
      %378 = arith.maximumf %329, %377 : vector<26x32xf32>
      %379 = vector.extract_strided_slice %378 {offsets = [0, 0], sizes = [25, 32], strides = [1, 1]} : vector<26x32xf32> to vector<25x32xf32>
      %380 = vector.extract_strided_slice %378 {offsets = [1, 0], sizes = [25, 32], strides = [1, 1]} : vector<26x32xf32> to vector<25x32xf32>
      %381 = arith.maximumf %379, %380 : vector<25x32xf32>
      %cst_37 = arith.constant dense<0.000000e+00> : vector<13x32xf32>
      %382 = tpu.matmul %4, %381, %cst_37 {dimension_numbers = #tpu.dot_dimension_numbers<[1], [0], [0], [1], [0, 0, 1, 1], [], []>} : vector<13x25xf32>, vector<25x32xf32>, vector<13x32xf32> -> vector<13x32xf32>
      %383 = vector.extract_strided_slice %382 {offsets = [0, 0], sizes = [11, 32], strides = [1, 1]} : vector<13x32xf32> to vector<11x32xf32>
      %384 = vector.extract_strided_slice %382 {offsets = [1, 0], sizes = [11, 32], strides = [1, 1]} : vector<13x32xf32> to vector<11x32xf32>
      %385 = vector.extract_strided_slice %382 {offsets = [2, 0], sizes = [11, 32], strides = [1, 1]} : vector<13x32xf32> to vector<11x32xf32>
      %386 = tpu.concatenate %383, %384, %385 in 1 : vector<11x32xf32>, vector<11x32xf32>, vector<11x32xf32> -> vector<11x96xf32>
      %387 = vector.extract_strided_slice %35 {offsets = [0, 6], sizes = [26, 1], strides = [1, 1]} : vector<28x28xf32> to vector<26x1xf32>
      %388 = vector.extract_strided_slice %35 {offsets = [1, 6], sizes = [26, 1], strides = [1, 1]} : vector<28x28xf32> to vector<26x1xf32>
      %389 = vector.extract_strided_slice %35 {offsets = [2, 6], sizes = [26, 1], strides = [1, 1]} : vector<28x28xf32> to vector<26x1xf32>
      %390 = vector.extract_strided_slice %35 {offsets = [0, 7], sizes = [26, 1], strides = [1, 1]} : vector<28x28xf32> to vector<26x1xf32>
      %391 = vector.extract_strided_slice %35 {offsets = [1, 7], sizes = [26, 1], strides = [1, 1]} : vector<28x28xf32> to vector<26x1xf32>
      %392 = vector.extract_strided_slice %35 {offsets = [2, 7], sizes = [26, 1], strides = [1, 1]} : vector<28x28xf32> to vector<26x1xf32>
      %393 = vector.extract_strided_slice %35 {offsets = [0, 8], sizes = [26, 1], strides = [1, 1]} : vector<28x28xf32> to vector<26x1xf32>
      %394 = vector.extract_strided_slice %35 {offsets = [1, 8], sizes = [26, 1], strides = [1, 1]} : vector<28x28xf32> to vector<26x1xf32>
      %395 = vector.extract_strided_slice %35 {offsets = [2, 8], sizes = [26, 1], strides = [1, 1]} : vector<28x28xf32> to vector<26x1xf32>
      %396 = vector.extract_strided_slice %35 {offsets = [0, 9], sizes = [26, 1], strides = [1, 1]} : vector<28x28xf32> to vector<26x1xf32>
      %397 = vector.extract_strided_slice %35 {offsets = [1, 9], sizes = [26, 1], strides = [1, 1]} : vector<28x28xf32> to vector<26x1xf32>
      %398 = vector.extract_strided_slice %35 {offsets = [2, 9], sizes = [26, 1], strides = [1, 1]} : vector<28x28xf32> to vector<26x1xf32>
      %399 = vector.extract_strided_slice %0 {offsets = [0, 0], sizes = [1, 32], strides = [1, 1]} : vector<9x32xf32> to vector<1x32xf32>
      %400 = vector.broadcast %387 : vector<26x1xf32> to vector<26x32xf32>
      %401 = vector.broadcast %399 : vector<1x32xf32> to vector<26x32xf32>
      %402 = arith.mulf %400, %401 : vector<26x32xf32>
      %403 = vector.broadcast %1 : vector<1x32xf32> to vector<26x32xf32>
      %404 = arith.addf %403, %402 : vector<26x32xf32>
      %405 = vector.extract_strided_slice %0 {offsets = [1, 0], sizes = [1, 32], strides = [1, 1]} : vector<9x32xf32> to vector<1x32xf32>
      %406 = vector.broadcast %388 : vector<26x1xf32> to vector<26x32xf32>
      %407 = vector.broadcast %405 : vector<1x32xf32> to vector<26x32xf32>
      %408 = arith.mulf %406, %407 : vector<26x32xf32>
      %409 = arith.addf %404, %408 : vector<26x32xf32>
      %410 = vector.extract_strided_slice %0 {offsets = [2, 0], sizes = [1, 32], strides = [1, 1]} : vector<9x32xf32> to vector<1x32xf32>
      %411 = vector.broadcast %389 : vector<26x1xf32> to vector<26x32xf32>
      %412 = vector.broadcast %410 : vector<1x32xf32> to vector<26x32xf32>
      %413 = arith.mulf %411, %412 : vector<26x32xf32>
      %414 = arith.addf %409, %413 : vector<26x32xf32>
      %415 = vector.extract_strided_slice %0 {offsets = [3, 0], sizes = [1, 32], strides = [1, 1]} : vector<9x32xf32> to vector<1x32xf32>
      %416 = vector.broadcast %390 : vector<26x1xf32> to vector<26x32xf32>
      %417 = vector.broadcast %415 : vector<1x32xf32> to vector<26x32xf32>
      %418 = arith.mulf %416, %417 : vector<26x32xf32>
      %419 = arith.addf %414, %418 : vector<26x32xf32>
      %420 = vector.extract_strided_slice %0 {offsets = [4, 0], sizes = [1, 32], strides = [1, 1]} : vector<9x32xf32> to vector<1x32xf32>
      %421 = vector.broadcast %391 : vector<26x1xf32> to vector<26x32xf32>
      %422 = vector.broadcast %420 : vector<1x32xf32> to vector<26x32xf32>
      %423 = arith.mulf %421, %422 : vector<26x32xf32>
      %424 = arith.addf %419, %423 : vector<26x32xf32>
      %425 = vector.extract_strided_slice %0 {offsets = [5, 0], sizes = [1, 32], strides = [1, 1]} : vector<9x32xf32> to vector<1x32xf32>
      %426 = vector.broadcast %392 : vector<26x1xf32> to vector<26x32xf32>
      %427 = vector.broadcast %425 : vector<1x32xf32> to vector<26x32xf32>
      %428 = arith.mulf %426, %427 : vector<26x32xf32>
      %429 = arith.addf %424, %428 : vector<26x32xf32>
      %430 = vector.extract_strided_slice %0 {offsets = [6, 0], sizes = [1, 32], strides = [1, 1]} : vector<9x32xf32> to vector<1x32xf32>
      %431 = vector.broadcast %393 : vector<26x1xf32> to vector<26x32xf32>
      %432 = vector.broadcast %430 : vector<1x32xf32> to vector<26x32xf32>
      %433 = arith.mulf %431, %432 : vector<26x32xf32>
      %434 = arith.addf %429, %433 : vector<26x32xf32>
      %435 = vector.extract_strided_slice %0 {offsets = [7, 0], sizes = [1, 32], strides = [1, 1]} : vector<9x32xf32> to vector<1x32xf32>
      %436 = vector.broadcast %394 : vector<26x1xf32> to vector<26x32xf32>
      %437 = vector.broadcast %435 : vector<1x32xf32> to vector<26x32xf32>
      %438 = arith.mulf %436, %437 : vector<26x32xf32>
      %439 = arith.addf %434, %438 : vector<26x32xf32>
      %440 = vector.extract_strided_slice %0 {offsets = [8, 0], sizes = [1, 32], strides = [1, 1]} : vector<9x32xf32> to vector<1x32xf32>
      %441 = vector.broadcast %395 : vector<26x1xf32> to vector<26x32xf32>
      %442 = vector.broadcast %440 : vector<1x32xf32> to vector<26x32xf32>
      %443 = arith.mulf %441, %442 : vector<26x32xf32>
      %444 = arith.addf %439, %443 : vector<26x32xf32>
      %cst_38 = arith.constant 0.000000e+00 : f32
      %445 = vector.broadcast %cst_38 : f32 to vector<26x32xf32>
      %446 = arith.maximumf %444, %445 : vector<26x32xf32>
      %447 = vector.extract_strided_slice %0 {offsets = [0, 0], sizes = [1, 32], strides = [1, 1]} : vector<9x32xf32> to vector<1x32xf32>
      %448 = vector.broadcast %390 : vector<26x1xf32> to vector<26x32xf32>
      %449 = vector.broadcast %447 : vector<1x32xf32> to vector<26x32xf32>
      %450 = arith.mulf %448, %449 : vector<26x32xf32>
      %451 = vector.broadcast %1 : vector<1x32xf32> to vector<26x32xf32>
      %452 = arith.addf %451, %450 : vector<26x32xf32>
      %453 = vector.extract_strided_slice %0 {offsets = [1, 0], sizes = [1, 32], strides = [1, 1]} : vector<9x32xf32> to vector<1x32xf32>
      %454 = vector.broadcast %391 : vector<26x1xf32> to vector<26x32xf32>
      %455 = vector.broadcast %453 : vector<1x32xf32> to vector<26x32xf32>
      %456 = arith.mulf %454, %455 : vector<26x32xf32>
      %457 = arith.addf %452, %456 : vector<26x32xf32>
      %458 = vector.extract_strided_slice %0 {offsets = [2, 0], sizes = [1, 32], strides = [1, 1]} : vector<9x32xf32> to vector<1x32xf32>
      %459 = vector.broadcast %392 : vector<26x1xf32> to vector<26x32xf32>
      %460 = vector.broadcast %458 : vector<1x32xf32> to vector<26x32xf32>
      %461 = arith.mulf %459, %460 : vector<26x32xf32>
      %462 = arith.addf %457, %461 : vector<26x32xf32>
      %463 = vector.extract_strided_slice %0 {offsets = [3, 0], sizes = [1, 32], strides = [1, 1]} : vector<9x32xf32> to vector<1x32xf32>
      %464 = vector.broadcast %393 : vector<26x1xf32> to vector<26x32xf32>
      %465 = vector.broadcast %463 : vector<1x32xf32> to vector<26x32xf32>
      %466 = arith.mulf %464, %465 : vector<26x32xf32>
      %467 = arith.addf %462, %466 : vector<26x32xf32>
      %468 = vector.extract_strided_slice %0 {offsets = [4, 0], sizes = [1, 32], strides = [1, 1]} : vector<9x32xf32> to vector<1x32xf32>
      %469 = vector.broadcast %394 : vector<26x1xf32> to vector<26x32xf32>
      %470 = vector.broadcast %468 : vector<1x32xf32> to vector<26x32xf32>
      %471 = arith.mulf %469, %470 : vector<26x32xf32>
      %472 = arith.addf %467, %471 : vector<26x32xf32>
      %473 = vector.extract_strided_slice %0 {offsets = [5, 0], sizes = [1, 32], strides = [1, 1]} : vector<9x32xf32> to vector<1x32xf32>
      %474 = vector.broadcast %395 : vector<26x1xf32> to vector<26x32xf32>
      %475 = vector.broadcast %473 : vector<1x32xf32> to vector<26x32xf32>
      %476 = arith.mulf %474, %475 : vector<26x32xf32>
      %477 = arith.addf %472, %476 : vector<26x32xf32>
      %478 = vector.extract_strided_slice %0 {offsets = [6, 0], sizes = [1, 32], strides = [1, 1]} : vector<9x32xf32> to vector<1x32xf32>
      %479 = vector.broadcast %396 : vector<26x1xf32> to vector<26x32xf32>
      %480 = vector.broadcast %478 : vector<1x32xf32> to vector<26x32xf32>
      %481 = arith.mulf %479, %480 : vector<26x32xf32>
      %482 = arith.addf %477, %481 : vector<26x32xf32>
      %483 = vector.extract_strided_slice %0 {offsets = [7, 0], sizes = [1, 32], strides = [1, 1]} : vector<9x32xf32> to vector<1x32xf32>
      %484 = vector.broadcast %397 : vector<26x1xf32> to vector<26x32xf32>
      %485 = vector.broadcast %483 : vector<1x32xf32> to vector<26x32xf32>
      %486 = arith.mulf %484, %485 : vector<26x32xf32>
      %487 = arith.addf %482, %486 : vector<26x32xf32>
      %488 = vector.extract_strided_slice %0 {offsets = [8, 0], sizes = [1, 32], strides = [1, 1]} : vector<9x32xf32> to vector<1x32xf32>
      %489 = vector.broadcast %398 : vector<26x1xf32> to vector<26x32xf32>
      %490 = vector.broadcast %488 : vector<1x32xf32> to vector<26x32xf32>
      %491 = arith.mulf %489, %490 : vector<26x32xf32>
      %492 = arith.addf %487, %491 : vector<26x32xf32>
      %cst_39 = arith.constant 0.000000e+00 : f32
      %493 = vector.broadcast %cst_39 : f32 to vector<26x32xf32>
      %494 = arith.maximumf %492, %493 : vector<26x32xf32>
      %495 = arith.maximumf %446, %494 : vector<26x32xf32>
      %496 = vector.extract_strided_slice %495 {offsets = [0, 0], sizes = [25, 32], strides = [1, 1]} : vector<26x32xf32> to vector<25x32xf32>
      %497 = vector.extract_strided_slice %495 {offsets = [1, 0], sizes = [25, 32], strides = [1, 1]} : vector<26x32xf32> to vector<25x32xf32>
      %498 = arith.maximumf %496, %497 : vector<25x32xf32>
      %cst_40 = arith.constant dense<0.000000e+00> : vector<13x32xf32>
      %499 = tpu.matmul %4, %498, %cst_40 {dimension_numbers = #tpu.dot_dimension_numbers<[1], [0], [0], [1], [0, 0, 1, 1], [], []>} : vector<13x25xf32>, vector<25x32xf32>, vector<13x32xf32> -> vector<13x32xf32>
      %500 = vector.extract_strided_slice %499 {offsets = [0, 0], sizes = [11, 32], strides = [1, 1]} : vector<13x32xf32> to vector<11x32xf32>
      %501 = vector.extract_strided_slice %499 {offsets = [1, 0], sizes = [11, 32], strides = [1, 1]} : vector<13x32xf32> to vector<11x32xf32>
      %502 = vector.extract_strided_slice %499 {offsets = [2, 0], sizes = [11, 32], strides = [1, 1]} : vector<13x32xf32> to vector<11x32xf32>
      %503 = tpu.concatenate %500, %501, %502 in 1 : vector<11x32xf32>, vector<11x32xf32>, vector<11x32xf32> -> vector<11x96xf32>
      %504 = vector.extract_strided_slice %35 {offsets = [0, 8], sizes = [26, 1], strides = [1, 1]} : vector<28x28xf32> to vector<26x1xf32>
      %505 = vector.extract_strided_slice %35 {offsets = [1, 8], sizes = [26, 1], strides = [1, 1]} : vector<28x28xf32> to vector<26x1xf32>
      %506 = vector.extract_strided_slice %35 {offsets = [2, 8], sizes = [26, 1], strides = [1, 1]} : vector<28x28xf32> to vector<26x1xf32>
      %507 = vector.extract_strided_slice %35 {offsets = [0, 9], sizes = [26, 1], strides = [1, 1]} : vector<28x28xf32> to vector<26x1xf32>
      %508 = vector.extract_strided_slice %35 {offsets = [1, 9], sizes = [26, 1], strides = [1, 1]} : vector<28x28xf32> to vector<26x1xf32>
      %509 = vector.extract_strided_slice %35 {offsets = [2, 9], sizes = [26, 1], strides = [1, 1]} : vector<28x28xf32> to vector<26x1xf32>
      %510 = vector.extract_strided_slice %35 {offsets = [0, 10], sizes = [26, 1], strides = [1, 1]} : vector<28x28xf32> to vector<26x1xf32>
      %511 = vector.extract_strided_slice %35 {offsets = [1, 10], sizes = [26, 1], strides = [1, 1]} : vector<28x28xf32> to vector<26x1xf32>
      %512 = vector.extract_strided_slice %35 {offsets = [2, 10], sizes = [26, 1], strides = [1, 1]} : vector<28x28xf32> to vector<26x1xf32>
      %513 = vector.extract_strided_slice %35 {offsets = [0, 11], sizes = [26, 1], strides = [1, 1]} : vector<28x28xf32> to vector<26x1xf32>
      %514 = vector.extract_strided_slice %35 {offsets = [1, 11], sizes = [26, 1], strides = [1, 1]} : vector<28x28xf32> to vector<26x1xf32>
      %515 = vector.extract_strided_slice %35 {offsets = [2, 11], sizes = [26, 1], strides = [1, 1]} : vector<28x28xf32> to vector<26x1xf32>
      %516 = vector.extract_strided_slice %0 {offsets = [0, 0], sizes = [1, 32], strides = [1, 1]} : vector<9x32xf32> to vector<1x32xf32>
      %517 = vector.broadcast %504 : vector<26x1xf32> to vector<26x32xf32>
      %518 = vector.broadcast %516 : vector<1x32xf32> to vector<26x32xf32>
      %519 = arith.mulf %517, %518 : vector<26x32xf32>
      %520 = vector.broadcast %1 : vector<1x32xf32> to vector<26x32xf32>
      %521 = arith.addf %520, %519 : vector<26x32xf32>
      %522 = vector.extract_strided_slice %0 {offsets = [1, 0], sizes = [1, 32], strides = [1, 1]} : vector<9x32xf32> to vector<1x32xf32>
      %523 = vector.broadcast %505 : vector<26x1xf32> to vector<26x32xf32>
      %524 = vector.broadcast %522 : vector<1x32xf32> to vector<26x32xf32>
      %525 = arith.mulf %523, %524 : vector<26x32xf32>
      %526 = arith.addf %521, %525 : vector<26x32xf32>
      %527 = vector.extract_strided_slice %0 {offsets = [2, 0], sizes = [1, 32], strides = [1, 1]} : vector<9x32xf32> to vector<1x32xf32>
      %528 = vector.broadcast %506 : vector<26x1xf32> to vector<26x32xf32>
      %529 = vector.broadcast %527 : vector<1x32xf32> to vector<26x32xf32>
      %530 = arith.mulf %528, %529 : vector<26x32xf32>
      %531 = arith.addf %526, %530 : vector<26x32xf32>
      %532 = vector.extract_strided_slice %0 {offsets = [3, 0], sizes = [1, 32], strides = [1, 1]} : vector<9x32xf32> to vector<1x32xf32>
      %533 = vector.broadcast %507 : vector<26x1xf32> to vector<26x32xf32>
      %534 = vector.broadcast %532 : vector<1x32xf32> to vector<26x32xf32>
      %535 = arith.mulf %533, %534 : vector<26x32xf32>
      %536 = arith.addf %531, %535 : vector<26x32xf32>
      %537 = vector.extract_strided_slice %0 {offsets = [4, 0], sizes = [1, 32], strides = [1, 1]} : vector<9x32xf32> to vector<1x32xf32>
      %538 = vector.broadcast %508 : vector<26x1xf32> to vector<26x32xf32>
      %539 = vector.broadcast %537 : vector<1x32xf32> to vector<26x32xf32>
      %540 = arith.mulf %538, %539 : vector<26x32xf32>
      %541 = arith.addf %536, %540 : vector<26x32xf32>
      %542 = vector.extract_strided_slice %0 {offsets = [5, 0], sizes = [1, 32], strides = [1, 1]} : vector<9x32xf32> to vector<1x32xf32>
      %543 = vector.broadcast %509 : vector<26x1xf32> to vector<26x32xf32>
      %544 = vector.broadcast %542 : vector<1x32xf32> to vector<26x32xf32>
      %545 = arith.mulf %543, %544 : vector<26x32xf32>
      %546 = arith.addf %541, %545 : vector<26x32xf32>
      %547 = vector.extract_strided_slice %0 {offsets = [6, 0], sizes = [1, 32], strides = [1, 1]} : vector<9x32xf32> to vector<1x32xf32>
      %548 = vector.broadcast %510 : vector<26x1xf32> to vector<26x32xf32>
      %549 = vector.broadcast %547 : vector<1x32xf32> to vector<26x32xf32>
      %550 = arith.mulf %548, %549 : vector<26x32xf32>
      %551 = arith.addf %546, %550 : vector<26x32xf32>
      %552 = vector.extract_strided_slice %0 {offsets = [7, 0], sizes = [1, 32], strides = [1, 1]} : vector<9x32xf32> to vector<1x32xf32>
      %553 = vector.broadcast %511 : vector<26x1xf32> to vector<26x32xf32>
      %554 = vector.broadcast %552 : vector<1x32xf32> to vector<26x32xf32>
      %555 = arith.mulf %553, %554 : vector<26x32xf32>
      %556 = arith.addf %551, %555 : vector<26x32xf32>
      %557 = vector.extract_strided_slice %0 {offsets = [8, 0], sizes = [1, 32], strides = [1, 1]} : vector<9x32xf32> to vector<1x32xf32>
      %558 = vector.broadcast %512 : vector<26x1xf32> to vector<26x32xf32>
      %559 = vector.broadcast %557 : vector<1x32xf32> to vector<26x32xf32>
      %560 = arith.mulf %558, %559 : vector<26x32xf32>
      %561 = arith.addf %556, %560 : vector<26x32xf32>
      %cst_41 = arith.constant 0.000000e+00 : f32
      %562 = vector.broadcast %cst_41 : f32 to vector<26x32xf32>
      %563 = arith.maximumf %561, %562 : vector<26x32xf32>
      %564 = vector.extract_strided_slice %0 {offsets = [0, 0], sizes = [1, 32], strides = [1, 1]} : vector<9x32xf32> to vector<1x32xf32>
      %565 = vector.broadcast %507 : vector<26x1xf32> to vector<26x32xf32>
      %566 = vector.broadcast %564 : vector<1x32xf32> to vector<26x32xf32>
      %567 = arith.mulf %565, %566 : vector<26x32xf32>
      %568 = vector.broadcast %1 : vector<1x32xf32> to vector<26x32xf32>
      %569 = arith.addf %568, %567 : vector<26x32xf32>
      %570 = vector.extract_strided_slice %0 {offsets = [1, 0], sizes = [1, 32], strides = [1, 1]} : vector<9x32xf32> to vector<1x32xf32>
      %571 = vector.broadcast %508 : vector<26x1xf32> to vector<26x32xf32>
      %572 = vector.broadcast %570 : vector<1x32xf32> to vector<26x32xf32>
      %573 = arith.mulf %571, %572 : vector<26x32xf32>
      %574 = arith.addf %569, %573 : vector<26x32xf32>
      %575 = vector.extract_strided_slice %0 {offsets = [2, 0], sizes = [1, 32], strides = [1, 1]} : vector<9x32xf32> to vector<1x32xf32>
      %576 = vector.broadcast %509 : vector<26x1xf32> to vector<26x32xf32>
      %577 = vector.broadcast %575 : vector<1x32xf32> to vector<26x32xf32>
      %578 = arith.mulf %576, %577 : vector<26x32xf32>
      %579 = arith.addf %574, %578 : vector<26x32xf32>
      %580 = vector.extract_strided_slice %0 {offsets = [3, 0], sizes = [1, 32], strides = [1, 1]} : vector<9x32xf32> to vector<1x32xf32>
      %581 = vector.broadcast %510 : vector<26x1xf32> to vector<26x32xf32>
      %582 = vector.broadcast %580 : vector<1x32xf32> to vector<26x32xf32>
      %583 = arith.mulf %581, %582 : vector<26x32xf32>
      %584 = arith.addf %579, %583 : vector<26x32xf32>
      %585 = vector.extract_strided_slice %0 {offsets = [4, 0], sizes = [1, 32], strides = [1, 1]} : vector<9x32xf32> to vector<1x32xf32>
      %586 = vector.broadcast %511 : vector<26x1xf32> to vector<26x32xf32>
      %587 = vector.broadcast %585 : vector<1x32xf32> to vector<26x32xf32>
      %588 = arith.mulf %586, %587 : vector<26x32xf32>
      %589 = arith.addf %584, %588 : vector<26x32xf32>
      %590 = vector.extract_strided_slice %0 {offsets = [5, 0], sizes = [1, 32], strides = [1, 1]} : vector<9x32xf32> to vector<1x32xf32>
      %591 = vector.broadcast %512 : vector<26x1xf32> to vector<26x32xf32>
      %592 = vector.broadcast %590 : vector<1x32xf32> to vector<26x32xf32>
      %593 = arith.mulf %591, %592 : vector<26x32xf32>
      %594 = arith.addf %589, %593 : vector<26x32xf32>
      %595 = vector.extract_strided_slice %0 {offsets = [6, 0], sizes = [1, 32], strides = [1, 1]} : vector<9x32xf32> to vector<1x32xf32>
      %596 = vector.broadcast %513 : vector<26x1xf32> to vector<26x32xf32>
      %597 = vector.broadcast %595 : vector<1x32xf32> to vector<26x32xf32>
      %598 = arith.mulf %596, %597 : vector<26x32xf32>
      %599 = arith.addf %594, %598 : vector<26x32xf32>
      %600 = vector.extract_strided_slice %0 {offsets = [7, 0], sizes = [1, 32], strides = [1, 1]} : vector<9x32xf32> to vector<1x32xf32>
      %601 = vector.broadcast %514 : vector<26x1xf32> to vector<26x32xf32>
      %602 = vector.broadcast %600 : vector<1x32xf32> to vector<26x32xf32>
      %603 = arith.mulf %601, %602 : vector<26x32xf32>
      %604 = arith.addf %599, %603 : vector<26x32xf32>
      %605 = vector.extract_strided_slice %0 {offsets = [8, 0], sizes = [1, 32], strides = [1, 1]} : vector<9x32xf32> to vector<1x32xf32>
      %606 = vector.broadcast %515 : vector<26x1xf32> to vector<26x32xf32>
      %607 = vector.broadcast %605 : vector<1x32xf32> to vector<26x32xf32>
      %608 = arith.mulf %606, %607 : vector<26x32xf32>
      %609 = arith.addf %604, %608 : vector<26x32xf32>
      %cst_42 = arith.constant 0.000000e+00 : f32
      %610 = vector.broadcast %cst_42 : f32 to vector<26x32xf32>
      %611 = arith.maximumf %609, %610 : vector<26x32xf32>
      %612 = arith.maximumf %563, %611 : vector<26x32xf32>
      %613 = vector.extract_strided_slice %612 {offsets = [0, 0], sizes = [25, 32], strides = [1, 1]} : vector<26x32xf32> to vector<25x32xf32>
      %614 = vector.extract_strided_slice %612 {offsets = [1, 0], sizes = [25, 32], strides = [1, 1]} : vector<26x32xf32> to vector<25x32xf32>
      %615 = arith.maximumf %613, %614 : vector<25x32xf32>
      %cst_43 = arith.constant dense<0.000000e+00> : vector<13x32xf32>
      %616 = tpu.matmul %4, %615, %cst_43 {dimension_numbers = #tpu.dot_dimension_numbers<[1], [0], [0], [1], [0, 0, 1, 1], [], []>} : vector<13x25xf32>, vector<25x32xf32>, vector<13x32xf32> -> vector<13x32xf32>
      %617 = vector.extract_strided_slice %616 {offsets = [0, 0], sizes = [11, 32], strides = [1, 1]} : vector<13x32xf32> to vector<11x32xf32>
      %618 = vector.extract_strided_slice %616 {offsets = [1, 0], sizes = [11, 32], strides = [1, 1]} : vector<13x32xf32> to vector<11x32xf32>
      %619 = vector.extract_strided_slice %616 {offsets = [2, 0], sizes = [11, 32], strides = [1, 1]} : vector<13x32xf32> to vector<11x32xf32>
      %620 = tpu.concatenate %617, %618, %619 in 1 : vector<11x32xf32>, vector<11x32xf32>, vector<11x32xf32> -> vector<11x96xf32>
      %621 = vector.extract_strided_slice %35 {offsets = [0, 10], sizes = [26, 1], strides = [1, 1]} : vector<28x28xf32> to vector<26x1xf32>
      %622 = vector.extract_strided_slice %35 {offsets = [1, 10], sizes = [26, 1], strides = [1, 1]} : vector<28x28xf32> to vector<26x1xf32>
      %623 = vector.extract_strided_slice %35 {offsets = [2, 10], sizes = [26, 1], strides = [1, 1]} : vector<28x28xf32> to vector<26x1xf32>
      %624 = vector.extract_strided_slice %35 {offsets = [0, 11], sizes = [26, 1], strides = [1, 1]} : vector<28x28xf32> to vector<26x1xf32>
      %625 = vector.extract_strided_slice %35 {offsets = [1, 11], sizes = [26, 1], strides = [1, 1]} : vector<28x28xf32> to vector<26x1xf32>
      %626 = vector.extract_strided_slice %35 {offsets = [2, 11], sizes = [26, 1], strides = [1, 1]} : vector<28x28xf32> to vector<26x1xf32>
      %627 = vector.extract_strided_slice %35 {offsets = [0, 12], sizes = [26, 1], strides = [1, 1]} : vector<28x28xf32> to vector<26x1xf32>
      %628 = vector.extract_strided_slice %35 {offsets = [1, 12], sizes = [26, 1], strides = [1, 1]} : vector<28x28xf32> to vector<26x1xf32>
      %629 = vector.extract_strided_slice %35 {offsets = [2, 12], sizes = [26, 1], strides = [1, 1]} : vector<28x28xf32> to vector<26x1xf32>
      %630 = vector.extract_strided_slice %35 {offsets = [0, 13], sizes = [26, 1], strides = [1, 1]} : vector<28x28xf32> to vector<26x1xf32>
      %631 = vector.extract_strided_slice %35 {offsets = [1, 13], sizes = [26, 1], strides = [1, 1]} : vector<28x28xf32> to vector<26x1xf32>
      %632 = vector.extract_strided_slice %35 {offsets = [2, 13], sizes = [26, 1], strides = [1, 1]} : vector<28x28xf32> to vector<26x1xf32>
      %633 = vector.extract_strided_slice %0 {offsets = [0, 0], sizes = [1, 32], strides = [1, 1]} : vector<9x32xf32> to vector<1x32xf32>
      %634 = vector.broadcast %621 : vector<26x1xf32> to vector<26x32xf32>
      %635 = vector.broadcast %633 : vector<1x32xf32> to vector<26x32xf32>
      %636 = arith.mulf %634, %635 : vector<26x32xf32>
      %637 = vector.broadcast %1 : vector<1x32xf32> to vector<26x32xf32>
      %638 = arith.addf %637, %636 : vector<26x32xf32>
      %639 = vector.extract_strided_slice %0 {offsets = [1, 0], sizes = [1, 32], strides = [1, 1]} : vector<9x32xf32> to vector<1x32xf32>
      %640 = vector.broadcast %622 : vector<26x1xf32> to vector<26x32xf32>
      %641 = vector.broadcast %639 : vector<1x32xf32> to vector<26x32xf32>
      %642 = arith.mulf %640, %641 : vector<26x32xf32>
      %643 = arith.addf %638, %642 : vector<26x32xf32>
      %644 = vector.extract_strided_slice %0 {offsets = [2, 0], sizes = [1, 32], strides = [1, 1]} : vector<9x32xf32> to vector<1x32xf32>
      %645 = vector.broadcast %623 : vector<26x1xf32> to vector<26x32xf32>
      %646 = vector.broadcast %644 : vector<1x32xf32> to vector<26x32xf32>
      %647 = arith.mulf %645, %646 : vector<26x32xf32>
      %648 = arith.addf %643, %647 : vector<26x32xf32>
      %649 = vector.extract_strided_slice %0 {offsets = [3, 0], sizes = [1, 32], strides = [1, 1]} : vector<9x32xf32> to vector<1x32xf32>
      %650 = vector.broadcast %624 : vector<26x1xf32> to vector<26x32xf32>
      %651 = vector.broadcast %649 : vector<1x32xf32> to vector<26x32xf32>
      %652 = arith.mulf %650, %651 : vector<26x32xf32>
      %653 = arith.addf %648, %652 : vector<26x32xf32>
      %654 = vector.extract_strided_slice %0 {offsets = [4, 0], sizes = [1, 32], strides = [1, 1]} : vector<9x32xf32> to vector<1x32xf32>
      %655 = vector.broadcast %625 : vector<26x1xf32> to vector<26x32xf32>
      %656 = vector.broadcast %654 : vector<1x32xf32> to vector<26x32xf32>
      %657 = arith.mulf %655, %656 : vector<26x32xf32>
      %658 = arith.addf %653, %657 : vector<26x32xf32>
      %659 = vector.extract_strided_slice %0 {offsets = [5, 0], sizes = [1, 32], strides = [1, 1]} : vector<9x32xf32> to vector<1x32xf32>
      %660 = vector.broadcast %626 : vector<26x1xf32> to vector<26x32xf32>
      %661 = vector.broadcast %659 : vector<1x32xf32> to vector<26x32xf32>
      %662 = arith.mulf %660, %661 : vector<26x32xf32>
      %663 = arith.addf %658, %662 : vector<26x32xf32>
      %664 = vector.extract_strided_slice %0 {offsets = [6, 0], sizes = [1, 32], strides = [1, 1]} : vector<9x32xf32> to vector<1x32xf32>
      %665 = vector.broadcast %627 : vector<26x1xf32> to vector<26x32xf32>
      %666 = vector.broadcast %664 : vector<1x32xf32> to vector<26x32xf32>
      %667 = arith.mulf %665, %666 : vector<26x32xf32>
      %668 = arith.addf %663, %667 : vector<26x32xf32>
      %669 = vector.extract_strided_slice %0 {offsets = [7, 0], sizes = [1, 32], strides = [1, 1]} : vector<9x32xf32> to vector<1x32xf32>
      %670 = vector.broadcast %628 : vector<26x1xf32> to vector<26x32xf32>
      %671 = vector.broadcast %669 : vector<1x32xf32> to vector<26x32xf32>
      %672 = arith.mulf %670, %671 : vector<26x32xf32>
      %673 = arith.addf %668, %672 : vector<26x32xf32>
      %674 = vector.extract_strided_slice %0 {offsets = [8, 0], sizes = [1, 32], strides = [1, 1]} : vector<9x32xf32> to vector<1x32xf32>
      %675 = vector.broadcast %629 : vector<26x1xf32> to vector<26x32xf32>
      %676 = vector.broadcast %674 : vector<1x32xf32> to vector<26x32xf32>
      %677 = arith.mulf %675, %676 : vector<26x32xf32>
      %678 = arith.addf %673, %677 : vector<26x32xf32>
      %cst_44 = arith.constant 0.000000e+00 : f32
      %679 = vector.broadcast %cst_44 : f32 to vector<26x32xf32>
      %680 = arith.maximumf %678, %679 : vector<26x32xf32>
      %681 = vector.extract_strided_slice %0 {offsets = [0, 0], sizes = [1, 32], strides = [1, 1]} : vector<9x32xf32> to vector<1x32xf32>
      %682 = vector.broadcast %624 : vector<26x1xf32> to vector<26x32xf32>
      %683 = vector.broadcast %681 : vector<1x32xf32> to vector<26x32xf32>
      %684 = arith.mulf %682, %683 : vector<26x32xf32>
      %685 = vector.broadcast %1 : vector<1x32xf32> to vector<26x32xf32>
      %686 = arith.addf %685, %684 : vector<26x32xf32>
      %687 = vector.extract_strided_slice %0 {offsets = [1, 0], sizes = [1, 32], strides = [1, 1]} : vector<9x32xf32> to vector<1x32xf32>
      %688 = vector.broadcast %625 : vector<26x1xf32> to vector<26x32xf32>
      %689 = vector.broadcast %687 : vector<1x32xf32> to vector<26x32xf32>
      %690 = arith.mulf %688, %689 : vector<26x32xf32>
      %691 = arith.addf %686, %690 : vector<26x32xf32>
      %692 = vector.extract_strided_slice %0 {offsets = [2, 0], sizes = [1, 32], strides = [1, 1]} : vector<9x32xf32> to vector<1x32xf32>
      %693 = vector.broadcast %626 : vector<26x1xf32> to vector<26x32xf32>
      %694 = vector.broadcast %692 : vector<1x32xf32> to vector<26x32xf32>
      %695 = arith.mulf %693, %694 : vector<26x32xf32>
      %696 = arith.addf %691, %695 : vector<26x32xf32>
      %697 = vector.extract_strided_slice %0 {offsets = [3, 0], sizes = [1, 32], strides = [1, 1]} : vector<9x32xf32> to vector<1x32xf32>
      %698 = vector.broadcast %627 : vector<26x1xf32> to vector<26x32xf32>
      %699 = vector.broadcast %697 : vector<1x32xf32> to vector<26x32xf32>
      %700 = arith.mulf %698, %699 : vector<26x32xf32>
      %701 = arith.addf %696, %700 : vector<26x32xf32>
      %702 = vector.extract_strided_slice %0 {offsets = [4, 0], sizes = [1, 32], strides = [1, 1]} : vector<9x32xf32> to vector<1x32xf32>
      %703 = vector.broadcast %628 : vector<26x1xf32> to vector<26x32xf32>
      %704 = vector.broadcast %702 : vector<1x32xf32> to vector<26x32xf32>
      %705 = arith.mulf %703, %704 : vector<26x32xf32>
      %706 = arith.addf %701, %705 : vector<26x32xf32>
      %707 = vector.extract_strided_slice %0 {offsets = [5, 0], sizes = [1, 32], strides = [1, 1]} : vector<9x32xf32> to vector<1x32xf32>
      %708 = vector.broadcast %629 : vector<26x1xf32> to vector<26x32xf32>
      %709 = vector.broadcast %707 : vector<1x32xf32> to vector<26x32xf32>
      %710 = arith.mulf %708, %709 : vector<26x32xf32>
      %711 = arith.addf %706, %710 : vector<26x32xf32>
      %712 = vector.extract_strided_slice %0 {offsets = [6, 0], sizes = [1, 32], strides = [1, 1]} : vector<9x32xf32> to vector<1x32xf32>
      %713 = vector.broadcast %630 : vector<26x1xf32> to vector<26x32xf32>
      %714 = vector.broadcast %712 : vector<1x32xf32> to vector<26x32xf32>
      %715 = arith.mulf %713, %714 : vector<26x32xf32>
      %716 = arith.addf %711, %715 : vector<26x32xf32>
      %717 = vector.extract_strided_slice %0 {offsets = [7, 0], sizes = [1, 32], strides = [1, 1]} : vector<9x32xf32> to vector<1x32xf32>
      %718 = vector.broadcast %631 : vector<26x1xf32> to vector<26x32xf32>
      %719 = vector.broadcast %717 : vector<1x32xf32> to vector<26x32xf32>
      %720 = arith.mulf %718, %719 : vector<26x32xf32>
      %721 = arith.addf %716, %720 : vector<26x32xf32>
      %722 = vector.extract_strided_slice %0 {offsets = [8, 0], sizes = [1, 32], strides = [1, 1]} : vector<9x32xf32> to vector<1x32xf32>
      %723 = vector.broadcast %632 : vector<26x1xf32> to vector<26x32xf32>
      %724 = vector.broadcast %722 : vector<1x32xf32> to vector<26x32xf32>
      %725 = arith.mulf %723, %724 : vector<26x32xf32>
      %726 = arith.addf %721, %725 : vector<26x32xf32>
      %cst_45 = arith.constant 0.000000e+00 : f32
      %727 = vector.broadcast %cst_45 : f32 to vector<26x32xf32>
      %728 = arith.maximumf %726, %727 : vector<26x32xf32>
      %729 = arith.maximumf %680, %728 : vector<26x32xf32>
      %730 = vector.extract_strided_slice %729 {offsets = [0, 0], sizes = [25, 32], strides = [1, 1]} : vector<26x32xf32> to vector<25x32xf32>
      %731 = vector.extract_strided_slice %729 {offsets = [1, 0], sizes = [25, 32], strides = [1, 1]} : vector<26x32xf32> to vector<25x32xf32>
      %732 = arith.maximumf %730, %731 : vector<25x32xf32>
      %cst_46 = arith.constant dense<0.000000e+00> : vector<13x32xf32>
      %733 = tpu.matmul %4, %732, %cst_46 {dimension_numbers = #tpu.dot_dimension_numbers<[1], [0], [0], [1], [0, 0, 1, 1], [], []>} : vector<13x25xf32>, vector<25x32xf32>, vector<13x32xf32> -> vector<13x32xf32>
      %734 = vector.extract_strided_slice %733 {offsets = [0, 0], sizes = [11, 32], strides = [1, 1]} : vector<13x32xf32> to vector<11x32xf32>
      %735 = vector.extract_strided_slice %733 {offsets = [1, 0], sizes = [11, 32], strides = [1, 1]} : vector<13x32xf32> to vector<11x32xf32>
      %736 = vector.extract_strided_slice %733 {offsets = [2, 0], sizes = [11, 32], strides = [1, 1]} : vector<13x32xf32> to vector<11x32xf32>
      %737 = tpu.concatenate %734, %735, %736 in 1 : vector<11x32xf32>, vector<11x32xf32>, vector<11x32xf32> -> vector<11x96xf32>
      %738 = vector.extract_strided_slice %35 {offsets = [0, 12], sizes = [26, 1], strides = [1, 1]} : vector<28x28xf32> to vector<26x1xf32>
      %739 = vector.extract_strided_slice %35 {offsets = [1, 12], sizes = [26, 1], strides = [1, 1]} : vector<28x28xf32> to vector<26x1xf32>
      %740 = vector.extract_strided_slice %35 {offsets = [2, 12], sizes = [26, 1], strides = [1, 1]} : vector<28x28xf32> to vector<26x1xf32>
      %741 = vector.extract_strided_slice %35 {offsets = [0, 13], sizes = [26, 1], strides = [1, 1]} : vector<28x28xf32> to vector<26x1xf32>
      %742 = vector.extract_strided_slice %35 {offsets = [1, 13], sizes = [26, 1], strides = [1, 1]} : vector<28x28xf32> to vector<26x1xf32>
      %743 = vector.extract_strided_slice %35 {offsets = [2, 13], sizes = [26, 1], strides = [1, 1]} : vector<28x28xf32> to vector<26x1xf32>
      %744 = vector.extract_strided_slice %35 {offsets = [0, 14], sizes = [26, 1], strides = [1, 1]} : vector<28x28xf32> to vector<26x1xf32>
      %745 = vector.extract_strided_slice %35 {offsets = [1, 14], sizes = [26, 1], strides = [1, 1]} : vector<28x28xf32> to vector<26x1xf32>
      %746 = vector.extract_strided_slice %35 {offsets = [2, 14], sizes = [26, 1], strides = [1, 1]} : vector<28x28xf32> to vector<26x1xf32>
      %747 = vector.extract_strided_slice %35 {offsets = [0, 15], sizes = [26, 1], strides = [1, 1]} : vector<28x28xf32> to vector<26x1xf32>
      %748 = vector.extract_strided_slice %35 {offsets = [1, 15], sizes = [26, 1], strides = [1, 1]} : vector<28x28xf32> to vector<26x1xf32>
      %749 = vector.extract_strided_slice %35 {offsets = [2, 15], sizes = [26, 1], strides = [1, 1]} : vector<28x28xf32> to vector<26x1xf32>
      %750 = vector.extract_strided_slice %0 {offsets = [0, 0], sizes = [1, 32], strides = [1, 1]} : vector<9x32xf32> to vector<1x32xf32>
      %751 = vector.broadcast %738 : vector<26x1xf32> to vector<26x32xf32>
      %752 = vector.broadcast %750 : vector<1x32xf32> to vector<26x32xf32>
      %753 = arith.mulf %751, %752 : vector<26x32xf32>
      %754 = vector.broadcast %1 : vector<1x32xf32> to vector<26x32xf32>
      %755 = arith.addf %754, %753 : vector<26x32xf32>
      %756 = vector.extract_strided_slice %0 {offsets = [1, 0], sizes = [1, 32], strides = [1, 1]} : vector<9x32xf32> to vector<1x32xf32>
      %757 = vector.broadcast %739 : vector<26x1xf32> to vector<26x32xf32>
      %758 = vector.broadcast %756 : vector<1x32xf32> to vector<26x32xf32>
      %759 = arith.mulf %757, %758 : vector<26x32xf32>
      %760 = arith.addf %755, %759 : vector<26x32xf32>
      %761 = vector.extract_strided_slice %0 {offsets = [2, 0], sizes = [1, 32], strides = [1, 1]} : vector<9x32xf32> to vector<1x32xf32>
      %762 = vector.broadcast %740 : vector<26x1xf32> to vector<26x32xf32>
      %763 = vector.broadcast %761 : vector<1x32xf32> to vector<26x32xf32>
      %764 = arith.mulf %762, %763 : vector<26x32xf32>
      %765 = arith.addf %760, %764 : vector<26x32xf32>
      %766 = vector.extract_strided_slice %0 {offsets = [3, 0], sizes = [1, 32], strides = [1, 1]} : vector<9x32xf32> to vector<1x32xf32>
      %767 = vector.broadcast %741 : vector<26x1xf32> to vector<26x32xf32>
      %768 = vector.broadcast %766 : vector<1x32xf32> to vector<26x32xf32>
      %769 = arith.mulf %767, %768 : vector<26x32xf32>
      %770 = arith.addf %765, %769 : vector<26x32xf32>
      %771 = vector.extract_strided_slice %0 {offsets = [4, 0], sizes = [1, 32], strides = [1, 1]} : vector<9x32xf32> to vector<1x32xf32>
      %772 = vector.broadcast %742 : vector<26x1xf32> to vector<26x32xf32>
      %773 = vector.broadcast %771 : vector<1x32xf32> to vector<26x32xf32>
      %774 = arith.mulf %772, %773 : vector<26x32xf32>
      %775 = arith.addf %770, %774 : vector<26x32xf32>
      %776 = vector.extract_strided_slice %0 {offsets = [5, 0], sizes = [1, 32], strides = [1, 1]} : vector<9x32xf32> to vector<1x32xf32>
      %777 = vector.broadcast %743 : vector<26x1xf32> to vector<26x32xf32>
      %778 = vector.broadcast %776 : vector<1x32xf32> to vector<26x32xf32>
      %779 = arith.mulf %777, %778 : vector<26x32xf32>
      %780 = arith.addf %775, %779 : vector<26x32xf32>
      %781 = vector.extract_strided_slice %0 {offsets = [6, 0], sizes = [1, 32], strides = [1, 1]} : vector<9x32xf32> to vector<1x32xf32>
      %782 = vector.broadcast %744 : vector<26x1xf32> to vector<26x32xf32>
      %783 = vector.broadcast %781 : vector<1x32xf32> to vector<26x32xf32>
      %784 = arith.mulf %782, %783 : vector<26x32xf32>
      %785 = arith.addf %780, %784 : vector<26x32xf32>
      %786 = vector.extract_strided_slice %0 {offsets = [7, 0], sizes = [1, 32], strides = [1, 1]} : vector<9x32xf32> to vector<1x32xf32>
      %787 = vector.broadcast %745 : vector<26x1xf32> to vector<26x32xf32>
      %788 = vector.broadcast %786 : vector<1x32xf32> to vector<26x32xf32>
      %789 = arith.mulf %787, %788 : vector<26x32xf32>
      %790 = arith.addf %785, %789 : vector<26x32xf32>
      %791 = vector.extract_strided_slice %0 {offsets = [8, 0], sizes = [1, 32], strides = [1, 1]} : vector<9x32xf32> to vector<1x32xf32>
      %792 = vector.broadcast %746 : vector<26x1xf32> to vector<26x32xf32>
      %793 = vector.broadcast %791 : vector<1x32xf32> to vector<26x32xf32>
      %794 = arith.mulf %792, %793 : vector<26x32xf32>
      %795 = arith.addf %790, %794 : vector<26x32xf32>
      %cst_47 = arith.constant 0.000000e+00 : f32
      %796 = vector.broadcast %cst_47 : f32 to vector<26x32xf32>
      %797 = arith.maximumf %795, %796 : vector<26x32xf32>
      %798 = vector.extract_strided_slice %0 {offsets = [0, 0], sizes = [1, 32], strides = [1, 1]} : vector<9x32xf32> to vector<1x32xf32>
      %799 = vector.broadcast %741 : vector<26x1xf32> to vector<26x32xf32>
      %800 = vector.broadcast %798 : vector<1x32xf32> to vector<26x32xf32>
      %801 = arith.mulf %799, %800 : vector<26x32xf32>
      %802 = vector.broadcast %1 : vector<1x32xf32> to vector<26x32xf32>
      %803 = arith.addf %802, %801 : vector<26x32xf32>
      %804 = vector.extract_strided_slice %0 {offsets = [1, 0], sizes = [1, 32], strides = [1, 1]} : vector<9x32xf32> to vector<1x32xf32>
      %805 = vector.broadcast %742 : vector<26x1xf32> to vector<26x32xf32>
      %806 = vector.broadcast %804 : vector<1x32xf32> to vector<26x32xf32>
      %807 = arith.mulf %805, %806 : vector<26x32xf32>
      %808 = arith.addf %803, %807 : vector<26x32xf32>
      %809 = vector.extract_strided_slice %0 {offsets = [2, 0], sizes = [1, 32], strides = [1, 1]} : vector<9x32xf32> to vector<1x32xf32>
      %810 = vector.broadcast %743 : vector<26x1xf32> to vector<26x32xf32>
      %811 = vector.broadcast %809 : vector<1x32xf32> to vector<26x32xf32>
      %812 = arith.mulf %810, %811 : vector<26x32xf32>
      %813 = arith.addf %808, %812 : vector<26x32xf32>
      %814 = vector.extract_strided_slice %0 {offsets = [3, 0], sizes = [1, 32], strides = [1, 1]} : vector<9x32xf32> to vector<1x32xf32>
      %815 = vector.broadcast %744 : vector<26x1xf32> to vector<26x32xf32>
      %816 = vector.broadcast %814 : vector<1x32xf32> to vector<26x32xf32>
      %817 = arith.mulf %815, %816 : vector<26x32xf32>
      %818 = arith.addf %813, %817 : vector<26x32xf32>
      %819 = vector.extract_strided_slice %0 {offsets = [4, 0], sizes = [1, 32], strides = [1, 1]} : vector<9x32xf32> to vector<1x32xf32>
      %820 = vector.broadcast %745 : vector<26x1xf32> to vector<26x32xf32>
      %821 = vector.broadcast %819 : vector<1x32xf32> to vector<26x32xf32>
      %822 = arith.mulf %820, %821 : vector<26x32xf32>
      %823 = arith.addf %818, %822 : vector<26x32xf32>
      %824 = vector.extract_strided_slice %0 {offsets = [5, 0], sizes = [1, 32], strides = [1, 1]} : vector<9x32xf32> to vector<1x32xf32>
      %825 = vector.broadcast %746 : vector<26x1xf32> to vector<26x32xf32>
      %826 = vector.broadcast %824 : vector<1x32xf32> to vector<26x32xf32>
      %827 = arith.mulf %825, %826 : vector<26x32xf32>
      %828 = arith.addf %823, %827 : vector<26x32xf32>
      %829 = vector.extract_strided_slice %0 {offsets = [6, 0], sizes = [1, 32], strides = [1, 1]} : vector<9x32xf32> to vector<1x32xf32>
      %830 = vector.broadcast %747 : vector<26x1xf32> to vector<26x32xf32>
      %831 = vector.broadcast %829 : vector<1x32xf32> to vector<26x32xf32>
      %832 = arith.mulf %830, %831 : vector<26x32xf32>
      %833 = arith.addf %828, %832 : vector<26x32xf32>
      %834 = vector.extract_strided_slice %0 {offsets = [7, 0], sizes = [1, 32], strides = [1, 1]} : vector<9x32xf32> to vector<1x32xf32>
      %835 = vector.broadcast %748 : vector<26x1xf32> to vector<26x32xf32>
      %836 = vector.broadcast %834 : vector<1x32xf32> to vector<26x32xf32>
      %837 = arith.mulf %835, %836 : vector<26x32xf32>
      %838 = arith.addf %833, %837 : vector<26x32xf32>
      %839 = vector.extract_strided_slice %0 {offsets = [8, 0], sizes = [1, 32], strides = [1, 1]} : vector<9x32xf32> to vector<1x32xf32>
      %840 = vector.broadcast %749 : vector<26x1xf32> to vector<26x32xf32>
      %841 = vector.broadcast %839 : vector<1x32xf32> to vector<26x32xf32>
      %842 = arith.mulf %840, %841 : vector<26x32xf32>
      %843 = arith.addf %838, %842 : vector<26x32xf32>
      %cst_48 = arith.constant 0.000000e+00 : f32
      %844 = vector.broadcast %cst_48 : f32 to vector<26x32xf32>
      %845 = arith.maximumf %843, %844 : vector<26x32xf32>
      %846 = arith.maximumf %797, %845 : vector<26x32xf32>
      %847 = vector.extract_strided_slice %846 {offsets = [0, 0], sizes = [25, 32], strides = [1, 1]} : vector<26x32xf32> to vector<25x32xf32>
      %848 = vector.extract_strided_slice %846 {offsets = [1, 0], sizes = [25, 32], strides = [1, 1]} : vector<26x32xf32> to vector<25x32xf32>
      %849 = arith.maximumf %847, %848 : vector<25x32xf32>
      %cst_49 = arith.constant dense<0.000000e+00> : vector<13x32xf32>
      %850 = tpu.matmul %4, %849, %cst_49 {dimension_numbers = #tpu.dot_dimension_numbers<[1], [0], [0], [1], [0, 0, 1, 1], [], []>} : vector<13x25xf32>, vector<25x32xf32>, vector<13x32xf32> -> vector<13x32xf32>
      %851 = vector.extract_strided_slice %850 {offsets = [0, 0], sizes = [11, 32], strides = [1, 1]} : vector<13x32xf32> to vector<11x32xf32>
      %852 = vector.extract_strided_slice %850 {offsets = [1, 0], sizes = [11, 32], strides = [1, 1]} : vector<13x32xf32> to vector<11x32xf32>
      %853 = vector.extract_strided_slice %850 {offsets = [2, 0], sizes = [11, 32], strides = [1, 1]} : vector<13x32xf32> to vector<11x32xf32>
      %854 = tpu.concatenate %851, %852, %853 in 1 : vector<11x32xf32>, vector<11x32xf32>, vector<11x32xf32> -> vector<11x96xf32>
      %855 = vector.extract_strided_slice %35 {offsets = [0, 14], sizes = [26, 1], strides = [1, 1]} : vector<28x28xf32> to vector<26x1xf32>
      %856 = vector.extract_strided_slice %35 {offsets = [1, 14], sizes = [26, 1], strides = [1, 1]} : vector<28x28xf32> to vector<26x1xf32>
      %857 = vector.extract_strided_slice %35 {offsets = [2, 14], sizes = [26, 1], strides = [1, 1]} : vector<28x28xf32> to vector<26x1xf32>
      %858 = vector.extract_strided_slice %35 {offsets = [0, 15], sizes = [26, 1], strides = [1, 1]} : vector<28x28xf32> to vector<26x1xf32>
      %859 = vector.extract_strided_slice %35 {offsets = [1, 15], sizes = [26, 1], strides = [1, 1]} : vector<28x28xf32> to vector<26x1xf32>
      %860 = vector.extract_strided_slice %35 {offsets = [2, 15], sizes = [26, 1], strides = [1, 1]} : vector<28x28xf32> to vector<26x1xf32>
      %861 = vector.extract_strided_slice %35 {offsets = [0, 16], sizes = [26, 1], strides = [1, 1]} : vector<28x28xf32> to vector<26x1xf32>
      %862 = vector.extract_strided_slice %35 {offsets = [1, 16], sizes = [26, 1], strides = [1, 1]} : vector<28x28xf32> to vector<26x1xf32>
      %863 = vector.extract_strided_slice %35 {offsets = [2, 16], sizes = [26, 1], strides = [1, 1]} : vector<28x28xf32> to vector<26x1xf32>
      %864 = vector.extract_strided_slice %35 {offsets = [0, 17], sizes = [26, 1], strides = [1, 1]} : vector<28x28xf32> to vector<26x1xf32>
      %865 = vector.extract_strided_slice %35 {offsets = [1, 17], sizes = [26, 1], strides = [1, 1]} : vector<28x28xf32> to vector<26x1xf32>
      %866 = vector.extract_strided_slice %35 {offsets = [2, 17], sizes = [26, 1], strides = [1, 1]} : vector<28x28xf32> to vector<26x1xf32>
      %867 = vector.extract_strided_slice %0 {offsets = [0, 0], sizes = [1, 32], strides = [1, 1]} : vector<9x32xf32> to vector<1x32xf32>
      %868 = vector.broadcast %855 : vector<26x1xf32> to vector<26x32xf32>
      %869 = vector.broadcast %867 : vector<1x32xf32> to vector<26x32xf32>
      %870 = arith.mulf %868, %869 : vector<26x32xf32>
      %871 = vector.broadcast %1 : vector<1x32xf32> to vector<26x32xf32>
      %872 = arith.addf %871, %870 : vector<26x32xf32>
      %873 = vector.extract_strided_slice %0 {offsets = [1, 0], sizes = [1, 32], strides = [1, 1]} : vector<9x32xf32> to vector<1x32xf32>
      %874 = vector.broadcast %856 : vector<26x1xf32> to vector<26x32xf32>
      %875 = vector.broadcast %873 : vector<1x32xf32> to vector<26x32xf32>
      %876 = arith.mulf %874, %875 : vector<26x32xf32>
      %877 = arith.addf %872, %876 : vector<26x32xf32>
      %878 = vector.extract_strided_slice %0 {offsets = [2, 0], sizes = [1, 32], strides = [1, 1]} : vector<9x32xf32> to vector<1x32xf32>
      %879 = vector.broadcast %857 : vector<26x1xf32> to vector<26x32xf32>
      %880 = vector.broadcast %878 : vector<1x32xf32> to vector<26x32xf32>
      %881 = arith.mulf %879, %880 : vector<26x32xf32>
      %882 = arith.addf %877, %881 : vector<26x32xf32>
      %883 = vector.extract_strided_slice %0 {offsets = [3, 0], sizes = [1, 32], strides = [1, 1]} : vector<9x32xf32> to vector<1x32xf32>
      %884 = vector.broadcast %858 : vector<26x1xf32> to vector<26x32xf32>
      %885 = vector.broadcast %883 : vector<1x32xf32> to vector<26x32xf32>
      %886 = arith.mulf %884, %885 : vector<26x32xf32>
      %887 = arith.addf %882, %886 : vector<26x32xf32>
      %888 = vector.extract_strided_slice %0 {offsets = [4, 0], sizes = [1, 32], strides = [1, 1]} : vector<9x32xf32> to vector<1x32xf32>
      %889 = vector.broadcast %859 : vector<26x1xf32> to vector<26x32xf32>
      %890 = vector.broadcast %888 : vector<1x32xf32> to vector<26x32xf32>
      %891 = arith.mulf %889, %890 : vector<26x32xf32>
      %892 = arith.addf %887, %891 : vector<26x32xf32>
      %893 = vector.extract_strided_slice %0 {offsets = [5, 0], sizes = [1, 32], strides = [1, 1]} : vector<9x32xf32> to vector<1x32xf32>
      %894 = vector.broadcast %860 : vector<26x1xf32> to vector<26x32xf32>
      %895 = vector.broadcast %893 : vector<1x32xf32> to vector<26x32xf32>
      %896 = arith.mulf %894, %895 : vector<26x32xf32>
      %897 = arith.addf %892, %896 : vector<26x32xf32>
      %898 = vector.extract_strided_slice %0 {offsets = [6, 0], sizes = [1, 32], strides = [1, 1]} : vector<9x32xf32> to vector<1x32xf32>
      %899 = vector.broadcast %861 : vector<26x1xf32> to vector<26x32xf32>
      %900 = vector.broadcast %898 : vector<1x32xf32> to vector<26x32xf32>
      %901 = arith.mulf %899, %900 : vector<26x32xf32>
      %902 = arith.addf %897, %901 : vector<26x32xf32>
      %903 = vector.extract_strided_slice %0 {offsets = [7, 0], sizes = [1, 32], strides = [1, 1]} : vector<9x32xf32> to vector<1x32xf32>
      %904 = vector.broadcast %862 : vector<26x1xf32> to vector<26x32xf32>
      %905 = vector.broadcast %903 : vector<1x32xf32> to vector<26x32xf32>
      %906 = arith.mulf %904, %905 : vector<26x32xf32>
      %907 = arith.addf %902, %906 : vector<26x32xf32>
      %908 = vector.extract_strided_slice %0 {offsets = [8, 0], sizes = [1, 32], strides = [1, 1]} : vector<9x32xf32> to vector<1x32xf32>
      %909 = vector.broadcast %863 : vector<26x1xf32> to vector<26x32xf32>
      %910 = vector.broadcast %908 : vector<1x32xf32> to vector<26x32xf32>
      %911 = arith.mulf %909, %910 : vector<26x32xf32>
      %912 = arith.addf %907, %911 : vector<26x32xf32>
      %cst_50 = arith.constant 0.000000e+00 : f32
      %913 = vector.broadcast %cst_50 : f32 to vector<26x32xf32>
      %914 = arith.maximumf %912, %913 : vector<26x32xf32>
      %915 = vector.extract_strided_slice %0 {offsets = [0, 0], sizes = [1, 32], strides = [1, 1]} : vector<9x32xf32> to vector<1x32xf32>
      %916 = vector.broadcast %858 : vector<26x1xf32> to vector<26x32xf32>
      %917 = vector.broadcast %915 : vector<1x32xf32> to vector<26x32xf32>
      %918 = arith.mulf %916, %917 : vector<26x32xf32>
      %919 = vector.broadcast %1 : vector<1x32xf32> to vector<26x32xf32>
      %920 = arith.addf %919, %918 : vector<26x32xf32>
      %921 = vector.extract_strided_slice %0 {offsets = [1, 0], sizes = [1, 32], strides = [1, 1]} : vector<9x32xf32> to vector<1x32xf32>
      %922 = vector.broadcast %859 : vector<26x1xf32> to vector<26x32xf32>
      %923 = vector.broadcast %921 : vector<1x32xf32> to vector<26x32xf32>
      %924 = arith.mulf %922, %923 : vector<26x32xf32>
      %925 = arith.addf %920, %924 : vector<26x32xf32>
      %926 = vector.extract_strided_slice %0 {offsets = [2, 0], sizes = [1, 32], strides = [1, 1]} : vector<9x32xf32> to vector<1x32xf32>
      %927 = vector.broadcast %860 : vector<26x1xf32> to vector<26x32xf32>
      %928 = vector.broadcast %926 : vector<1x32xf32> to vector<26x32xf32>
      %929 = arith.mulf %927, %928 : vector<26x32xf32>
      %930 = arith.addf %925, %929 : vector<26x32xf32>
      %931 = vector.extract_strided_slice %0 {offsets = [3, 0], sizes = [1, 32], strides = [1, 1]} : vector<9x32xf32> to vector<1x32xf32>
      %932 = vector.broadcast %861 : vector<26x1xf32> to vector<26x32xf32>
      %933 = vector.broadcast %931 : vector<1x32xf32> to vector<26x32xf32>
      %934 = arith.mulf %932, %933 : vector<26x32xf32>
      %935 = arith.addf %930, %934 : vector<26x32xf32>
      %936 = vector.extract_strided_slice %0 {offsets = [4, 0], sizes = [1, 32], strides = [1, 1]} : vector<9x32xf32> to vector<1x32xf32>
      %937 = vector.broadcast %862 : vector<26x1xf32> to vector<26x32xf32>
      %938 = vector.broadcast %936 : vector<1x32xf32> to vector<26x32xf32>
      %939 = arith.mulf %937, %938 : vector<26x32xf32>
      %940 = arith.addf %935, %939 : vector<26x32xf32>
      %941 = vector.extract_strided_slice %0 {offsets = [5, 0], sizes = [1, 32], strides = [1, 1]} : vector<9x32xf32> to vector<1x32xf32>
      %942 = vector.broadcast %863 : vector<26x1xf32> to vector<26x32xf32>
      %943 = vector.broadcast %941 : vector<1x32xf32> to vector<26x32xf32>
      %944 = arith.mulf %942, %943 : vector<26x32xf32>
      %945 = arith.addf %940, %944 : vector<26x32xf32>
      %946 = vector.extract_strided_slice %0 {offsets = [6, 0], sizes = [1, 32], strides = [1, 1]} : vector<9x32xf32> to vector<1x32xf32>
      %947 = vector.broadcast %864 : vector<26x1xf32> to vector<26x32xf32>
      %948 = vector.broadcast %946 : vector<1x32xf32> to vector<26x32xf32>
      %949 = arith.mulf %947, %948 : vector<26x32xf32>
      %950 = arith.addf %945, %949 : vector<26x32xf32>
      %951 = vector.extract_strided_slice %0 {offsets = [7, 0], sizes = [1, 32], strides = [1, 1]} : vector<9x32xf32> to vector<1x32xf32>
      %952 = vector.broadcast %865 : vector<26x1xf32> to vector<26x32xf32>
      %953 = vector.broadcast %951 : vector<1x32xf32> to vector<26x32xf32>
      %954 = arith.mulf %952, %953 : vector<26x32xf32>
      %955 = arith.addf %950, %954 : vector<26x32xf32>
      %956 = vector.extract_strided_slice %0 {offsets = [8, 0], sizes = [1, 32], strides = [1, 1]} : vector<9x32xf32> to vector<1x32xf32>
      %957 = vector.broadcast %866 : vector<26x1xf32> to vector<26x32xf32>
      %958 = vector.broadcast %956 : vector<1x32xf32> to vector<26x32xf32>
      %959 = arith.mulf %957, %958 : vector<26x32xf32>
      %960 = arith.addf %955, %959 : vector<26x32xf32>
      %cst_51 = arith.constant 0.000000e+00 : f32
      %961 = vector.broadcast %cst_51 : f32 to vector<26x32xf32>
      %962 = arith.maximumf %960, %961 : vector<26x32xf32>
      %963 = arith.maximumf %914, %962 : vector<26x32xf32>
      %964 = vector.extract_strided_slice %963 {offsets = [0, 0], sizes = [25, 32], strides = [1, 1]} : vector<26x32xf32> to vector<25x32xf32>
      %965 = vector.extract_strided_slice %963 {offsets = [1, 0], sizes = [25, 32], strides = [1, 1]} : vector<26x32xf32> to vector<25x32xf32>
      %966 = arith.maximumf %964, %965 : vector<25x32xf32>
      %cst_52 = arith.constant dense<0.000000e+00> : vector<13x32xf32>
      %967 = tpu.matmul %4, %966, %cst_52 {dimension_numbers = #tpu.dot_dimension_numbers<[1], [0], [0], [1], [0, 0, 1, 1], [], []>} : vector<13x25xf32>, vector<25x32xf32>, vector<13x32xf32> -> vector<13x32xf32>
      %968 = vector.extract_strided_slice %967 {offsets = [0, 0], sizes = [11, 32], strides = [1, 1]} : vector<13x32xf32> to vector<11x32xf32>
      %969 = vector.extract_strided_slice %967 {offsets = [1, 0], sizes = [11, 32], strides = [1, 1]} : vector<13x32xf32> to vector<11x32xf32>
      %970 = vector.extract_strided_slice %967 {offsets = [2, 0], sizes = [11, 32], strides = [1, 1]} : vector<13x32xf32> to vector<11x32xf32>
      %971 = tpu.concatenate %968, %969, %970 in 1 : vector<11x32xf32>, vector<11x32xf32>, vector<11x32xf32> -> vector<11x96xf32>
      %972 = vector.extract_strided_slice %35 {offsets = [0, 16], sizes = [26, 1], strides = [1, 1]} : vector<28x28xf32> to vector<26x1xf32>
      %973 = vector.extract_strided_slice %35 {offsets = [1, 16], sizes = [26, 1], strides = [1, 1]} : vector<28x28xf32> to vector<26x1xf32>
      %974 = vector.extract_strided_slice %35 {offsets = [2, 16], sizes = [26, 1], strides = [1, 1]} : vector<28x28xf32> to vector<26x1xf32>
      %975 = vector.extract_strided_slice %35 {offsets = [0, 17], sizes = [26, 1], strides = [1, 1]} : vector<28x28xf32> to vector<26x1xf32>
      %976 = vector.extract_strided_slice %35 {offsets = [1, 17], sizes = [26, 1], strides = [1, 1]} : vector<28x28xf32> to vector<26x1xf32>
      %977 = vector.extract_strided_slice %35 {offsets = [2, 17], sizes = [26, 1], strides = [1, 1]} : vector<28x28xf32> to vector<26x1xf32>
      %978 = vector.extract_strided_slice %35 {offsets = [0, 18], sizes = [26, 1], strides = [1, 1]} : vector<28x28xf32> to vector<26x1xf32>
      %979 = vector.extract_strided_slice %35 {offsets = [1, 18], sizes = [26, 1], strides = [1, 1]} : vector<28x28xf32> to vector<26x1xf32>
      %980 = vector.extract_strided_slice %35 {offsets = [2, 18], sizes = [26, 1], strides = [1, 1]} : vector<28x28xf32> to vector<26x1xf32>
      %981 = vector.extract_strided_slice %35 {offsets = [0, 19], sizes = [26, 1], strides = [1, 1]} : vector<28x28xf32> to vector<26x1xf32>
      %982 = vector.extract_strided_slice %35 {offsets = [1, 19], sizes = [26, 1], strides = [1, 1]} : vector<28x28xf32> to vector<26x1xf32>
      %983 = vector.extract_strided_slice %35 {offsets = [2, 19], sizes = [26, 1], strides = [1, 1]} : vector<28x28xf32> to vector<26x1xf32>
      %984 = vector.extract_strided_slice %0 {offsets = [0, 0], sizes = [1, 32], strides = [1, 1]} : vector<9x32xf32> to vector<1x32xf32>
      %985 = vector.broadcast %972 : vector<26x1xf32> to vector<26x32xf32>
      %986 = vector.broadcast %984 : vector<1x32xf32> to vector<26x32xf32>
      %987 = arith.mulf %985, %986 : vector<26x32xf32>
      %988 = vector.broadcast %1 : vector<1x32xf32> to vector<26x32xf32>
      %989 = arith.addf %988, %987 : vector<26x32xf32>
      %990 = vector.extract_strided_slice %0 {offsets = [1, 0], sizes = [1, 32], strides = [1, 1]} : vector<9x32xf32> to vector<1x32xf32>
      %991 = vector.broadcast %973 : vector<26x1xf32> to vector<26x32xf32>
      %992 = vector.broadcast %990 : vector<1x32xf32> to vector<26x32xf32>
      %993 = arith.mulf %991, %992 : vector<26x32xf32>
      %994 = arith.addf %989, %993 : vector<26x32xf32>
      %995 = vector.extract_strided_slice %0 {offsets = [2, 0], sizes = [1, 32], strides = [1, 1]} : vector<9x32xf32> to vector<1x32xf32>
      %996 = vector.broadcast %974 : vector<26x1xf32> to vector<26x32xf32>
      %997 = vector.broadcast %995 : vector<1x32xf32> to vector<26x32xf32>
      %998 = arith.mulf %996, %997 : vector<26x32xf32>
      %999 = arith.addf %994, %998 : vector<26x32xf32>
      %1000 = vector.extract_strided_slice %0 {offsets = [3, 0], sizes = [1, 32], strides = [1, 1]} : vector<9x32xf32> to vector<1x32xf32>
      %1001 = vector.broadcast %975 : vector<26x1xf32> to vector<26x32xf32>
      %1002 = vector.broadcast %1000 : vector<1x32xf32> to vector<26x32xf32>
      %1003 = arith.mulf %1001, %1002 : vector<26x32xf32>
      %1004 = arith.addf %999, %1003 : vector<26x32xf32>
      %1005 = vector.extract_strided_slice %0 {offsets = [4, 0], sizes = [1, 32], strides = [1, 1]} : vector<9x32xf32> to vector<1x32xf32>
      %1006 = vector.broadcast %976 : vector<26x1xf32> to vector<26x32xf32>
      %1007 = vector.broadcast %1005 : vector<1x32xf32> to vector<26x32xf32>
      %1008 = arith.mulf %1006, %1007 : vector<26x32xf32>
      %1009 = arith.addf %1004, %1008 : vector<26x32xf32>
      %1010 = vector.extract_strided_slice %0 {offsets = [5, 0], sizes = [1, 32], strides = [1, 1]} : vector<9x32xf32> to vector<1x32xf32>
      %1011 = vector.broadcast %977 : vector<26x1xf32> to vector<26x32xf32>
      %1012 = vector.broadcast %1010 : vector<1x32xf32> to vector<26x32xf32>
      %1013 = arith.mulf %1011, %1012 : vector<26x32xf32>
      %1014 = arith.addf %1009, %1013 : vector<26x32xf32>
      %1015 = vector.extract_strided_slice %0 {offsets = [6, 0], sizes = [1, 32], strides = [1, 1]} : vector<9x32xf32> to vector<1x32xf32>
      %1016 = vector.broadcast %978 : vector<26x1xf32> to vector<26x32xf32>
      %1017 = vector.broadcast %1015 : vector<1x32xf32> to vector<26x32xf32>
      %1018 = arith.mulf %1016, %1017 : vector<26x32xf32>
      %1019 = arith.addf %1014, %1018 : vector<26x32xf32>
      %1020 = vector.extract_strided_slice %0 {offsets = [7, 0], sizes = [1, 32], strides = [1, 1]} : vector<9x32xf32> to vector<1x32xf32>
      %1021 = vector.broadcast %979 : vector<26x1xf32> to vector<26x32xf32>
      %1022 = vector.broadcast %1020 : vector<1x32xf32> to vector<26x32xf32>
      %1023 = arith.mulf %1021, %1022 : vector<26x32xf32>
      %1024 = arith.addf %1019, %1023 : vector<26x32xf32>
      %1025 = vector.extract_strided_slice %0 {offsets = [8, 0], sizes = [1, 32], strides = [1, 1]} : vector<9x32xf32> to vector<1x32xf32>
      %1026 = vector.broadcast %980 : vector<26x1xf32> to vector<26x32xf32>
      %1027 = vector.broadcast %1025 : vector<1x32xf32> to vector<26x32xf32>
      %1028 = arith.mulf %1026, %1027 : vector<26x32xf32>
      %1029 = arith.addf %1024, %1028 : vector<26x32xf32>
      %cst_53 = arith.constant 0.000000e+00 : f32
      %1030 = vector.broadcast %cst_53 : f32 to vector<26x32xf32>
      %1031 = arith.maximumf %1029, %1030 : vector<26x32xf32>
      %1032 = vector.extract_strided_slice %0 {offsets = [0, 0], sizes = [1, 32], strides = [1, 1]} : vector<9x32xf32> to vector<1x32xf32>
      %1033 = vector.broadcast %975 : vector<26x1xf32> to vector<26x32xf32>
      %1034 = vector.broadcast %1032 : vector<1x32xf32> to vector<26x32xf32>
      %1035 = arith.mulf %1033, %1034 : vector<26x32xf32>
      %1036 = vector.broadcast %1 : vector<1x32xf32> to vector<26x32xf32>
      %1037 = arith.addf %1036, %1035 : vector<26x32xf32>
      %1038 = vector.extract_strided_slice %0 {offsets = [1, 0], sizes = [1, 32], strides = [1, 1]} : vector<9x32xf32> to vector<1x32xf32>
      %1039 = vector.broadcast %976 : vector<26x1xf32> to vector<26x32xf32>
      %1040 = vector.broadcast %1038 : vector<1x32xf32> to vector<26x32xf32>
      %1041 = arith.mulf %1039, %1040 : vector<26x32xf32>
      %1042 = arith.addf %1037, %1041 : vector<26x32xf32>
      %1043 = vector.extract_strided_slice %0 {offsets = [2, 0], sizes = [1, 32], strides = [1, 1]} : vector<9x32xf32> to vector<1x32xf32>
      %1044 = vector.broadcast %977 : vector<26x1xf32> to vector<26x32xf32>
      %1045 = vector.broadcast %1043 : vector<1x32xf32> to vector<26x32xf32>
      %1046 = arith.mulf %1044, %1045 : vector<26x32xf32>
      %1047 = arith.addf %1042, %1046 : vector<26x32xf32>
      %1048 = vector.extract_strided_slice %0 {offsets = [3, 0], sizes = [1, 32], strides = [1, 1]} : vector<9x32xf32> to vector<1x32xf32>
      %1049 = vector.broadcast %978 : vector<26x1xf32> to vector<26x32xf32>
      %1050 = vector.broadcast %1048 : vector<1x32xf32> to vector<26x32xf32>
      %1051 = arith.mulf %1049, %1050 : vector<26x32xf32>
      %1052 = arith.addf %1047, %1051 : vector<26x32xf32>
      %1053 = vector.extract_strided_slice %0 {offsets = [4, 0], sizes = [1, 32], strides = [1, 1]} : vector<9x32xf32> to vector<1x32xf32>
      %1054 = vector.broadcast %979 : vector<26x1xf32> to vector<26x32xf32>
      %1055 = vector.broadcast %1053 : vector<1x32xf32> to vector<26x32xf32>
      %1056 = arith.mulf %1054, %1055 : vector<26x32xf32>
      %1057 = arith.addf %1052, %1056 : vector<26x32xf32>
      %1058 = vector.extract_strided_slice %0 {offsets = [5, 0], sizes = [1, 32], strides = [1, 1]} : vector<9x32xf32> to vector<1x32xf32>
      %1059 = vector.broadcast %980 : vector<26x1xf32> to vector<26x32xf32>
      %1060 = vector.broadcast %1058 : vector<1x32xf32> to vector<26x32xf32>
      %1061 = arith.mulf %1059, %1060 : vector<26x32xf32>
      %1062 = arith.addf %1057, %1061 : vector<26x32xf32>
      %1063 = vector.extract_strided_slice %0 {offsets = [6, 0], sizes = [1, 32], strides = [1, 1]} : vector<9x32xf32> to vector<1x32xf32>
      %1064 = vector.broadcast %981 : vector<26x1xf32> to vector<26x32xf32>
      %1065 = vector.broadcast %1063 : vector<1x32xf32> to vector<26x32xf32>
      %1066 = arith.mulf %1064, %1065 : vector<26x32xf32>
      %1067 = arith.addf %1062, %1066 : vector<26x32xf32>
      %1068 = vector.extract_strided_slice %0 {offsets = [7, 0], sizes = [1, 32], strides = [1, 1]} : vector<9x32xf32> to vector<1x32xf32>
      %1069 = vector.broadcast %982 : vector<26x1xf32> to vector<26x32xf32>
      %1070 = vector.broadcast %1068 : vector<1x32xf32> to vector<26x32xf32>
      %1071 = arith.mulf %1069, %1070 : vector<26x32xf32>
      %1072 = arith.addf %1067, %1071 : vector<26x32xf32>
      %1073 = vector.extract_strided_slice %0 {offsets = [8, 0], sizes = [1, 32], strides = [1, 1]} : vector<9x32xf32> to vector<1x32xf32>
      %1074 = vector.broadcast %983 : vector<26x1xf32> to vector<26x32xf32>
      %1075 = vector.broadcast %1073 : vector<1x32xf32> to vector<26x32xf32>
      %1076 = arith.mulf %1074, %1075 : vector<26x32xf32>
      %1077 = arith.addf %1072, %1076 : vector<26x32xf32>
      %cst_54 = arith.constant 0.000000e+00 : f32
      %1078 = vector.broadcast %cst_54 : f32 to vector<26x32xf32>
      %1079 = arith.maximumf %1077, %1078 : vector<26x32xf32>
      %1080 = arith.maximumf %1031, %1079 : vector<26x32xf32>
      %1081 = vector.extract_strided_slice %1080 {offsets = [0, 0], sizes = [25, 32], strides = [1, 1]} : vector<26x32xf32> to vector<25x32xf32>
      %1082 = vector.extract_strided_slice %1080 {offsets = [1, 0], sizes = [25, 32], strides = [1, 1]} : vector<26x32xf32> to vector<25x32xf32>
      %1083 = arith.maximumf %1081, %1082 : vector<25x32xf32>
      %cst_55 = arith.constant dense<0.000000e+00> : vector<13x32xf32>
      %1084 = tpu.matmul %4, %1083, %cst_55 {dimension_numbers = #tpu.dot_dimension_numbers<[1], [0], [0], [1], [0, 0, 1, 1], [], []>} : vector<13x25xf32>, vector<25x32xf32>, vector<13x32xf32> -> vector<13x32xf32>
      %1085 = vector.extract_strided_slice %1084 {offsets = [0, 0], sizes = [11, 32], strides = [1, 1]} : vector<13x32xf32> to vector<11x32xf32>
      %1086 = vector.extract_strided_slice %1084 {offsets = [1, 0], sizes = [11, 32], strides = [1, 1]} : vector<13x32xf32> to vector<11x32xf32>
      %1087 = vector.extract_strided_slice %1084 {offsets = [2, 0], sizes = [11, 32], strides = [1, 1]} : vector<13x32xf32> to vector<11x32xf32>
      %1088 = tpu.concatenate %1085, %1086, %1087 in 1 : vector<11x32xf32>, vector<11x32xf32>, vector<11x32xf32> -> vector<11x96xf32>
      %1089 = vector.extract_strided_slice %35 {offsets = [0, 18], sizes = [26, 1], strides = [1, 1]} : vector<28x28xf32> to vector<26x1xf32>
      %1090 = vector.extract_strided_slice %35 {offsets = [1, 18], sizes = [26, 1], strides = [1, 1]} : vector<28x28xf32> to vector<26x1xf32>
      %1091 = vector.extract_strided_slice %35 {offsets = [2, 18], sizes = [26, 1], strides = [1, 1]} : vector<28x28xf32> to vector<26x1xf32>
      %1092 = vector.extract_strided_slice %35 {offsets = [0, 19], sizes = [26, 1], strides = [1, 1]} : vector<28x28xf32> to vector<26x1xf32>
      %1093 = vector.extract_strided_slice %35 {offsets = [1, 19], sizes = [26, 1], strides = [1, 1]} : vector<28x28xf32> to vector<26x1xf32>
      %1094 = vector.extract_strided_slice %35 {offsets = [2, 19], sizes = [26, 1], strides = [1, 1]} : vector<28x28xf32> to vector<26x1xf32>
      %1095 = vector.extract_strided_slice %35 {offsets = [0, 20], sizes = [26, 1], strides = [1, 1]} : vector<28x28xf32> to vector<26x1xf32>
      %1096 = vector.extract_strided_slice %35 {offsets = [1, 20], sizes = [26, 1], strides = [1, 1]} : vector<28x28xf32> to vector<26x1xf32>
      %1097 = vector.extract_strided_slice %35 {offsets = [2, 20], sizes = [26, 1], strides = [1, 1]} : vector<28x28xf32> to vector<26x1xf32>
      %1098 = vector.extract_strided_slice %35 {offsets = [0, 21], sizes = [26, 1], strides = [1, 1]} : vector<28x28xf32> to vector<26x1xf32>
      %1099 = vector.extract_strided_slice %35 {offsets = [1, 21], sizes = [26, 1], strides = [1, 1]} : vector<28x28xf32> to vector<26x1xf32>
      %1100 = vector.extract_strided_slice %35 {offsets = [2, 21], sizes = [26, 1], strides = [1, 1]} : vector<28x28xf32> to vector<26x1xf32>
      %1101 = vector.extract_strided_slice %0 {offsets = [0, 0], sizes = [1, 32], strides = [1, 1]} : vector<9x32xf32> to vector<1x32xf32>
      %1102 = vector.broadcast %1089 : vector<26x1xf32> to vector<26x32xf32>
      %1103 = vector.broadcast %1101 : vector<1x32xf32> to vector<26x32xf32>
      %1104 = arith.mulf %1102, %1103 : vector<26x32xf32>
      %1105 = vector.broadcast %1 : vector<1x32xf32> to vector<26x32xf32>
      %1106 = arith.addf %1105, %1104 : vector<26x32xf32>
      %1107 = vector.extract_strided_slice %0 {offsets = [1, 0], sizes = [1, 32], strides = [1, 1]} : vector<9x32xf32> to vector<1x32xf32>
      %1108 = vector.broadcast %1090 : vector<26x1xf32> to vector<26x32xf32>
      %1109 = vector.broadcast %1107 : vector<1x32xf32> to vector<26x32xf32>
      %1110 = arith.mulf %1108, %1109 : vector<26x32xf32>
      %1111 = arith.addf %1106, %1110 : vector<26x32xf32>
      %1112 = vector.extract_strided_slice %0 {offsets = [2, 0], sizes = [1, 32], strides = [1, 1]} : vector<9x32xf32> to vector<1x32xf32>
      %1113 = vector.broadcast %1091 : vector<26x1xf32> to vector<26x32xf32>
      %1114 = vector.broadcast %1112 : vector<1x32xf32> to vector<26x32xf32>
      %1115 = arith.mulf %1113, %1114 : vector<26x32xf32>
      %1116 = arith.addf %1111, %1115 : vector<26x32xf32>
      %1117 = vector.extract_strided_slice %0 {offsets = [3, 0], sizes = [1, 32], strides = [1, 1]} : vector<9x32xf32> to vector<1x32xf32>
      %1118 = vector.broadcast %1092 : vector<26x1xf32> to vector<26x32xf32>
      %1119 = vector.broadcast %1117 : vector<1x32xf32> to vector<26x32xf32>
      %1120 = arith.mulf %1118, %1119 : vector<26x32xf32>
      %1121 = arith.addf %1116, %1120 : vector<26x32xf32>
      %1122 = vector.extract_strided_slice %0 {offsets = [4, 0], sizes = [1, 32], strides = [1, 1]} : vector<9x32xf32> to vector<1x32xf32>
      %1123 = vector.broadcast %1093 : vector<26x1xf32> to vector<26x32xf32>
      %1124 = vector.broadcast %1122 : vector<1x32xf32> to vector<26x32xf32>
      %1125 = arith.mulf %1123, %1124 : vector<26x32xf32>
      %1126 = arith.addf %1121, %1125 : vector<26x32xf32>
      %1127 = vector.extract_strided_slice %0 {offsets = [5, 0], sizes = [1, 32], strides = [1, 1]} : vector<9x32xf32> to vector<1x32xf32>
      %1128 = vector.broadcast %1094 : vector<26x1xf32> to vector<26x32xf32>
      %1129 = vector.broadcast %1127 : vector<1x32xf32> to vector<26x32xf32>
      %1130 = arith.mulf %1128, %1129 : vector<26x32xf32>
      %1131 = arith.addf %1126, %1130 : vector<26x32xf32>
      %1132 = vector.extract_strided_slice %0 {offsets = [6, 0], sizes = [1, 32], strides = [1, 1]} : vector<9x32xf32> to vector<1x32xf32>
      %1133 = vector.broadcast %1095 : vector<26x1xf32> to vector<26x32xf32>
      %1134 = vector.broadcast %1132 : vector<1x32xf32> to vector<26x32xf32>
      %1135 = arith.mulf %1133, %1134 : vector<26x32xf32>
      %1136 = arith.addf %1131, %1135 : vector<26x32xf32>
      %1137 = vector.extract_strided_slice %0 {offsets = [7, 0], sizes = [1, 32], strides = [1, 1]} : vector<9x32xf32> to vector<1x32xf32>
      %1138 = vector.broadcast %1096 : vector<26x1xf32> to vector<26x32xf32>
      %1139 = vector.broadcast %1137 : vector<1x32xf32> to vector<26x32xf32>
      %1140 = arith.mulf %1138, %1139 : vector<26x32xf32>
      %1141 = arith.addf %1136, %1140 : vector<26x32xf32>
      %1142 = vector.extract_strided_slice %0 {offsets = [8, 0], sizes = [1, 32], strides = [1, 1]} : vector<9x32xf32> to vector<1x32xf32>
      %1143 = vector.broadcast %1097 : vector<26x1xf32> to vector<26x32xf32>
      %1144 = vector.broadcast %1142 : vector<1x32xf32> to vector<26x32xf32>
      %1145 = arith.mulf %1143, %1144 : vector<26x32xf32>
      %1146 = arith.addf %1141, %1145 : vector<26x32xf32>
      %cst_56 = arith.constant 0.000000e+00 : f32
      %1147 = vector.broadcast %cst_56 : f32 to vector<26x32xf32>
      %1148 = arith.maximumf %1146, %1147 : vector<26x32xf32>
      %1149 = vector.extract_strided_slice %0 {offsets = [0, 0], sizes = [1, 32], strides = [1, 1]} : vector<9x32xf32> to vector<1x32xf32>
      %1150 = vector.broadcast %1092 : vector<26x1xf32> to vector<26x32xf32>
      %1151 = vector.broadcast %1149 : vector<1x32xf32> to vector<26x32xf32>
      %1152 = arith.mulf %1150, %1151 : vector<26x32xf32>
      %1153 = vector.broadcast %1 : vector<1x32xf32> to vector<26x32xf32>
      %1154 = arith.addf %1153, %1152 : vector<26x32xf32>
      %1155 = vector.extract_strided_slice %0 {offsets = [1, 0], sizes = [1, 32], strides = [1, 1]} : vector<9x32xf32> to vector<1x32xf32>
      %1156 = vector.broadcast %1093 : vector<26x1xf32> to vector<26x32xf32>
      %1157 = vector.broadcast %1155 : vector<1x32xf32> to vector<26x32xf32>
      %1158 = arith.mulf %1156, %1157 : vector<26x32xf32>
      %1159 = arith.addf %1154, %1158 : vector<26x32xf32>
      %1160 = vector.extract_strided_slice %0 {offsets = [2, 0], sizes = [1, 32], strides = [1, 1]} : vector<9x32xf32> to vector<1x32xf32>
      %1161 = vector.broadcast %1094 : vector<26x1xf32> to vector<26x32xf32>
      %1162 = vector.broadcast %1160 : vector<1x32xf32> to vector<26x32xf32>
      %1163 = arith.mulf %1161, %1162 : vector<26x32xf32>
      %1164 = arith.addf %1159, %1163 : vector<26x32xf32>
      %1165 = vector.extract_strided_slice %0 {offsets = [3, 0], sizes = [1, 32], strides = [1, 1]} : vector<9x32xf32> to vector<1x32xf32>
      %1166 = vector.broadcast %1095 : vector<26x1xf32> to vector<26x32xf32>
      %1167 = vector.broadcast %1165 : vector<1x32xf32> to vector<26x32xf32>
      %1168 = arith.mulf %1166, %1167 : vector<26x32xf32>
      %1169 = arith.addf %1164, %1168 : vector<26x32xf32>
      %1170 = vector.extract_strided_slice %0 {offsets = [4, 0], sizes = [1, 32], strides = [1, 1]} : vector<9x32xf32> to vector<1x32xf32>
      %1171 = vector.broadcast %1096 : vector<26x1xf32> to vector<26x32xf32>
      %1172 = vector.broadcast %1170 : vector<1x32xf32> to vector<26x32xf32>
      %1173 = arith.mulf %1171, %1172 : vector<26x32xf32>
      %1174 = arith.addf %1169, %1173 : vector<26x32xf32>
      %1175 = vector.extract_strided_slice %0 {offsets = [5, 0], sizes = [1, 32], strides = [1, 1]} : vector<9x32xf32> to vector<1x32xf32>
      %1176 = vector.broadcast %1097 : vector<26x1xf32> to vector<26x32xf32>
      %1177 = vector.broadcast %1175 : vector<1x32xf32> to vector<26x32xf32>
      %1178 = arith.mulf %1176, %1177 : vector<26x32xf32>
      %1179 = arith.addf %1174, %1178 : vector<26x32xf32>
      %1180 = vector.extract_strided_slice %0 {offsets = [6, 0], sizes = [1, 32], strides = [1, 1]} : vector<9x32xf32> to vector<1x32xf32>
      %1181 = vector.broadcast %1098 : vector<26x1xf32> to vector<26x32xf32>
      %1182 = vector.broadcast %1180 : vector<1x32xf32> to vector<26x32xf32>
      %1183 = arith.mulf %1181, %1182 : vector<26x32xf32>
      %1184 = arith.addf %1179, %1183 : vector<26x32xf32>
      %1185 = vector.extract_strided_slice %0 {offsets = [7, 0], sizes = [1, 32], strides = [1, 1]} : vector<9x32xf32> to vector<1x32xf32>
      %1186 = vector.broadcast %1099 : vector<26x1xf32> to vector<26x32xf32>
      %1187 = vector.broadcast %1185 : vector<1x32xf32> to vector<26x32xf32>
      %1188 = arith.mulf %1186, %1187 : vector<26x32xf32>
      %1189 = arith.addf %1184, %1188 : vector<26x32xf32>
      %1190 = vector.extract_strided_slice %0 {offsets = [8, 0], sizes = [1, 32], strides = [1, 1]} : vector<9x32xf32> to vector<1x32xf32>
      %1191 = vector.broadcast %1100 : vector<26x1xf32> to vector<26x32xf32>
      %1192 = vector.broadcast %1190 : vector<1x32xf32> to vector<26x32xf32>
      %1193 = arith.mulf %1191, %1192 : vector<26x32xf32>
      %1194 = arith.addf %1189, %1193 : vector<26x32xf32>
      %cst_57 = arith.constant 0.000000e+00 : f32
      %1195 = vector.broadcast %cst_57 : f32 to vector<26x32xf32>
      %1196 = arith.maximumf %1194, %1195 : vector<26x32xf32>
      %1197 = arith.maximumf %1148, %1196 : vector<26x32xf32>
      %1198 = vector.extract_strided_slice %1197 {offsets = [0, 0], sizes = [25, 32], strides = [1, 1]} : vector<26x32xf32> to vector<25x32xf32>
      %1199 = vector.extract_strided_slice %1197 {offsets = [1, 0], sizes = [25, 32], strides = [1, 1]} : vector<26x32xf32> to vector<25x32xf32>
      %1200 = arith.maximumf %1198, %1199 : vector<25x32xf32>
      %cst_58 = arith.constant dense<0.000000e+00> : vector<13x32xf32>
      %1201 = tpu.matmul %4, %1200, %cst_58 {dimension_numbers = #tpu.dot_dimension_numbers<[1], [0], [0], [1], [0, 0, 1, 1], [], []>} : vector<13x25xf32>, vector<25x32xf32>, vector<13x32xf32> -> vector<13x32xf32>
      %1202 = vector.extract_strided_slice %1201 {offsets = [0, 0], sizes = [11, 32], strides = [1, 1]} : vector<13x32xf32> to vector<11x32xf32>
      %1203 = vector.extract_strided_slice %1201 {offsets = [1, 0], sizes = [11, 32], strides = [1, 1]} : vector<13x32xf32> to vector<11x32xf32>
      %1204 = vector.extract_strided_slice %1201 {offsets = [2, 0], sizes = [11, 32], strides = [1, 1]} : vector<13x32xf32> to vector<11x32xf32>
      %1205 = tpu.concatenate %1202, %1203, %1204 in 1 : vector<11x32xf32>, vector<11x32xf32>, vector<11x32xf32> -> vector<11x96xf32>
      %1206 = tpu.concatenate %152, %269, %386 in 1 : vector<11x96xf32>, vector<11x96xf32>, vector<11x96xf32> -> vector<11x288xf32>
      %c0_59 = arith.constant 0 : index
      %c0_60 = arith.constant 0 : index
      %1207 = vector.load %arg4[%c0_59, %c0_60] : memref<288x64xf32, #tpu.memory_space<vmem>>, vector<288x64xf32>
      %cst_61 = arith.constant dense<0.000000e+00> : vector<11x64xf32>
      %1208 = tpu.matmul %1206, %1207, %cst_61 {dimension_numbers = #tpu.dot_dimension_numbers<[1], [0], [0], [1], [0, 0, 1, 1], [], []>} : vector<11x288xf32>, vector<288x64xf32>, vector<11x64xf32> -> vector<11x64xf32>
      %1209 = vector.broadcast %2 : vector<1x64xf32> to vector<11x64xf32>
      %1210 = arith.addf %1208, %1209 : vector<11x64xf32>
      %cst_62 = arith.constant 0.000000e+00 : f32
      %1211 = vector.broadcast %cst_62 : f32 to vector<11x64xf32>
      %1212 = arith.maximumf %1210, %1211 : vector<11x64xf32>
      %1213 = tpu.concatenate %269, %386, %503 in 1 : vector<11x96xf32>, vector<11x96xf32>, vector<11x96xf32> -> vector<11x288xf32>
      %c0_63 = arith.constant 0 : index
      %c0_64 = arith.constant 0 : index
      %1214 = vector.load %arg4[%c0_63, %c0_64] : memref<288x64xf32, #tpu.memory_space<vmem>>, vector<288x64xf32>
      %cst_65 = arith.constant dense<0.000000e+00> : vector<11x64xf32>
      %1215 = tpu.matmul %1213, %1214, %cst_65 {dimension_numbers = #tpu.dot_dimension_numbers<[1], [0], [0], [1], [0, 0, 1, 1], [], []>} : vector<11x288xf32>, vector<288x64xf32>, vector<11x64xf32> -> vector<11x64xf32>
      %1216 = vector.broadcast %2 : vector<1x64xf32> to vector<11x64xf32>
      %1217 = arith.addf %1215, %1216 : vector<11x64xf32>
      %cst_66 = arith.constant 0.000000e+00 : f32
      %1218 = vector.broadcast %cst_66 : f32 to vector<11x64xf32>
      %1219 = arith.maximumf %1217, %1218 : vector<11x64xf32>
      %1220 = arith.maximumf %1212, %1219 : vector<11x64xf32>
      %1221 = vector.extract_strided_slice %1220 {offsets = [0, 0], sizes = [10, 64], strides = [1, 1]} : vector<11x64xf32> to vector<10x64xf32>
      %1222 = vector.extract_strided_slice %1220 {offsets = [1, 0], sizes = [10, 64], strides = [1, 1]} : vector<11x64xf32> to vector<10x64xf32>
      %1223 = arith.maximumf %1221, %1222 : vector<10x64xf32>
      %cst_67 = arith.constant dense<0.000000e+00> : vector<5x64xf32>
      %1224 = tpu.matmul %5, %1223, %cst_67 {dimension_numbers = #tpu.dot_dimension_numbers<[1], [0], [0], [1], [0, 0, 1, 1], [], []>} : vector<5x10xf32>, vector<10x64xf32>, vector<5x64xf32> -> vector<5x64xf32>
      %1225 = vector.extract_strided_slice %1224 {offsets = [0, 0], sizes = [3, 64], strides = [1, 1]} : vector<5x64xf32> to vector<3x64xf32>
      %1226 = vector.extract_strided_slice %1224 {offsets = [1, 0], sizes = [3, 64], strides = [1, 1]} : vector<5x64xf32> to vector<3x64xf32>
      %1227 = vector.extract_strided_slice %1224 {offsets = [2, 0], sizes = [3, 64], strides = [1, 1]} : vector<5x64xf32> to vector<3x64xf32>
      %1228 = tpu.concatenate %1225, %1226, %1227 in 1 : vector<3x64xf32>, vector<3x64xf32>, vector<3x64xf32> -> vector<3x192xf32>
      %1229 = tpu.concatenate %386, %503, %620 in 1 : vector<11x96xf32>, vector<11x96xf32>, vector<11x96xf32> -> vector<11x288xf32>
      %c0_68 = arith.constant 0 : index
      %c0_69 = arith.constant 0 : index
      %1230 = vector.load %arg4[%c0_68, %c0_69] : memref<288x64xf32, #tpu.memory_space<vmem>>, vector<288x64xf32>
      %cst_70 = arith.constant dense<0.000000e+00> : vector<11x64xf32>
      %1231 = tpu.matmul %1229, %1230, %cst_70 {dimension_numbers = #tpu.dot_dimension_numbers<[1], [0], [0], [1], [0, 0, 1, 1], [], []>} : vector<11x288xf32>, vector<288x64xf32>, vector<11x64xf32> -> vector<11x64xf32>
      %1232 = vector.broadcast %2 : vector<1x64xf32> to vector<11x64xf32>
      %1233 = arith.addf %1231, %1232 : vector<11x64xf32>
      %cst_71 = arith.constant 0.000000e+00 : f32
      %1234 = vector.broadcast %cst_71 : f32 to vector<11x64xf32>
      %1235 = arith.maximumf %1233, %1234 : vector<11x64xf32>
      %1236 = tpu.concatenate %503, %620, %737 in 1 : vector<11x96xf32>, vector<11x96xf32>, vector<11x96xf32> -> vector<11x288xf32>
      %c0_72 = arith.constant 0 : index
      %c0_73 = arith.constant 0 : index
      %1237 = vector.load %arg4[%c0_72, %c0_73] : memref<288x64xf32, #tpu.memory_space<vmem>>, vector<288x64xf32>
      %cst_74 = arith.constant dense<0.000000e+00> : vector<11x64xf32>
      %1238 = tpu.matmul %1236, %1237, %cst_74 {dimension_numbers = #tpu.dot_dimension_numbers<[1], [0], [0], [1], [0, 0, 1, 1], [], []>} : vector<11x288xf32>, vector<288x64xf32>, vector<11x64xf32> -> vector<11x64xf32>
      %1239 = vector.broadcast %2 : vector<1x64xf32> to vector<11x64xf32>
      %1240 = arith.addf %1238, %1239 : vector<11x64xf32>
      %cst_75 = arith.constant 0.000000e+00 : f32
      %1241 = vector.broadcast %cst_75 : f32 to vector<11x64xf32>
      %1242 = arith.maximumf %1240, %1241 : vector<11x64xf32>
      %1243 = arith.maximumf %1235, %1242 : vector<11x64xf32>
      %1244 = vector.extract_strided_slice %1243 {offsets = [0, 0], sizes = [10, 64], strides = [1, 1]} : vector<11x64xf32> to vector<10x64xf32>
      %1245 = vector.extract_strided_slice %1243 {offsets = [1, 0], sizes = [10, 64], strides = [1, 1]} : vector<11x64xf32> to vector<10x64xf32>
      %1246 = arith.maximumf %1244, %1245 : vector<10x64xf32>
      %cst_76 = arith.constant dense<0.000000e+00> : vector<5x64xf32>
      %1247 = tpu.matmul %5, %1246, %cst_76 {dimension_numbers = #tpu.dot_dimension_numbers<[1], [0], [0], [1], [0, 0, 1, 1], [], []>} : vector<5x10xf32>, vector<10x64xf32>, vector<5x64xf32> -> vector<5x64xf32>
      %1248 = vector.extract_strided_slice %1247 {offsets = [0, 0], sizes = [3, 64], strides = [1, 1]} : vector<5x64xf32> to vector<3x64xf32>
      %1249 = vector.extract_strided_slice %1247 {offsets = [1, 0], sizes = [3, 64], strides = [1, 1]} : vector<5x64xf32> to vector<3x64xf32>
      %1250 = vector.extract_strided_slice %1247 {offsets = [2, 0], sizes = [3, 64], strides = [1, 1]} : vector<5x64xf32> to vector<3x64xf32>
      %1251 = tpu.concatenate %1248, %1249, %1250 in 1 : vector<3x64xf32>, vector<3x64xf32>, vector<3x64xf32> -> vector<3x192xf32>
      %1252 = tpu.concatenate %620, %737, %854 in 1 : vector<11x96xf32>, vector<11x96xf32>, vector<11x96xf32> -> vector<11x288xf32>
      %c0_77 = arith.constant 0 : index
      %c0_78 = arith.constant 0 : index
      %1253 = vector.load %arg4[%c0_77, %c0_78] : memref<288x64xf32, #tpu.memory_space<vmem>>, vector<288x64xf32>
      %cst_79 = arith.constant dense<0.000000e+00> : vector<11x64xf32>
      %1254 = tpu.matmul %1252, %1253, %cst_79 {dimension_numbers = #tpu.dot_dimension_numbers<[1], [0], [0], [1], [0, 0, 1, 1], [], []>} : vector<11x288xf32>, vector<288x64xf32>, vector<11x64xf32> -> vector<11x64xf32>
      %1255 = vector.broadcast %2 : vector<1x64xf32> to vector<11x64xf32>
      %1256 = arith.addf %1254, %1255 : vector<11x64xf32>
      %cst_80 = arith.constant 0.000000e+00 : f32
      %1257 = vector.broadcast %cst_80 : f32 to vector<11x64xf32>
      %1258 = arith.maximumf %1256, %1257 : vector<11x64xf32>
      %1259 = tpu.concatenate %737, %854, %971 in 1 : vector<11x96xf32>, vector<11x96xf32>, vector<11x96xf32> -> vector<11x288xf32>
      %c0_81 = arith.constant 0 : index
      %c0_82 = arith.constant 0 : index
      %1260 = vector.load %arg4[%c0_81, %c0_82] : memref<288x64xf32, #tpu.memory_space<vmem>>, vector<288x64xf32>
      %cst_83 = arith.constant dense<0.000000e+00> : vector<11x64xf32>
      %1261 = tpu.matmul %1259, %1260, %cst_83 {dimension_numbers = #tpu.dot_dimension_numbers<[1], [0], [0], [1], [0, 0, 1, 1], [], []>} : vector<11x288xf32>, vector<288x64xf32>, vector<11x64xf32> -> vector<11x64xf32>
      %1262 = vector.broadcast %2 : vector<1x64xf32> to vector<11x64xf32>
      %1263 = arith.addf %1261, %1262 : vector<11x64xf32>
      %cst_84 = arith.constant 0.000000e+00 : f32
      %1264 = vector.broadcast %cst_84 : f32 to vector<11x64xf32>
      %1265 = arith.maximumf %1263, %1264 : vector<11x64xf32>
      %1266 = arith.maximumf %1258, %1265 : vector<11x64xf32>
      %1267 = vector.extract_strided_slice %1266 {offsets = [0, 0], sizes = [10, 64], strides = [1, 1]} : vector<11x64xf32> to vector<10x64xf32>
      %1268 = vector.extract_strided_slice %1266 {offsets = [1, 0], sizes = [10, 64], strides = [1, 1]} : vector<11x64xf32> to vector<10x64xf32>
      %1269 = arith.maximumf %1267, %1268 : vector<10x64xf32>
      %cst_85 = arith.constant dense<0.000000e+00> : vector<5x64xf32>
      %1270 = tpu.matmul %5, %1269, %cst_85 {dimension_numbers = #tpu.dot_dimension_numbers<[1], [0], [0], [1], [0, 0, 1, 1], [], []>} : vector<5x10xf32>, vector<10x64xf32>, vector<5x64xf32> -> vector<5x64xf32>
      %1271 = vector.extract_strided_slice %1270 {offsets = [0, 0], sizes = [3, 64], strides = [1, 1]} : vector<5x64xf32> to vector<3x64xf32>
      %1272 = vector.extract_strided_slice %1270 {offsets = [1, 0], sizes = [3, 64], strides = [1, 1]} : vector<5x64xf32> to vector<3x64xf32>
      %1273 = vector.extract_strided_slice %1270 {offsets = [2, 0], sizes = [3, 64], strides = [1, 1]} : vector<5x64xf32> to vector<3x64xf32>
      %1274 = tpu.concatenate %1271, %1272, %1273 in 1 : vector<3x64xf32>, vector<3x64xf32>, vector<3x64xf32> -> vector<3x192xf32>
      %1275 = tpu.concatenate %854, %971, %1088 in 1 : vector<11x96xf32>, vector<11x96xf32>, vector<11x96xf32> -> vector<11x288xf32>
      %c0_86 = arith.constant 0 : index
      %c0_87 = arith.constant 0 : index
      %1276 = vector.load %arg4[%c0_86, %c0_87] : memref<288x64xf32, #tpu.memory_space<vmem>>, vector<288x64xf32>
      %cst_88 = arith.constant dense<0.000000e+00> : vector<11x64xf32>
      %1277 = tpu.matmul %1275, %1276, %cst_88 {dimension_numbers = #tpu.dot_dimension_numbers<[1], [0], [0], [1], [0, 0, 1, 1], [], []>} : vector<11x288xf32>, vector<288x64xf32>, vector<11x64xf32> -> vector<11x64xf32>
      %1278 = vector.broadcast %2 : vector<1x64xf32> to vector<11x64xf32>
      %1279 = arith.addf %1277, %1278 : vector<11x64xf32>
      %cst_89 = arith.constant 0.000000e+00 : f32
      %1280 = vector.broadcast %cst_89 : f32 to vector<11x64xf32>
      %1281 = arith.maximumf %1279, %1280 : vector<11x64xf32>
      %1282 = tpu.concatenate %971, %1088, %1205 in 1 : vector<11x96xf32>, vector<11x96xf32>, vector<11x96xf32> -> vector<11x288xf32>
      %c0_90 = arith.constant 0 : index
      %c0_91 = arith.constant 0 : index
      %1283 = vector.load %arg4[%c0_90, %c0_91] : memref<288x64xf32, #tpu.memory_space<vmem>>, vector<288x64xf32>
      %cst_92 = arith.constant dense<0.000000e+00> : vector<11x64xf32>
      %1284 = tpu.matmul %1282, %1283, %cst_92 {dimension_numbers = #tpu.dot_dimension_numbers<[1], [0], [0], [1], [0, 0, 1, 1], [], []>} : vector<11x288xf32>, vector<288x64xf32>, vector<11x64xf32> -> vector<11x64xf32>
      %1285 = vector.broadcast %2 : vector<1x64xf32> to vector<11x64xf32>
      %1286 = arith.addf %1284, %1285 : vector<11x64xf32>
      %cst_93 = arith.constant 0.000000e+00 : f32
      %1287 = vector.broadcast %cst_93 : f32 to vector<11x64xf32>
      %1288 = arith.maximumf %1286, %1287 : vector<11x64xf32>
      %1289 = arith.maximumf %1281, %1288 : vector<11x64xf32>
      %1290 = vector.extract_strided_slice %1289 {offsets = [0, 0], sizes = [10, 64], strides = [1, 1]} : vector<11x64xf32> to vector<10x64xf32>
      %1291 = vector.extract_strided_slice %1289 {offsets = [1, 0], sizes = [10, 64], strides = [1, 1]} : vector<11x64xf32> to vector<10x64xf32>
      %1292 = arith.maximumf %1290, %1291 : vector<10x64xf32>
      %cst_94 = arith.constant dense<0.000000e+00> : vector<5x64xf32>
      %1293 = tpu.matmul %5, %1292, %cst_94 {dimension_numbers = #tpu.dot_dimension_numbers<[1], [0], [0], [1], [0, 0, 1, 1], [], []>} : vector<5x10xf32>, vector<10x64xf32>, vector<5x64xf32> -> vector<5x64xf32>
      %1294 = vector.extract_strided_slice %1293 {offsets = [0, 0], sizes = [3, 64], strides = [1, 1]} : vector<5x64xf32> to vector<3x64xf32>
      %1295 = vector.extract_strided_slice %1293 {offsets = [1, 0], sizes = [3, 64], strides = [1, 1]} : vector<5x64xf32> to vector<3x64xf32>
      %1296 = vector.extract_strided_slice %1293 {offsets = [2, 0], sizes = [3, 64], strides = [1, 1]} : vector<5x64xf32> to vector<3x64xf32>
      %1297 = tpu.concatenate %1294, %1295, %1296 in 1 : vector<3x64xf32>, vector<3x64xf32>, vector<3x64xf32> -> vector<3x192xf32>
      %1298 = tpu.concatenate %1228, %1251, %1274 in 1 : vector<3x192xf32>, vector<3x192xf32>, vector<3x192xf32> -> vector<3x576xf32>
      %c0_95 = arith.constant 0 : index
      %c0_96 = arith.constant 0 : index
      %1299 = vector.load %arg6[%c0_95, %c0_96] : memref<576x128xf32, #tpu.memory_space<vmem>>, vector<576x128xf32>
      %cst_97 = arith.constant dense<0.000000e+00> : vector<3x128xf32>
      %1300 = tpu.matmul %1298, %1299, %cst_97 {dimension_numbers = #tpu.dot_dimension_numbers<[1], [0], [0], [1], [0, 0, 1, 1], [], []>} : vector<3x576xf32>, vector<576x128xf32>, vector<3x128xf32> -> vector<3x128xf32>
      %1301 = vector.broadcast %3 : vector<1x128xf32> to vector<3x128xf32>
      %1302 = arith.addf %1300, %1301 : vector<3x128xf32>
      %cst_98 = arith.constant 0.000000e+00 : f32
      %1303 = vector.broadcast %cst_98 : f32 to vector<3x128xf32>
      %1304 = arith.maximumf %1302, %1303 : vector<3x128xf32>
      %1305 = tpu.concatenate %1251, %1274, %1297 in 1 : vector<3x192xf32>, vector<3x192xf32>, vector<3x192xf32> -> vector<3x576xf32>
      %c0_99 = arith.constant 0 : index
      %c0_100 = arith.constant 0 : index
      %1306 = vector.load %arg6[%c0_99, %c0_100] : memref<576x128xf32, #tpu.memory_space<vmem>>, vector<576x128xf32>
      %cst_101 = arith.constant dense<0.000000e+00> : vector<3x128xf32>
      %1307 = tpu.matmul %1305, %1306, %cst_101 {dimension_numbers = #tpu.dot_dimension_numbers<[1], [0], [0], [1], [0, 0, 1, 1], [], []>} : vector<3x576xf32>, vector<576x128xf32>, vector<3x128xf32> -> vector<3x128xf32>
      %1308 = vector.broadcast %3 : vector<1x128xf32> to vector<3x128xf32>
      %1309 = arith.addf %1307, %1308 : vector<3x128xf32>
      %cst_102 = arith.constant 0.000000e+00 : f32
      %1310 = vector.broadcast %cst_102 : f32 to vector<3x128xf32>
      %1311 = arith.maximumf %1309, %1310 : vector<3x128xf32>
      %1312 = arith.maximumf %1304, %1311 : vector<3x128xf32>
      %1313 = vector.extract_strided_slice %1312 {offsets = [0, 0], sizes = [1, 128], strides = [1, 1]} : vector<3x128xf32> to vector<1x128xf32>
      %1314 = vector.extract_strided_slice %1312 {offsets = [1, 0], sizes = [1, 128], strides = [1, 1]} : vector<3x128xf32> to vector<1x128xf32>
      %1315 = arith.maximumf %1313, %1314 : vector<1x128xf32>
      %1316 = vector.broadcast %arg15 : i32 to vector<8x128xi32>
      %1317 = arith.cmpi eq, %6, %1316 : vector<8x128xi32>
      %1318 = vector.shape_cast %1315 : vector<1x128xf32> to vector<1x128xf32>
      %1319 = vector.broadcast %1318 : vector<1x128xf32> to vector<8x128xf32>
      %1320 = arith.select %1317, %1319, %arg16 : vector<8x128xi1>, vector<8x128xf32>
      scf.yield %1320 : vector<8x128xf32>
    }
    %c8_i32_11 = arith.constant 8 : i32
    %c0_12 = arith.constant 0 : index
    %c0_13 = arith.constant 0 : index
    %10 = vector.load %arg8[%c0_12, %c0_13] : memref<128x512xf32, #tpu.memory_space<vmem>>, vector<128x512xf32>
    %cst_14 = arith.constant dense<0.000000e+00> : vector<8x512xf32>
    %11 = tpu.matmul %9, %10, %cst_14 {dimension_numbers = #tpu.dot_dimension_numbers<[1], [0], [0], [1], [0, 0, 1, 1], [], []>} : vector<8x128xf32>, vector<128x512xf32>, vector<8x512xf32> -> vector<8x512xf32>
    %c0_15 = arith.constant 0 : index
    %c0_16 = arith.constant 0 : index
    %12 = vector.load %arg9[%c0_15, %c0_16] : memref<1x512xf32, #tpu.memory_space<vmem>>, vector<1x512xf32>
    %13 = vector.broadcast %12 : vector<1x512xf32> to vector<8x512xf32>
    %14 = arith.addf %11, %13 : vector<8x512xf32>
    %cst_17 = arith.constant 0.000000e+00 : f32
    %15 = vector.broadcast %cst_17 : f32 to vector<8x512xf32>
    %16 = arith.maximumf %14, %15 : vector<8x512xf32>
    %c0_18 = arith.constant 0 : index
    %c0_19 = arith.constant 0 : index
    %17 = vector.load %arg10[%c0_18, %c0_19] : memref<512x10xf32, #tpu.memory_space<vmem>>, vector<512x10xf32>
    %cst_20 = arith.constant dense<0.000000e+00> : vector<8x10xf32>
    %18 = tpu.matmul %16, %17, %cst_20 {dimension_numbers = #tpu.dot_dimension_numbers<[1], [0], [0], [1], [0, 0, 1, 1], [], []>} : vector<8x512xf32>, vector<512x10xf32>, vector<8x10xf32> -> vector<8x10xf32>
    %c0_21 = arith.constant 0 : index
    %c0_22 = arith.constant 0 : index
    %19 = vector.load %arg11[%c0_21, %c0_22] : memref<1x10xf32, #tpu.memory_space<vmem>>, vector<1x10xf32>
    %20 = vector.broadcast %19 : vector<1x10xf32> to vector<8x10xf32>
    %21 = arith.addf %18, %20 : vector<8x10xf32>
    %cst_23 = arith.constant dense<0xFF800000> : vector<8xf32>
    %22 = vector.multi_reduction <maximumf>, %21, %cst_23 [1] : vector<8x10xf32> to vector<8xf32>
    %23 = vector.shape_cast %22 : vector<8xf32> to vector<8x1xf32>
    %24 = vector.broadcast %23 : vector<8x1xf32> to vector<8x10xf32>
    %25 = arith.subf %21, %24 : vector<8x10xf32>
    %26 = math.exp %25 : vector<8x10xf32>
    %cst_24 = arith.constant dense<0.000000e+00> : vector<8xf32>
    %27 = vector.multi_reduction <add>, %26, %cst_24 [1] : vector<8x10xf32> to vector<8xf32>
    %28 = vector.shape_cast %27 : vector<8xf32> to vector<8x1xf32>
    %29 = math.log %28 : vector<8x1xf32>
    %30 = vector.broadcast %29 : vector<8x1xf32> to vector<8x10xf32>
    %31 = arith.subf %25, %30 : vector<8x10xf32>
    %c0_25 = arith.constant 0 : index
    %c0_26 = arith.constant 0 : index
    %32 = vector.load %arg14[%c0_25, %c0_26] : memref<8x10xf32, #tpu.memory_space<vmem>>, vector<8x10xf32>
    tpu.vector_store %arg14[%c0_25, %c0_26], %31 {strides = array<i32>} : memref<8x10xf32, #tpu.memory_space<vmem>>, vector<8x10xf32>,
    return
  }
  func.func @transform_0(%arg0: i32) -> (i32, i32, i32) {
    %c0_i32 = arith.constant 0 : i32
    %c0_i32_0 = arith.constant 0 : i32
    %c0_i32_1 = arith.constant 0 : i32
    return %arg0, %c0_i32, %c0_i32_0 : i32, i32, i32
  }
  func.func @transform_1(%arg0: i32) -> (i32, i32) {
    %c0_i32 = arith.constant 0 : i32
    %c0_i32_0 = arith.constant 0 : i32
    %c0_i32_1 = arith.constant 0 : i32
    return %c0_i32, %c0_i32_0 : i32, i32
  }
  func.func @transform_2(%arg0: i32) -> (i32, i32) {
    %c0_i32 = arith.constant 0 : i32
    %c0_i32_0 = arith.constant 0 : i32
    %c0_i32_1 = arith.constant 0 : i32
    return %c0_i32, %c0_i32_0 : i32, i32
  }
  func.func @transform_3(%arg0: i32) -> (i32, i32) {
    %c0_i32 = arith.constant 0 : i32
    %c0_i32_0 = arith.constant 0 : i32
    %c0_i32_1 = arith.constant 0 : i32
    return %c0_i32, %c0_i32_0 : i32, i32
  }
  func.func @transform_4(%arg0: i32) -> (i32, i32) {
    %c0_i32 = arith.constant 0 : i32
    %c0_i32_0 = arith.constant 0 : i32
    %c0_i32_1 = arith.constant 0 : i32
    return %c0_i32, %c0_i32_0 : i32, i32
  }
  func.func @transform_5(%arg0: i32) -> (i32, i32) {
    %c0_i32 = arith.constant 0 : i32
    %c0_i32_0 = arith.constant 0 : i32
    %c0_i32_1 = arith.constant 0 : i32
    return %c0_i32, %c0_i32_0 : i32, i32
  }
  func.func @transform_6(%arg0: i32) -> (i32, i32) {
    %c0_i32 = arith.constant 0 : i32
    %c0_i32_0 = arith.constant 0 : i32
    %c0_i32_1 = arith.constant 0 : i32
    return %c0_i32, %c0_i32_0 : i32, i32
  }
  func.func @transform_7(%arg0: i32) -> (i32, i32) {
    %c0_i32 = arith.constant 0 : i32
    %c0_i32_0 = arith.constant 0 : i32
    %c0_i32_1 = arith.constant 0 : i32
    return %c0_i32, %c0_i32_0 : i32, i32
  }
  func.func @transform_8(%arg0: i32) -> (i32, i32) {
    %c0_i32 = arith.constant 0 : i32
    %c0_i32_0 = arith.constant 0 : i32
    %c0_i32_1 = arith.constant 0 : i32
    return %c0_i32, %c0_i32_0 : i32, i32
  }
  func.func @transform_9(%arg0: i32) -> (i32, i32) {
    %c0_i32 = arith.constant 0 : i32
    %c0_i32_0 = arith.constant 0 : i32
    %c0_i32_1 = arith.constant 0 : i32
    return %c0_i32, %c0_i32_0 : i32, i32
  }
  func.func @transform_10(%arg0: i32) -> (i32, i32) {
    %c0_i32 = arith.constant 0 : i32
    %c0_i32_0 = arith.constant 0 : i32
    %c0_i32_1 = arith.constant 0 : i32
    return %c0_i32, %c0_i32_0 : i32, i32
  }
  func.func @transform_11(%arg0: i32) -> (i32, i32) {
    %c0_i32 = arith.constant 0 : i32
    %c0_i32_0 = arith.constant 0 : i32
    %c0_i32_1 = arith.constant 0 : i32
    return %c0_i32, %c0_i32_0 : i32, i32
  }
  func.func @transform_12(%arg0: i32) -> (i32, i32) {
    %c0_i32 = arith.constant 0 : i32
    %c0_i32_0 = arith.constant 0 : i32
    %c0_i32_1 = arith.constant 0 : i32
    return %c0_i32, %c0_i32_0 : i32, i32
  }
  func.func @transform_13(%arg0: i32) -> (i32, i32) {
    %c0_i32 = arith.constant 0 : i32
    %c0_i32_0 = arith.constant 0 : i32
    return %arg0, %c0_i32 : i32, i32
  }
}

</mosaic_0001>

<bundles_post_ra>
// kernel: net_forward.1
= control target key start
LH: loop header
LB: loop body
LE: loop exit
PB: predicated region body
PF: predicated region fallthrough
CT: control target
= control target key end

     0   :  { %s16100_s0 = inlined_call_operand.vmem [shape: f32[16,28,28], index: 0, kind: input, shape index: {}]   ;;  %s16101_s1 = inlined_call_operand.vmem [shape: f32[9,32], index: 1, kind: input, shape index: {}]   ;;  %s16102_s2 = inlined_call_operand.vmem [shape: f32[1,32], index: 2, kind: input, shape index: {}]   ;;  %s16103_s3 = inlined_call_operand.vmem [shape: f32[288,64], index: 3, kind: input, shape index: {}]   ;;  %s16104_s4 = inlined_call_operand.vmem [shape: f32[1,64], index: 4, kind: input, shape index: {}]   ;;  %s16105_s5 = inlined_call_operand.vmem [shape: f32[576,128], index: 5, kind: input, shape index: {}]   ;;  %s16106_s6 = inlined_call_operand.vmem [shape: f32[1,128], index: 6, kind: input, shape index: {}]   ;;  %s16107_s7 = inlined_call_operand.vmem [shape: f32[128,512], index: 7, kind: input, shape index: {}]   ;;  %s16108_s8 = inlined_call_operand.vmem [shape: f32[1,512], index: 8, kind: input, shape index: {}]   ;;  %s16109_s9 = inlined_call_operand.vmem [shape: f32[512,10], index: 9, kind: input, shape index: {}]   ;;  %s16110_s10 = inlined_call_operand.vmem [shape: f32[1,10], index: 10, kind: input, shape index: {}]   ;;  %s16111_s11 = inlined_call_operand.vmem [shape: f32[13,25], index: 11, kind: input, shape index: {}]   ;;  %s16112_s12 = inlined_call_operand.vmem [shape: f32[5,10], index: 12, kind: input, shape index: {}]   ;;  %s16113_s13 = inlined_call_operand.hbm [shape: f32[16,10], index: 13, kind: output, shape index: {}]  }
   0x1   :  { %16388 = sst [smem:[#allocation91_spill]] %s16100_s0 }
   0x2   :  { %16389 = sst [smem:[#allocation92_spill]] %s16101_s1 }
   0x3   :  { %16390 = sst [smem:[#allocation93_spill]] %s16102_s2 }
   0x4   :  { %16391 = sst [smem:[#allocation94_spill]] %s16104_s4 }
   0x5   :  { %18 = vsyncpa [#allocation3], 0 }
   0x6   :  { %20 = vsyncpa [#allocation3 + $0x1], 0  ;;  %s10427_s25 = smov 0   ;;  %s10429_s26 = smov 0  }
   0x7   :  { %s10431_s27 = smov 0   ;;  %s10433_s28 = smov 0  }
   0x8 LB: > { %16392 = sst [smem:[#allocation5_spill]] %s10312_s27  ;;  %s10448_s29 = sadd.s32 4294967295, %s10316_s28   ;;  %s10316_s28 = sphi %s10433_s28, %s17064_s28   ;;  %s10312_s27 = sphi %s10431_s27, %s17061_s27   ;;  %s10308_s26 = sphi %s10429_s26, %s17063_s26   ;;  %s10304_s25 = sphi %s10427_s25, %s17062_s25  }
   0x9   : > { %s8329_s30 = sadd.s32 4294967294, %s10316_s28   ;;  %s10452_s14 = sadd.s32 1, %s10316_s28  }
   0xa   : > { %s311_s15 = sadd.s32 1, %s10312_s27  ;;  %s308_s16 = ssub.s32 %s10316_s28, %s10452_s14 }
   0xb   : > { %p321_p0 = scmp.ne.s32.totalorder %s10312_s27, %s10308_s26  ;;  %p309_p1 = scmp.eq.s32.totalorder %s308_s16, 0 }
   0xc   : > { %p322_p2 = scmp.eq.s32.totalorder %s10448_s29, 1  ;;  %p327_p3 = scmp.ne.s32.totalorder %s10308_s26, %s10304_s25 }
   0xd   : > { %p328_p4 = scmp.eq.s32.totalorder %s8329_s30, 1  ;;  %p8332_p7 = scmp.ge.s32.totalorder %s10316_s28, 1 }
   0xe   : > { %s10463_s17 = scalar_select %p309_p1, %s10312_s27, %s311_s15  }
   0xf   : > { %p10465_p5 = por %p322_p2, %p321_p0  ;;  %p10469_p6 = por %p328_p4, %p327_p3 }
  0x10   : > { %16393 = sst [smem:[#allocation6_spill]] %s10463_s17  ;;  %p392_p8 = scmp.lt.s32.totalorder %s10316_s28, 3 }
  0x12   : > { %p393_p9 = pnand %p8332_p7, %p392_p8 }
  0x14   : > { %396 = sbr.rel (%p393_p9) target bundleno = 3397 (0xd45), region = 72 }
  0x1b   : > { %s16115_s20 = sand.u32 1, %s10308_s26   ;;  %s8334_s21 = sshll.u32 %s10448_s29, 3  ;;  %v10490_v2 = vld [vmem:[%s16111_s11] sm:$0xff]  ;;  %v452_v3 = vlaneseq  ;;  %v10514_v7 = vld [vmem:[%s16111_s11 + $0x8] sm:$0x1f]  ;;  %v10529_v10 = vmov 0.0  }
  0x1c   : > { %s16396_s1 = sld [smem:[#allocation92_spill]]  ;;  %16399 = vst [vmem:[#allocation9_spill] sm:$0xff] %v10490_v2  ;;  %s10494_s17 = sshll.u32 %s16115_s20, 3  ;;  %v10509_v6 = vld [vmem:[%s16106_s6] ss:$0 sm:$0xff]  ;;  %16405 = vst [vmem:[#allocation13_spill] sm:$0xff] %v10514_v7 }
  0x1d   : > { %p438_p10 = scmp.lt.s32.totalorder %s8334_s21, 15  ;;  %s16400_s2 = sld [smem:[#allocation93_spill]]  ;;  %16404 = vst [vmem:[#allocation12_spill] sm:$0xff] %v10509_v6  ;;  %v10516_v8 = vshrl.u32 %v452_v3, 7  ;;  %v10521_v9 = vld [vmem:[%s16112_s12] sm:$0x1f] }
  0x1e   : > { %s16402_s4 = sld [smem:[#allocation94_spill]]  ;;  %16407 = vst [vmem:[#allocation15_spill] sm:$0xff] %v10521_v9  ;;  %s16408_s0 = sld [smem:[#allocation91_spill]] }
  0x1f   : > { %16406 = vst [vmem:[#allocation14_spill] sm:$0xff] %v10516_v8  ;;  %s17066_s21 = smov (!%p438_p10, %s8334_s21), 15  ;;  %s10531_s20 = smov 0  }
  0x20   : > { %s8403_s23 = sshll.u32 %s17066_s21, 5 }
  0x22   : > { %v10480_v0 = vld [vmem:[%s16396_s1] sm:$0xff]  ;;  %v10485_v1 = vld [vmem:[%s16396_s1 + $0x8] ss:$0 sm:$0xff] }
  0x23   : > { %16397 = vst [vmem:[#allocation7_spill] sm:$0xff] %v10480_v0  ;;  %16398 = vst [vmem:[#allocation8_spill] sm:$0xff] %v10485_v1  ;;  %v10499_v4 = vld [vmem:[%s16400_s2] ss:$0 sm:$0xff] }
  0x24   : > { %16401 = vst [vmem:[#allocation10_spill] sm:$0xff] %v10499_v4  ;;  %v10504_v5 = vld [vmem:[%s16402_s4] ss:$0 sm:$0xff]  ;;  %s10526_s30 = scalar_lea.vmem %s16408_s0, %s8403_s23 }
  0x25   : > { %16403 = vst [vmem:[#allocation11_spill] sm:$0xff] %v10504_v5 }
  0x26 LB: >> { %v16411_v8 = vld [vmem:[#allocation14_spill] sm:$0xff]  ;;  %16413 = vst [vmem:[#allocation16_spill] sm:$0xff] %v10320_v10  ;;  %v10326_v11 = vmov 0   ;;  %s8337_s1 = sshll.u32 %s10324_s20, 5  ;;  %v10327_v16 = vmov 1   ;;  %v10328_v17 = vmov 2   ;;  %s10324_s20 = sphi %s10531_s20, %s459_s20   ;;  %v10320_v10 = vphi %v10529_v10, %v17051_v10  }
  0x27   : >> { %10122 = vset.pattern.permute.xlu1 %v10326_v11  ;;  %10121 = vset.pattern.permute.xlu0 %v10326_v11  ;;  %s10541_s21 = scalar_lea.vmem %s10526_s30, %s8337_s1  ;;  %v10329_v18 = vmov 4   ;;  %v10330_v19 = vmov 5   ;;  %v10331_v20 = vmov 3   ;;  %v10332_v21 = vmov 6   ;;  %s16370_s16 = smov 32  }
  0x28   : >> { %v10544_v12 = vld [vmem:[%s10541_s21 + $0x10] sm:$0xff]  ;;  %v10547_v13 = vld [vmem:[%s10541_s21] sm:$0xff]  ;;  %v10552_v14 = vld [vmem:[%s10541_s21 + $0x18] sm:$0xf]  ;;  %v10333_v22 = vmov 7   ;;  %v10334_v23 = vmov 8  }
  0x29   : >> { %479 = vperm.xlu1 %10122, %v10544_v12   ;;  %469 = vperm.xlu0 %10121, %v10547_v13   ;;  %v10555_v15 = vld [vmem:[%s10541_s21 + $0x8] sm:$0xff]  ;;  %v10335_v24 = vmov 9   ;;  %v10336_v25 = vmov 10   ;;  %v10337_v26 = vmov 11   ;;  %v10338_v27 = vmov 12   ;;  %s16368_s27 = smov 64  }
  0x2a   : >> { %v16410_v1 = vld [vmem:[#allocation8_spill] sm:$0xff]  ;;  %v16412_v0 = vld [vmem:[#allocation7_spill] sm:$0xff]  ;;  %v16117_v28 = vsub.s32 1, %v16411_v8  ;;  %v10606_v29 = vsub.s32 0, %v16411_v8  ;;  %v16118_v30 = vsub.s32 2, %v16411_v8  ;;  %v16116_v36 = vsub.s32 3, %v16411_v8 }
  0x2b   : >> { %v16409_v4 = vld [vmem:[#allocation10_spill] sm:$0xff]  ;;  %vm517_vm0 = vcmask 1046528   ;;  %vm545_vm1 = vcmask 1045504   ;;  %v591_v40 = vsub.s32 4, %v16411_v8  ;;  %v618_v41 = vsub.s32 5, %v16411_v8  ;;  %s16372_s22 = smov 96  }
  0x2c   : >> { %16414 = vst [vmem:[#allocation17_spill] sm:$0xff] %v10606_v29  ;;  %v10612_v31 = vrot.slane %v16412_v0, %v16117_v28  ;;  %v10616_v32 = vrot.slane %v16412_v0, %v10606_v29  ;;  %v10621_v33 = vrot.slane %v16412_v0, %v16118_v30  ;;  %v10636_v47 = vrot.slane %v16412_v0, %v16116_v36  ;;  %s17020_s23 = smov 96   ;;  %s17021_s24 = smov 32  }
  0x2d   : >> { %484 = vperm.xlu1 %10122, %v10552_v14   ;;  %474 = vperm.xlu0 %10121, %v10555_v15   ;;  %v10649_v63 = vrot.slane %v16412_v0, %v591_v40  ;;  %vm941_vm2 = vcmask 1040384   ;;  %vm10339_vm3 = vmmov 1   ;;  %vm934_vm5 = vcmask 203776  }
  0x2e   : >> { %16415 = vst [vmem:[#allocation18_spill] sm:$0xff] %v10612_v31  ;;  %16416 = vst [vmem:[#allocation19_spill] sm:$0xff] %v10616_v32  ;;  %vm1040_vm6 = vcmask 261120   ;;  %vm1043_vm7 = vcmask 523264   ;;  %vm5463_vm8 = vcmask 785408   ;;  %vm10353_vm9 = vmmov 0  }
  0x2f   : >> { %16417 = vst [vmem:[#allocation20_spill] sm:$0xff] %v10621_v33  ;;  %vm11185_vm4 = vmpackc.low %vm941_vm2, %vm10339_vm3  ;;  %vm5855_vm10 = vcmask 1041408   ;;  %vm5851_vm12 = vcmask 80896  }
  0x30   : >> { %vm14956_vm11 = vmpackc.low %vm5855_vm10, %vm10339_vm3 }
  0x31   : >> { %10124 = vset.pattern.permute.xlu1 %v10327_v16  ;;  %10123 = vset.pattern.permute.xlu0 %v10327_v16  ;;  %v661_v16 = vsub.s32 6, %v16411_v8 }
  0x32   : >> { %566 = vperm.xlu1 %10124, %v10555_v15   ;;  %562 = vperm.xlu0 %10123, %v10547_v13  }
  0x36   : >> { %570 = vperm.xlu1 %10124, %v10544_v12   ;;  %574 = vperm.xlu0 %10123, %v10552_v14  }
  0x3a   : >> { %10125 = vset.pattern.permute.xlu1 %v10328_v17  ;;  %10126 = vset.pattern.permute.xlu0 %v10328_v17 }
  0x3b   : >> { %644 = vperm.xlu1 %10125, %v10547_v13   ;;  %648 = vperm.xlu0 %10126, %v10555_v15  }
  0x3f   : >> { %652 = vperm.xlu1 %10125, %v10544_v12   ;;  %10127 = vset.pattern.permute.xlu0 %v10329_v18 }
  0x40   : >> { %1155 = vperm.xlu0 %10127, %v10547_v13  }
  0x43   : >> { %656 = vperm.xlu1 %10125, %v10552_v14  }
  0x44   : >> { %1167 = vperm.xlu0 %10127, %v10552_v14  }
  0x47   : >> { %10128 = vset.pattern.permute.xlu1 %v10329_v18 }
  0x48   : >> { %1159 = vperm.xlu1 %10128, %v10555_v15   ;;  %10130 = vset.pattern.permute.xlu0 %v10330_v19 }
  0x49   : >> { %1341 = vperm.xlu0 %10130, %v10555_v15  }
  0x4c   : >> { %1163 = vperm.xlu1 %10128, %v10544_v12  }
  0x4d   : >> { %10131 = vset.pattern.permute.xlu0 %v10331_v20 }
  0x4e   : >> { %838 = vperm.xlu0 %10131, %v10547_v13  }
  0x50   : >> { %10129 = vset.pattern.permute.xlu1 %v10330_v19 }
  0x51   : >> { %1337 = vperm.xlu1 %10129, %v10547_v13  }
  0x52   : >> { %850 = vperm.xlu0 %10131, %v10552_v14  }
  0x55   : >> { %1345 = vperm.xlu1 %10129, %v10544_v12  }
  0x56   : >> { %10134 = vset.pattern.permute.xlu0 %v10332_v21 }
  0x57   : >> { %1648 = vperm.xlu0 %10134, %v10555_v15  }
  0x59   : >> { %1349 = vperm.xlu1 %10129, %v10552_v14  }
  0x5b   : >> { %10135 = vset.pattern.permute.xlu0 %v10333_v22 }
  0x5c   : >> { %1826 = vperm.xlu0 %10135, %v10547_v13  }
  0x5d   : >> { %10132 = vset.pattern.permute.xlu1 %v10331_v20 }
  0x5e   : >> { %842 = vperm.xlu1 %10132, %v10555_v15  }
  0x60   : >> { %1838 = vperm.xlu0 %10135, %v10552_v14  }
  0x62   : >> { %846 = vperm.xlu1 %10132, %v10544_v12  }
  0x64   : >> { %10138 = vset.pattern.permute.xlu0 %v10334_v23 }
  0x65   : >> { %2137 = vperm.xlu0 %10138, %v10555_v15  }
  0x66   : >> { %10133 = vset.pattern.permute.xlu1 %v10332_v21 }
  0x67   : >> { %1644 = vperm.xlu1 %10133, %v10547_v13  }
  0x69   : >> { %10139 = vset.pattern.permute.xlu0 %v10335_v24 }
  0x6a   : >> { %2315 = vperm.xlu0 %10139, %v10547_v13  }
  0x6b   : >> { %1652 = vperm.xlu1 %10133, %v10544_v12  }
  0x6e   : >> { %2327 = vperm.xlu0 %10139, %v10552_v14  }
  0x6f   : >> { %1656 = vperm.xlu1 %10133, %v10552_v14  }
  0x72   : >> { %10142 = vset.pattern.permute.xlu0 %v10336_v25 }
  0x73   : >> { %10136 = vset.pattern.permute.xlu1 %v10333_v22  ;;  %2626 = vperm.xlu0 %10142, %v10555_v15  }
  0x74   : >> { %1830 = vperm.xlu1 %10136, %v10555_v15  }
  0x77   : >> { %10143 = vset.pattern.permute.xlu0 %v10337_v26 }
  0x78   : >> { %1834 = vperm.xlu1 %10136, %v10544_v12   ;;  %2804 = vperm.xlu0 %10143, %v10547_v13  }
  0x7c   : >> { %10137 = vset.pattern.permute.xlu1 %v10334_v23  ;;  %2816 = vperm.xlu0 %10143, %v10552_v14  }
  0x7d   : >> { %2133 = vperm.xlu1 %10137, %v10547_v13  }
  0x80   : >> { %10146 = vset.pattern.permute.xlu0 %v10338_v27 }
  0x81   : >> { %2141 = vperm.xlu1 %10137, %v10544_v12   ;;  %3115 = vperm.xlu0 %10146, %v10555_v15  }
  0x85   : >> { %2145 = vperm.xlu1 %10137, %v10552_v14  }
  0x89   : >> { %10140 = vset.pattern.permute.xlu1 %v10335_v24  ;;  %v673_v24 = vsub.s32 7, %v16411_v8 }
  0x8a   : >> { %2319 = vperm.xlu1 %10140, %v10555_v15  }
  0x8e   : >> { %2323 = vperm.xlu1 %10140, %v10544_v12  }
  0x92   : >> { %10141 = vset.pattern.permute.xlu1 %v10336_v25 }
  0x93   : >> { %2622 = vperm.xlu1 %10141, %v10547_v13  }
  0x97   : >> { %2630 = vperm.xlu1 %10141, %v10544_v12  }
  0x9b   : >> { %2634 = vperm.xlu1 %10141, %v10552_v14  }
  0x9f   : >> { %10144 = vset.pattern.permute.xlu1 %v10337_v26 }
  0xa0   : >> { %2808 = vperm.xlu1 %10144, %v10555_v15  }
  0xa4   : >> { %2812 = vperm.xlu1 %10144, %v10544_v12  }
  0xa8   : >> { %v480_v34 = vpop.permute.xlu1 %479  ;;  %v470_v35 = vpop.permute.xlu0 %469  ;;  %10145 = vset.pattern.permute.xlu1 %v10338_v27 }
  0xa9   : >> { %v511_v37 = vmul.f32 %v10612_v31, %v480_v34  ;;  %3111 = vperm.xlu1 %10145, %v10547_v13   ;;  %v509_v38 = vmul.f32 %v10612_v31, %v470_v35  ;;  %v491_v39 = vmul.f32 %v10616_v32, %v470_v35  ;;  %v493_v42 = vmul.f32 %v10616_v32, %v480_v34 }
  0xaa   : >> { %v539_v43 = vmul.f32 %v10621_v33, %v480_v34  ;;  %v537_v44 = vmul.f32 %v10621_v33, %v470_v35 }
  0xab   : >> { %v521_v48 = vrot.slane %v511_v37, 1  ;;  %v518_v52 = vrot.slane %v509_v38, 1  ;;  %v501_v56 = vadd.f32 %v16409_v4, %v491_v39  ;;  %v503_v3 = vadd.f32 %v16409_v4, %v493_v42 }
  0xac   : >> { %v485_v45 = vpop.permute.xlu1 %484  ;;  %v475_v46 = vpop.permute.xlu0 %474  ;;  %v546_v60 = vrot.slane %v537_v44, 2  ;;  %v549_v17 = vrot.slane %v539_v43, 2  ;;  %v10670_v39 = vrot.slane %v16412_v0, %v661_v16 }
  0xad   : >> { %v494_v49 = vmul.f32 %v10616_v32, %v485_v45  ;;  %v512_v50 = vmul.f32 %v10612_v31, %v485_v45  ;;  %v492_v51 = vmul.f32 %v10616_v32, %v475_v46  ;;  %3119 = vperm.xlu1 %10145, %v10544_v12   ;;  %v540_v53 = vmul.f32 %v10621_v33, %v485_v45 }
  0xae   : >> { %v510_v54 = vmul.f32 %v10612_v31, %v475_v46  ;;  %v538_v55 = vmul.f32 %v10621_v33, %v475_v46  ;;  %v10654_v12 = vrot.slane %v16412_v0, %v618_v41 }
  0xaf   : >> { %v504_v57 = vadd.f32 %v16409_v4, %v494_v49  ;;  %v523_v58 = vrot.slane %v512_v50, 1  ;;  %v502_v59 = vadd.f32 %v16409_v4, %v492_v51  ;;  %v551_v18 = vrot.slane %v540_v53, 2 }
  0xb0   : >> { %v519_v61 = vrot.slane %v510_v54, 1  ;;  %v547_v62 = vrot.slane %v538_v55, 2 }
  0xb1   : >> { %v524_v11 = vsel %vm517_vm0, %v521_v48, %v523_v58  ;;  %v567_v13 = vpop.permute.xlu1 %566  ;;  %v563_v15 = vpop.permute.xlu0 %562  ;;  %3123 = vperm.xlu1 %10145, %v10552_v14   ;;  %v532_v21 = vadd.f32 %v523_v58, %v504_v57  ;;  %v552_v40 = vsel %vm545_vm1, %v549_v17, %v551_v18 }
  0xb2   : >> { %v520_v19 = vsel %vm517_vm0, %v518_v52, %v519_v61  ;;  %v522_v20 = vsel %vm517_vm0, %v519_v61, %v521_v48  ;;  %v531_v25 = vadd.f32 %v524_v11, %v503_v3  ;;  %v548_v26 = vsel %vm545_vm1, %v546_v60, %v547_v62 }
  0xb3   : >> { %v529_v22 = vadd.f32 %v520_v19, %v501_v56  ;;  %v530_v23 = vadd.f32 %v522_v20, %v502_v59  ;;  %v550_v27 = vsel %vm545_vm1, %v547_v62, %v549_v17  ;;  %v10664_v34 = vmul.f32 %v10649_v63, %v567_v13 }
  0xb4   : >> { %v10667_v35 = vmul.f32 %v10654_v12, %v567_v13  ;;  %v582_v41 = vmul.f32 %v10636_v47, %v567_v13  ;;  %v730_v42 = vmul.f32 %v567_v13, %v10616_v32  ;;  %v738_v43 = vmul.f32 %v567_v13, %v10612_v31 }
  0xb5   : >> { %v558_v14 = vadd.f32 %v550_v27, %v530_v23  ;;  %v571_v37 = vpop.permute.xlu1 %570  ;;  %v575_v38 = vpop.permute.xlu0 %574  ;;  %v557_v44 = vadd.f32 %v548_v26, %v529_v22  ;;  %v761_v45 = vmul.f32 %v567_v13, %v10621_v33  ;;  %v581_v46 = vmul.f32 %v10636_v47, %v563_v15 }
  0xb6   : >> { %v10679_v48 = vmul.f32 %v10649_v63, %v563_v15  ;;  %v559_v49 = vadd.f32 %v552_v40, %v531_v25  ;;  %v560_v50 = vadd.f32 %v551_v18, %v532_v21  ;;  %v602_v51 = vrot.slane %v10664_v34, 1 }
  0xb7   : >> { %v10683_v52 = vrot.slane %v16412_v0, %v673_v24  ;;  %v10685_v53 = vadd.f32 %v582_v41, %v558_v14  ;;  %v629_v54 = vrot.slane %v10667_v35, 2  ;;  %v729_v55 = vmul.f32 %v563_v15, %v10616_v32 }
  0xb8   : >> { %v737_v56 = vmul.f32 %v563_v15, %v10612_v31  ;;  %v734_v57 = vadd.f32 %v16409_v4, %v730_v42  ;;  %v746_v58 = vrot.slane %v738_v43, 1  ;;  %v760_v59 = vmul.f32 %v563_v15, %v10621_v33 }
  0xb9   : >> { %v595_v60 = vmul.f32 %v10649_v63, %v571_v37  ;;  %v769_v62 = vrot.slane %v761_v45, 2  ;;  %v585_v3 = vadd.f32 %v581_v46, %v557_v44  ;;  %v601_v11 = vrot.slane %v10679_v48, 1 }
  0xba   : >> { %v10693_v61 = vpop.permute.xlu1 %644  ;;  %v10697_v13 = vmul.f32 %v10654_v12, %v563_v15  ;;  %v10699_v16 = vpop.permute.xlu0 %648  ;;  %v745_v17 = vrot.slane %v737_v56, 1  ;;  %v583_v18 = vmul.f32 %v10636_v47, %v571_v37  ;;  %v739_v19 = vmul.f32 %v571_v37, %v10612_v31 }
  0xbb   : >> { %v762_v20 = vmul.f32 %v571_v37, %v10621_v33  ;;  %v733_v21 = vadd.f32 %v16409_v4, %v729_v55  ;;  %v10706_v22 = vmul.f32 %v10654_v12, %v571_v37  ;;  %v731_v23 = vmul.f32 %v571_v37, %v10616_v32 }
  0xbc   : >> { %v584_v24 = vmul.f32 %v10636_v47, %v575_v38  ;;  %v768_v15 = vrot.slane %v760_v59, 2  ;;  %v604_v25 = vrot.slane %v595_v60, 1  ;;  %v748_v26 = vrot.slane %v739_v19, 1 }
  0xbd   : >> { %v596_v27 = vmul.f32 %v10649_v63, %v575_v38  ;;  %v771_v40 = vrot.slane %v762_v20, 2  ;;  %v732_v42 = vmul.f32 %v575_v38, %v10616_v32  ;;  %v740_v43 = vmul.f32 %v575_v38, %v10612_v31 }
  0xbe   : >> { %v10711_v14 = vpop.permute.xlu1 %652  ;;  %v588_v41 = vadd.f32 %v584_v24, %v560_v50  ;;  %v747_v45 = vsel %vm517_vm0, %v745_v17, %v746_v58  ;;  %v623_v46 = vmul.f32 %v10654_v12, %v575_v38  ;;  %v763_v48 = vmul.f32 %v575_v38, %v10621_v33 }
  0xbf   : >> { %v10715_v44 = vpop.permute.xlu0 %1155  ;;  %v606_v37 = vrot.slane %v596_v27, 1  ;;  %v735_v55 = vadd.f32 %v16409_v4, %v731_v23  ;;  %v749_v56 = vsel %vm517_vm0, %v746_v58, %v748_v26  ;;  %v736_v59 = vadd.f32 %v16409_v4, %v732_v42 }
  0xc0   : >> { %v750_v50 = vrot.slane %v740_v43, 1  ;;  %v628_v60 = vrot.slane %v10697_v13, 2  ;;  %v10725_v19 = vsel %vm545_vm1, %v768_v15, %v769_v62  ;;  %v587_v20 = vadd.f32 %v583_v18, %v559_v49 }
  0xc1   : >> { %v631_v17 = vrot.slane %v10706_v22, 2  ;;  %v10730_v27 = vadd.f32 %v747_v45, %v733_v21  ;;  %v10733_v38 = vsel %vm545_vm1, %v769_v62, %v771_v40  ;;  %v615_v23 = vadd.f32 %v606_v37, %v588_v41 }
  0xc2   : >> { %v10728_v24 = vpop.permute.xlu1 %656  ;;  %v751_v58 = vsel %vm517_vm0, %v748_v26, %v750_v50  ;;  %v10738_v43 = vadd.f32 %v749_v56, %v734_v57  ;;  %v633_v13 = vrot.slane %v623_v46, 2  ;;  %v759_v15 = vadd.f32 %v750_v50, %v736_v59 }
  0xc3   : >> { %v10736_v42 = vpop.permute.xlu0 %1167  ;;  %v773_v36 = vrot.slane %v763_v48, 2  ;;  %v607_v49 = vsel %vm517_vm0, %v604_v25, %v606_v37  ;;  %v758_v18 = vadd.f32 %v751_v58, %v735_v55  ;;  %v10743_v21 = vmul.f32 %v10711_v14, %v10616_v32 }
  0xc4   : >> { %v10747_v62 = vmul.f32 %v10728_v24, %v10612_v31  ;;  %v10751_v22 = vmul.f32 %v10715_v44, %v10612_v31  ;;  %v10755_v57 = vmul.f32 %v10728_v24, %v10621_v33  ;;  %v10759_v26 = vmul.f32 %v10736_v42, %v10612_v31 }
  0xc5   : >> { %v603_v41 = vsel %vm517_vm0, %v601_v11, %v602_v51  ;;  %v10764_v45 = vadd.f32 %v633_v13, %v615_v23  ;;  %v10768_v37 = vmul.f32 %v10728_v24, %v10616_v32  ;;  %v605_v48 = vsel %vm517_vm0, %v602_v51, %v604_v25 }
  0xc6   : >> { %16418 = vst [vmem:[#allocation21_spill] sm:$0xff] %v10751_v22  ;;  %16419 = vst [vmem:[#allocation22_spill] sm:$0xff] %v10759_v26  ;;  %v612_v55 = vadd.f32 %v603_v41, %v585_v3  ;;  %v774_v56 = vsel %vm545_vm1, %v771_v40, %v773_v36  ;;  %v10776_v59 = vadd.f32 %v773_v36, %v759_v15 }
  0xc7   : >> { %16420 = vst [vmem:[#allocation23_spill] sm:$0xff] %v10768_v37  ;;  %v10770_v46 = vpop.permute.xlu1 %1159  ;;  %v10780_v11 = vmul.f32 %v10736_v42, %v10621_v33  ;;  %v613_v23 = vadd.f32 %v605_v48, %v10685_v53  ;;  %v10785_v58 = vadd.f32 %v774_v56, %v758_v18  ;;  %v10790_v34 = vmul.f32 %v10736_v42, %v10616_v32 }
  0xc8   : >> { %v10782_v50 = vpop.permute.xlu0 %1341  ;;  %v630_v36 = vsel %vm545_vm1, %v628_v60, %v629_v54  ;;  %v663_v53 = vmul.f32 %v10670_v39, %v10693_v61  ;;  %v614_v15 = vadd.f32 %v607_v49, %v587_v20  ;;  %v632_v18 = vsel %vm545_vm1, %v629_v54, %v631_v17 }
  0xc9   : >> { %16421 = vst [vmem:[#allocation24_spill] sm:$0xff] %v10780_v11  ;;  %16422 = vst [vmem:[#allocation25_spill] sm:$0xff] %v10790_v34  ;;  %v639_v25 = vadd.f32 %v630_v36, %v612_v55  ;;  %v675_v41 = vmul.f32 %v10683_v52, %v10693_v61  ;;  %v676_v60 = vmul.f32 %v10683_v52, %v10699_v16 }
  0xca   : >> { %v634_v55 = vsel %vm545_vm1, %v631_v17, %v633_v13  ;;  %v640_v56 = vadd.f32 %v632_v18, %v613_v23  ;;  %v677_v36 = vmul.f32 %v10683_v52, %v10711_v14  ;;  %v664_v35 = vmul.f32 %v10670_v39, %v10699_v16 }
  0xcb   : >> { %v10799_v40 = vpop.permute.xlu1 %1163  ;;  %v665_v54 = vmul.f32 %v10670_v39, %v10711_v14  ;;  %v10820_v20 = vmul.f32 %v10683_v52, %v10728_v24  ;;  %v683_v49 = vrot.slane %v675_v41, 1  ;;  %v667_v48 = vadd.f32 %v663_v53, %v639_v25 }
  0xcc   : >> { %v684_v3 = vrot.slane %v676_v60, 1  ;;  %v686_v17 = vrot.slane %v677_v36, 1  ;;  %v702_v13 = vmul.f32 %v16410_v1, %v10693_v61  ;;  %v641_v23 = vadd.f32 %v634_v55, %v614_v15 }
  0xcd   : >> { %v10812_v30 = vpop.permute.xlu0 %838  ;;  %v703_v51 = vmul.f32 %v16410_v1, %v10699_v16  ;;  %v704_v28 = vmul.f32 %v16410_v1, %v10711_v14  ;;  %v1537_v0 = vmul.f32 %v10799_v40, %v10616_v32  ;;  %v10837_v15 = vmul.f32 %v16410_v1, %v10728_v24 }
  0xce   : >> { %v685_v25 = vsel %vm517_vm0, %v683_v49, %v684_v3  ;;  %v687_v53 = vsel %vm517_vm0, %v684_v3, %v686_v17  ;;  %v10841_v41 = vmul.f32 %v10770_v46, %v10612_v31  ;;  %v10845_v60 = vmul.f32 %v10782_v50, %v10612_v31 }
  0xcf   : >> { %v668_v36 = vadd.f32 %v664_v35, %v640_v56  ;;  %v710_v18 = vrot.slane %v702_v13, 2  ;;  %v10851_v49 = vmul.f32 %v10799_v40, %v10612_v31  ;;  %v669_v3 = vadd.f32 %v665_v54, %v641_v23 }
  0xd0   : >> { %v10831_v10 = vpop.permute.xlu1 %1337  ;;  %16423 = vst [vmem:[#allocation26_spill] sm:$0xff] %v10841_v41  ;;  %16424 = vst [vmem:[#allocation27_spill] sm:$0xff] %v10845_v60  ;;  %v16426_v29 = vrot.slane %v10820_v20, 1  ;;  %v694_v6 = vadd.f32 %v685_v25, %v667_v48  ;;  %v711_v34 = vrot.slane %v703_v51, 2  ;;  %v713_v60 = vrot.slane %v704_v28, 2 }
  0xd1   : >> { %v10847_v55 = vpop.permute.xlu0 %850  ;;  %16425 = vst [vmem:[#allocation28_spill] sm:$0xff] %v10851_v49  ;;  %v695_v5 = vadd.f32 %v687_v53, %v668_v36  ;;  %v10861_v56 = vadd.f32 %v16409_v4, %v1537_v0  ;;  %v783_v0 = vmul.f32 %v10693_v61, %v10636_v47  ;;  %v10879_v51 = vmul.f32 %v10831_v10, %v10612_v31 }
  0xd2   : >> { %v689_v8 = vsel %vm517_vm0, %v686_v17, %v16426_v29  ;;  %v10858_v9 = vmul.f32 %v10847_v55, %v10612_v31  ;;  %v10865_v35 = vmul.f32 %v10847_v55, %v10621_v33  ;;  %v779_v29 = vadd.f32 %v10725_v19, %v10730_v27 }
  0xd3   : >> { %16427 = vst [vmem:[#allocation29_spill] sm:$0xff] %v10861_v56  ;;  %v696_v17 = vadd.f32 %v689_v8, %v669_v3  ;;  %v712_v28 = vsel %vm545_vm1, %v710_v18, %v711_v34  ;;  %16429 = vst [vmem:[#allocation31_spill] sm:$0xff] %v10879_v51  ;;  %v10883_v23 = vmul.f32 %v10847_v55, %v10616_v32 }
  0xd4   : >> { %v10867_v54 = vpop.permute.xlu1 %1345  ;;  %v714_v25 = vsel %vm545_vm1, %v711_v34, %v713_v60  ;;  %v10886_v19 = vadd.f32 %v712_v28, %v694_v6  ;;  %v780_v18 = vadd.f32 %v10733_v38, %v10738_v43  ;;  %v784_v53 = vmul.f32 %v10699_v16, %v10636_v47 }
  0xd5   : >> { %16428 = vst [vmem:[#allocation30_spill] sm:$0xff] %v10867_v54  ;;  %v1719_v48 = vmul.f32 %v10867_v54, %v10616_v32  ;;  %16430 = vst [vmem:[#allocation32_spill] sm:$0xff] %v10883_v23  ;;  %v10889_v8 = vadd.f32 %v714_v25, %v695_v5  ;;  %v10898_v3 = vmul.f32 %v10867_v54, %v10612_v31  ;;  %v16434_v34 = vrot.slane %v10837_v15, 2 }
  0xd6   : >> { %v10902_v6 = vpop.permute.xlu0 %1648  ;;  %v785_v38 = vmul.f32 %v10711_v14, %v10636_v47  ;;  %v787_v36 = vadd.f32 %v783_v0, %v779_v29  ;;  %v814_v29 = vmul.f32 %v10693_v61, %v10654_v12 }
  0xd7   : >> { %16431 = vst [vmem:[#allocation33_spill] sm:$0xff] %v10898_v3  ;;  %16433 = vst [vmem:[#allocation35_spill] sm:$0xff] %v10902_v6  ;;  %v716_v5 = vsel %vm545_vm1, %v713_v60, %v16434_v34  ;;  %v10910_v43 = vadd.f32 %v16409_v4, %v1719_v48  ;;  %v10914_v28 = vmul.f32 %v10902_v6, %v10612_v31 }
  0xd8   : >> { %v10900_v13 = vpop.permute.xlu1 %1349  ;;  %v10916_v25 = vadd.f32 %v716_v5, %v696_v17  ;;  %v791_v3 = vmul.f32 %v10693_v61, %v10649_v63  ;;  %v792_v60 = vmul.f32 %v10699_v16, %v10649_v63  ;;  %v793_v34 = vmul.f32 %v10711_v14, %v10649_v63 }
  0xd9   : >> { %16432 = vst [vmem:[#allocation34_spill] sm:$0xff] %v10900_v13  ;;  %16435 = vst [vmem:[#allocation36_spill] sm:$0xff] %v10910_v43  ;;  %v788_v43 = vadd.f32 %v784_v53, %v780_v18  ;;  %v10934_v17 = vmul.f32 %v10900_v13, %v10612_v31  ;;  %v815_v18 = vmul.f32 %v10699_v16, %v10654_v12 }
  0xda   : >> { %16436 = vst [vmem:[#allocation37_spill] sm:$0xff] %v10914_v28  ;;  %v10928_v28 = vmul.f32 %v10728_v24, %v10649_v63  ;;  %v799_v0 = vrot.slane %v791_v3, 1  ;;  %v800_v5 = vrot.slane %v792_v60, 1  ;;  %v802_v27 = vrot.slane %v793_v34, 1 }
  0xdb   : >> { %16437 = vst [vmem:[#allocation38_spill] sm:$0xff] %v10934_v17  ;;  %v816_v53 = vmul.f32 %v10711_v14, %v10654_v12  ;;  %v10945_v48 = vmul.f32 %v10728_v24, %v10654_v12  ;;  %v10949_v11 = vmul.f32 %v10900_v13, %v10621_v33  ;;  %v822_v34 = vrot.slane %v814_v29, 2  ;;  %v10965_v7 = vpop.permute.xlu0 %1826 }
  0xdc   : >> { %v801_v3 = vsel %vm517_vm0, %v799_v0, %v800_v5  ;;  %v803_v60 = vsel %vm517_vm0, %v800_v5, %v802_v27  ;;  %v10955_v6 = vmul.f32 %v10900_v13, %v10649_v63  ;;  %v789_v56 = vadd.f32 %v785_v38, %v10785_v58  ;;  %16442 = vst [vmem:[#allocation42_spill] sm:$0xff] %v10965_v7 }
  0xdd   : >> { %v10936_v51 = vpop.permute.xlu1 %842  ;;  %16438 = vst [vmem:[#allocation39_spill] sm:$0xff] %v10949_v11  ;;  %v16440_v26 = vrot.slane %v10928_v28, 1  ;;  %v823_v41 = vrot.slane %v815_v18, 2  ;;  %v10963_v22 = vmul.f32 %v10900_v13, %v10616_v32  ;;  %v810_v29 = vadd.f32 %v801_v3, %v787_v36 }
  0xde   : >> { %16439 = vst [vmem:[#allocation40_spill] sm:$0xff] %v10955_v6  ;;  %v811_v5 = vadd.f32 %v803_v60, %v788_v43  ;;  %v825_v38 = vrot.slane %v816_v53, 2  ;;  %v16135_v23 = vrot.slane %v10945_v48, 2  ;;  %v853_v36 = vmul.f32 %v10812_v30, %v10670_v39 }
  0xdf   : >> { %v805_v49 = vsel %vm517_vm0, %v802_v27, %v16440_v26  ;;  %16441 = vst [vmem:[#allocation41_spill] sm:$0xff] %v10963_v22  ;;  %v10975_v27 = vmul.f32 %v10965_v7, %v10612_v31  ;;  %v824_v18 = vsel %vm545_vm1, %v822_v34, %v823_v41  ;;  %v861_v34 = vmul.f32 %v10812_v30, %v10683_v52 }
  0xe0   : >> { %v812_v58 = vadd.f32 %v805_v49, %v789_v56  ;;  %v826_v43 = vsel %vm545_vm1, %v823_v41, %v825_v38  ;;  %v828_v49 = vsel %vm545_vm1, %v825_v38, %v16135_v23  ;;  %v854_v56 = vmul.f32 %v10936_v51, %v10670_v39 }
  0xe1   : >> { %v10969_v6 = vpop.permute.xlu1 %846  ;;  %16443 = vst [vmem:[#allocation43_spill] sm:$0xff] %v10975_v27  ;;  %v833_v3 = vadd.f32 %v824_v18, %v810_v29  ;;  %v834_v60 = vadd.f32 %v826_v43, %v811_v5  ;;  %v862_v2 = vmul.f32 %v10936_v51, %v10683_v52  ;;  %v10996_v38 = vmul.f32 %v10847_v55, %v10683_v52  ;;  %v11002_v29 = vpop.permute.xlu0 %1838 }
  0xe2   : >> { %v855_v53 = vmul.f32 %v10969_v6, %v10670_v39  ;;  %v835_v26 = vadd.f32 %v828_v49, %v812_v58  ;;  %v863_v41 = vmul.f32 %v10969_v6, %v10683_v52  ;;  %v884_v23 = vmul.f32 %v16410_v1, %v10812_v30  ;;  %16444 = vst [vmem:[#allocation44_spill] sm:$0xff] %v11002_v29 }
  0xe3   : >> { %v857_v5 = vadd.f32 %v853_v36, %v833_v3  ;;  %v869_v18 = vrot.slane %v861_v34, 1  ;;  %v885_v43 = vmul.f32 %v16410_v1, %v10936_v51  ;;  %v858_v49 = vadd.f32 %v854_v56, %v834_v60 }
  0xe4   : >> { %v859_v58 = vadd.f32 %v855_v53, %v835_v26  ;;  %v870_v27 = vrot.slane %v862_v2, 1  ;;  %v872_v22 = vrot.slane %v863_v41, 1  ;;  %v16144_v7 = vrot.slane %v10996_v38, 1 }
  0xe5   : >> { %v886_v11 = vmul.f32 %v16410_v1, %v10969_v6  ;;  %v11011_v17 = vmul.f32 %v16410_v1, %v10847_v55  ;;  %v892_v37 = vrot.slane %v884_v23, 2  ;;  %v893_v13 = vrot.slane %v885_v43, 2 }
  0xe6   : >> { %v11000_v0 = vpop.permute.xlu1 %1644  ;;  %v11015_v26 = vmul.f32 %v11002_v29, %v10612_v31  ;;  %v871_v36 = vsel %vm517_vm0, %v869_v18, %v870_v27  ;;  %v873_v2 = vsel %vm517_vm0, %v870_v27, %v872_v22  ;;  %v875_v56 = vsel %vm517_vm0, %v872_v22, %v16144_v7 }
  0xe7   : >> { %v880_v3 = vadd.f32 %v871_v36, %v857_v5  ;;  %v881_v60 = vadd.f32 %v873_v2, %v858_v49  ;;  %v882_v34 = vadd.f32 %v875_v56, %v859_v58  ;;  %v666_v23 = vmul.f32 %v10670_v39, %v10728_v24 }
  0xe8   : >> { %16445 = vst [vmem:[#allocation45_spill] sm:$0xff] %v11015_v26  ;;  %v11028_v41 = vmul.f32 %v11002_v29, %v10621_v33  ;;  %v894_v18 = vsel %vm545_vm1, %v892_v37, %v893_v13  ;;  %v895_v43 = vrot.slane %v886_v11, 2  ;;  %v16148_v27 = vrot.slane %v11011_v17, 2 }
  0xe9   : >> { %v11034_v22 = vmul.f32 %v10969_v6, %v10616_v32  ;;  %v11038_v5 = vmul.f32 %v11002_v29, %v10649_v63  ;;  %v11042_v58 = vmul.f32 %v11002_v29, %v10616_v32  ;;  %v903_v49 = vadd.f32 %v894_v18, %v880_v3 }
  0xea   : >> { %v11022_v53 = vpop.permute.xlu1 %1652  ;;  %16446 = vst [vmem:[#allocation46_spill] sm:$0xff] %v11028_v41  ;;  %v896_v37 = vsel %vm545_vm1, %v893_v13, %v895_v43  ;;  %v898_v11 = vsel %vm545_vm1, %v895_v43, %v16148_v27  ;;  %v786_v2 = vmul.f32 %v10728_v24, %v10636_v47  ;;  %v670_v54 = vadd.f32 %v666_v23, %v10764_v45  ;;  %v11069_v23 = vpop.permute.xlu0 %2137 }
  0xeb   : >> { %16447 = vst [vmem:[#allocation47_spill] sm:$0xff] %v11038_v5  ;;  %16448 = vst [vmem:[#allocation48_spill] sm:$0xff] %v11042_v58  ;;  %v2026_v36 = vmul.f32 %v11022_v53, %v10616_v32  ;;  %v904_v56 = vadd.f32 %v896_v37, %v881_v60  ;;  %v905_v7 = vadd.f32 %v898_v11, %v882_v34  ;;  %v907_v5 = vmax.f32 %v903_v49, 0.0 }
  0xec   : >> { %v11055_v3 = vmul.f32 %v11000_v0, %v10612_v31  ;;  %v11059_v18 = vmul.f32 %v11022_v53, %v10612_v31  ;;  %v16451_v34 = vmax.f32 %v10886_v19, 0.0  ;;  %v856_v45 = vmul.f32 %v10847_v55, %v10670_v39  ;;  %16452 = vst [vmem:[#allocation51_spill] sm:$0xff] %v11069_v23 }
  0xed   : >> { %v908_v24 = vmax.f32 %v904_v56, 0.0  ;;  %v909_v60 = vmax.f32 %v905_v7, 0.0  ;;  %v11072_v37 = vadd.f32 %v16409_v4, %v2026_v36  ;;  %v790_v11 = vadd.f32 %v786_v2, %v10776_v59 }
  0xee   : >> { %16449 = vst [vmem:[#allocation49_spill] sm:$0xff] %v11055_v3  ;;  %16450 = vst [vmem:[#allocation50_spill] sm:$0xff] %v11059_v18  ;;  %v11061_v13 = vpop.permute.xlu1 %1656  ;;  %v911_v49 = vmax.f32 %v16451_v34, %v907_v5  ;;  %v11077_v43 = vmul.f32 %v11069_v23, %v10612_v31  ;;  %v1046_v7 = vmul.f32 %v10693_v61, %v10616_v32  ;;  %v16455_v5 = vmax.f32 %v10889_v8, 0.0 }
  0xef   : >> { %16453 = vst [vmem:[#allocation52_spill] sm:$0xff] %v11072_v37  ;;  %v11083_v19 = vmul.f32 %v11061_v13, %v10649_v63  ;;  %v16456_v34 = vmax.f32 %v10916_v25, 0.0  ;;  %v16457_v59 = vrot.slane %v10820_v20, 1  ;;  %v11095_v27 = vmul.f32 %v11061_v13, %v10616_v32 }
  0xf0   : >> { %16454 = vst [vmem:[#allocation53_spill] sm:$0xff] %v11077_v43  ;;  %v912_v56 = vmax.f32 %v16455_v5, %v908_v24  ;;  %v11099_v43 = vmul.f32 %v11061_v13, %v10612_v31  ;;  %v919_v58 = vrot.slane %v911_v49, 1  ;;  %v16460_v41 = vrot.slane %v10928_v28, 1 }
  0xf1   : >> { %v11089_v36 = vmax.f32 %v16456_v34, %v909_v60  ;;  %v697_v2 = vadd.f32 %v16457_v59, %v670_v54  ;;  %16458 = vst [vmem:[#allocation54_spill] sm:$0xff] %v11095_v27  ;;  %v1047_v60 = vmul.f32 %v10699_v16, %v10616_v32  ;;  %v1054_v20 = vmul.f32 %v10693_v61, %v10612_v31 }
  0xf2   : >> { %16459 = vst [vmem:[#allocation55_spill] sm:$0xff] %v11099_v43  ;;  %v813_v8 = vadd.f32 %v16460_v41, %v790_v11  ;;  %v920_v24 = vrot.slane %v912_v56, 1  ;;  %v16461_v54 = vrot.slane %v10945_v48, 2  ;;  %v1050_v34 = vadd.f32 %v16409_v4, %v1046_v7 }
  0xf3   : >> { %v16157_v25 = vrot.slane %v11089_v36, 1  ;;  %v1055_v59 = vmul.f32 %v10699_v16, %v10612_v31  ;;  %v1056_v28 = vmul.f32 %v10711_v14, %v10612_v31  ;;  %v1062_v27 = vrot.slane %v1054_v20, 1 }
  0xf4   : >> { %v836_v5 = vadd.f32 %v16461_v54, %v813_v8  ;;  %v921_v41 = vsel %vm517_vm0, %v919_v58, %v920_v24  ;;  %v1077_v26 = vmul.f32 %v10693_v61, %v10621_v33  ;;  %v16462_v23 = vrot.slane %v10837_v15, 2 }
  0xf5   : >> { %v923_v11 = vsel %vm517_vm0, %v920_v24, %v16157_v25  ;;  %v930_v48 = vmax.f32 %v911_v49, %v921_v41  ;;  %v1063_v7 = vrot.slane %v1055_v59, 1  ;;  %v1051_v18 = vadd.f32 %v16409_v4, %v1047_v60 }
  0xf6   : >> { %v931_v8 = vmax.f32 %v912_v56, %v923_v11  ;;  %v860_v54 = vadd.f32 %v856_v45, %v836_v5  ;;  %v724_v37 = vadd.f32 %v16462_v23, %v697_v2  ;;  %v1065_v3 = vrot.slane %v1056_v28, 1  ;;  %v11136_v45 = vpop.permute.xlu1 %1830 }
  0xf7   : >> { %v1078_v58 = vmul.f32 %v10699_v16, %v10621_v33  ;;  %v16463_v24 = vrot.slane %v10996_v38, 1  ;;  %v1064_v25 = vsel %vm517_vm0, %v1062_v27, %v1063_v7  ;;  %v1079_v61 = vmul.f32 %v10711_v14, %v10621_v33  ;;  %16465 = vst [vmem:[#allocation57_spill] sm:$0xff] %v11136_v45 }
  0xf8   : >> { %v9320_v29 = vpack.c.bf16 %v931_v8, %v930_v48  ;;  %v11134_v15 = vmul.f32 %v11061_v13, %v10621_v33  ;;  %v1066_v16 = vsel %vm517_vm0, %v1063_v7, %v1065_v3  ;;  %v16466_v23 = vrot.slane %v10747_v62, 1 }
  0xf9   : >> { %v883_v20 = vadd.f32 %v16463_v24, %v860_v54  ;;  %v16467_v27 = vrot.slane %v11011_v17, 2  ;;  %v1052_v14 = vadd.f32 %v16409_v4, %v10743_v21  ;;  %v1073_v2 = vadd.f32 %v1064_v25, %v1050_v34 }
  0xfa   : >> { %16464 = vst [vmem:[#allocation56_spill] sm:$0xff] %v11134_v15  ;;  %v1068_v38 = vsel %vm517_vm0, %v1065_v3, %v16466_v23  ;;  %9321 = vmatprep.subr.bf16.mxu0 %v9320_v29  ;;  %v1085_v60 = vrot.slane %v1077_v26, 2  ;;  %v728_v5 = vmax.f32 %v724_v37, 0.0  ;;  %v1074_v59 = vadd.f32 %v1066_v16, %v1051_v18  ;;  %v11161_v7 = vpop.permute.xlu1 %1834  ;;  %v16476_v15 = vld [vmem:[#allocation30_spill] sm:$0xff] }
  0xfb   : >> { %v906_v56 = vadd.f32 %v16467_v27, %v883_v20  ;;  %9323 = vmatpush3.bf16.msra.mxu0 %v9320_v29  ;;  %v1086_v28 = vrot.slane %v1078_v58, 2  ;;  %v1088_v41 = vrot.slane %v1079_v61, 2  ;;  %v1075_v48 = vadd.f32 %v1068_v38, %v1052_v14 }
  0xfc   : >> { %v1100_v8 = vmul.f32 %v10812_v30, %v10636_v47  ;;  %v1108_v3 = vmul.f32 %v10812_v30, %v10649_v63  ;;  %v1101_v21 = vmul.f32 %v10936_v51, %v10636_v47  ;;  %v1102_v29 = vmul.f32 %v10969_v6, %v10636_v47 }
  0xfd   : >> { %v910_v11 = vmax.f32 %v906_v56, 0.0  ;;  %v1087_v17 = vsel %vm545_vm1, %v1085_v60, %v1086_v28  ;;  %v1109_v26 = vmul.f32 %v10936_v51, %v10649_v63  ;;  %v1089_v37 = vsel %vm545_vm1, %v1086_v28, %v1088_v41 }
  0xfe   : >> { %v16468_v25 = vrot.slane %v10755_v57, 2  ;;  %v1096_v54 = vadd.f32 %v1087_v17, %v1073_v2  ;;  %v1110_v58 = vmul.f32 %v10969_v6, %v10649_v63  ;;  %v11167_v24 = vmul.f32 %v10847_v55, %v10649_v63 }
  0xff   : >> { %v914_v18 = vmax.f32 %v728_v5, %v910_v11  ;;  %v1116_v20 = vrot.slane %v1108_v3, 1  ;;  %v1117_v61 = vrot.slane %v1109_v26, 1  ;;  %v1097_v38 = vadd.f32 %v1089_v37, %v1074_v59 }
 0x100   : >> { %v1091_v34 = vsel %vm545_vm1, %v1088_v41, %v16468_v25  ;;  %v11172_v56 = vmul.f32 %v11136_v45, %v10612_v31  ;;  %v1104_v14 = vadd.f32 %v1100_v8, %v1096_v54  ;;  %v1119_v60 = vrot.slane %v1110_v58, 1  ;;  %v11196_v25 = vpop.permute.xlu1 %2133 }
 0x101   : >> { %v924_v23 = vrot.slane %v914_v18, 1  ;;  %v1098_v27 = vadd.f32 %v1091_v34, %v1075_v48  ;;  %v1118_v2 = vsel %vm517_vm0, %v1116_v20, %v1117_v61  ;;  %v16470_v5 = vrot.slane %v11089_v36, 1 }
 0x102   : >> { %16469 = vst [vmem:[#allocation58_spill] sm:$0xff] %v11172_v56  ;;  %v1105_v41 = vadd.f32 %v1101_v21, %v1097_v38  ;;  %v16160_v3 = vrot.slane %v11167_v24, 1  ;;  %v1120_v48 = vsel %vm517_vm0, %v1117_v61, %v1119_v60  ;;  %v1131_v26 = vmul.f32 %v10812_v30, %v10654_v12 }
 0x103   : >> { %v925_v28 = vsel %vm517_vm0, %v16470_v5, %v924_v23  ;;  %v1106_v11 = vadd.f32 %v1102_v29, %v1098_v27  ;;  %v933_v59 = vmax.f32 %v914_v18, %v924_v23  ;;  %v16471_v8 = vmov 0 }
 0x104   : >> { %v932_v17 = vmax.f32 %v11089_v36, %v925_v28  ;;  %v16472_v8 = vsel %vm11185_vm4, 4294967295, %v16471_v8  ;;  %v1122_v21 = vsel %vm517_vm0, %v1119_v60, %v16160_v3  ;;  %v1127_v29 = vadd.f32 %v1118_v2, %v1104_v14 }
 0x105   : >> { %16473 = vst [vmem:[#allocation59_spill] sm:$0xff] %v16472_v8  ;;  %v1132_v36 = vmul.f32 %v10936_v51, %v10654_v12  ;;  %v1133_v18 = vmul.f32 %v10969_v6, %v10654_v12  ;;  %v1128_v34 = vadd.f32 %v1120_v48, %v1105_v41  ;;  %v11200_v54 = vmul.f32 %v10847_v55, %v10654_v12  ;;  %v16597_v8 = vld [vmem:[#allocation54_spill] sm:$0xff] }
 0x106   : >> { %v9324_v37 = vpack.c.bf16 %v933_v59, %v932_v17  ;;  %v1139_v58 = vrot.slane %v1131_v26, 2  ;;  %v1129_v20 = vadd.f32 %v1122_v21, %v1106_v11  ;;  %v1170_v38 = vmul.f32 %v10715_v44, %v10670_v39 }
 0x107   : >> { %v1140_v61 = vrot.slane %v1132_v36, 2  ;;  %v1142_v23 = vrot.slane %v1133_v18, 2  ;;  %v16158_v27 = vrot.slane %v11200_v54, 2  ;;  %v1171_v14 = vmul.f32 %v10770_v46, %v10670_v39 }
 0x108   : >> { %9326 = vmatprep.subr.msk.bf16.mxu0 %vm11185_vm4, %v9324_v37  ;;  %v1178_v2 = vmul.f32 %v10715_v44, %v10683_v52  ;;  %v1179_v60 = vmul.f32 %v10770_v46, %v10683_v52  ;;  %v1180_v41 = vmul.f32 %v10799_v40, %v10683_v52  ;;  %v11221_v11 = vmul.f32 %v10736_v42, %v10683_v52 }
 0x109   : >> { %9329 = vmatpush3.bf16.msk.msra.mxu0 %vm11185_vm4, %v9324_v37  ;;  %v1141_v5 = vsel %vm545_vm1, %v1139_v58, %v1140_v61  ;;  %v1143_v28 = vsel %vm545_vm1, %v1140_v61, %v1142_v23  ;;  %v1145_v17 = vsel %vm545_vm1, %v1142_v23, %v16158_v27  ;;  %v1172_v36 = vmul.f32 %v10799_v40, %v10670_v39  ;;  %v11228_v58 = vpop.permute.xlu1 %2141 }
 0x10a   : >> { %v1150_v59 = vadd.f32 %v1141_v5, %v1127_v29  ;;  %v1151_v48 = vadd.f32 %v1143_v28, %v1128_v34  ;;  %v1186_v26 = vrot.slane %v1178_v2, 1  ;;  %v1152_v21 = vadd.f32 %v1145_v17, %v1129_v20 }
 0x10b   : >> { %v1187_v18 = vrot.slane %v1179_v60, 1  ;;  %v1189_v37 = vrot.slane %v1180_v41, 1  ;;  %v16159_v16 = vrot.slane %v11221_v11, 1  ;;  %v1201_v49 = vmul.f32 %v16410_v1, %v10715_v44 }
 0x10c   : >> { %v1174_v61 = vadd.f32 %v1170_v38, %v1150_v59  ;;  %v1202_v23 = vmul.f32 %v16410_v1, %v10770_v46  ;;  %v11237_v29 = vmul.f32 %v11161_v7, %v10616_v32  ;;  %v11241_v34 = vmul.f32 %v11228_v58, %v10616_v32 }
 0x10d   : >> { %v1175_v20 = vadd.f32 %v1171_v14, %v1151_v48  ;;  %v1176_v2 = vadd.f32 %v1172_v36, %v1152_v21  ;;  %v1188_v38 = vsel %vm517_vm0, %v1186_v26, %v1187_v18  ;;  %v1190_v60 = vsel %vm517_vm0, %v1187_v18, %v1189_v37 }
 0x10e   : >> { %v1203_v5 = vmul.f32 %v16410_v1, %v10799_v40  ;;  %v11249_v28 = vmul.f32 %v16410_v1, %v10736_v42  ;;  %v1197_v41 = vadd.f32 %v1188_v38, %v1174_v61  ;;  %v1209_v17 = vrot.slane %v1201_v49, 2 }
 0x10f   : >> { %v1210_v59 = vrot.slane %v1202_v23, 2  ;;  %v1228_v27 = vmul.f32 %v10812_v30, %v10616_v32  ;;  %v1192_v14 = vsel %vm517_vm0, %v1189_v37, %v16159_v16  ;;  %v1229_v21 = vmul.f32 %v10936_v51, %v10616_v32 }
 0x110   : >> { %v1212_v48 = vrot.slane %v1203_v5, 2  ;;  %v16161_v26 = vrot.slane %v11249_v28, 2  ;;  %v1198_v36 = vadd.f32 %v1190_v60, %v1175_v20  ;;  %v1199_v18 = vadd.f32 %v1192_v14, %v1176_v2 }
 0x111   : >> { %v1236_v61 = vmul.f32 %v10812_v30, %v10612_v31  ;;  %v1237_v49 = vmul.f32 %v10936_v51, %v10612_v31  ;;  %v1211_v23 = vsel %vm545_vm1, %v1209_v17, %v1210_v59  ;;  %v1232_v37 = vadd.f32 %v16409_v4, %v1228_v27 }
 0x112   : >> { %v1213_v38 = vsel %vm545_vm1, %v1210_v59, %v1212_v48  ;;  %v1234_v5 = vadd.f32 %v16409_v4, %v11034_v22  ;;  %v1215_v20 = vsel %vm545_vm1, %v1212_v48, %v16161_v26  ;;  %v11271_v2 = vadd.f32 %v1211_v23, %v1197_v41 }
 0x113   : >> { %v1238_v60 = vmul.f32 %v10969_v6, %v10612_v31  ;;  %v1244_v14 = vrot.slane %v1236_v61, 1  ;;  %v1233_v16 = vadd.f32 %v16409_v4, %v1229_v21  ;;  %v1245_v17 = vrot.slane %v1237_v49, 1 }
 0x114   : >> { %v1259_v59 = vmul.f32 %v10812_v30, %v10621_v33  ;;  %v1260_v27 = vmul.f32 %v10936_v51, %v10621_v33  ;;  %v11280_v22 = vadd.f32 %v1213_v38, %v1198_v36  ;;  %v11282_v3 = vadd.f32 %v1215_v20, %v1199_v18 }
 0x115   : >> { %v1247_v48 = vrot.slane %v1238_v60, 1  ;;  %v1261_v41 = vmul.f32 %v10969_v6, %v10621_v33  ;;  %v1246_v23 = vsel %vm517_vm0, %v1244_v14, %v1245_v17  ;;  %v1282_v21 = vmul.f32 %v10715_v44, %v10636_v47 }
 0x116   : >> { %v1267_v61 = vrot.slane %v1259_v59, 2  ;;  %v1268_v26 = vrot.slane %v1260_v27, 2  ;;  %v16474_v49 = vrot.slane %v10858_v9, 1  ;;  %v1255_v36 = vadd.f32 %v1246_v23, %v1232_v37 }
 0x117   : >> { %v1248_v30 = vsel %vm517_vm0, %v1245_v17, %v1247_v48  ;;  %v1270_v18 = vrot.slane %v1261_v41, 2  ;;  %v1283_v6 = vmul.f32 %v10770_v46, %v10636_v47  ;;  %v16475_v59 = vrot.slane %v10865_v35, 2 }
 0x118   : >> { %v1250_v51 = vsel %vm517_vm0, %v1247_v48, %v16474_v49  ;;  %v1256_v38 = vadd.f32 %v1248_v30, %v1233_v16  ;;  %v1269_v60 = vsel %vm545_vm1, %v1267_v61, %v1268_v26  ;;  %v1284_v56 = vmul.f32 %v10799_v40, %v10636_v47 }
 0x119   : >> { %v1257_v20 = vadd.f32 %v1250_v51, %v1234_v5  ;;  %v1271_v14 = vsel %vm545_vm1, %v1268_v26, %v1270_v18  ;;  %v1273_v27 = vsel %vm545_vm1, %v1270_v18, %v16475_v59  ;;  %v1278_v17 = vadd.f32 %v1269_v60, %v1255_v36 }
 0x11a   : >> { %v1279_v48 = vadd.f32 %v1271_v14, %v1256_v38  ;;  %v1290_v16 = vmul.f32 %v10715_v44, %v10649_v63  ;;  %v1291_v5 = vmul.f32 %v10770_v46, %v10649_v63  ;;  %v1292_v26 = vmul.f32 %v10799_v40, %v10649_v63 }
 0x11b   : >> { %v1280_v37 = vadd.f32 %v1273_v27, %v1257_v20  ;;  %v1286_v41 = vadd.f32 %v1282_v21, %v1278_v17  ;;  %v11310_v23 = vmul.f32 %v10736_v42, %v10649_v63  ;;  %v1313_v61 = vmul.f32 %v10715_v44, %v10654_v12 }
 0x11c   : >> { %v1287_v30 = vadd.f32 %v1283_v6, %v1279_v48  ;;  %v1298_v51 = vrot.slane %v1290_v16, 1  ;;  %v1299_v36 = vrot.slane %v1291_v5, 1  ;;  %v1301_v18 = vrot.slane %v1292_v26, 1 }
 0x11d   : >> { %v1288_v49 = vadd.f32 %v1284_v56, %v1280_v37  ;;  %v16166_v38 = vrot.slane %v11310_v23, 1  ;;  %v1314_v21 = vmul.f32 %v10770_v46, %v10654_v12  ;;  %v1315_v20 = vmul.f32 %v10799_v40, %v10654_v12 }
 0x11e   : >> { %v1300_v60 = vsel %vm517_vm0, %v1298_v51, %v1299_v36  ;;  %v11322_v14 = vmul.f32 %v10736_v42, %v10654_v12  ;;  %v1321_v59 = vrot.slane %v1313_v61, 2  ;;  %v1352_v56 = vmul.f32 %v10831_v10, %v10670_v39 }
 0x11f   : >> { %v1302_v6 = vsel %vm517_vm0, %v1299_v36, %v1301_v18  ;;  %v1304_v27 = vsel %vm517_vm0, %v1301_v18, %v16166_v38  ;;  %v1309_v17 = vadd.f32 %v1300_v60, %v1286_v41  ;;  %v1322_v48 = vrot.slane %v1314_v21, 2 }
 0x120   : >> { %v1310_v37 = vadd.f32 %v1302_v6, %v1287_v30  ;;  %v1311_v16 = vadd.f32 %v1304_v27, %v1288_v49  ;;  %v1324_v5 = vrot.slane %v1315_v20, 2  ;;  %v16169_v26 = vrot.slane %v11322_v14, 2 }
 0x121   : >> { %v1323_v51 = vsel %vm545_vm1, %v1321_v59, %v1322_v48  ;;  %v1353_v61 = vmul.f32 %v10782_v50, %v10670_v39  ;;  %v1354_v43 = vmul.f32 %v16476_v15, %v10670_v39  ;;  %v1360_v36 = vmul.f32 %v10831_v10, %v10683_v52  ;;  %v16477_v59 = vld [vmem:[#allocation34_spill] sm:$0xff] }
 0x122   : >> { %v1325_v18 = vsel %vm545_vm1, %v1322_v48, %v1324_v5  ;;  %v1327_v41 = vsel %vm545_vm1, %v1324_v5, %v16169_v26  ;;  %v1332_v30 = vadd.f32 %v1323_v51, %v1309_v17  ;;  %v1361_v49 = vmul.f32 %v10782_v50, %v10683_v52 }
 0x123   : >> { %v1333_v21 = vadd.f32 %v1325_v18, %v1310_v37  ;;  %v1334_v20 = vadd.f32 %v1327_v41, %v1311_v16  ;;  %v1362_v60 = vmul.f32 %v16476_v15, %v10683_v52  ;;  %v11348_v6 = vmul.f32 %v16477_v59, %v10683_v52 }
 0x124   : >> { %v1356_v27 = vadd.f32 %v1352_v56, %v1332_v30  ;;  %v1368_v38 = vrot.slane %v1360_v36, 1  ;;  %v1369_v48 = vrot.slane %v1361_v49, 1  ;;  %v1383_v45 = vmul.f32 %v16410_v1, %v10831_v10 }
 0x125   : >> { %v1357_v5 = vadd.f32 %v1353_v61, %v1333_v21  ;;  %v1358_v17 = vadd.f32 %v1354_v43, %v1334_v20  ;;  %v1371_v51 = vrot.slane %v1362_v60, 1  ;;  %v16170_v26 = vrot.slane %v11348_v6, 1 }
 0x126   : >> { %v1370_v37 = vsel %vm517_vm0, %v1368_v38, %v1369_v48  ;;  %v1384_v16 = vmul.f32 %v16410_v1, %v10782_v50  ;;  %v1385_v18 = vmul.f32 %v16410_v1, %v16476_v15  ;;  %v11360_v56 = vmul.f32 %v16410_v1, %v16477_v59 }
 0x127   : >> { %v1372_v36 = vsel %vm517_vm0, %v1369_v48, %v1371_v51  ;;  %v1374_v43 = vsel %vm517_vm0, %v1371_v51, %v16170_v26  ;;  %v1379_v61 = vadd.f32 %v1370_v37, %v1356_v27  ;;  %v1391_v41 = vrot.slane %v1383_v45, 2 }
 0x128   : >> { %v1380_v30 = vadd.f32 %v1372_v36, %v1357_v5  ;;  %v1381_v38 = vadd.f32 %v1374_v43, %v1358_v17  ;;  %v1392_v49 = vrot.slane %v1384_v16, 2  ;;  %v1394_v21 = vrot.slane %v1385_v18, 2  ;;  %v11392_v18 = vpop.permute.xlu1 %2145  ;;  %v16483_v36 = vld [vmem:[#allocation23_spill] sm:$0xff] }
 0x129   : >> { %v11368_v20 = vadd.f32 %v16409_v4, %v11237_v29  ;;  %v11372_v60 = vmul.f32 %v11161_v7, %v10612_v31  ;;  %v11376_v48 = vmul.f32 %v11196_v25, %v10612_v31  ;;  %v16171_v51 = vrot.slane %v11360_v56, 2 }
 0x12a   : >> { %v11381_v45 = vadd.f32 %v16409_v4, %v11241_v34  ;;  %v11385_v27 = vmul.f32 %v11228_v58, %v10612_v31  ;;  %v1393_v29 = vsel %vm545_vm1, %v1391_v41, %v1392_v49  ;;  %v1395_v5 = vsel %vm545_vm1, %v1392_v49, %v1394_v21 }
 0x12b   : >> { %16478 = vst [vmem:[#allocation30_spill] sm:$0xff] %v11368_v20  ;;  %16479 = vst [vmem:[#allocation34_spill] sm:$0xff] %v11372_v60  ;;  %v1397_v17 = vsel %vm545_vm1, %v1394_v21, %v16171_v51  ;;  %v1402_v37 = vadd.f32 %v1393_v29, %v1379_v61  ;;  %v1403_v16 = vadd.f32 %v1395_v5, %v1380_v30  ;;  %v1224_v43 = vmax.f32 %v11271_v2, 0.0 }
 0x12c   : >> { %16480 = vst [vmem:[#allocation60_spill] sm:$0xff] %v11376_v48  ;;  %16481 = vst [vmem:[#allocation61_spill] sm:$0xff] %v11381_v45  ;;  %v1053_v34 = vadd.f32 %v16409_v4, %v16483_v36  ;;  %v1225_v26 = vmax.f32 %v11280_v22, 0.0  ;;  %v1226_v45 = vmax.f32 %v11282_v3, 0.0  ;;  %v1404_v41 = vadd.f32 %v1397_v17, %v1381_v38  ;;  %v11399_v48 = vpop.permute.xlu0 %2315  ;;  %v16488_v3 = vld [vmem:[#allocation32_spill] sm:$0xff] }
 0x12d   : >> { %16482 = vst [vmem:[#allocation62_spill] sm:$0xff] %v11385_v27  ;;  %v1406_v27 = vmax.f32 %v1402_v37, 0.0  ;;  %v1407_v49 = vmax.f32 %v1403_v16, 0.0  ;;  %16484 = vst [vmem:[#allocation23_spill] sm:$0xff] %v11399_v48  ;;  %v16485_v21 = vrot.slane %v10747_v62, 1  ;;  %v1103_v30 = vmul.f32 %v10847_v55, %v10636_v47 }
 0x12e   : >> { %v1408_v29 = vmax.f32 %v1404_v41, 0.0  ;;  %v11407_v5 = vmul.f32 %v11399_v48, %v10612_v31  ;;  %v11411_v2 = vmul.f32 %v11392_v18, %v10649_v63  ;;  %v1235_v22 = vadd.f32 %v16409_v4, %v16488_v3 }
 0x12f   : >> { %v1076_v61 = vadd.f32 %v16485_v21, %v1053_v34  ;;  %v1410_v38 = vmax.f32 %v1224_v43, %v1406_v27  ;;  %v1411_v17 = vmax.f32 %v1225_v26, %v1407_v49  ;;  %v11417_v62 = vmul.f32 %v11392_v18, %v10612_v31  ;;  %v16493_v43 = vld [vmem:[#allocation9_spill] sm:$0xff] }
 0x130   : >> { %16486 = vst [vmem:[#allocation63_spill] sm:$0xff] %v11407_v5  ;;  %16487 = vst [vmem:[#allocation64_spill] sm:$0xff] %v11411_v2  ;;  %v16490_v55 = vrot.slane %v10755_v57, 2  ;;  %v11421_v16 = vmax.f32 %v1226_v45, %v1408_v29  ;;  %v16491_v36 = vrot.slane %v10858_v9, 1  ;;  %v1285_v41 = vmul.f32 %v10736_v42, %v10636_v47  ;;  %9064 = vmatprep.mubr.msk.f32.mxu0 %vm934_vm5, %v16493_v43  ;;  %v16496_v29 = vld [vmem:[#allocation13_spill] sm:$0xff] }
 0x131   : >> { %16489 = vst [vmem:[#allocation32_spill] sm:$0xff] %v11417_v62  ;;  %v1418_v21 = vrot.slane %v1410_v38, 1  ;;  %v1419_v3 = vrot.slane %v1411_v17, 1  ;;  %v11429_v26 = vmul.f32 %v11392_v18, %v10616_v32  ;;  %9075 = vmatprep.mubr.msk.f32.mxu1 %vm934_vm5, %v16493_v43  ;;  %v11438_v57 = vmul.f32 %v11392_v18, %v10621_v33  ;;  %9065 = vmatmul.mubr.msk.f32.vlgmr.msra.gmra.mrb[0].mxu0 %vm934_vm5, %v16496_v29  ;;  %v16500_v2 = vld [vmem:[#allocation21_spill] sm:$0xff] }
 0x132   : >> { %v1099_v37 = vadd.f32 %v16490_v55, %v1076_v61  ;;  %v1258_v34 = vadd.f32 %v16491_v36, %v1235_v22  ;;  %v1421_v9 = vrot.slane %v11421_v16, 1  ;;  %v1173_v45 = vmul.f32 %v10736_v42, %v10670_v39  ;;  %9086 = vmatprep.mubr.msk.f32.mxu0 %vm934_vm5, %v16493_v43 }
 0x133   : >> { %16492 = vst [vmem:[#allocation65_spill] sm:$0xff] %v11429_v26  ;;  %16494 = vst [vmem:[#allocation66_spill] sm:$0xff] %v11438_v57  ;;  %v16495_v49 = vrot.slane %v10865_v35, 2  ;;  %v16497_v22 = vrot.slane %v11167_v24, 1  ;;  %v1536_v36 = vmul.f32 %v10770_v46, %v10616_v32  ;;  %v16498_v24 = vrot.slane %v11200_v54, 2 }
 0x134   : >> { %v1107_v27 = vadd.f32 %v1103_v30, %v1099_v37  ;;  %v1420_v30 = vsel %vm517_vm0, %v1418_v21, %v1419_v3  ;;  %v1535_v37 = vmul.f32 %v10715_v44, %v10616_v32  ;;  %v1422_v42 = vsel %vm517_vm0, %v1419_v3, %v1421_v9 }
 0x135   : >> { %v1281_v61 = vadd.f32 %v16495_v49, %v1258_v34  ;;  %v1429_v35 = vmax.f32 %v1410_v38, %v1420_v30  ;;  %v1430_v49 = vmax.f32 %v1411_v17, %v1422_v42  ;;  %v16499_v26 = vrot.slane %v11310_v23, 1  ;;  %v16501_v38 = vld [vmem:[#allocation26_spill] sm:$0xff]  ;;  %v16502_v17 = vld [vmem:[#allocation28_spill] sm:$0xff] }
 0x136   : >> { %v1130_v55 = vadd.f32 %v16497_v22, %v1107_v27  ;;  %v1355_v22 = vmul.f32 %v16477_v59, %v10670_v39  ;;  %v1539_v51 = vadd.f32 %v16409_v4, %v1535_v37  ;;  %v1540_v48 = vadd.f32 %v16409_v4, %v1536_v36 }
 0x137   : >> { %v1289_v21 = vadd.f32 %v1285_v41, %v1281_v61  ;;  %v1551_v3 = vrot.slane %v16500_v2, 1  ;;  %v1552_v30 = vrot.slane %v16501_v38, 1  ;;  %v9330_v34 = vpack.c.bf16 %v1430_v49, %v1429_v35  ;;  %v11486_v49 = vpop.permute.xlu1 %2319  ;;  %v11494_v38 = vpop.permute.xlu0 %2327 }
 0x138   : >> { %v1153_v27 = vadd.f32 %v16498_v24, %v1130_v55  ;;  %v1554_v61 = vrot.slane %v16502_v17, 1  ;;  %v1566_v54 = vmul.f32 %v10715_v44, %v10621_v33  ;;  %v16503_v55 = vrot.slane %v11322_v14, 2  ;;  %v16505_v44 = vld [vmem:[#allocation22_spill] sm:$0xff]  ;;  %16507 = vst [vmem:[#allocation21_spill] sm:$0xff] %v11486_v49  ;;  %16510 = vst [vmem:[#allocation28_spill] sm:$0xff] %v11494_v38 }
 0x139   : >> { %v1312_v5 = vadd.f32 %v16499_v26, %v1289_v21  ;;  %v1553_v37 = vsel %vm517_vm0, %v1551_v3, %v1552_v30  ;;  %v1567_v23 = vmul.f32 %v10770_v46, %v10621_v33  ;;  %v1568_v2 = vmul.f32 %v10799_v40, %v10621_v33  ;;  %9331 = vmatprep.subr.bf16.mxu1 %v9330_v34 }
 0x13a   : >> { %v1177_v41 = vadd.f32 %v1173_v45, %v1153_v27  ;;  %v16504_v45 = vrot.slane %v11221_v11, 1  ;;  %v1555_v35 = vsel %vm517_vm0, %v1552_v30, %v1554_v61  ;;  %v16506_v21 = vrot.slane %v16505_v44, 1  ;;  %9333 = vmatpush3.bf16.msra.mxu1 %v9330_v34 }
 0x13b   : >> { %v1335_v42 = vadd.f32 %v16503_v55, %v1312_v5  ;;  %v1562_v46 = vadd.f32 %v1553_v37, %v1539_v51  ;;  %v1563_v24 = vadd.f32 %v1555_v35, %v1540_v48  ;;  %v1574_v27 = vrot.slane %v1566_v54, 2  ;;  %v16513_v51 = vld [vmem:[#allocation29_spill] sm:$0xff] }
 0x13c   : >> { %v1200_v36 = vadd.f32 %v16504_v45, %v1177_v41  ;;  %v1557_v14 = vsel %vm517_vm0, %v1554_v61, %v16506_v21  ;;  %v16508_v40 = vrot.slane %v11249_v28, 2  ;;  %v11492_v11 = vmul.f32 %v11486_v49, %v10612_v31 }
 0x13d   : >> { %v1359_v5 = vadd.f32 %v1355_v22, %v1335_v42  ;;  %v1575_v30 = vrot.slane %v1567_v23, 2  ;;  %v1577_v41 = vrot.slane %v1568_v2, 2  ;;  %v16511_v17 = vrot.slane %v11348_v6, 1 }
 0x13e   : >> { %v1223_v3 = vadd.f32 %v16508_v40, %v1200_v36  ;;  %16509 = vst [vmem:[#allocation26_spill] sm:$0xff] %v11492_v11  ;;  %v11500_v22 = vmul.f32 %v11494_v38, %v10649_v63  ;;  %v1589_v48 = vmul.f32 %v10831_v10, %v10636_v47  ;;  %v1597_v28 = vmul.f32 %v10831_v10, %v10649_v63 }
 0x13f   : >> { %v1382_v34 = vadd.f32 %v16511_v17, %v1359_v5  ;;  %v1564_v61 = vadd.f32 %v1557_v14, %v16513_v51  ;;  %v1576_v54 = vsel %vm545_vm1, %v1574_v27, %v1575_v30  ;;  %v1578_v55 = vsel %vm545_vm1, %v1575_v30, %v1577_v41  ;;  %v16515_v27 = vld [vmem:[#allocation24_spill] sm:$0xff] }
 0x140   : >> { %16512 = vst [vmem:[#allocation22_spill] sm:$0xff] %v11500_v22  ;;  %v1590_v6 = vmul.f32 %v10782_v50, %v10636_v47  ;;  %v16514_v42 = vrot.slane %v11360_v56, 2  ;;  %v1585_v23 = vadd.f32 %v1576_v54, %v1562_v46  ;;  %v1586_v2 = vadd.f32 %v1578_v55, %v1563_v24  ;;  %v16517_v17 = vld [vmem:[#allocation40_spill] sm:$0xff] }
 0x141   : >> { %v1591_v45 = vmul.f32 %v16476_v15, %v10636_v47  ;;  %v1227_v36 = vmax.f32 %v1223_v3, 0.0  ;;  %v1598_v35 = vmul.f32 %v10782_v50, %v10649_v63  ;;  %v1599_v21 = vmul.f32 %v16476_v15, %v10649_v63 }
 0x142   : >> { %v1405_v37 = vadd.f32 %v16514_v42, %v1382_v34  ;;  %v1605_v14 = vrot.slane %v1597_v28, 1  ;;  %v16516_v40 = vrot.slane %v16515_v27, 2  ;;  %v1593_v56 = vadd.f32 %v1589_v48, %v1585_v23 }
 0x143   : >> { %v16176_v46 = vrot.slane %v16517_v17, 1  ;;  %v1606_v24 = vrot.slane %v1598_v35, 1  ;;  %v1608_v34 = vrot.slane %v1599_v21, 1  ;;  %v1620_v3 = vmul.f32 %v10831_v10, %v10654_v12 }
 0x144   : >> { %v1409_v5 = vmax.f32 %v1405_v37, 0.0  ;;  %v1580_v30 = vsel %vm545_vm1, %v1577_v41, %v16516_v40  ;;  %v1621_v51 = vmul.f32 %v10782_v50, %v10654_v12  ;;  %v1594_v55 = vadd.f32 %v1590_v6, %v1586_v2 }
 0x145   : >> { %v1622_v28 = vmul.f32 %v16476_v15, %v10654_v12  ;;  %v11531_v42 = vmul.f32 %v16477_v59, %v10654_v12  ;;  %v11535_v41 = vmul.f32 %v11494_v38, %v10616_v32  ;;  %v1587_v48 = vadd.f32 %v1580_v30, %v1564_v61 }
 0x146   : >> { %v1413_v54 = vmax.f32 %v1227_v36, %v1409_v5  ;;  %v1607_v37 = vsel %vm517_vm0, %v1605_v14, %v1606_v24  ;;  %v1609_v23 = vsel %vm517_vm0, %v1606_v24, %v1608_v34  ;;  %v1611_v6 = vsel %vm517_vm0, %v1608_v34, %v16176_v46 }
 0x147   : >> { %16518 = vst [vmem:[#allocation29_spill] sm:$0xff] %v11535_v41  ;;  %v1617_v2 = vadd.f32 %v1609_v23, %v1594_v55  ;;  %v1628_v36 = vrot.slane %v1620_v3, 2  ;;  %v1595_v21 = vadd.f32 %v1591_v45, %v1587_v48  ;;  %v1629_v5 = vrot.slane %v1621_v51, 2  ;;  %v16519_v48 = vld [vmem:[#allocation35_spill] sm:$0xff] }
 0x148   : >> { %v1423_v35 = vrot.slane %v1413_v54, 1  ;;  %v1631_v40 = vrot.slane %v1622_v28, 2  ;;  %v1659_v26 = vmul.f32 %v11000_v0, %v10670_v39  ;;  %v1616_v14 = vadd.f32 %v1607_v37, %v1593_v56 }
 0x149   : >> { %v16175_v30 = vrot.slane %v11531_v42, 2  ;;  %v1667_v24 = vmul.f32 %v11000_v0, %v10683_v52  ;;  %v1618_v3 = vadd.f32 %v1611_v6, %v1595_v21  ;;  %v1630_v51 = vsel %vm545_vm1, %v1628_v36, %v1629_v5 }
 0x14a   : >> { %v1424_v61 = vsel %vm517_vm0, %v1421_v9, %v1423_v35  ;;  %v1432_v55 = vmax.f32 %v1413_v54, %v1423_v35  ;;  %v1632_v45 = vsel %vm545_vm1, %v1629_v5, %v1631_v40  ;;  %v1660_v23 = vmul.f32 %v16519_v48, %v10670_v39 }
 0x14b   : >> { %v1431_v34 = vmax.f32 %v11421_v16, %v1424_v61  ;;  %v1640_v28 = vadd.f32 %v1632_v45, %v1617_v2  ;;  %v1668_v9 = vmul.f32 %v16519_v48, %v10683_v52  ;;  %v1669_v37 = vmul.f32 %v11022_v53, %v10683_v52 }
 0x14c   : >> { %v11561_v16 = vmul.f32 %v11061_v13, %v10683_v52  ;;  %v1675_v54 = vrot.slane %v1667_v24, 1  ;;  %v1634_v35 = vsel %vm545_vm1, %v1631_v40, %v16175_v30  ;;  %v1639_v6 = vadd.f32 %v1630_v51, %v1616_v14 }
 0x14d   : >> { %v9334_v56 = vpack.c.bf16 %v1432_v55, %v1431_v34  ;;  %v1661_v2 = vmul.f32 %v11022_v53, %v10670_v39  ;;  %v1676_v36 = vrot.slane %v1668_v9, 1  ;;  %v1678_v21 = vrot.slane %v1669_v37, 1 }
 0x14e   : >> { %v16177_v5 = vrot.slane %v11561_v16, 1  ;;  %v1690_v61 = vmul.f32 %v16410_v1, %v11000_v0  ;;  %v1691_v24 = vmul.f32 %v16410_v1, %v16519_v48  ;;  %v1641_v40 = vadd.f32 %v1634_v35, %v1618_v3 }
 0x14f   : >> { %9336 = vmatprep.subr.msk.bf16.mxu1 %vm11185_vm4, %v9334_v56  ;;  %v1692_v14 = vmul.f32 %v16410_v1, %v11022_v53  ;;  %v11581_v34 = vmul.f32 %v16410_v1, %v11061_v13  ;;  %v1717_v55 = vmul.f32 %v10831_v10, %v10616_v32  ;;  %v1663_v45 = vadd.f32 %v1659_v26, %v1639_v6  ;;  %v16520_v26 = vld [vmem:[#allocation31_spill] sm:$0xff] }
 0x150   : >> { %9339 = vmatpush3.bf16.msk.msra.mxu1 %vm11185_vm4, %v9334_v56  ;;  %v1664_v51 = vadd.f32 %v1660_v23, %v1640_v28  ;;  %v1677_v9 = vsel %vm517_vm0, %v1675_v54, %v1676_v36  ;;  %v1679_v37 = vsel %vm517_vm0, %v1676_v36, %v1678_v21  ;;  %v1681_v3 = vsel %vm517_vm0, %v1678_v21, %v16177_v5  ;;  %v16522_v6 = vld [vmem:[#allocation27_spill] sm:$0xff]  ;;  %v16523_v21 = vld [vmem:[#allocation33_spill] sm:$0xff] }
 0x151   : >> { %v1698_v56 = vrot.slane %v1690_v61, 2  ;;  %v1699_v35 = vrot.slane %v1691_v24, 2  ;;  %v1701_v30 = vrot.slane %v1692_v14, 2  ;;  %v1718_v41 = vmul.f32 %v10782_v50, %v10616_v32 }
 0x152   : >> { %v1721_v11 = vadd.f32 %v16409_v4, %v1717_v55  ;;  %v1733_v28 = vrot.slane %v16520_v26, 1  ;;  %v11599_v23 = vmul.f32 %v11494_v38, %v10612_v31  ;;  %v1665_v54 = vadd.f32 %v1661_v2, %v1641_v40 }
 0x153   : >> { %9076 = vmatmul.mubr.msk.f32.vlgmr.msra.gmra.mrb[0].mxu1 %vm934_vm5, %v16496_v29  ;;  %v1734_v36 = vrot.slane %v16522_v6, 1  ;;  %v1736_v61 = vrot.slane %v16523_v21, 1  ;;  %v11607_v24 = vmul.f32 %v11494_v38, %v10621_v33  ;;  %v1686_v14 = vadd.f32 %v1677_v9, %v1663_v45  ;;  %v16525_v6 = vld [vmem:[#allocation38_spill] sm:$0xff] }
 0x154   : >> { %16521 = vst [vmem:[#allocation24_spill] sm:$0xff] %v11599_v23  ;;  %9097 = vmatprep.mubr.msk.f32.mxu1 %vm934_vm5, %v16493_v43  ;;  %v11609_v55 = vadd.f32 %v1679_v37, %v1664_v51  ;;  %v1722_v26 = vadd.f32 %v16409_v4, %v1718_v41  ;;  %v11612_v5 = vadd.f32 %v1681_v3, %v1665_v54  ;;  %v16526_v21 = vrot.slane %v16525_v6, 1  ;;  %v16528_v37 = vld [vmem:[#allocation36_spill] sm:$0xff] }
 0x155   : >> { %16524 = vst [vmem:[#allocation40_spill] sm:$0xff] %v11607_v24  ;;  %v1735_v2 = vsel %vm517_vm0, %v1733_v28, %v1734_v36  ;;  %v1737_v40 = vsel %vm517_vm0, %v1734_v36, %v1736_v61  ;;  %v1700_v22 = vsel %vm545_vm1, %v1698_v56, %v1699_v35  ;;  %v11621_v57 = vsel %vm545_vm1, %v1699_v35, %v1701_v30 }
 0x156   : >> { %v1739_v46 = vsel %vm517_vm0, %v1736_v61, %v16526_v21  ;;  %v16527_v45 = vrot.slane %v11581_v34, 2  ;;  %v1744_v41 = vadd.f32 %v1735_v2, %v1721_v11  ;;  %v1745_v9 = vadd.f32 %v1737_v40, %v1722_v26 }
 0x157   : >> { %v1746_v3 = vadd.f32 %v1739_v46, %v16528_v37  ;;  %v1748_v28 = vmul.f32 %v10831_v10, %v10621_v33  ;;  %v1749_v54 = vmul.f32 %v10782_v50, %v10621_v33  ;;  %v1750_v56 = vmul.f32 %v16476_v15, %v10621_v33 }
 0x158   : >> { %v11626_v51 = vsel %vm545_vm1, %v1701_v30, %v16527_v45  ;;  %v1771_v35 = vmul.f32 %v11000_v0, %v10636_v47  ;;  %v1772_v30 = vmul.f32 %v16519_v48, %v10636_v47  ;;  %v1773_v11 = vmul.f32 %v11022_v53, %v10636_v47 }
 0x159   : >> { %v1756_v36 = vrot.slane %v1748_v28, 2  ;;  %v1757_v46 = vrot.slane %v1749_v54, 2  ;;  %v1779_v10 = vmul.f32 %v11000_v0, %v10649_v63  ;;  %v1780_v50 = vmul.f32 %v16519_v48, %v10649_v63  ;;  %v16529_v54 = vld [vmem:[#allocation39_spill] sm:$0xff] }
 0x15a   : >> { %v1759_v61 = vrot.slane %v1750_v56, 2  ;;  %v1781_v15 = vmul.f32 %v11022_v53, %v10649_v63  ;;  %v1802_v2 = vmul.f32 %v11000_v0, %v10654_v12  ;;  %v1803_v37 = vmul.f32 %v16519_v48, %v10654_v12 }
 0x15b   : >> { %v1758_v40 = vsel %vm545_vm1, %v1756_v36, %v1757_v46  ;;  %v1787_v21 = vrot.slane %v1779_v10, 1  ;;  %v1788_v45 = vrot.slane %v1780_v50, 1  ;;  %v16530_v62 = vrot.slane %v16529_v54, 2 }
 0x15c   : >> { %v1760_v28 = vsel %vm545_vm1, %v1757_v46, %v1759_v61  ;;  %v1767_v38 = vadd.f32 %v1758_v40, %v1744_v41  ;;  %v1790_v49 = vrot.slane %v1781_v15, 1  ;;  %v1804_v36 = vmul.f32 %v11022_v53, %v10654_v12 }
 0x15d   : >> { %v1762_v56 = vsel %vm545_vm1, %v1759_v61, %v16530_v62  ;;  %v1768_v20 = vadd.f32 %v1760_v28, %v1745_v9  ;;  %v1789_v60 = vsel %vm517_vm0, %v1787_v21, %v1788_v45  ;;  %v16531_v43 = vrot.slane %v11083_v19, 1  ;;  %v11674_v28 = vpop.permute.xlu1 %2323 }
 0x15e   : >> { %v1769_v26 = vadd.f32 %v1762_v56, %v1746_v3  ;;  %v1775_v10 = vadd.f32 %v1771_v35, %v1767_v38  ;;  %v1791_v50 = vsel %vm517_vm0, %v1788_v45, %v1790_v49  ;;  %v11666_v29 = vmul.f32 %v11061_v13, %v10654_v12 }
 0x15f   : >> { %v1793_v46 = vsel %vm517_vm0, %v1790_v49, %v16531_v43  ;;  %v1776_v62 = vadd.f32 %v1772_v30, %v1768_v20  ;;  %v1810_v9 = vrot.slane %v1802_v2, 2  ;;  %v1811_v3 = vrot.slane %v1803_v37, 2  ;;  %v16532_v43 = vld [vmem:[#allocation42_spill] sm:$0xff] }
 0x160   : >> { %v1777_v41 = vadd.f32 %v1773_v11, %v1769_v26  ;;  %v11668_v61 = vadd.f32 %v1700_v22, %v1686_v14  ;;  %v1798_v15 = vadd.f32 %v1789_v60, %v1775_v10  ;;  %v1813_v40 = vrot.slane %v1804_v36, 2  ;;  %v16533_v22 = vld [vmem:[#allocation57_spill] sm:$0xff]  ;;  %v16534_v10 = vld [vmem:[#allocation44_spill] sm:$0xff] }
 0x161   : >> { %v16189_v38 = vrot.slane %v11666_v29, 2  ;;  %v1799_v35 = vadd.f32 %v1791_v50, %v1776_v62  ;;  %v1812_v45 = vsel %vm545_vm1, %v1810_v9, %v1811_v3  ;;  %v1841_v49 = vmul.f32 %v16532_v43, %v10670_v39 }
 0x162   : >> { %v1800_v21 = vadd.f32 %v1793_v46, %v1777_v41  ;;  %v1821_v30 = vadd.f32 %v1812_v45, %v1798_v15  ;;  %v1842_v60 = vmul.f32 %v16533_v22, %v10670_v39  ;;  %v1843_v14 = vmul.f32 %v11161_v7, %v10670_v39 }
 0x163   : >> { %v1816_v20 = vsel %vm545_vm1, %v1813_v40, %v16189_v38  ;;  %v1814_v11 = vsel %vm545_vm1, %v1811_v3, %v1813_v40  ;;  %v1849_v2 = vmul.f32 %v16532_v43, %v10683_v52  ;;  %v1850_v37 = vmul.f32 %v16533_v22, %v10683_v52 }
 0x164   : >> { %v1823_v26 = vadd.f32 %v1816_v20, %v1800_v21  ;;  %v1822_v56 = vadd.f32 %v1814_v11, %v1799_v35  ;;  %v1851_v36 = vmul.f32 %v11161_v7, %v10683_v52  ;;  %v11692_v50 = vmul.f32 %v16534_v10, %v10683_v52 }
 0x165   : >> { %v1872_v46 = vmul.f32 %v16410_v1, %v16532_v43  ;;  %v1845_v62 = vadd.f32 %v1841_v49, %v1821_v30  ;;  %v1857_v9 = vrot.slane %v1849_v2, 1  ;;  %v1858_v3 = vrot.slane %v1850_v37, 1  ;;  %v11706_v30 = vpop.permute.xlu1 %2622 }
 0x166   : >> { %v1847_v41 = vadd.f32 %v1843_v14, %v1823_v26  ;;  %v1860_v15 = vrot.slane %v1851_v36, 1  ;;  %v1862_v40 = vrot.slane %v11692_v50, 1  ;;  %v1873_v35 = vmul.f32 %v16410_v1, %v16533_v22 }
 0x167   : >> { %v1874_v21 = vmul.f32 %v16410_v1, %v11161_v7  ;;  %v1846_v45 = vadd.f32 %v1842_v60, %v1822_v56  ;;  %v1859_v20 = vsel %vm517_vm0, %v1857_v9, %v1858_v3  ;;  %v11704_v11 = vmul.f32 %v16410_v1, %v16534_v10 }
 0x168   : >> { %v1880_v49 = vrot.slane %v1872_v46, 2  ;;  %v1861_v14 = vsel %vm517_vm0, %v1858_v3, %v1860_v15  ;;  %v1863_v26 = vsel %vm517_vm0, %v1860_v15, %v1862_v40  ;;  %v1868_v2 = vadd.f32 %v1859_v20, %v1845_v62 }
 0x169   : >> { %v1881_v37 = vrot.slane %v1873_v35, 2  ;;  %v1869_v36 = vadd.f32 %v1861_v14, %v1846_v45  ;;  %v1870_v38 = vadd.f32 %v1863_v26, %v1847_v41  ;;  %v1883_v60 = vrot.slane %v1874_v21, 2  ;;  %v16535_v35 = vld [vmem:[#allocation25_spill] sm:$0xff] }
 0x16a   : >> { %v16193_v56 = vrot.slane %v11704_v11, 2  ;;  %v1710_v9 = vadd.f32 %v11621_v57, %v11609_v55  ;;  %v1711_v46 = vadd.f32 %v11626_v51, %v11612_v5  ;;  %v10340_v41 = vmov 14   ;;  %v11728_v51 = vld [vmem:[%s10541_s21 + $0x8] sm:$0xff] }
 0x16b   : >> { %v1882_v3 = vsel %vm545_vm1, %v1880_v49, %v1881_v37  ;;  %v1884_v1 = vsel %vm545_vm1, %v1881_v37, %v1883_v60  ;;  %10148 = vset.pattern.permute.xlu1 %v10340_v41  ;;  %v1542_v21 = vadd.f32 %v16409_v4, %v16535_v35  ;;  %v1713_v45 = vmax.f32 %v11668_v61, 0.0  ;;  %v11737_v37 = vpop.permute.xlu1 %2630  ;;  %10147 = vset.pattern.permute.xlu0 %v10340_v41 }
 0x16c   : >> { %v1886_v62 = vsel %vm545_vm1, %v1883_v60, %v16193_v56  ;;  %v1891_v15 = vadd.f32 %v1882_v3, %v1868_v2  ;;  %v1892_v57 = vadd.f32 %v1884_v1, %v1869_v36  ;;  %v2697_v5 = vmul.f32 %v11674_v28, %v10616_v32  ;;  %3604 = vperm.xlu1 %10148, %v11728_v51   ;;  %v16537_v2 = vld [vmem:[#allocation41_spill] sm:$0xff] }
 0x16d   : >> { %v1893_v55 = vadd.f32 %v1886_v62, %v1870_v38  ;;  %v16536_v49 = vrot.slane %v16505_v44, 1  ;;  %v1592_v26 = vmul.f32 %v16477_v59, %v10636_v47  ;;  %v1724_v61 = vadd.f32 %v16409_v4, %v16537_v2  ;;  %v11740_v3 = vld [vmem:[%s10541_s21] sm:$0xff] }
 0x16e   : >> { %v1895_v20 = vmax.f32 %v1891_v15, 0.0  ;;  %v1714_v1 = vmax.f32 %v1710_v9, 0.0  ;;  %v1715_v38 = vmax.f32 %v1711_v46, 0.0  ;;  %v1896_v36 = vmax.f32 %v1892_v57, 0.0  ;;  %3600 = vperm.xlu0 %10147, %v11740_v3   ;;  %v16566_v56 = vld [vmem:[#allocation49_spill] sm:$0xff] }
 0x16f   : >> { %v1565_v14 = vadd.f32 %v16536_v49, %v1542_v21  ;;  %v1897_v60 = vmax.f32 %v1893_v55, 0.0  ;;  %v16538_v62 = vrot.slane %v16515_v27, 2  ;;  %v16539_v59 = vrot.slane %v16525_v6, 1  ;;  %v11749_v21 = vpop.permute.xlu0 %2626 }
 0x170   : >> { %v1899_v44 = vmax.f32 %v1713_v45, %v1895_v20  ;;  %v1774_v41 = vmul.f32 %v11061_v13, %v10636_v47  ;;  %v1900_v57 = vmax.f32 %v1714_v1, %v1896_v36  ;;  %v11756_v45 = vld [vmem:[%s10541_s21 + $0x10] sm:$0xff]  ;;  %v11760_v27 = vadd.f32 %v16409_v4, %v2697_v5 }
 0x171   : >> { %v1588_v15 = vadd.f32 %v16538_v62, %v1565_v14  ;;  %v1747_v35 = vadd.f32 %v16539_v59, %v1724_v61  ;;  %v11753_v55 = vmax.f32 %v1715_v38, %v1897_v60  ;;  %3608 = vperm.xlu1 %10148, %v11756_v45   ;;  %v1662_v20 = vmul.f32 %v11061_v13, %v10670_v39  ;;  %v11768_v38 = vld [vmem:[%s10541_s21 + $0x18] sm:$0xf] }
 0x172   : >> { %16540 = vst [vmem:[#allocation35_spill] sm:$0xff] %v11760_v27  ;;  %v16541_v49 = vrot.slane %v16529_v54, 2  ;;  %v1907_v2 = vrot.slane %v1899_v44, 1  ;;  %v1908_v61 = vrot.slane %v1900_v57, 1  ;;  %3612 = vperm.xlu0 %10147, %v11768_v38   ;;  %v16542_v36 = vrot.slane %v16517_v17, 1  ;;  %v11777_v54 = vpop.permute.xlu1 %2634 }
 0x173   : >> { %v1596_v6 = vadd.f32 %v1592_v26, %v1588_v15  ;;  %v16192_v1 = vrot.slane %v11753_v55, 1  ;;  %v1844_v26 = vmul.f32 %v16534_v10, %v10670_v39  ;;  %v3004_v13 = vmul.f32 %v11737_v37, %v10616_v32  ;;  %v11779_v62 = vpop.permute.xlu0 %2804 }
 0x174   : >> { %v1770_v14 = vadd.f32 %v16541_v49, %v1747_v35  ;;  %16543 = vst [vmem:[#allocation31_spill] sm:$0xff] %v11779_v62  ;;  %v1909_v15 = vsel %vm517_vm0, %v1907_v2, %v1908_v61  ;;  %v10341_v35 = vmov 15   ;;  %v11787_v17 = vmul.f32 %v11777_v54, %v10612_v31 }
 0x175   : >> { %v1619_v60 = vadd.f32 %v16542_v36, %v1596_v6  ;;  %v1911_v59 = vsel %vm517_vm0, %v1908_v61, %v16192_v1  ;;  %10149 = vset.pattern.permute.xlu1 %v10341_v35  ;;  %v1918_v6 = vmax.f32 %v1899_v44, %v1909_v15  ;;  %v16547_v2 = vrot.slane %v11083_v19, 1 }
 0x176   : >> { %v1778_v5 = vadd.f32 %v1774_v41, %v1770_v14  ;;  %16544 = vst [vmem:[#allocation27_spill] sm:$0xff] %v11787_v17  ;;  %v11791_v41 = vmul.f32 %v11777_v54, %v10621_v33  ;;  %v1919_v49 = vmax.f32 %v1900_v57, %v1911_v59  ;;  %v16546_v14 = vrot.slane %v11531_v42, 2  ;;  %3782 = vperm.xlu1 %10149, %v11740_v3  }
 0x177   : >> { %v11800_v61 = vmul.f32 %v11674_v28, %v10612_v31  ;;  %v11804_v9 = vmul.f32 %v11706_v30, %v10612_v31  ;;  %v11808_v44 = vmul.f32 %v11737_v37, %v10612_v31  ;;  %v11812_v42 = vmul.f32 %v11749_v21, %v10612_v31  ;;  %10150 = vset.pattern.permute.xlu0 %v10341_v35 }
 0x178   : >> { %16545 = vst [vmem:[#allocation33_spill] sm:$0xff] %v11791_v41  ;;  %v1642_v36 = vadd.f32 %v16546_v14, %v1619_v60  ;;  %v1801_v46 = vadd.f32 %v16547_v2, %v1778_v5  ;;  %v9340_v19 = vpack.c.bf16 %v1919_v49, %v1918_v6  ;;  %v16552_v60 = vrot.slane %v11666_v29, 2  ;;  %3786 = vperm.xlu0 %10150, %v11728_v51   ;;  %v11837_v49 = vpop.permute.xlu1 %2808 }
 0x179   : >> { %16548 = vst [vmem:[#allocation38_spill] sm:$0xff] %v11800_v61  ;;  %16549 = vst [vmem:[#allocation36_spill] sm:$0xff] %v11804_v9  ;;  %v11817_v15 = vadd.f32 %v16409_v4, %v3004_v13  ;;  %v11822_v59 = vmul.f32 %v11777_v54, %v10649_v63  ;;  %v11826_v14 = vmul.f32 %v11777_v54, %v10616_v32  ;;  %v16557_v29 = vrot.slane %v11561_v16, 1 }
 0x17a   : >> { %16550 = vst [vmem:[#allocation39_spill] sm:$0xff] %v11808_v44  ;;  %16551 = vst [vmem:[#allocation42_spill] sm:$0xff] %v11812_v42  ;;  %v1666_v57 = vadd.f32 %v1662_v20, %v1642_v36  ;;  %v1824_v5 = vadd.f32 %v16552_v60, %v1801_v46  ;;  %v11831_v20 = vmul.f32 %v11779_v62, %v10612_v31  ;;  %9341 = vmatprep.subr.bf16.mxu0 %v9340_v19  ;;  %v11839_v36 = vpop.permute.xlu0 %2816 }
 0x17b   : >> { %16553 = vst [vmem:[#allocation57_spill] sm:$0xff] %v11817_v15  ;;  %16554 = vst [vmem:[#allocation44_spill] sm:$0xff] %v11822_v59  ;;  %3790 = vperm.xlu1 %10149, %v11756_v45   ;;  %v2024_v2 = vmul.f32 %v11000_v0, %v10616_v32  ;;  %9343 = vmatpush3.bf16.msra.mxu0 %v9340_v19  ;;  %v11845_v60 = vmul.f32 %v11837_v49, %v10612_v31 }
 0x17c   : >> { %16555 = vst [vmem:[#allocation25_spill] sm:$0xff] %v11826_v14  ;;  %16556 = vst [vmem:[#allocation41_spill] sm:$0xff] %v11831_v20  ;;  %v1689_v46 = vadd.f32 %v16557_v29, %v1666_v57  ;;  %v1848_v13 = vadd.f32 %v1844_v26, %v1824_v5  ;;  %v11849_v16 = vmul.f32 %v11839_v36, %v10636_v47  ;;  %v16564_v5 = vrot.slane %v11581_v34, 2  ;;  %v16567_v14 = vld [vmem:[#allocation37_spill] sm:$0xff]  ;;  %v16568_v20 = vld [vmem:[#allocation50_spill] sm:$0xff] }
 0x17d   : >> { %16558 = vst [vmem:[#allocation67_spill] sm:$0xff] %v11837_v49  ;;  %16559 = vst [vmem:[#allocation68_spill] sm:$0xff] %v11839_v36  ;;  %v11853_v26 = vmul.f32 %v11839_v36, %v10649_v63  ;;  %v11857_v57 = vmul.f32 %v11839_v36, %v10654_v12  ;;  %v2025_v6 = vmul.f32 %v16519_v48, %v10616_v32  ;;  %v2043_v41 = vrot.slane %v16568_v20, 1 }
 0x17e   : >> { %16560 = vst [vmem:[#allocation69_spill] sm:$0xff] %v11845_v60  ;;  %16561 = vst [vmem:[#allocation70_spill] sm:$0xff] %v11849_v16  ;;  %v1712_v29 = vadd.f32 %v16564_v5, %v1689_v46  ;;  %v1871_v19 = vadd.f32 %v1862_v40, %v1848_v13  ;;  %v2028_v35 = vadd.f32 %v16409_v4, %v2024_v2  ;;  %v2040_v16 = vrot.slane %v16566_v56, 1  ;;  %v16570_v56 = vld [vmem:[#allocation55_spill] sm:$0xff] }
 0x17f   : >> { %16562 = vst [vmem:[#allocation71_spill] sm:$0xff] %v11853_v26  ;;  %16563 = vst [vmem:[#allocation72_spill] sm:$0xff] %v11857_v57  ;;  %v11868_v1 = vmul.f32 %v11839_v36, %v10616_v32  ;;  %v2041_v60 = vrot.slane %v16567_v14, 1  ;;  %v16569_v46 = vrot.slane %v11704_v11, 2  ;;  %3794 = vperm.xlu1 %10149, %v11768_v38   ;;  %v2029_v40 = vadd.f32 %v16409_v4, %v2025_v6 }
 0x180   : >> { %v1716_v34 = vmax.f32 %v1712_v29, 0.0  ;;  %v2055_v13 = vmul.f32 %v11000_v0, %v10621_v33  ;;  %v16571_v15 = vrot.slane %v16570_v56, 1  ;;  %v2056_v20 = vmul.f32 %v16519_v48, %v10621_v33 }
 0x181   : >> { %16565 = vst [vmem:[#allocation73_spill] sm:$0xff] %v11868_v1  ;;  %v1894_v50 = vadd.f32 %v16569_v46, %v1871_v19  ;;  %v2042_v2 = vsel %vm517_vm0, %v2040_v16, %v2041_v60  ;;  %v2044_v5 = vsel %vm517_vm0, %v2041_v60, %v2043_v41  ;;  %v16572_v46 = vld [vmem:[#allocation52_spill] sm:$0xff]  ;;  %v2057_v6 = vmul.f32 %v11022_v53, %v10621_v33 }
 0x182   : >> { %v2046_v14 = vsel %vm517_vm0, %v2043_v41, %v16571_v15  ;;  %v2051_v29 = vadd.f32 %v2042_v2, %v2028_v35  ;;  %v2052_v19 = vadd.f32 %v2044_v5, %v2029_v40  ;;  %v2063_v0 = vrot.slane %v2055_v13, 2  ;;  %v16573_v5 = vld [vmem:[#allocation47_spill] sm:$0xff] }
 0x183   : >> { %v1898_v11 = vmax.f32 %v1894_v50, 0.0  ;;  %v2053_v17 = vadd.f32 %v2046_v14, %v16572_v46  ;;  %v2064_v44 = vrot.slane %v2056_v20, 2  ;;  %v2078_v60 = vmul.f32 %v16532_v43, %v10636_v47 }
 0x184   : >> { %v2079_v41 = vmul.f32 %v16533_v22, %v10636_v47  ;;  %v2080_v48 = vmul.f32 %v11161_v7, %v10636_v47  ;;  %v2086_v15 = vmul.f32 %v16532_v43, %v10649_v63  ;;  %v2066_v50 = vrot.slane %v2057_v6, 2 }
 0x185   : >> { %v1902_v16 = vmax.f32 %v1716_v34, %v1898_v11  ;;  %v2065_v35 = vsel %vm545_vm1, %v2063_v0, %v2064_v44  ;;  %v2087_v53 = vmul.f32 %v16533_v22, %v10649_v63  ;;  %v2088_v40 = vmul.f32 %v11161_v7, %v10649_v63  ;;  %v16574_v11 = vld [vmem:[#allocation56_spill] sm:$0xff] }
 0x186   : >> { %v2074_v34 = vadd.f32 %v2065_v35, %v2051_v29  ;;  %v2094_v2 = vrot.slane %v2086_v15, 1  ;;  %v2067_v20 = vsel %vm545_vm1, %v2064_v44, %v2066_v50  ;;  %v16575_v46 = vrot.slane %v16574_v11, 2 }
 0x187   : >> { %v1912_v13 = vrot.slane %v1902_v16, 1  ;;  %v2095_v9 = vrot.slane %v2087_v53, 1  ;;  %v2097_v0 = vrot.slane %v2088_v40, 1  ;;  %v16576_v6 = vrot.slane %v11753_v55, 1 }
 0x188   : >> { %v2069_v42 = vsel %vm545_vm1, %v2066_v50, %v16575_v46  ;;  %v2075_v62 = vadd.f32 %v2067_v20, %v2052_v19  ;;  %v2082_v15 = vadd.f32 %v2078_v60, %v2074_v34  ;;  %v16577_v50 = vrot.slane %v16573_v5, 1  ;;  %v16578_v60 = vld [vmem:[#allocation51_spill] sm:$0xff] }
 0x189   : >> { %v1913_v57 = vsel %vm517_vm0, %v16576_v6, %v1912_v13  ;;  %v1921_v49 = vmax.f32 %v1902_v16, %v1912_v13  ;;  %v2076_v24 = vadd.f32 %v2069_v42, %v2053_v17  ;;  %v2096_v35 = vsel %vm517_vm0, %v2094_v2, %v2095_v9 }
 0x18a   : >> { %v1920_v29 = vmax.f32 %v11753_v55, %v1913_v57  ;;  %v2098_v44 = vsel %vm517_vm0, %v2095_v9, %v2097_v0  ;;  %v2083_v14 = vadd.f32 %v2079_v41, %v2075_v62  ;;  %v2100_v53 = vsel %vm517_vm0, %v2097_v0, %v16577_v50 }
 0x18b   : >> { %v2084_v59 = vadd.f32 %v2080_v48, %v2076_v24  ;;  %v2109_v40 = vmul.f32 %v16532_v43, %v10654_v12  ;;  %v2105_v16 = vadd.f32 %v2096_v35, %v2082_v15  ;;  %v2110_v17 = vmul.f32 %v16533_v22, %v10654_v12 }
 0x18c   : >> { %v9344_v46 = vpack.c.bf16 %v1921_v49, %v1920_v29  ;;  %v2111_v55 = vmul.f32 %v11161_v7, %v10654_v12  ;;  %v2106_v42 = vadd.f32 %v2098_v44, %v2083_v14  ;;  %v11924_v24 = vmul.f32 %v16534_v10, %v10654_v12  ;;  %v16579_v44 = vld [vmem:[#allocation13_spill] sm:$0xff] }
 0x18d   : >> { %v2107_v57 = vadd.f32 %v2100_v53, %v2084_v59  ;;  %v2117_v9 = vrot.slane %v2109_v40, 2  ;;  %v2118_v62 = vrot.slane %v2110_v17, 2  ;;  %v2148_v49 = vmul.f32 %v11196_v25, %v10670_v39 }
 0x18e   : >> { %9346 = vmatprep.subr.msk.bf16.mxu0 %vm11185_vm4, %v9344_v46  ;;  %v2120_v19 = vrot.slane %v2111_v55, 2  ;;  %v2149_v41 = vmul.f32 %v16578_v60, %v10670_v39  ;;  %v16207_v59 = vrot.slane %v11924_v24, 2  ;;  %v2150_v48 = vmul.f32 %v11228_v58, %v10670_v39 }
 0x18f   : >> { %9349 = vmatpush3.bf16.msk.msra.mxu0 %vm11185_vm4, %v9344_v46  ;;  %v2156_v13 = vmul.f32 %v11196_v25, %v10683_v52  ;;  %v2157_v34 = vmul.f32 %v16578_v60, %v10683_v52  ;;  %v2119_v2 = vsel %vm545_vm1, %v2117_v9, %v2118_v62  ;;  %v2158_v20 = vmul.f32 %v11228_v58, %v10683_v52  ;;  %v16580_v9 = vld [vmem:[#allocation8_spill] sm:$0xff] }
 0x190   : >> { %v2121_v14 = vsel %vm545_vm1, %v2118_v62, %v2120_v19  ;;  %v11947_v0 = vmul.f32 %v11392_v18, %v10683_v52  ;;  %v2123_v6 = vsel %vm545_vm1, %v2120_v19, %v16207_v59  ;;  %v2128_v29 = vadd.f32 %v2119_v2, %v2105_v16  ;;  %v16581_v19 = vld [vmem:[#allocation9_spill] sm:$0xff] }
 0x191   : >> { %v2129_v15 = vadd.f32 %v2121_v14, %v2106_v42  ;;  %v2164_v35 = vrot.slane %v2156_v13, 1  ;;  %v2130_v50 = vadd.f32 %v2123_v6, %v2107_v57  ;;  %v2165_v53 = vrot.slane %v2157_v34, 1 }
 0x192   : >> { %9087 = vmatmul.mubr.msk.f32.vlgmr.msra.gmra.mrb[2].mxu0 %vm934_vm5, %v16579_v44  ;;  %v2167_v40 = vrot.slane %v2158_v20, 1  ;;  %v16206_v46 = vrot.slane %v11947_v0, 1  ;;  %v2152_v17 = vadd.f32 %v2148_v49, %v2128_v29  ;;  %v2179_v62 = vmul.f32 %v16580_v9, %v11196_v25 }
 0x193   : >> { %v2153_v55 = vadd.f32 %v2149_v41, %v2129_v15  ;;  %v2180_v27 = vmul.f32 %v16580_v9, %v16578_v60  ;;  %9108 = vmatprep.mubr.msk.f32.mxu0 %vm934_vm5, %v16581_v19  ;;  %v2154_v16 = vadd.f32 %v2150_v48, %v2130_v50  ;;  %v2166_v42 = vsel %vm517_vm0, %v2164_v35, %v2165_v53  ;;  %v16582_v50 = vld [vmem:[#allocation43_spill] sm:$0xff] }
 0x194   : >> { %v2168_v57 = vsel %vm517_vm0, %v2165_v53, %v2167_v40  ;;  %v2170_v13 = vsel %vm517_vm0, %v2167_v40, %v16206_v46  ;;  %v2175_v49 = vadd.f32 %v2166_v42, %v2152_v17  ;;  %v2181_v34 = vmul.f32 %v16580_v9, %v11228_v58 }
 0x195   : >> { %v2176_v41 = vadd.f32 %v2168_v57, %v2153_v55  ;;  %v11970_v2 = vmul.f32 %v16580_v9, %v11392_v18  ;;  %v2177_v14 = vadd.f32 %v2170_v13, %v2154_v16  ;;  %v2187_v20 = vrot.slane %v2179_v62, 2  ;;  %v16583_v55 = vld [vmem:[#allocation58_spill] sm:$0xff] }
 0x196   : >> { %v2188_v48 = vrot.slane %v2180_v27, 2  ;;  %v2206_v6 = vmul.f32 %v16532_v43, %v10616_v32  ;;  %v2190_v29 = vrot.slane %v2181_v34, 2  ;;  %v2207_v35 = vmul.f32 %v16533_v22, %v10616_v32  ;;  %v16584_v16 = vld [vmem:[#allocation34_spill] sm:$0xff] }
 0x197   : >> { %v16213_v15 = vrot.slane %v11970_v2, 2  ;;  %v2222_v53 = vrot.slane %v16582_v50, 1  ;;  %v2223_v42 = vrot.slane %v16583_v55, 1  ;;  %v2225_v62 = vrot.slane %v16584_v16, 1 }
 0x198   : >> { %v2189_v40 = vsel %vm545_vm1, %v2187_v20, %v2188_v48  ;;  %v2210_v17 = vadd.f32 %v16409_v4, %v2206_v6  ;;  %v11984_v27 = vmul.f32 %v11839_v36, %v10612_v31  ;;  %v11988_v57 = vmul.f32 %v11839_v36, %v10621_v33 }
 0x199   : >> { %v2191_v13 = vsel %vm545_vm1, %v2188_v48, %v2190_v29  ;;  %v2193_v34 = vsel %vm545_vm1, %v2190_v29, %v16213_v15  ;;  %v2211_v6 = vadd.f32 %v16409_v4, %v2207_v35  ;;  %v2224_v50 = vsel %vm517_vm0, %v2222_v53, %v2223_v42  ;;  %v16589_v15 = vld [vmem:[#allocation30_spill] sm:$0xff] }
 0x19a   : >> { %16585 = vst [vmem:[#allocation49_spill] sm:$0xff] %v11984_v27  ;;  %16586 = vst [vmem:[#allocation37_spill] sm:$0xff] %v11988_v57  ;;  %v2226_v55 = vsel %vm517_vm0, %v2223_v42, %v2225_v62  ;;  %v11998_v16 = vadd.f32 %v2189_v40, %v2175_v49  ;;  %v12000_v46 = vadd.f32 %v2191_v13, %v2176_v41  ;;  %v16587_v57 = vld [vmem:[#allocation45_spill] sm:$0xff]  ;;  %v16590_v42 = vld [vmem:[#allocation64_spill] sm:$0xff] }
 0x19b   : >> { %v12002_v59 = vadd.f32 %v2193_v34, %v2177_v14  ;;  %v16588_v48 = vrot.slane %v16587_v57, 1  ;;  %v2233_v36 = vadd.f32 %v2224_v50, %v2210_v17  ;;  %v2234_v29 = vadd.f32 %v2226_v55, %v2211_v6 }
 0x19c   : >> { %v2237_v35 = vmul.f32 %v16532_v43, %v10621_v33  ;;  %v2238_v53 = vmul.f32 %v16533_v22, %v10621_v33  ;;  %v2239_v49 = vmul.f32 %v11161_v7, %v10621_v33  ;;  %v2260_v41 = vmul.f32 %v11196_v25, %v10636_v47 }
 0x19d   : >> { %v2228_v31 = vsel %vm517_vm0, %v2225_v62, %v16588_v48  ;;  %v2261_v14 = vmul.f32 %v16578_v60, %v10636_v47  ;;  %v2262_v17 = vmul.f32 %v11228_v58, %v10636_v47  ;;  %v2269_v43 = vmul.f32 %v16578_v60, %v10649_v63 }
 0x19e   : >> { %v2235_v20 = vadd.f32 %v2228_v31, %v16589_v15  ;;  %v2245_v40 = vrot.slane %v2237_v35, 2  ;;  %v2268_v31 = vmul.f32 %v11196_v25, %v10649_v63  ;;  %v2246_v22 = vrot.slane %v2238_v53, 2  ;;  %v16591_v35 = vld [vmem:[#allocation46_spill] sm:$0xff] }
 0x19f   : >> { %v2248_v15 = vrot.slane %v2239_v49, 2  ;;  %v2270_v7 = vmul.f32 %v11228_v58, %v10649_v63  ;;  %v2277_v34 = vrot.slane %v2269_v43, 1  ;;  %v2291_v6 = vmul.f32 %v11196_v25, %v10654_v12 }
 0x1a0   : >> { %v2276_v13 = vrot.slane %v2268_v31, 1  ;;  %v2292_v50 = vmul.f32 %v16578_v60, %v10654_v12  ;;  %v2247_v55 = vsel %vm545_vm1, %v2245_v40, %v2246_v22  ;;  %v16592_v53 = vrot.slane %v16591_v35, 2 }
 0x1a1   : >> { %v2249_v48 = vsel %vm545_vm1, %v2246_v22, %v2248_v15  ;;  %v2279_v26 = vrot.slane %v2270_v7, 1  ;;  %v2256_v19 = vadd.f32 %v2247_v55, %v2233_v36  ;;  %v16593_v44 = vrot.slane %v16590_v42, 1 }
 0x1a2   : >> { %v2251_v49 = vsel %vm545_vm1, %v2248_v15, %v16592_v53  ;;  %v2257_v23 = vadd.f32 %v2249_v48, %v2234_v29  ;;  %v2278_v31 = vsel %vm517_vm0, %v2276_v13, %v2277_v34  ;;  %v2293_v40 = vmul.f32 %v11228_v58, %v10654_v12 }
 0x1a3   : >> { %v2258_v62 = vadd.f32 %v2251_v49, %v2235_v20  ;;  %v2280_v43 = vsel %vm517_vm0, %v2277_v34, %v2279_v26  ;;  %v2282_v27 = vsel %vm517_vm0, %v2279_v26, %v16593_v44  ;;  %v12045_v22 = vmul.f32 %v11392_v18, %v10654_v12  ;;  %v16594_v44 = vld [vmem:[#allocation23_spill] sm:$0xff] }
 0x1a4   : >> { %v2264_v15 = vadd.f32 %v2260_v41, %v2256_v19  ;;  %v2265_v7 = vadd.f32 %v2261_v14, %v2257_v23  ;;  %v2299_v29 = vrot.slane %v2291_v6, 2  ;;  %v2300_v13 = vrot.slane %v2292_v50, 2 }
 0x1a5   : >> { %v2266_v36 = vadd.f32 %v2262_v17, %v2258_v62  ;;  %v2302_v55 = vrot.slane %v2293_v40, 2  ;;  %v16219_v34 = vrot.slane %v12045_v22, 2  ;;  %v2330_v49 = vmul.f32 %v16594_v44, %v10670_v39  ;;  %v16595_v17 = vld [vmem:[#allocation21_spill] sm:$0xff] }
 0x1a6   : >> { %v2287_v48 = vadd.f32 %v2278_v31, %v2264_v15  ;;  %v2288_v53 = vadd.f32 %v2280_v43, %v2265_v7  ;;  %v2301_v1 = vsel %vm545_vm1, %v2299_v29, %v2300_v13  ;;  %v2332_v19 = vmul.f32 %v11674_v28, %v10670_v39  ;;  %v16596_v31 = vld [vmem:[#allocation28_spill] sm:$0xff] }
 0x1a7   : >> { %v2289_v26 = vadd.f32 %v2282_v27, %v2266_v36  ;;  %v2303_v61 = vsel %vm545_vm1, %v2300_v13, %v2302_v55  ;;  %v2305_v23 = vsel %vm545_vm1, %v2302_v55, %v16219_v34  ;;  %v2331_v62 = vmul.f32 %v16595_v17, %v10670_v39 }
 0x1a8   : >> { %v2310_v41 = vadd.f32 %v2301_v1, %v2287_v48  ;;  %v2338_v27 = vmul.f32 %v16594_v44, %v10683_v52  ;;  %v2339_v6 = vmul.f32 %v16595_v17, %v10683_v52  ;;  %v2340_v50 = vmul.f32 %v11674_v28, %v10683_v52 }
 0x1a9   : >> { %v2312_v14 = vadd.f32 %v2305_v23, %v2289_v26  ;;  %v12068_v43 = vmul.f32 %v16596_v31, %v10683_v52  ;;  %v2361_v1 = vmul.f32 %v16580_v9, %v16594_v44  ;;  %v2311_v40 = vadd.f32 %v2303_v61, %v2288_v53 }
 0x1aa   : >> { %v2334_v15 = vadd.f32 %v2330_v49, %v2310_v41  ;;  %v2346_v36 = vrot.slane %v2338_v27, 1  ;;  %v2347_v29 = vrot.slane %v2339_v6, 1  ;;  %v2349_v13 = vrot.slane %v2340_v50, 1 }
 0x1ab   : >> { %v2336_v7 = vadd.f32 %v2332_v19, %v2312_v14  ;;  %v2351_v55 = vrot.slane %v12068_v43, 1  ;;  %v2362_v48 = vmul.f32 %v16580_v9, %v16595_v17  ;;  %v2335_v26 = vadd.f32 %v2331_v62, %v2311_v40 }
 0x1ac   : >> { %v2363_v23 = vmul.f32 %v16580_v9, %v11674_v28  ;;  %v12079_v34 = vmul.f32 %v16580_v9, %v16596_v31  ;;  %v2369_v20 = vrot.slane %v2361_v1, 2  ;;  %v2348_v61 = vsel %vm517_vm0, %v2346_v36, %v2347_v29 }
 0x1ad   : >> { %v2350_v53 = vsel %vm517_vm0, %v2347_v29, %v2349_v13  ;;  %v2352_v49 = vsel %vm517_vm0, %v2349_v13, %v2351_v55  ;;  %v2370_v19 = vrot.slane %v2362_v48, 2  ;;  %v2357_v41 = vadd.f32 %v2348_v61, %v2334_v15 }
 0x1ae   : >> { %v2358_v14 = vadd.f32 %v2350_v53, %v2335_v26  ;;  %v2359_v62 = vadd.f32 %v2352_v49, %v2336_v7  ;;  %v2372_v27 = vrot.slane %v2363_v23, 2  ;;  %v2203_v6 = vmax.f32 %v12000_v46, 0.0  ;;  %v16598_v46 = vld [vmem:[#allocation60_spill] sm:$0xff] }
 0x1af   : >> { %v2204_v50 = vmax.f32 %v12002_v59, 0.0  ;;  %v2371_v40 = vsel %vm545_vm1, %v2369_v20, %v2370_v19  ;;  %v2374_v1 = vrot.slane %v12079_v34, 2  ;;  %v2031_v9 = vadd.f32 %v16409_v4, %v16597_v8  ;;  %v16600_v49 = vld [vmem:[#allocation48_spill] sm:$0xff] }
 0x1b0   : >> { %v2373_v36 = vsel %vm545_vm1, %v2370_v19, %v2372_v27  ;;  %v2380_v29 = vadd.f32 %v2371_v40, %v2357_v41  ;;  %v10342_v13 = vmov 13   ;;  %v2081_v59 = vmul.f32 %v16534_v10, %v10636_v47 }
 0x1b1   : >> { %v2375_v15 = vsel %vm545_vm1, %v2372_v27, %v2374_v1  ;;  %v2381_v7 = vadd.f32 %v2373_v36, %v2358_v14  ;;  %10152 = vset.pattern.permute.xlu1 %v10342_v13  ;;  %10151 = vset.pattern.permute.xlu0 %v10342_v13  ;;  %v2529_v20 = vrot.slane %v16598_v46, 1  ;;  %v16599_v23 = vrot.slane %v16570_v56, 1 }
 0x1b2   : >> { %v2382_v48 = vadd.f32 %v2375_v15, %v2359_v62  ;;  %v2384_v26 = vmax.f32 %v2380_v29, 0.0  ;;  %v2151_v8 = vmul.f32 %v11392_v18, %v10670_v39  ;;  %3297 = vperm.xlu1 %10152, %v11728_v51   ;;  %3293 = vperm.xlu0 %10151, %v11740_v3   ;;  %v2213_v19 = vadd.f32 %v16409_v4, %v16600_v49  ;;  %v16604_v29 = vld [vmem:[#allocation53_spill] sm:$0xff] }
 0x1b3   : >> { %v2054_v61 = vadd.f32 %v16599_v23, %v2031_v9  ;;  %v2385_v53 = vmax.f32 %v2381_v7, 0.0  ;;  %v2263_v10 = vmul.f32 %v11392_v18, %v10636_v47  ;;  %v2333_v41 = vmul.f32 %v16596_v31, %v10670_v39 }
 0x1b4   : >> { %v2386_v14 = vmax.f32 %v2382_v48, 0.0  ;;  %v16601_v56 = vmax.f32 %v11998_v16, 0.0  ;;  %v16602_v62 = vrot.slane %v16574_v11, 2  ;;  %v2513_v51 = vmul.f32 %v11196_v25, %v10616_v32 }
 0x1b5   : >> { %v2389_v3 = vmax.f32 %v2203_v6, %v2385_v53  ;;  %v16603_v40 = vrot.slane %v16587_v57, 1  ;;  %v2514_v18 = vmul.f32 %v16578_v60, %v10616_v32  ;;  %v2530_v15 = vrot.slane %v16604_v29, 1  ;;  %v16612_v29 = vld [vmem:[#allocation61_spill] sm:$0xff] }
 0x1b6   : >> { %v2388_v9 = vmax.f32 %v16601_v56, %v2384_v26  ;;  %v2077_v27 = vadd.f32 %v16602_v62, %v2054_v61  ;;  %v12122_v7 = vmax.f32 %v2204_v50, %v2386_v14  ;;  %3301 = vperm.xlu1 %10152, %v11756_v45   ;;  %3305 = vperm.xlu0 %10151, %v11768_v38   ;;  %v16605_v6 = vrot.slane %v16591_v35, 2 }
 0x1b7   : >> { %v2236_v36 = vadd.f32 %v16603_v40, %v2213_v19  ;;  %v2517_v11 = vadd.f32 %v16409_v4, %v2513_v51  ;;  %v2397_v46 = vrot.slane %v2389_v3, 1  ;;  %v2518_v48 = vadd.f32 %v16409_v4, %v2514_v18  ;;  %v16610_v40 = vld [vmem:[#allocation32_spill] sm:$0xff] }
 0x1b8   : >> { %v2396_v13 = vrot.slane %v2388_v9, 1  ;;  %v2085_v16 = vadd.f32 %v2081_v59, %v2077_v27  ;;  %v2531_v26 = vsel %vm517_vm0, %v2529_v20, %v2530_v15  ;;  %v2399_v23 = vrot.slane %v12122_v7, 1  ;;  %v16607_v59 = vld [vmem:[#allocation62_spill] sm:$0xff] }
 0x1b9   : >> { %v2259_v57 = vadd.f32 %v16605_v6, %v2236_v36  ;;  %v16606_v50 = vrot.slane %v16573_v5, 1  ;;  %v2532_v53 = vrot.slane %v16607_v59, 1  ;;  %v2540_v45 = vadd.f32 %v2531_v26, %v2517_v11 }
 0x1ba   : >> { %v2398_v38 = vsel %vm517_vm0, %v2396_v13, %v2397_v46  ;;  %v2544_v19 = vmul.f32 %v11196_v25, %v10621_v33  ;;  %v2545_v35 = vmul.f32 %v16578_v60, %v10621_v33  ;;  %v2400_v20 = vsel %vm517_vm0, %v2397_v46, %v2399_v23 }
 0x1bb   : >> { %v2108_v61 = vadd.f32 %v16606_v50, %v2085_v16  ;;  %v2267_v49 = vadd.f32 %v2263_v10, %v2259_v57  ;;  %v2407_v14 = vmax.f32 %v2388_v9, %v2398_v38  ;;  %v16608_v5 = vrot.slane %v11924_v24, 2 }
 0x1bc   : >> { %v2533_v62 = vsel %vm517_vm0, %v2530_v15, %v2532_v53  ;;  %v2408_v27 = vmax.f32 %v2389_v3, %v2400_v20  ;;  %v16609_v51 = vrot.slane %v16590_v42, 1  ;;  %v16611_v36 = vrot.slane %v16610_v40, 1 }
 0x1bd   : >> { %v2131_v56 = vadd.f32 %v16608_v5, %v2108_v61  ;;  %v2541_v18 = vadd.f32 %v2533_v62, %v2518_v48  ;;  %v2546_v9 = vmul.f32 %v11228_v58, %v10621_v33  ;;  %v2552_v16 = vrot.slane %v2544_v19, 2 }
 0x1be   : >> { %v2290_v10 = vadd.f32 %v16609_v51, %v2267_v49  ;;  %v2535_v25 = vsel %vm517_vm0, %v2532_v53, %v16611_v36  ;;  %v9350_v24 = vpack.c.bf16 %v2408_v27, %v2407_v14  ;;  %v16613_v11 = vrot.slane %v12045_v22, 2  ;;  %v16616_v53 = vld [vmem:[#allocation66_spill] sm:$0xff] }
 0x1bf   : >> { %v2155_v60 = vadd.f32 %v2151_v8, %v2131_v56  ;;  %v2542_v13 = vadd.f32 %v2535_v25, %v16612_v29  ;;  %v2553_v3 = vrot.slane %v2545_v35, 2  ;;  %v2567_v42 = vmul.f32 %v16594_v44, %v10636_v47  ;;  %v16618_v25 = vld [vmem:[#allocation22_spill] sm:$0xff] }
 0x1c0   : >> { %v2313_v15 = vadd.f32 %v16613_v11, %v2290_v10  ;;  %v16614_v46 = vrot.slane %v11947_v0, 1  ;;  %v2555_v57 = vrot.slane %v2546_v9, 2  ;;  %v2568_v8 = vmul.f32 %v16595_v17, %v10636_v47  ;;  %9351 = vmatprep.subr.bf16.mxu1 %v9350_v24 }
 0x1c1   : >> { %v2569_v48 = vmul.f32 %v11674_v28, %v10636_v47  ;;  %v2554_v26 = vsel %vm545_vm1, %v2552_v16, %v2553_v3  ;;  %v2575_v22 = vmul.f32 %v16594_v44, %v10649_v63  ;;  %v2576_v50 = vmul.f32 %v16595_v17, %v10649_v63  ;;  %9353 = vmatpush3.bf16.msra.mxu1 %v9350_v24 }
 0x1c2   : >> { %v2178_v6 = vadd.f32 %v16614_v46, %v2155_v60  ;;  %v2337_v58 = vadd.f32 %v2333_v41, %v2313_v15  ;;  %v16615_v0 = vrot.slane %v11970_v2, 2  ;;  %v2556_v59 = vsel %vm545_vm1, %v2553_v3, %v2555_v57 }
 0x1c3   : >> { %v16617_v38 = vrot.slane %v16616_v53, 2  ;;  %v2563_v19 = vadd.f32 %v2554_v26, %v2540_v45  ;;  %v2564_v35 = vadd.f32 %v2556_v59, %v2541_v18  ;;  %v2577_v14 = vmul.f32 %v11674_v28, %v10649_v63 }
 0x1c4   : >> { %v2201_v61 = vadd.f32 %v16615_v0, %v2178_v6  ;;  %v2360_v41 = vadd.f32 %v2351_v55, %v2337_v58  ;;  %v2583_v62 = vrot.slane %v2575_v22, 1  ;;  %v2584_v2 = vrot.slane %v2576_v50, 1 }
 0x1c5   : >> { %v2558_v49 = vsel %vm545_vm1, %v2555_v57, %v16617_v38  ;;  %v2571_v56 = vadd.f32 %v2567_v42, %v2563_v19  ;;  %v2572_v51 = vadd.f32 %v2568_v8, %v2564_v35  ;;  %v2586_v36 = vrot.slane %v2577_v14, 1 }
 0x1c6   : >> { %v2565_v20 = vadd.f32 %v2558_v49, %v2542_v13  ;;  %v2205_v5 = vmax.f32 %v2201_v61, 0.0  ;;  %v2383_v27 = vadd.f32 %v2374_v1, %v2360_v41  ;;  %v2585_v45 = vsel %vm517_vm0, %v2583_v62, %v2584_v2 }
 0x1c7   : >> { %v16228_v43 = vrot.slane %v16618_v25, 1  ;;  %v2598_v55 = vmul.f32 %v16594_v44, %v10654_v12  ;;  %v2599_v18 = vmul.f32 %v16595_v17, %v10654_v12  ;;  %v2587_v29 = vsel %vm517_vm0, %v2584_v2, %v2586_v36 }
 0x1c8   : >> { %v2573_v10 = vadd.f32 %v2569_v48, %v2565_v20  ;;  %v2387_v60 = vmax.f32 %v2383_v27, 0.0  ;;  %v2594_v13 = vadd.f32 %v2585_v45, %v2571_v56  ;;  %v2600_v34 = vmul.f32 %v11674_v28, %v10654_v12 }
 0x1c9   : >> { %v2589_v1 = vsel %vm517_vm0, %v2586_v36, %v16228_v43  ;;  %v2595_v9 = vadd.f32 %v2587_v29, %v2572_v51  ;;  %v12195_v16 = vmul.f32 %v16596_v31, %v10654_v12  ;;  %v2606_v24 = vrot.slane %v2598_v55, 2 }
 0x1ca   : >> { %v2391_v11 = vmax.f32 %v2205_v5, %v2387_v60  ;;  %v2596_v15 = vadd.f32 %v2589_v1, %v2573_v10  ;;  %v2607_v3 = vrot.slane %v2599_v18, 2  ;;  %v2609_v42 = vrot.slane %v2600_v34, 2  ;;  %v16619_v10 = vld [vmem:[#allocation8_spill] sm:$0xff] }
 0x1cb   : >> { %v16227_v46 = vrot.slane %v12195_v16, 2  ;;  %v2637_v6 = vmul.f32 %v11706_v30, %v10670_v39  ;;  %v2638_v57 = vmul.f32 %v11749_v21, %v10670_v39  ;;  %v2639_v8 = vmul.f32 %v11737_v37, %v10670_v39 }
 0x1cc   : >> { %v2401_v48 = vrot.slane %v2391_v11, 1  ;;  %v2608_v58 = vsel %vm545_vm1, %v2606_v24, %v2607_v3  ;;  %v2610_v26 = vsel %vm545_vm1, %v2607_v3, %v2609_v42  ;;  %v2645_v22 = vmul.f32 %v11706_v30, %v10683_v52 }
 0x1cd   : >> { %v2612_v50 = vsel %vm545_vm1, %v2609_v42, %v16227_v46  ;;  %v2617_v0 = vadd.f32 %v2608_v58, %v2594_v13  ;;  %v2618_v61 = vadd.f32 %v2610_v26, %v2595_v9  ;;  %v2646_v59 = vmul.f32 %v11749_v21, %v10683_v52  ;;  %v12250_v26 = vpop.permute.xlu1 %2812 }
 0x1ce   : >> { %v2402_v38 = vsel %vm517_vm0, %v2399_v23, %v2401_v48  ;;  %v2410_v49 = vmax.f32 %v2391_v11, %v2401_v48  ;;  %v2619_v19 = vadd.f32 %v2612_v50, %v2596_v15  ;;  %v2647_v41 = vmul.f32 %v11737_v37, %v10683_v52  ;;  %v16622_v48 = vld [vmem:[#allocation26_spill] sm:$0xff] }
 0x1cf   : >> { %v2409_v35 = vmax.f32 %v12122_v7, %v2402_v38  ;;  %v2641_v20 = vadd.f32 %v2637_v6, %v2617_v0  ;;  %v2642_v14 = vadd.f32 %v2638_v57, %v2618_v61  ;;  %v12221_v5 = vmul.f32 %v11777_v54, %v10683_v52  ;;  %v16621_v57 = vld [vmem:[#allocation63_spill] sm:$0xff]  ;;  %v16623_v61 = vld [vmem:[#allocation38_spill] sm:$0xff]  ;;  %v16624_v38 = vld [vmem:[#allocation73_spill] sm:$0xff] }
 0x1d0   : >> { %v2643_v56 = vadd.f32 %v2639_v8, %v2619_v19  ;;  %v2653_v62 = vrot.slane %v2645_v22, 1  ;;  %v2654_v2 = vrot.slane %v2646_v59, 1  ;;  %v2656_v27 = vrot.slane %v2647_v41, 1  ;;  %v16625_v19 = vld [vmem:[#allocation49_spill] sm:$0xff] }
 0x1d1   : >> { %v9354_v51 = vpack.c.bf16 %v2410_v49, %v2409_v35  ;;  %v16224_v23 = vrot.slane %v12221_v5, 1  ;;  %v2668_v36 = vmul.f32 %v16619_v10, %v11706_v30  ;;  %v2669_v45 = vmul.f32 %v16619_v10, %v11749_v21 }
 0x1d2   : >> { %v2655_v7 = vsel %vm517_vm0, %v2653_v62, %v2654_v2  ;;  %v2657_v55 = vsel %vm517_vm0, %v2654_v2, %v2656_v27  ;;  %v2670_v18 = vmul.f32 %v16619_v10, %v11737_v37  ;;  %v12234_v60 = vmul.f32 %v16619_v10, %v11777_v54 }
 0x1d3   : >> { %9356 = vmatprep.subr.msk.bf16.mxu1 %vm11185_vm4, %v9354_v51  ;;  %v2659_v13 = vsel %vm517_vm0, %v2656_v27, %v16224_v23  ;;  %v2664_v34 = vadd.f32 %v2655_v7, %v2641_v20  ;;  %v2665_v1 = vadd.f32 %v2657_v55, %v2642_v14  ;;  %v2676_v9 = vrot.slane %v2668_v36, 2  ;;  %v16626_v20 = vld [vmem:[#allocation13_spill] sm:$0xff]  ;;  %v16627_v27 = vld [vmem:[#allocation24_spill] sm:$0xff] }
 0x1d4   : >> { %9359 = vmatpush3.bf16.msk.msra.mxu1 %vm11185_vm4, %v9354_v51  ;;  %v2666_v24 = vadd.f32 %v2659_v13, %v2643_v56  ;;  %v2677_v11 = vrot.slane %v2669_v45, 2  ;;  %v2679_v15 = vrot.slane %v2670_v18, 2  ;;  %v16223_v3 = vrot.slane %v12234_v60, 2  ;;  %v16629_v45 = vld [vmem:[#allocation9_spill] sm:$0xff] }
 0x1d5   : >> { %v2695_v42 = vmul.f32 %v16594_v44, %v10616_v32  ;;  %v2696_v6 = vmul.f32 %v16595_v17, %v10616_v32  ;;  %v2711_v8 = vrot.slane %v16621_v57, 1  ;;  %v2712_v58 = vrot.slane %v16622_v48, 1 }
 0x1d6   : >> { %v2678_v22 = vsel %vm545_vm1, %v2676_v9, %v2677_v11  ;;  %v2680_v50 = vsel %vm545_vm1, %v2677_v11, %v2679_v15  ;;  %v2682_v0 = vsel %vm545_vm1, %v2679_v15, %v16223_v3  ;;  %v2714_v59 = vrot.slane %v16623_v61, 1  ;;  %v16630_v11 = vld [vmem:[#allocation35_spill] sm:$0xff] }
 0x1d7   : >> { %v12260_v49 = vadd.f32 %v16409_v4, %v16624_v38  ;;  %v12265_v35 = vmul.f32 %v12250_v26, %v10616_v32  ;;  %9098 = vmatmul.mubr.msk.f32.vlgmr.msra.gmra.mrb[2].mxu1 %vm934_vm5, %v16626_v20  ;;  %v2699_v14 = vadd.f32 %v16409_v4, %v2695_v42  ;;  %v2700_v56 = vadd.f32 %v16409_v4, %v2696_v6 }
 0x1d8   : >> { %v2713_v62 = vsel %vm517_vm0, %v2711_v8, %v2712_v58  ;;  %v2715_v2 = vsel %vm517_vm0, %v2712_v58, %v2714_v59  ;;  %v16628_v51 = vrot.slane %v16627_v27, 1  ;;  %9119 = vmatprep.mubr.msk.f32.mxu1 %vm934_vm5, %v16629_v45  ;;  %v12278_v7 = vadd.f32 %v2678_v22, %v2664_v34  ;;  %v16631_v22 = vld [vmem:[#allocation44_spill] sm:$0xff] }
 0x1d9   : >> { %v12280_v55 = vadd.f32 %v2680_v50, %v2665_v1  ;;  %v12282_v18 = vadd.f32 %v2682_v0, %v2666_v24  ;;  %v2722_v13 = vadd.f32 %v2713_v62, %v2699_v14  ;;  %v2723_v9 = vadd.f32 %v2715_v2, %v2700_v56  ;;  %v16632_v62 = vld [vmem:[#allocation40_spill] sm:$0xff] }
 0x1da   : >> { %v2717_v36 = vsel %vm517_vm0, %v2714_v59, %v16628_v51  ;;  %v2726_v42 = vmul.f32 %v16594_v44, %v10621_v33  ;;  %v2727_v6 = vmul.f32 %v16595_v17, %v10621_v33  ;;  %v2728_v57 = vmul.f32 %v11674_v28, %v10621_v33 }
 0x1db   : >> { %v2724_v15 = vadd.f32 %v2717_v36, %v16630_v11  ;;  %v2749_v34 = vmul.f32 %v11706_v30, %v10636_v47  ;;  %v2750_v1 = vmul.f32 %v11749_v21, %v10636_v47  ;;  %v2751_v24 = vmul.f32 %v11737_v37, %v10636_v47 }
 0x1dc   : >> { %v2734_v8 = vrot.slane %v2726_v42, 2  ;;  %v2735_v48 = vrot.slane %v2727_v6, 2  ;;  %v2757_v44 = vmul.f32 %v11706_v30, %v10649_v63  ;;  %v2758_v17 = vmul.f32 %v11749_v21, %v10649_v63 }
 0x1dd   : >> { %v2737_v58 = vrot.slane %v2728_v57, 2  ;;  %v2759_v28 = vmul.f32 %v11737_v37, %v10649_v63  ;;  %v16225_v50 = vrot.slane %v16631_v22, 1  ;;  %v2780_v0 = vmul.f32 %v11706_v30, %v10654_v12 }
 0x1de   : >> { %v2736_v61 = vsel %vm545_vm1, %v2734_v8, %v2735_v48  ;;  %v2765_v59 = vrot.slane %v2757_v44, 1  ;;  %v2766_v38 = vrot.slane %v2758_v17, 1  ;;  %v2781_v14 = vmul.f32 %v11749_v21, %v10654_v12  ;;  %v12316_v44 = vpop.permute.xlu1 %3111 }
 0x1df   : >> { %v2738_v56 = vsel %vm545_vm1, %v2735_v48, %v2737_v58  ;;  %v16633_v2 = vrot.slane %v16632_v62, 2  ;;  %v2745_v36 = vadd.f32 %v2736_v61, %v2722_v13  ;;  %v2768_v11 = vrot.slane %v2759_v28, 1 }
 0x1e0   : >> { %v2746_v42 = vadd.f32 %v2738_v56, %v2723_v9  ;;  %v2767_v57 = vsel %vm517_vm0, %v2765_v59, %v2766_v38  ;;  %v2782_v8 = vmul.f32 %v11737_v37, %v10654_v12  ;;  %v12324_v13 = vmul.f32 %v11777_v54, %v10654_v12 }
 0x1e1   : >> { %v2740_v51 = vsel %vm545_vm1, %v2737_v58, %v16633_v2  ;;  %v2753_v17 = vadd.f32 %v2749_v34, %v2745_v36  ;;  %v2769_v3 = vsel %vm517_vm0, %v2766_v38, %v2768_v11  ;;  %v2771_v48 = vsel %vm517_vm0, %v2768_v11, %v16225_v50  ;;  %v16634_v34 = vld [vmem:[#allocation31_spill] sm:$0xff] }
 0x1e2   : >> { %v2747_v6 = vadd.f32 %v2740_v51, %v2724_v15  ;;  %v2754_v9 = vadd.f32 %v2750_v1, %v2746_v42  ;;  %v2788_v58 = vrot.slane %v2780_v0, 2  ;;  %v2789_v28 = vrot.slane %v2781_v14, 2  ;;  %v16635_v11 = vld [vmem:[#allocation67_spill] sm:$0xff] }
 0x1e3   : >> { %v2776_v61 = vadd.f32 %v2767_v57, %v2753_v17  ;;  %v2791_v59 = vrot.slane %v2782_v8, 2  ;;  %v16226_v56 = vrot.slane %v12324_v13, 2  ;;  %v2819_v2 = vmul.f32 %v16634_v34, %v10670_v39  ;;  %v12342_v57 = vpop.permute.xlu1 %3119 }
 0x1e4   : >> { %v2755_v15 = vadd.f32 %v2751_v24, %v2747_v6  ;;  %v2777_v38 = vadd.f32 %v2769_v3, %v2754_v9  ;;  %v2790_v36 = vsel %vm545_vm1, %v2788_v58, %v2789_v28  ;;  %v2820_v23 = vmul.f32 %v16635_v11, %v10670_v39 }
 0x1e5   : >> { %v2792_v50 = vsel %vm545_vm1, %v2789_v28, %v2791_v59  ;;  %v2794_v1 = vsel %vm545_vm1, %v2791_v59, %v16226_v56  ;;  %v2799_v24 = vadd.f32 %v2790_v36, %v2776_v61  ;;  %v2821_v0 = vmul.f32 %v12250_v26, %v10670_v39 }
 0x1e6   : >> { %v2778_v51 = vadd.f32 %v2771_v48, %v2755_v15  ;;  %v2800_v14 = vadd.f32 %v2792_v50, %v2777_v38  ;;  %v2827_v3 = vmul.f32 %v16634_v34, %v10683_v52  ;;  %v2828_v6 = vmul.f32 %v16635_v11, %v10683_v52  ;;  %v16636_v48 = vld [vmem:[#allocation68_spill] sm:$0xff] }
 0x1e7   : >> { %v2823_v8 = vadd.f32 %v2819_v2, %v2799_v24  ;;  %v2829_v17 = vmul.f32 %v12250_v26, %v10683_v52  ;;  %v12348_v9 = vmul.f32 %v16636_v48, %v10683_v52  ;;  %v2850_v50 = vmul.f32 %v16619_v10, %v16634_v34  ;;  %v12369_v43 = vpop.permute.xlu1 %3123 }
 0x1e8   : >> { %v2801_v42 = vadd.f32 %v2794_v1, %v2778_v51  ;;  %v2824_v15 = vadd.f32 %v2820_v23, %v2800_v14  ;;  %v2835_v28 = vrot.slane %v2827_v3, 1  ;;  %v2836_v61 = vrot.slane %v2828_v6, 1  ;;  %v16637_v23 = vld [vmem:[#allocation65_spill] sm:$0xff] }
 0x1e9   : >> { %v2838_v59 = vrot.slane %v2829_v17, 1  ;;  %v2840_v38 = vrot.slane %v12348_v9, 1  ;;  %v2851_v2 = vmul.f32 %v16619_v10, %v16635_v11  ;;  %v2852_v51 = vmul.f32 %v16619_v10, %v12250_v26 }
 0x1ea   : >> { %v2825_v58 = vadd.f32 %v2821_v0, %v2801_v42  ;;  %v2837_v36 = vsel %vm517_vm0, %v2835_v28, %v2836_v61  ;;  %v12360_v1 = vmul.f32 %v16619_v10, %v16636_v48  ;;  %v2858_v24 = vrot.slane %v2850_v50, 2 }
 0x1eb   : >> { %v2520_v0 = vadd.f32 %v16409_v4, %v16637_v23  ;;  %v2839_v14 = vsel %vm517_vm0, %v2836_v61, %v2838_v59  ;;  %v2841_v42 = vsel %vm517_vm0, %v2838_v59, %v2840_v38  ;;  %v2846_v3 = vadd.f32 %v2837_v36, %v2823_v8  ;;  %v16639_v59 = vld [vmem:[#allocation29_spill] sm:$0xff] }
 0x1ec   : >> { %v2859_v6 = vrot.slane %v2851_v2, 2  ;;  %v2847_v17 = vadd.f32 %v2839_v14, %v2824_v15  ;;  %v2848_v56 = vadd.f32 %v2841_v42, %v2825_v58  ;;  %v2861_v46 = vrot.slane %v2852_v51, 2 }
 0x1ed   : >> { %v2863_v28 = vrot.slane %v12360_v1, 2  ;;  %v2691_v50 = vmax.f32 %v12278_v7, 0.0  ;;  %v16638_v23 = vrot.slane %v16610_v40, 1  ;;  %v2570_v10 = vmul.f32 %v16596_v31, %v10636_v47 }
 0x1ee   : >> { %v2860_v41 = vsel %vm545_vm1, %v2858_v24, %v2859_v6  ;;  %v2862_v8 = vsel %vm545_vm1, %v2859_v6, %v2861_v46  ;;  %v2702_v2 = vadd.f32 %v16409_v4, %v16639_v59  ;;  %v2692_v7 = vmax.f32 %v12280_v55, 0.0 }
 0x1ef   : >> { %v2543_v61 = vadd.f32 %v16638_v23, %v2520_v0  ;;  %v2864_v15 = vsel %vm545_vm1, %v2861_v46, %v2863_v28  ;;  %v2869_v58 = vadd.f32 %v2860_v41, %v2846_v3  ;;  %v2870_v51 = vadd.f32 %v2862_v8, %v2847_v17 }
 0x1f0   : >> { %v2871_v36 = vadd.f32 %v2864_v15, %v2848_v56  ;;  %v16640_v40 = vrot.slane %v16616_v53, 2  ;;  %v16641_v31 = vrot.slane %v16627_v27, 1  ;;  %v2752_v46 = vmul.f32 %v11777_v54, %v10636_v47  ;;  %v16642_v56 = vld [vmem:[#allocation72_spill] sm:$0xff]  ;;  %v12400_v15 = vld [vmem:[%s10541_s21] sm:$0xff] }
 0x1f1   : >> { %v2873_v0 = vmax.f32 %v2869_v58, 0.0  ;;  %v2693_v41 = vmax.f32 %v12282_v18, 0.0  ;;  %v2874_v42 = vmax.f32 %v2870_v51, 0.0  ;;  %v10343_v55 = vmov 16   ;;  %v12404_v18 = vld [vmem:[%s10541_s21 + $0x8] sm:$0xff]  ;;  %v12409_v58 = vpop.permute.xlu0 %3115 }
 0x1f2   : >> { %v2566_v24 = vadd.f32 %v16640_v40, %v2543_v61  ;;  %v2725_v14 = vadd.f32 %v16641_v31, %v2702_v2  ;;  %v2875_v3 = vmax.f32 %v2871_v36, 0.0  ;;  %10153 = vset.pattern.permute.xlu1 %v10343_v55  ;;  %10154 = vset.pattern.permute.xlu0 %v10343_v55  ;;  %v16643_v17 = vrot.slane %v16625_v19, 1  ;;  %v16647_v36 = vld [vmem:[#allocation18_spill] sm:$0xff] }
 0x1f3   : >> { %v2877_v27 = vmax.f32 %v2691_v50, %v2873_v0  ;;  %v16644_v61 = vrot.slane %v16632_v62, 2  ;;  %4089 = vperm.xlu1 %10153, %v12400_v15   ;;  %4093 = vperm.xlu0 %10154, %v12404_v18   ;;  %v2878_v59 = vmax.f32 %v2692_v7, %v2874_v42  ;;  %v16646_v50 = vrot.slane %v16618_v25, 1 }
 0x1f4   : >> { %v2574_v6 = vadd.f32 %v2570_v10, %v2566_v24  ;;  %v12395_v23 = vadd.f32 %v16643_v17, %v12260_v49  ;;  %v12407_v10 = vpop.permute.xlu1 %3604  ;;  %v12411_v49 = vmax.f32 %v2693_v41, %v2875_v3  ;;  %v2640_v2 = vmul.f32 %v11777_v54, %v10670_v39  ;;  %v16649_v41 = vld [vmem:[#allocation37_spill] sm:$0xff] }
 0x1f5   : >> { %v2748_v8 = vadd.f32 %v16644_v61, %v2725_v14  ;;  %16645 = vst [vmem:[#allocation50_spill] sm:$0xff] %v12407_v10  ;;  %v12419_v51 = vadd.f32 %v16409_v4, %v12265_v35  ;;  %v12423_v40 = vmul.f32 %v12250_v26, %v16647_v36  ;;  %v2885_v0 = vrot.slane %v2877_v27, 1 }
 0x1f6   : >> { %v2597_v62 = vadd.f32 %v16646_v50, %v2574_v6  ;;  %v2886_v31 = vrot.slane %v2878_v59, 1  ;;  %v16230_v7 = vrot.slane %v12411_v49, 1  ;;  %v16648_v14 = vrot.slane %v12195_v16, 2  ;;  %v12434_v6 = vld [vmem:[%s10541_s21 + $0x10] sm:$0xff] }
 0x1f7   : >> { %v2756_v24 = vadd.f32 %v2752_v46, %v2748_v8  ;;  %v16650_v54 = vrot.slane %v16631_v22, 1  ;;  %v2822_v35 = vmul.f32 %v16636_v48, %v10670_v39  ;;  %4097 = vperm.xlu1 %10153, %v12434_v6   ;;  %v12439_v46 = vmul.f32 %v12316_v44, %v16647_v36 }
 0x1f8   : >> { %v2620_v25 = vadd.f32 %v16648_v14, %v2597_v62  ;;  %v10344_v55 = vmov 18   ;;  %v12441_v16 = vpop.permute.xlu1 %3608  ;;  %v2887_v17 = vsel %vm517_vm0, %v2885_v0, %v2886_v31  ;;  %v2889_v22 = vsel %vm517_vm0, %v2886_v31, %v16230_v7  ;;  %v12456_v0 = vpop.permute.xlu0 %3600 }
 0x1f9   : >> { %v2779_v3 = vadd.f32 %v16650_v54, %v2756_v24  ;;  %16651 = vst [vmem:[#allocation55_spill] sm:$0xff] %v12439_v46  ;;  %10155 = vset.pattern.permute.xlu0 %v10344_v55  ;;  %16652 = vst [vmem:[#allocation52_spill] sm:$0xff] %v12441_v16  ;;  %v3493_v61 = vmul.f32 %v12342_v57, %v10616_v32  ;;  %v2896_v8 = vmax.f32 %v2877_v27, %v2887_v17 }
 0x1fa   : >> { %v2644_v48 = vadd.f32 %v2640_v2, %v2620_v25  ;;  %4578 = vperm.xlu0 %10155, %v12400_v15   ;;  %v2897_v50 = vmax.f32 %v2878_v59, %v2889_v22  ;;  %v16653_v62 = vrot.slane %v12324_v13, 2  ;;  %v12454_v14 = vmul.f32 %v12369_v43, %v16647_v36  ;;  %16655 = vst [vmem:[#allocation56_spill] sm:$0xff] %v12456_v0  ;;  %v12469_v25 = vld [vmem:[%s10541_s21 + $0x18] sm:$0xf] }
 0x1fb   : >> { %v16656_v54 = vrot.slane %v12221_v5, 1  ;;  %v12462_v2 = vmul.f32 %v12342_v57, %v16647_v36  ;;  %v12466_v27 = vmul.f32 %v12369_v43, %v10621_v33  ;;  %4101 = vperm.xlu1 %10153, %v12469_v25   ;;  %v3492_v5 = vmul.f32 %v12409_v58, %v10616_v32 }
 0x1fc   : >> { %v2802_v24 = vadd.f32 %v16653_v62, %v2779_v3  ;;  %16654 = vst [vmem:[#allocation47_spill] sm:$0xff] %v12454_v14  ;;  %v9360_v59 = vpack.c.bf16 %v2897_v50, %v2896_v8  ;;  %v3982_v3 = vmul.f32 %v12441_v16, %v10616_v32  ;;  %v12477_v17 = vadd.f32 %v16409_v4, %v3493_v61  ;;  %v12492_v8 = vpop.permute.xlu1 %3782 }
 0x1fd   : >> { %v2667_v31 = vadd.f32 %v16656_v54, %v2644_v48  ;;  %16657 = vst [vmem:[#allocation51_spill] sm:$0xff] %v12462_v2  ;;  %16658 = vst [vmem:[#allocation43_spill] sm:$0xff] %v12466_v27  ;;  %v12481_v22 = vmul.f32 %v12369_v43, %v10649_v63  ;;  %v12490_v48 = vmul.f32 %v12441_v16, %v16647_v36  ;;  %v16663_v61 = vrot.slane %v12234_v60, 2 }
 0x1fe   : >> { %v2826_v13 = vadd.f32 %v2822_v35, %v2802_v24  ;;  %16659 = vst [vmem:[#allocation58_spill] sm:$0xff] %v12477_v17  ;;  %v12485_v35 = vmul.f32 %v12369_v43, %v10616_v32  ;;  %4590 = vperm.xlu0 %10155, %v12469_v25   ;;  %16662 = vst [vmem:[#allocation30_spill] sm:$0xff] %v12492_v8  ;;  %9361 = vmatprep.subr.bf16.mxu0 %v9360_v59  ;;  %v10345_v54 = vmov 19   ;;  %v16684_v27 = vrot.slane %v12411_v49, 1 }
 0x1ff   : >> { %16661 = vst [vmem:[#allocation45_spill] sm:$0xff] %v12490_v48  ;;  %v2690_v50 = vadd.f32 %v16663_v61, %v2667_v31  ;;  %9363 = vmatpush3.bf16.msra.mxu0 %v9360_v59  ;;  %v12502_v42 = vmul.f32 %v12407_v10, %v16647_v36  ;;  %v12506_v53 = vmul.f32 %v12409_v58, %v16647_v36  ;;  %v16243_v10 = vmov 17  }
 0x200   : >> { %16660 = vst [vmem:[#allocation34_spill] sm:$0xff] %v12485_v35  ;;  %v2849_v62 = vadd.f32 %v2840_v38, %v2826_v13  ;;  %v12510_v60 = vmul.f32 %v12409_v58, %v10621_v33  ;;  %10156 = vset.pattern.permute.xlu1 %v10344_v55  ;;  %v12515_v38 = vadd.f32 %v16409_v4, %v3982_v3  ;;  %v12524_v13 = vpop.permute.xlu0 %3612 }
 0x201   : >> { %16664 = vst [vmem:[#allocation64_spill] sm:$0xff] %v12502_v42  ;;  %16665 = vst [vmem:[#allocation46_spill] sm:$0xff] %v12506_v53  ;;  %v12518_v31 = vadd.f32 %v16409_v4, %v3492_v5  ;;  %v12522_v59 = vmul.f32 %v12492_v8, %v16647_v36  ;;  %4582 = vperm.xlu1 %10156, %v12404_v18   ;;  %v3980_v1 = vmul.f32 %v12456_v0, %v10616_v32 }
 0x202   : >> { %16666 = vst [vmem:[#allocation23_spill] sm:$0xff] %v12510_v60  ;;  %v2872_v9 = vadd.f32 %v2863_v28, %v2849_v62  ;;  %16667 = vst [vmem:[#allocation21_spill] sm:$0xff] %v12515_v38  ;;  %10158 = vset.pattern.permute.xlu0 %v10345_v54  ;;  %v12532_v28 = vmul.f32 %v12456_v0, %v16647_v36  ;;  %v12536_v55 = vmul.f32 %v12456_v0, %v10621_v33  ;;  %v12539_v62 = vpop.permute.xlu1 %3790 }
 0x203   : >> { %16668 = vst [vmem:[#allocation28_spill] sm:$0xff] %v12518_v31  ;;  %16669 = vst [vmem:[#allocation54_spill] sm:$0xff] %v12522_v59  ;;  %v2694_v3 = vmax.f32 %v2690_v50, 0.0  ;;  %4764 = vperm.xlu0 %10158, %v12404_v18   ;;  %v12543_v24 = vmul.f32 %v12524_v13, %v10649_v63  ;;  %v12547_v61 = vmul.f32 %v12524_v13, %v10654_v12  ;;  %v16698_v31 = vld [vmem:[#allocation71_spill] sm:$0xff] }
 0x204   : >> { %16670 = vst [vmem:[#allocation60_spill] sm:$0xff] %v12524_v13  ;;  %16671 = vst [vmem:[#allocation48_spill] sm:$0xff] %v12532_v28  ;;  %v2876_v5 = vmax.f32 %v2872_v9, 0.0  ;;  %v4164_v50 = vmul.f32 %v12539_v62, %v10616_v32  ;;  %v3983_v9 = vmul.f32 %v12524_v13, %v10616_v32  ;;  %v12557_v42 = vmul.f32 %v12524_v13, %v10636_v47 }
 0x205   : >> { %16672 = vst [vmem:[#allocation53_spill] sm:$0xff] %v12536_v55  ;;  %16673 = vst [vmem:[#allocation62_spill] sm:$0xff] %v12539_v62  ;;  %v12561_v35 = vmul.f32 %v12524_v13, %v16647_v36  ;;  %v12565_v7 = vmul.f32 %v12524_v13, %v10621_v33  ;;  %4586 = vperm.xlu1 %10156, %v12434_v6   ;;  %v12569_v59 = vadd.f32 %v16409_v4, %v3980_v1  ;;  %v12581_v1 = vpop.permute.xlu0 %3786 }
 0x206   : >> { %16674 = vst [vmem:[#allocation32_spill] sm:$0xff] %v12543_v24  ;;  %16675 = vst [vmem:[#allocation61_spill] sm:$0xff] %v12547_v61  ;;  %v2880_v38 = vmax.f32 %v2694_v3, %v2876_v5  ;;  %v16679_v5 = vld [vmem:[#allocation36_spill] sm:$0xff]  ;;  %v12577_v0 = vmul.f32 %v12539_v62, %v16647_v36  ;;  %v12585_v3 = vadd.f32 %v16409_v4, %v4164_v50  ;;  %v16699_v14 = vrot.slane %v16698_v31, 1 }
 0x207   : >> { %16676 = vst [vmem:[#allocation66_spill] sm:$0xff] %v12557_v42  ;;  %16677 = vst [vmem:[#allocation22_spill] sm:$0xff] %v12565_v7  ;;  %v3018_v16 = vrot.slane %v16679_v5, 1  ;;  %10159 = vset.pattern.permute.xlu0 %v16243_v10  ;;  %v12588_v5 = vadd.f32 %v16409_v4, %v3983_v9  ;;  %v12592_v8 = vmul.f32 %v12581_v1, %v10616_v32 }
 0x208   : >> { %16678 = vst [vmem:[#allocation63_spill] sm:$0xff] %v12569_v59  ;;  %v2890_v42 = vrot.slane %v2880_v38, 1  ;;  %16680 = vst [vmem:[#allocation26_spill] sm:$0xff] %v12577_v0  ;;  %4271 = vperm.xlu0 %10159, %v12400_v15   ;;  %v12596_v10 = vmul.f32 %v12581_v1, %v16647_v36  ;;  %v12607_v9 = vmul.f32 %v12581_v1, %v10621_v33 }
 0x209   : >> { %16681 = vst [vmem:[#allocation38_spill] sm:$0xff] %v12581_v1  ;;  %16682 = vst [vmem:[#allocation73_spill] sm:$0xff] %v12585_v3  ;;  %v12603_v3 = vpop.permute.xlu1 %3794  ;;  %10157 = vset.pattern.permute.xlu1 %v10345_v54  ;;  %v3002_v0 = vmul.f32 %v11706_v30, %v10616_v32  ;;  %v3034_v7 = vmul.f32 %v11749_v21, %v10621_v33 }
 0x20a   : >> { %16683 = vst [vmem:[#allocation49_spill] sm:$0xff] %v12596_v10  ;;  %v2891_v13 = vsel %vm517_vm0, %v16684_v27, %v2890_v42  ;;  %16685 = vst [vmem:[#allocation24_spill] sm:$0xff] %v12607_v9  ;;  %v2899_v59 = vmax.f32 %v2880_v38, %v2890_v42  ;;  %v12612_v28 = vmul.f32 %v12603_v3, %v10649_v63  ;;  %4760 = vperm.xlu1 %10157, %v12400_v15   ;;  %v16689_v42 = vld [vmem:[#allocation42_spill] sm:$0xff] }
 0x20b   : >> { %v2898_v55 = vmax.f32 %v12411_v49, %v2891_v13  ;;  %v12616_v27 = vmul.f32 %v12603_v3, %v10616_v32  ;;  %v12621_v50 = vmul.f32 %v12603_v3, %v16647_v36  ;;  %v3003_v49 = vmul.f32 %v11749_v21, %v10616_v32  ;;  %v16690_v13 = vld [vmem:[#allocation39_spill] sm:$0xff] }
 0x20c   : >> { %16686 = vst [vmem:[#allocation35_spill] sm:$0xff] %v12612_v28  ;;  %v3019_v54 = vrot.slane %v16689_v42, 1  ;;  %4283 = vperm.xlu0 %10159, %v12469_v25   ;;  %v3021_v28 = vrot.slane %v16690_v13, 1  ;;  %v3006_v62 = vadd.f32 %v16409_v4, %v3002_v0  ;;  %v3035_v42 = vmul.f32 %v11737_v37, %v10621_v33 }
 0x20d   : >> { %16687 = vst [vmem:[#allocation44_spill] sm:$0xff] %v12616_v27  ;;  %16688 = vst [vmem:[#allocation40_spill] sm:$0xff] %v12621_v50  ;;  %v9364_v38 = vpack.c.bf16 %v2899_v59, %v2898_v55  ;;  %v3033_v27 = vmul.f32 %v11706_v30, %v10621_v33  ;;  %v3007_v1 = vadd.f32 %v16409_v4, %v3003_v49  ;;  %v16691_v55 = vld [vmem:[#allocation27_spill] sm:$0xff]  ;;  %v3042_v21 = vrot.slane %v3034_v7, 2  ;;  %v16693_v49 = vld [vmem:[#allocation57_spill] sm:$0xff] }
 0x20e   : >> { %v3020_v61 = vsel %vm517_vm0, %v3018_v16, %v3019_v54  ;;  %v3022_v59 = vsel %vm517_vm0, %v3019_v54, %v3021_v28  ;;  %v16692_v13 = vrot.slane %v16691_v55, 1  ;;  %4768 = vperm.xlu1 %10157, %v12434_v6   ;;  %v3044_v60 = vrot.slane %v3035_v42, 2 }
 0x20f   : >> { %9366 = vmatprep.subr.msk.bf16.mxu0 %vm11185_vm4, %v9364_v38  ;;  %v3041_v24 = vrot.slane %v3033_v27, 2  ;;  %v3029_v16 = vadd.f32 %v3020_v61, %v3006_v62  ;;  %v3030_v0 = vadd.f32 %v3022_v59, %v3007_v1  ;;  %v3056_v54 = vmul.f32 %v16634_v34, %v10636_v47 }
 0x210   : >> { %v3024_v30 = vsel %vm517_vm0, %v3021_v28, %v16692_v13  ;;  %9369 = vmatpush3.bf16.msk.msra.mxu0 %vm11185_vm4, %v9364_v38  ;;  %v3057_v28 = vmul.f32 %v16635_v11, %v10636_v47  ;;  %v3058_v7 = vmul.f32 %v12250_v26, %v10636_v47  ;;  %v3045_v27 = vsel %vm545_vm1, %v3042_v21, %v3044_v60  ;;  %v16694_v38 = vld [vmem:[#allocation33_spill] sm:$0xff] }
 0x211   : >> { %v3031_v37 = vadd.f32 %v3024_v30, %v16693_v49  ;;  %v3043_v17 = vsel %vm545_vm1, %v3041_v24, %v3042_v21  ;;  %v16695_v13 = vrot.slane %v16694_v38, 2  ;;  %v3064_v1 = vmul.f32 %v16634_v34, %v10649_v63  ;;  %v12668_v21 = vpop.f32.mrb[0].mxu0 }
 0x212   : >> { %v3052_v62 = vadd.f32 %v3043_v17, %v3029_v16  ;;  %v3053_v24 = vadd.f32 %v3045_v27, %v3030_v0  ;;  %v3065_v59 = vmul.f32 %v16635_v11, %v10649_v63  ;;  %v3066_v30 = vmul.f32 %v12250_v26, %v10649_v63  ;;  %16696 = vst [vmem:[#allocation31_spill] sm:$0xff] %v12668_v21  ;;  %v12675_v0 = vpop.f32.mrb[1].mxu0 }
 0x213   : >> { %v3047_v61 = vsel %vm545_vm1, %v3044_v60, %v16695_v13  ;;  %9109 = vmatmul.mubr.msk.f32.vlgmr.msra.gmra.mrb[4].mxu0 %vm934_vm5, %v16626_v20  ;;  %4772 = vperm.xlu1 %10157, %v12469_v25   ;;  %v3072_v17 = vrot.slane %v3064_v1, 1  ;;  %v3087_v16 = vmul.f32 %v16634_v34, %v10654_v12  ;;  %v3088_v49 = vmul.f32 %v16635_v11, %v10654_v12 }
 0x214   : >> { %v3054_v42 = vadd.f32 %v3047_v61, %v3031_v37  ;;  %v3060_v60 = vadd.f32 %v3056_v54, %v3052_v62  ;;  %16697 = vst [vmem:[#allocation67_spill] sm:$0xff] %v12675_v0  ;;  %9130 = vmatprep.mubr.msk.f32.mxu0 %vm934_vm5, %v16629_v45  ;;  %v3061_v37 = vadd.f32 %v3057_v28, %v3053_v24  ;;  %v3073_v13 = vrot.slane %v3065_v59, 1 }
 0x215   : >> { %v3075_v61 = vrot.slane %v3066_v30, 1  ;;  %v3089_v25 = vmul.f32 %v12250_v26, %v10654_v12  ;;  %v3095_v54 = vrot.slane %v3087_v16, 2  ;;  %v3096_v62 = vrot.slane %v3088_v49, 2 }
 0x216   : >> { %v3062_v27 = vadd.f32 %v3058_v7, %v3054_v42  ;;  %v3126_v1 = vmul.f32 %v12316_v44, %v10670_v39  ;;  %v3074_v20 = vsel %vm517_vm0, %v3072_v17, %v3073_v13  ;;  %v3127_v28 = vmul.f32 %v12409_v58, %v10670_v39 }
 0x217   : >> { %v3076_v29 = vsel %vm517_vm0, %v3073_v13, %v3075_v61  ;;  %v3078_v45 = vsel %vm517_vm0, %v3075_v61, %v16699_v14  ;;  %v16700_v7 = vmov 17   ;;  %v3083_v24 = vadd.f32 %v3074_v20, %v3060_v60 }
 0x218   : >> { %10160 = vset.pattern.permute.xlu1 %v16700_v7  ;;  %v3084_v42 = vadd.f32 %v3076_v29, %v3061_v37  ;;  %v3085_v59 = vadd.f32 %v3078_v45, %v3062_v27  ;;  %v3097_v30 = vsel %vm545_vm1, %v3095_v54, %v3096_v62  ;;  %v3098_v16 = vrot.slane %v3089_v25, 2  ;;  %v16701_v45 = vld [vmem:[#allocation8_spill] sm:$0xff] }
 0x219   : >> { %4275 = vperm.xlu1 %10160, %v12404_v18   ;;  %v3128_v17 = vmul.f32 %v12342_v57, %v10670_v39  ;;  %v3134_v49 = vmul.f32 %v12316_v44, %v10683_v52  ;;  %v3135_v14 = vmul.f32 %v12409_v58, %v10683_v52  ;;  %v3106_v13 = vadd.f32 %v3097_v30, %v3083_v24 }
 0x21a   : >> { %v3136_v20 = vmul.f32 %v12342_v57, %v10683_v52  ;;  %v12703_v29 = vmul.f32 %v12369_v43, %v10683_v52  ;;  %v3157_v18 = vmul.f32 %v16701_v45, %v12316_v44  ;;  %v3099_v60 = vsel %vm545_vm1, %v3096_v62, %v3098_v16 }
 0x21b   : >> { %v16702_v37 = vrot.slane %v16642_v56, 2  ;;  %v3142_v61 = vrot.slane %v3134_v49, 1  ;;  %v3143_v25 = vrot.slane %v3135_v14, 1  ;;  %v3107_v54 = vadd.f32 %v3099_v60, %v3084_v42 }
 0x21c   : >> { %v3130_v24 = vadd.f32 %v3126_v1, %v3106_v13  ;;  %v3145_v30 = vrot.slane %v3136_v20, 1  ;;  %v16266_v2 = vrot.slane %v12703_v29, 1  ;;  %v3158_v46 = vmul.f32 %v16701_v45, %v12409_v58 }
 0x21d   : >> { %v3101_v27 = vsel %vm545_vm1, %v3098_v16, %v16702_v37  ;;  %4279 = vperm.xlu1 %10160, %v12434_v6   ;;  %v3144_v53 = vsel %vm517_vm0, %v3142_v61, %v3143_v25  ;;  %v3159_v62 = vmul.f32 %v16701_v45, %v12342_v57  ;;  %v12720_v16 = vmul.f32 %v12603_v3, %v10621_v33 }
 0x21e   : >> { %v3108_v7 = vadd.f32 %v3101_v27, %v3085_v59  ;;  %v12724_v1 = vadd.f32 %v16409_v4, %v12592_v8  ;;  %v3131_v42 = vadd.f32 %v3127_v28, %v3107_v54  ;;  %v3146_v6 = vsel %vm517_vm0, %v3143_v25, %v3145_v30 }
 0x21f   : >> { %16703 = vst [vmem:[#allocation68_spill] sm:$0xff] %v12720_v16  ;;  %v16705_v59 = vrot.slane %v12561_v35, 1  ;;  %v16706_v49 = vrot.slane %v12490_v48, 1  ;;  %v12736_v13 = vmul.f32 %v16701_v45, %v12369_v43  ;;  %v3165_v20 = vrot.slane %v3157_v18, 2 }
 0x220   : >> { %16704 = vst [vmem:[#allocation65_spill] sm:$0xff] %v12724_v1  ;;  %v3166_v60 = vrot.slane %v3158_v46, 2  ;;  %v3132_v37 = vadd.f32 %v3128_v17, %v3108_v7  ;;  %v3153_v27 = vadd.f32 %v3144_v53, %v3130_v24  ;;  %v3168_v8 = vrot.slane %v3159_v62, 2  ;;  %v16709_v17 = vld [vmem:[#allocation69_spill] sm:$0xff] }
 0x221   : >> { %v12732_v14 = vsel %vm517_vm0, %v16706_v49, %v16705_v59  ;;  %v3184_v28 = vmul.f32 %v16634_v34, %v10616_v32  ;;  %v3148_v61 = vsel %vm517_vm0, %v3145_v30, %v16266_v2  ;;  %v3154_v25 = vadd.f32 %v3146_v6, %v3131_v42  ;;  %v16708_v59 = vld [vmem:[#allocation41_spill] sm:$0xff] }
 0x222   : >> { %16707 = vst [vmem:[#allocation29_spill] sm:$0xff] %v12732_v14  ;;  %v3185_v54 = vmul.f32 %v16635_v11, %v10616_v32  ;;  %v3200_v49 = vrot.slane %v16708_v59, 1  ;;  %v3167_v1 = vsel %vm545_vm1, %v3165_v20, %v3166_v60  ;;  %v16269_v46 = vrot.slane %v12736_v13, 2 }
 0x223   : >> { %v3188_v53 = vadd.f32 %v16409_v4, %v3184_v28  ;;  %v3201_v18 = vrot.slane %v16709_v17, 1  ;;  %v16710_v7 = vrot.slane %v12561_v35, 1  ;;  %v3169_v30 = vsel %vm545_vm1, %v3166_v60, %v3168_v8 }
 0x224   : >> { %v3189_v62 = vadd.f32 %v16409_v4, %v3185_v54  ;;  %v3203_v42 = vrot.slane %v12423_v40, 1  ;;  %v3215_v28 = vmul.f32 %v16634_v34, %v10621_v33  ;;  %v3155_v17 = vadd.f32 %v3148_v61, %v3132_v37 }
 0x225   : >> { %v12753_v24 = vadd.f32 %v16710_v7, %v12588_v5  ;;  %v3202_v59 = vsel %vm517_vm0, %v3200_v49, %v3201_v18  ;;  %v12763_v2 = vadd.f32 %v3167_v1, %v3153_v27  ;;  %v16712_v5 = vrot.slane %v16625_v19, 1 }
 0x226   : >> { %v3204_v35 = vsel %vm517_vm0, %v3201_v18, %v3203_v42  ;;  %v3171_v40 = vsel %vm545_vm1, %v3168_v8, %v16269_v46  ;;  %v12772_v54 = vadd.f32 %v3169_v30, %v3154_v25  ;;  %v3211_v7 = vadd.f32 %v3202_v59, %v3188_v53 }
 0x227   : >> { %16711 = vst [vmem:[#allocation72_spill] sm:$0xff] %v12753_v24  ;;  %v3206_v60 = vsel %vm517_vm0, %v3203_v42, %v16712_v5  ;;  %v3216_v49 = vmul.f32 %v16635_v11, %v10621_v33  ;;  %v3212_v34 = vadd.f32 %v3204_v35, %v3189_v62  ;;  %v3217_v37 = vmul.f32 %v12250_v26, %v10621_v33 }
 0x228   : >> { %v3213_v1 = vadd.f32 %v3206_v60, %v12419_v51  ;;  %v3223_v27 = vrot.slane %v3215_v28, 2  ;;  %v3238_v61 = vmul.f32 %v12316_v44, %v10636_v47  ;;  %v3246_v8 = vmul.f32 %v12316_v44, %v10649_v63 }
 0x229   : >> { %v3224_v19 = vrot.slane %v3216_v49, 2  ;;  %v3247_v25 = vmul.f32 %v12409_v58, %v10649_v63  ;;  %v3226_v53 = vrot.slane %v3217_v37, 2  ;;  %v3239_v11 = vmul.f32 %v12409_v58, %v10636_v47 }
 0x22a   : >> { %v3248_v51 = vmul.f32 %v12342_v57, %v10649_v63  ;;  %v3269_v26 = vmul.f32 %v12316_v44, %v10654_v12  ;;  %v3254_v30 = vrot.slane %v3246_v8, 1  ;;  %v3270_v42 = vmul.f32 %v12409_v58, %v10654_v12  ;;  %v12817_v8 = vpop.f32.mrb[0].mxu1 }
 0x22b   : >> { %v3225_v18 = vsel %vm545_vm1, %v3223_v27, %v3224_v19  ;;  %v3255_v62 = vrot.slane %v3247_v25, 1  ;;  %v3227_v59 = vsel %vm545_vm1, %v3224_v19, %v3226_v53  ;;  %v16713_v28 = vrot.slane %v16649_v41, 2  ;;  %16715 = vst [vmem:[#allocation37_spill] sm:$0xff] %v12817_v8 }
 0x22c   : >> { %v3234_v5 = vadd.f32 %v3225_v18, %v3211_v7  ;;  %v3257_v60 = vrot.slane %v3248_v51, 1  ;;  %v3235_v49 = vadd.f32 %v3227_v59, %v3212_v34  ;;  %v3240_v20 = vmul.f32 %v12342_v57, %v10636_v47 }
 0x22d   : >> { %v3229_v35 = vsel %vm545_vm1, %v3226_v53, %v16713_v28  ;;  %v3271_v27 = vmul.f32 %v12342_v57, %v10654_v12  ;;  %v12803_v25 = vadd.f32 %v3171_v40, %v3155_v17  ;;  %v3259_v58 = vrot.slane %v12481_v22, 1  ;;  %v16714_v28 = vld [vmem:[#allocation25_spill] sm:$0xff] }
 0x22e   : >> { %v3236_v37 = vadd.f32 %v3229_v35, %v3213_v1  ;;  %v12808_v19 = vmul.f32 %v12369_v43, %v10654_v12  ;;  %v3242_v34 = vadd.f32 %v3238_v61, %v3234_v5  ;;  %v3243_v1 = vadd.f32 %v3239_v11, %v3235_v49 }
 0x22f   : >> { %v3256_v53 = vsel %vm517_vm0, %v3254_v30, %v3255_v62  ;;  %v3258_v51 = vsel %vm517_vm0, %v3255_v62, %v3257_v60  ;;  %v3277_v18 = vrot.slane %v3269_v26, 2  ;;  %v3278_v59 = vrot.slane %v3270_v42, 2  ;;  %v12824_v42 = vpop.f32.mrb[1].mxu1 }
 0x230   : >> { %v3009_v17 = vadd.f32 %v16409_v4, %v16714_v28  ;;  %v3244_v35 = vadd.f32 %v3240_v20, %v3236_v37  ;;  %v3280_v6 = vrot.slane %v3271_v27, 2  ;;  %v3260_v11 = vsel %vm517_vm0, %v3257_v60, %v3259_v58  ;;  %16717 = vst [vmem:[#allocation36_spill] sm:$0xff] %v12824_v42 }
 0x231   : >> { %v3282_v30 = vrot.slane %v12808_v19, 2  ;;  %v16716_v26 = vrot.slane %v16691_v55, 1  ;;  %v3265_v5 = vadd.f32 %v3256_v53, %v3242_v34  ;;  %v3266_v49 = vadd.f32 %v3258_v51, %v3243_v1 }
 0x232   : >> { %v16718_v28 = vrot.slane %v16649_v41, 2  ;;  %v3241_v37 = vmul.f32 %v12369_v43, %v10636_v47  ;;  %v3279_v27 = vsel %vm545_vm1, %v3277_v18, %v3278_v59  ;;  %v16719_v60 = vrot.slane %v16694_v38, 2 }
 0x233   : >> { %v3032_v62 = vadd.f32 %v16716_v26, %v3009_v17  ;;  %v16267_v19 = vrot.slane %v12668_v21, 2  ;;  %v3267_v55 = vadd.f32 %v3260_v11, %v3244_v35  ;;  %v3281_v17 = vsel %vm545_vm1, %v3278_v59, %v3280_v6 }
 0x234   : >> { %v3237_v20 = vadd.f32 %v16718_v28, %v12395_v23  ;;  %v10347_v34 = vmov 20   ;;  %v1031_v1 = vrot.slane %v12675_v0, 2  ;;  %v3283_v23 = vsel %vm545_vm1, %v3280_v6, %v3282_v30 }
 0x235   : >> { %v3055_v7 = vadd.f32 %v16719_v60, %v3032_v62  ;;  %10161 = vset.pattern.permute.xlu1 %v10347_v34  ;;  %10162 = vset.pattern.permute.xlu0 %v10347_v34  ;;  %v1514_v41 = vrot.slane %v12817_v8, 1  ;;  %v16268_v38 = vrot.slane %v12817_v8, 2  ;;  %v1513_v53 = vrot.slane %v12824_v42, 1 }
 0x236   : >> { %v3245_v26 = vadd.f32 %v3241_v37, %v3237_v20  ;;  %5067 = vperm.xlu1 %10161, %v12400_v15   ;;  %v3288_v51 = vadd.f32 %v3279_v27, %v3265_v5  ;;  %v12844_v18 = vmul.f32 %v12369_v43, %v10670_v39  ;;  %v12849_v59 = vsel %vm545_vm1, %v1031_v1, %v16267_v19  ;;  %v16721_v15 = vld [vmem:[#allocation70_spill] sm:$0xff]  ;;  %v12854_v20 = vpop.permute.xlu1 %3297  ;;  %v12856_v5 = vpop.permute.xlu0 %3293 }
 0x237   : >> { %16720 = vst [vmem:[#allocation42_spill] sm:$0xff] %v12849_v59  ;;  %v1522_v6 = vrot.slane %v12824_v42, 2  ;;  %v3289_v35 = vadd.f32 %v3281_v17, %v3266_v49  ;;  %v3063_v11 = vadd.f32 %v16721_v15, %v3055_v7  ;;  %v1515_v28 = vsel %vm517_vm0, %v1513_v53, %v1514_v41 }
 0x238   : >> { %v3268_v62 = vadd.f32 %v3259_v58, %v3245_v26  ;;  %v3290_v37 = vadd.f32 %v3283_v23, %v3267_v55  ;;  %v12859_v27 = vpack.i.bf16 %v1514_v41, %v1515_v28  ;;  %v3673_v7 = vmul.f32 %v12856_v5, %v10616_v32 }
 0x239   : >> { %v12864_v60 = vsel %vm545_vm1, %v1522_v6, %v16268_v38  ;;  %v12870_v58 = vmul.f32 %v12856_v5, %v16647_v36  ;;  %v12874_v49 = vmul.f32 %v12856_v5, %v10621_v33  ;;  %v3308_v17 = vmul.f32 %v12856_v5, %v10670_v39 }
 0x23a   : >> { %v3316_v26 = vmul.f32 %v12856_v5, %v10683_v52  ;;  %v3317_v34 = vmul.f32 %v12854_v20, %v10683_v52  ;;  %v12885_v1 = vmul.f32 %v12854_v20, %v16647_v36  ;;  %v3309_v23 = vmul.f32 %v12854_v20, %v10670_v39  ;;  %v12896_v43 = vpop.permute.xlu1 %3301  ;;  %v3306_v19 = vpop.permute.xlu0 %3305 }
 0x23b   : >> { %v16722_v41 = vrot.slane %v16698_v31, 1  ;;  %v3291_v6 = vadd.f32 %v3282_v30, %v3268_v62  ;;  %v12892_v15 = vadd.f32 %v16409_v4, %v3673_v7  ;;  %v3675_v61 = vmul.f32 %v12896_v43, %v10616_v32 }
 0x23c   : >> { %v3324_v38 = vrot.slane %v3316_v26, 1  ;;  %v12902_v22 = vmul.f32 %v12896_v43, %v16647_v36  ;;  %v12905_v31 = vmul.f32 %v3306_v19, %v10649_v63  ;;  %v3325_v30 = vrot.slane %v3317_v34, 1 }
 0x23d   : >> { %v3086_v53 = vadd.f32 %v16722_v41, %v3063_v11  ;;  %v12908_v11 = vmul.f32 %v3306_v19, %v10654_v12  ;;  %v12911_v62 = vmul.f32 %v3306_v19, %v16647_v36  ;;  %v3312_v7 = vadd.f32 %v3308_v17, %v3288_v51 }
 0x23e   : >> { %v3339_v26 = vmul.f32 %v16701_v45, %v12856_v5  ;;  %v12916_v41 = vmul.f32 %v3306_v19, %v10636_v47  ;;  %v12919_v55 = vmul.f32 %v3306_v19, %v10616_v32  ;;  %v3310_v28 = vmul.f32 %v12896_v43, %v10670_v39 }
 0x23f   : >> { %v3313_v34 = vadd.f32 %v3309_v23, %v3289_v35  ;;  %v12924_v40 = vadd.f32 %v16409_v4, %v3675_v61  ;;  %v12929_v17 = vmul.f32 %v3306_v19, %v10621_v33  ;;  %v3318_v0 = vmul.f32 %v12896_v43, %v10683_v52 }
 0x240   : >> { %v3319_v21 = vmul.f32 %v3306_v19, %v10683_v52  ;;  %v3326_v59 = vsel %vm517_vm0, %v3324_v38, %v3325_v30  ;;  %v3314_v61 = vadd.f32 %v3310_v28, %v3290_v37  ;;  %v3340_v46 = vmul.f32 %v16701_v45, %v12854_v20 }
 0x241   : >> { %v3335_v23 = vadd.f32 %v3326_v59, %v3312_v7  ;;  %v3327_v51 = vrot.slane %v3318_v0, 1  ;;  %v3341_v8 = vmul.f32 %v16701_v45, %v12896_v43  ;;  %v3342_v42 = vmul.f32 %v16701_v45, %v3306_v19 }
 0x242   : >> { %v3329_v24 = vrot.slane %v3319_v21, 1  ;;  %v3347_v16 = vrot.slane %v3339_v26, 2  ;;  %v3348_v9 = vrot.slane %v3340_v46, 2  ;;  %v16723_v50 = vrot.slane %v16642_v56, 2 }
 0x243   : >> { %v3311_v38 = vmul.f32 %v3306_v19, %v10670_v39  ;;  %v3328_v37 = vsel %vm517_vm0, %v3325_v30, %v3327_v51  ;;  %v3350_v28 = vrot.slane %v3341_v8, 2  ;;  %v3352_v7 = vrot.slane %v3342_v42, 2 }
 0x244   : >> { %v3109_v10 = vadd.f32 %v16723_v50, %v3086_v53  ;;  %v3330_v59 = vsel %vm517_vm0, %v3327_v51, %v3329_v24  ;;  %v3336_v0 = vadd.f32 %v3328_v37, %v3313_v34  ;;  %v3349_v35 = vsel %vm545_vm1, %v3347_v16, %v3348_v9  ;;  %v16725_v51 = vld [vmem:[#allocation55_spill] sm:$0xff] }
 0x245   : >> { %v3337_v21 = vadd.f32 %v3330_v59, %v3314_v61  ;;  %v3351_v26 = vsel %vm545_vm1, %v3348_v9, %v3350_v28  ;;  %v3353_v46 = vsel %vm545_vm1, %v3350_v28, %v3352_v7  ;;  %v3358_v56 = vadd.f32 %v3349_v35, %v3335_v23  ;;  %v16726_v61 = vld [vmem:[#allocation51_spill] sm:$0xff] }
 0x246   : >> { %v3133_v48 = vadd.f32 %v12844_v18, %v3109_v10  ;;  %v3315_v50 = vadd.f32 %v3311_v38, %v3291_v6  ;;  %v3359_v53 = vadd.f32 %v3351_v26, %v3336_v0  ;;  %v16724_v30 = vrot.slane %v12703_v29, 1  ;;  %v16729_v38 = vld [vmem:[#allocation46_spill] sm:$0xff] }
 0x247   : >> { %v3360_v19 = vadd.f32 %v3353_v46, %v3337_v21  ;;  %v3491_v8 = vmul.f32 %v12316_v44, %v10616_v32  ;;  %v3362_v42 = vmax.f32 %v3358_v56, 0.0  ;;  %v3507_v16 = vrot.slane %v16725_v51, 1  ;;  %v16734_v56 = vld [vmem:[#allocation47_spill] sm:$0xff]  ;;  %v16737_v51 = vld [vmem:[#allocation58_spill] sm:$0xff] }
 0x248   : >> { %v3156_v14 = vadd.f32 %v16724_v30, %v3133_v48  ;;  %v3338_v34 = vadd.f32 %v3329_v24, %v3315_v50  ;;  %v3510_v10 = vrot.slane %v16726_v61, 1  ;;  %v3363_v18 = vmax.f32 %v3359_v53, 0.0  ;;  %v16736_v30 = vld [vmem:[#allocation28_spill] sm:$0xff] }
 0x249   : >> { %v3364_v9 = vmax.f32 %v3360_v19, 0.0  ;;  %v16727_v37 = vrot.slane %v12736_v13, 2  ;;  %v3495_v6 = vadd.f32 %v16409_v4, %v3491_v8  ;;  %v16728_v23 = vmax.f32 %v12763_v2, 0.0 }
 0x24a   : >> { %v3361_v48 = vadd.f32 %v3352_v7, %v3338_v34  ;;  %v16730_v59 = vrot.slane %v16729_v38, 1  ;;  %v16732_v21 = vmax.f32 %v12772_v54, 0.0  ;;  %v16733_v13 = vmax.f32 %v12803_v25, 0.0 }
 0x24b   : >> { %v3179_v35 = vadd.f32 %v16727_v37, %v3156_v14  ;;  %v3366_v29 = vmax.f32 %v16728_v23, %v3362_v42  ;;  %v16735_v50 = vrot.slane %v16734_v56, 1  ;;  %v3522_v54 = vmul.f32 %v12316_v44, %v10621_v33 }
 0x24c   : >> { %v3509_v28 = vsel %vm517_vm0, %v3507_v16, %v16730_v59  ;;  %v16731_v24 = vmov %v16730_v59  ;;  %v3367_v26 = vmax.f32 %v16732_v21, %v3363_v18  ;;  %v3368_v14 = vmax.f32 %v16733_v13, %v3364_v9  ;;  %v16738_v59 = vld [vmem:[#allocation23_spill] sm:$0xff] }
 0x24d   : >> { %v3511_v0 = vsel %vm517_vm0, %v16731_v24, %v3510_v10  ;;  %v3183_v46 = vmax.f32 %v3179_v35, 0.0  ;;  %v3513_v2 = vsel %vm517_vm0, %v3510_v10, %v16735_v50  ;;  %v3374_v7 = vrot.slane %v3366_v29, 1 }
 0x24e   : >> { %v3365_v53 = vmax.f32 %v3361_v48, 0.0  ;;  %v3518_v19 = vadd.f32 %v3509_v28, %v3495_v6  ;;  %v3519_v8 = vadd.f32 %v3511_v0, %v16736_v30  ;;  %v3375_v42 = vrot.slane %v3367_v26, 1 }
 0x24f   : >> { %v3377_v34 = vrot.slane %v3368_v14, 1  ;;  %v3520_v16 = vadd.f32 %v3513_v2, %v16737_v51  ;;  %v3524_v25 = vmul.f32 %v12342_v57, %v10621_v33  ;;  %v3545_v18 = vmul.f32 %v12856_v5, %v10636_v47 }
 0x250   : >> { %v3369_v61 = vmax.f32 %v3183_v46, %v3365_v53  ;;  %v3546_v10 = vmul.f32 %v12854_v20, %v10636_v47  ;;  %v3376_v9 = vsel %vm517_vm0, %v3374_v7, %v3375_v42  ;;  %v3530_v35 = vrot.slane %v3522_v54, 2  ;;  %v16741_v7 = vld [vmem:[#allocation43_spill] sm:$0xff] }
 0x251   : >> { %v3378_v37 = vsel %vm517_vm0, %v3375_v42, %v3377_v34  ;;  %v3547_v6 = vmul.f32 %v12896_v43, %v10636_v47  ;;  %v3385_v23 = vmax.f32 %v3366_v29, %v3376_v9  ;;  %v3533_v38 = vrot.slane %v3524_v25, 2 }
 0x252   : >> { %v3386_v44 = vmax.f32 %v3367_v26, %v3378_v37  ;;  %v3379_v48 = vrot.slane %v3369_v61, 1  ;;  %v16739_v57 = vrot.slane %v16738_v59, 2  ;;  %v3553_v24 = vmul.f32 %v12856_v5, %v10649_v63 }
 0x253   : >> { %v3554_v0 = vmul.f32 %v12854_v20, %v10649_v63  ;;  %v3555_v21 = vmul.f32 %v12896_v43, %v10649_v63  ;;  %v16742_v53 = vrot.slane %v16741_v7, 2 }
 0x254   : >> { %v3532_v28 = vsel %vm545_vm1, %v3530_v35, %v16739_v57  ;;  %v9370_v13 = vpack.c.bf16 %v3386_v44, %v3385_v23  ;;  %v3380_v46 = vsel %vm517_vm0, %v3377_v34, %v3379_v48  ;;  %v3388_v29 = vmax.f32 %v3369_v61, %v3379_v48 }
 0x255   : >> { %v16740_v26 = vmov %v16739_v57  ;;  %v3387_v2 = vmax.f32 %v3368_v14, %v3380_v46  ;;  %v3536_v30 = vsel %vm545_vm1, %v3533_v38, %v16742_v53  ;;  %v3541_v42 = vadd.f32 %v3532_v28, %v3518_v19  ;;  %v16745_v57 = vld [vmem:[#allocation56_spill] sm:$0xff] }
 0x256   : >> { %v3534_v50 = vsel %vm545_vm1, %v16740_v26, %v3533_v38  ;;  %9371 = vmatprep.subr.bf16.mxu1 %v9370_v13  ;;  %v3543_v54 = vadd.f32 %v3536_v30, %v3520_v16  ;;  %v3561_v25 = vrot.slane %v3553_v24, 1  ;;  %v3562_v9 = vrot.slane %v3554_v0, 1  ;;  %v16746_v24 = vld [vmem:[#allocation50_spill] sm:$0xff]  ;;  %v16747_v46 = vld [vmem:[#allocation52_spill] sm:$0xff] }
 0x257   : >> { %v3542_v51 = vadd.f32 %v3534_v50, %v3519_v8  ;;  %v3564_v37 = vrot.slane %v3555_v21, 1  ;;  %9373 = vmatpush3.bf16.msra.mxu1 %v9370_v13  ;;  %v9374_v35 = vpack.c.bf16 %v3388_v29, %v3387_v2  ;;  %v3549_v34 = vadd.f32 %v3545_v18, %v3541_v42  ;;  %v16748_v53 = vld [vmem:[#allocation60_spill] sm:$0xff] }
 0x258   : >> { %v3576_v23 = vmul.f32 %v12856_v5, %v10654_v12  ;;  %v3551_v44 = vadd.f32 %v3547_v6, %v3543_v54  ;;  %v3563_v14 = vsel %vm517_vm0, %v3561_v25, %v3562_v9  ;;  %v16743_v19 = vrot.slane %v12905_v31, 1 }
 0x259   : >> { %v3550_v61 = vadd.f32 %v3546_v10, %v3542_v51  ;;  %v3565_v48 = vsel %vm517_vm0, %v3562_v9, %v3564_v37  ;;  %9376 = vmatprep.subr.msk.bf16.mxu1 %vm11185_vm4, %v9374_v35  ;;  %v3572_v38 = vadd.f32 %v3563_v14, %v3549_v34  ;;  %v3577_v18 = vmul.f32 %v12854_v20, %v10654_v12 }
 0x25a   : >> { %v3567_v8 = vsel %vm517_vm0, %v3564_v37, %v16743_v19  ;;  %v3578_v5 = vmul.f32 %v12896_v43, %v10654_v12  ;;  %v3584_v6 = vrot.slane %v3576_v23, 2  ;;  %v3615_v28 = vmul.f32 %v16745_v57, %v10670_v39 }
 0x25b   : >> { %v3573_v59 = vadd.f32 %v3565_v48, %v3550_v61  ;;  %v3574_v10 = vadd.f32 %v3567_v8, %v3551_v44  ;;  %v3616_v0 = vmul.f32 %v16746_v24, %v10670_v39  ;;  %9379 = vmatpush3.bf16.msk.msra.mxu1 %vm11185_vm4, %v9374_v35  ;;  %v3585_v21 = vrot.slane %v3577_v18, 2  ;;  %v16750_v35 = vld [vmem:[#allocation13_spill] sm:$0xff] }
 0x25c   : >> { %v3587_v13 = vrot.slane %v3578_v5, 2  ;;  %v3617_v29 = vmul.f32 %v16747_v46, %v10670_v39  ;;  %v3623_v26 = vmul.f32 %v16745_v57, %v10683_v52  ;;  %v3624_v50 = vmul.f32 %v16746_v24, %v10683_v52  ;;  %v16751_v18 = vld [vmem:[#allocation9_spill] sm:$0xff] }
 0x25d   : >> { %v3625_v2 = vmul.f32 %v16747_v46, %v10683_v52  ;;  %v13034_v30 = vmul.f32 %v16748_v53, %v10683_v52  ;;  %v3646_v42 = vmul.f32 %v16701_v45, %v16745_v57  ;;  %v3586_v51 = vsel %vm545_vm1, %v3584_v6, %v3585_v21 }
 0x25e   : >> { %v3588_v54 = vsel %vm545_vm1, %v3585_v21, %v3587_v13  ;;  %v16749_v25 = vrot.slane %v12908_v11, 2  ;;  %v3631_v37 = vrot.slane %v3623_v26, 1  ;;  %9120 = vmatmul.mubr.msk.f32.vlgmr.msra.gmra.mrb[4].mxu1 %vm934_vm5, %v16750_v35  ;;  %v3595_v34 = vadd.f32 %v3586_v51, %v3572_v38 }
 0x25f   : >> { %v3596_v61 = vadd.f32 %v3588_v54, %v3573_v59  ;;  %v3632_v44 = vrot.slane %v3624_v50, 1  ;;  %v3634_v14 = vrot.slane %v3625_v2, 1  ;;  %v16287_v48 = vrot.slane %v13034_v30, 1  ;;  %9141 = vmatprep.mubr.msk.f32.mxu1 %vm934_vm5, %v16751_v18 }
 0x260   : >> { %v3590_v9 = vsel %vm545_vm1, %v3587_v13, %v16749_v25  ;;  %v3647_v19 = vmul.f32 %v16701_v45, %v16746_v24  ;;  %v3648_v8 = vmul.f32 %v16701_v45, %v16747_v46  ;;  %v3680_v5 = vadd.f32 %v16409_v4, %v12919_v55 }
 0x261   : >> { %v3597_v23 = vadd.f32 %v3590_v9, %v3574_v10  ;;  %v16288_v38 = vrot.slane %v12929_v17, 2  ;;  %v3619_v59 = vadd.f32 %v3615_v28, %v3595_v34  ;;  %v3620_v10 = vadd.f32 %v3616_v0, %v3596_v61 }
 0x262   : >> { %v3633_v6 = vsel %vm517_vm0, %v3631_v37, %v3632_v44  ;;  %v3635_v21 = vsel %vm517_vm0, %v3632_v44, %v3634_v14  ;;  %v13059_v13 = vmul.f32 %v16701_v45, %v16748_v53  ;;  %v3654_v26 = vrot.slane %v3646_v42, 2 }
 0x263   : >> { %v16752_v50 = vrot.slane %v12911_v62, 1  ;;  %v16753_v2 = vrot.slane %v12902_v22, 1  ;;  %v3621_v55 = vadd.f32 %v3617_v29, %v3597_v23  ;;  %v3637_v28 = vsel %vm517_vm0, %v3634_v14, %v16287_v48 }
 0x264   : >> { %v3655_v0 = vrot.slane %v3647_v19, 2  ;;  %v3657_v54 = vrot.slane %v3648_v8, 2  ;;  %v16286_v25 = vrot.slane %v13059_v13, 2  ;;  %v3674_v9 = vmul.f32 %v12854_v20, %v10616_v32 }
 0x265   : >> { %v3695_v51 = vsel %vm517_vm0, %v16753_v2, %v16752_v50  ;;  %v3690_v42 = vrot.slane %v12885_v1, 1  ;;  %v3642_v37 = vadd.f32 %v3633_v6, %v3619_v59  ;;  %v3643_v34 = vadd.f32 %v3635_v21, %v3620_v10 }
 0x266   : >> { %v3705_v61 = vmul.f32 %v12854_v20, %v10621_v33  ;;  %v3706_v29 = vmul.f32 %v12896_v43, %v10621_v33  ;;  %v16754_v23 = vmov %v16752_v50  ;;  %v3656_v14 = vsel %vm545_vm1, %v3654_v26, %v3655_v0 }
 0x267   : >> { %v13079_v44 = vadd.f32 %v16754_v23, %v3680_v5  ;;  %v3658_v19 = vsel %vm545_vm1, %v3655_v0, %v3657_v54  ;;  %v3678_v8 = vadd.f32 %v16409_v4, %v3674_v9  ;;  %v3644_v50 = vadd.f32 %v3637_v28, %v3621_v55 }
 0x268   : >> { %v16755_v1 = vrot.slane %v12870_v58, 1  ;;  %v16756_v20 = vmov %v16753_v2  ;;  %v3702_v43 = vadd.f32 %v3695_v51, %v12924_v40  ;;  %v3660_v62 = vsel %vm545_vm1, %v3657_v54, %v16286_v25  ;;  %v13202_v25 = vld [vmem:[%s10541_s21 + $0x10] sm:$0xff] }
 0x269   : >> { %v3693_v10 = vsel %vm517_vm0, %v3690_v42, %v16756_v20  ;;  %v3713_v21 = vrot.slane %v3705_v61, 2  ;;  %v13095_v26 = vadd.f32 %v3656_v14, %v3642_v37  ;;  %v13097_v2 = vadd.f32 %v3658_v19, %v3643_v34 }
 0x26a   : >> { %v3691_v59 = vsel %vm517_vm0, %v16755_v1, %v3690_v42  ;;  %v3701_v6 = vadd.f32 %v3693_v10, %v3678_v8  ;;  %v3715_v58 = vrot.slane %v3706_v29, 2  ;;  %v3727_v22 = vmul.f32 %v16745_v57, %v10636_v47  ;;  %v13122_v8 = vpop.f32.mrb[2].mxu0 }
 0x26b   : >> { %v3700_v5 = vadd.f32 %v3691_v59, %v12892_v15  ;;  %v16757_v55 = vrot.slane %v12874_v49, 2  ;;  %v3728_v51 = vmul.f32 %v16746_v24, %v10636_v47  ;;  %v3729_v15 = vmul.f32 %v16747_v46, %v10636_v47  ;;  %16758 = vst [vmem:[#allocation39_spill] sm:$0xff] %v13122_v8 }
 0x26c   : >> { %v3735_v28 = vmul.f32 %v16745_v57, %v10649_v63  ;;  %v3716_v0 = vsel %vm545_vm1, %v3713_v21, %v3715_v58  ;;  %v3718_v54 = vsel %vm545_vm1, %v3715_v58, %v16288_v38  ;;  %v3736_v49 = vmul.f32 %v16746_v24, %v10649_v63 }
 0x26d   : >> { %v3714_v40 = vsel %vm545_vm1, %v16757_v55, %v3713_v21  ;;  %v3724_v42 = vadd.f32 %v3716_v0, %v3701_v6  ;;  %v3725_v37 = vadd.f32 %v3718_v54, %v3702_v43  ;;  %v3737_v34 = vmul.f32 %v16747_v46, %v10649_v63  ;;  %v13128_v6 = vpop.f32.mrb[3].mxu0 }
 0x26e   : >> { %v3723_v9 = vadd.f32 %v3714_v40, %v3700_v5  ;;  %v3743_v61 = vrot.slane %v3735_v28, 1  ;;  %v3744_v23 = vrot.slane %v3736_v49, 1  ;;  %v3758_v14 = vmul.f32 %v16745_v57, %v10654_v12  ;;  %16759 = vst [vmem:[#allocation27_spill] sm:$0xff] %v13128_v6  ;;  %v16760_v40 = vld [vmem:[#allocation32_spill] sm:$0xff] }
 0x26f   : >> { %v3759_v19 = vmul.f32 %v16746_v24, %v10654_v12  ;;  %v3732_v1 = vadd.f32 %v3728_v51, %v3724_v42  ;;  %v3733_v59 = vadd.f32 %v3729_v15, %v3725_v37  ;;  %v3746_v20 = vrot.slane %v3737_v34, 1 }
 0x270   : >> { %v3731_v29 = vadd.f32 %v3727_v22, %v3723_v9  ;;  %v3760_v10 = vmul.f32 %v16747_v46, %v10654_v12  ;;  %v2003_v43 = vrot.slane %v13122_v8, 1  ;;  %v2012_v5 = vrot.slane %v13122_v8, 2 }
 0x271   : >> { %v3745_v21 = vsel %vm517_vm0, %v3743_v61, %v3744_v23  ;;  %v3766_v57 = vrot.slane %v3758_v14, 2  ;;  %v2002_v58 = vrot.slane %v13128_v6, 1  ;;  %v2011_v22 = vrot.slane %v13128_v6, 2  ;;  %v16762_v14 = vld [vmem:[#allocation30_spill] sm:$0xff] }
 0x272   : >> { %v3747_v55 = vsel %vm517_vm0, %v3744_v23, %v3746_v20  ;;  %v16761_v51 = vrot.slane %v16760_v40, 1  ;;  %2007 = vrot.lane.b32.xlu0 %v2003_v43, %s16370_s16  ;;  %v13138_v28 = vadd.f32 %v3660_v62, %v3644_v50  ;;  %v3754_v0 = vadd.f32 %v3745_v21, %v3731_v29  ;;  %v16763_v29 = vld [vmem:[#allocation61_spill] sm:$0xff] }
 0x273   : >> { %v3755_v54 = vadd.f32 %v3747_v55, %v3732_v1  ;;  %v3767_v9 = vrot.slane %v3759_v19, 2  ;;  %v2004_v49 = vsel %vm517_vm0, %v2002_v58, %v2003_v43  ;;  %v2013_v42 = vsel %vm545_vm1, %v2011_v22, %v2012_v5 }
 0x274   : >> { %v3749_v15 = vsel %vm517_vm0, %v3746_v20, %v16761_v51  ;;  %v3769_v34 = vrot.slane %v3760_v10, 2  ;;  %2005 = vrot.lane.b32.xlu1 %v2004_v49, %s16370_s16  ;;  %v3797_v20 = vmul.f32 %v16762_v14, %v10670_v39  ;;  %v3805_v50 = vmul.f32 %v16762_v14, %v10683_v52 }
 0x275   : >> { %v3756_v37 = vadd.f32 %v3749_v15, %v3733_v59  ;;  %v3768_v23 = vsel %vm545_vm1, %v3766_v57, %v3767_v9  ;;  %v16764_v19 = vrot.slane %v16763_v29, 2  ;;  %v16765_v59 = vld [vmem:[#allocation38_spill] sm:$0xff]  ;;  %v13164_v55 = vmul.f32 %v12603_v3, %v10683_v52 }
 0x276   : >> { %v3770_v62 = vsel %vm545_vm1, %v3767_v9, %v3769_v34  ;;  %v3798_v10 = vmul.f32 %v16765_v59, %v10670_v39  ;;  %v3806_v43 = vmul.f32 %v16765_v59, %v10683_v52  ;;  %2016 = vrot.lane.b32.xlu0 %v2012_v5, %s16368_s27  ;;  %v3777_v21 = vadd.f32 %v3768_v23, %v3754_v0  ;;  %v16766_v57 = vld [vmem:[#allocation62_spill] sm:$0xff]  ;;  %v13169_v5 = vpop.permute.xlu0 %4093 }
 0x277   : >> { %v3772_v1 = vsel %vm545_vm1, %v3769_v34, %v16764_v19  ;;  %v3799_v58 = vmul.f32 %v16766_v57, %v10670_v39  ;;  %v3807_v22 = vmul.f32 %v16766_v57, %v10683_v52  ;;  %v3778_v51 = vadd.f32 %v3770_v62, %v3755_v54  ;;  %v13167_v34 = vpop.permute.xlu1 %4089  ;;  %v10238_v62 = vld [vmem:[%s10541_s21 + $0x8] sm:$0xff] }
 0x278   : >> { %v3779_v15 = vadd.f32 %v3772_v1, %v3756_v37  ;;  %v3813_v9 = vrot.slane %v3805_v50, 1  ;;  %v3814_v49 = vrot.slane %v3806_v43, 1  ;;  %2014 = vrot.lane.b32.xlu1 %v2013_v42, %s16368_s27  ;;  %v4469_v54 = vmul.f32 %v13167_v34, %v10616_v32 }
 0x279   : >> { %v3816_v19 = vrot.slane %v3807_v22, 1  ;;  %v13178_v37 = vmul.f32 %v13167_v34, %v16647_v36  ;;  %v13182_v42 = vmul.f32 %v13167_v34, %v10621_v33  ;;  %v4470_v50 = vmul.f32 %v13169_v5, %v10616_v32 }
 0x27a   : >> { %5071 = vperm.xlu0 %10162, %v10238_v62   ;;  %v13189_v1 = vmul.f32 %v13169_v5, %v16647_v36  ;;  %v13193_v43 = vmul.f32 %v13169_v5, %v10621_v33  ;;  %v3801_v22 = vadd.f32 %v3797_v20, %v3777_v21  ;;  %v13197_v48 = vmul.f32 %v16701_v45, %v16762_v14  ;;  %v10241_v21 = vld [vmem:[%s10541_s21 + $0x18] sm:$0xf] }
 0x27b   : >> { %16767 = vst [vmem:[#allocation57_spill] sm:$0xff] %v13178_v37  ;;  %16768 = vst [vmem:[#allocation33_spill] sm:$0xff] %v13182_v42  ;;  %v3802_v38 = vadd.f32 %v3798_v10, %v3778_v51  ;;  %v3803_v23 = vadd.f32 %v3799_v58, %v3779_v15  ;;  %v3815_v0 = vsel %vm517_vm0, %v3813_v9, %v3814_v49  ;;  %v13210_v8 = vpop.permute.xlu1 %4097  ;;  %v13225_v9 = vpop.permute.xlu0 %4578 }
 0x27c   : >> { %16769 = vst [vmem:[#allocation71_spill] sm:$0xff] %v13189_v1  ;;  %16770 = vst [vmem:[#allocation41_spill] sm:$0xff] %v13193_v43  ;;  %v3817_v61 = vsel %vm517_vm0, %v3814_v49, %v3816_v19  ;;  %5075 = vperm.xlu1 %10161, %v13202_v25   ;;  %v13206_v6 = vadd.f32 %v16409_v4, %v4469_v54  ;;  %v13213_v10 = vadd.f32 %v16409_v4, %v4470_v50  ;;  %v10350_v50 = vmov 21  }
 0x27d   : >> { %v4471_v58 = vmul.f32 %v13210_v8, %v10616_v32  ;;  %v13219_v51 = vmul.f32 %v13210_v8, %v16647_v36  ;;  %v13223_v15 = vmul.f32 %v13210_v8, %v10621_v33  ;;  %16774 = vst [vmem:[#allocation55_spill] sm:$0xff] %v13225_v9  ;;  %v16775_v49 = vrot.slane %v13164_v55, 1 }
 0x27e   : >> { %16771 = vst [vmem:[#allocation69_spill] sm:$0xff] %v13206_v6  ;;  %16772 = vst [vmem:[#allocation25_spill] sm:$0xff] %v13213_v10  ;;  %10163 = vset.pattern.permute.xlu0 %v10350_v50  ;;  %v4958_v42 = vmul.f32 %v13225_v9, %v10616_v32  ;;  %v13236_v10 = vmul.f32 %v13225_v9, %v16647_v36  ;;  %v10240_v6 = vld [vmem:[%s10541_s21] sm:$0xff]  ;;  %v13241_v37 = vmul.f32 %v13210_v8, %v10636_v47 }
 0x27f   : >> { %16773 = vst [vmem:[#allocation70_spill] sm:$0xff] %v13223_v15  ;;  %v3819_v54 = vsel %vm517_vm0, %v3816_v19, %v16775_v49  ;;  %5249 = vperm.xlu0 %10163, %v10240_v6   ;;  %v13245_v19 = vmul.f32 %v13225_v9, %v10621_v33  ;;  %v13247_v49 = vadd.f32 %v3815_v0, %v3801_v22  ;;  %v13257_v18 = vpop.permute.xlu1 %4101  ;;  %v13274_v22 = vpop.permute.xlu0 %4590 }
 0x280   : >> { %16776 = vst [vmem:[#allocation51_spill] sm:$0xff] %v13236_v10  ;;  %16777 = vst [vmem:[#allocation46_spill] sm:$0xff] %v13241_v37  ;;  %v13249_v20 = vadd.f32 %v3817_v61, %v3802_v38  ;;  %5079 = vperm.xlu1 %10161, %v10241_v21   ;;  %v13253_v43 = vadd.f32 %v16409_v4, %v4471_v58  ;;  %v13259_v37 = vadd.f32 %v3819_v54, %v3803_v23 }
 0x281   : >> { %16778 = vst [vmem:[#allocation47_spill] sm:$0xff] %v13245_v19  ;;  %v13263_v9 = vmul.f32 %v13257_v18, %v10649_v63  ;;  %v13267_v38 = vmul.f32 %v13257_v18, %v10654_v12  ;;  %v4472_v61 = vmul.f32 %v13257_v18, %v10616_v32  ;;  %v13272_v0 = vadd.f32 %v16409_v4, %v4958_v42 }
 0x282   : >> { %16779 = vst [vmem:[#allocation28_spill] sm:$0xff] %v13253_v43  ;;  %16783 = vst [vmem:[#allocation56_spill] sm:$0xff] %v13274_v22  ;;  %v4480_v23 = vmul.f32 %v13257_v18, %v16647_v36  ;;  %v13280_v58 = vmul.f32 %v13257_v18, %v10621_v33  ;;  %v13285_v6 = vmul.f32 %v13274_v22, %v10649_v63 }
 0x283   : >> { %16780 = vst [vmem:[#allocation58_spill] sm:$0xff] %v13263_v9  ;;  %16781 = vst [vmem:[#allocation23_spill] sm:$0xff] %v13267_v38  ;;  %5261 = vperm.xlu0 %10163, %v10241_v21   ;;  %v4476_v1 = vadd.f32 %v16409_v4, %v4472_v61  ;;  %v3829_v15 = vmul.f32 %v16701_v45, %v16765_v59  ;;  %v13297_v54 = vmul.f32 %v13257_v18, %v10636_v47  ;;  %v13307_v43 = vpop.permute.xlu1 %4582  ;;  %v13323_v19 = vpop.permute.xlu0 %4764 }
 0x284   : >> { %16782 = vst [vmem:[#allocation43_spill] sm:$0xff] %v13272_v0  ;;  %16784 = vst [vmem:[#allocation50_spill] sm:$0xff] %v13280_v58  ;;  %v13291_v0 = vmul.f32 %v13274_v22, %v10654_v12  ;;  %10164 = vset.pattern.permute.xlu1 %v10350_v50  ;;  %v4490_v10 = vrot.slane %v4480_v23, 1  ;;  %v13301_v21 = vmul.f32 %v13274_v22, %v10636_v47  ;;  %v16793_v38 = vrot.slane %v13219_v51, 1 }
 0x285   : >> { %16785 = vst [vmem:[#allocation52_spill] sm:$0xff] %v13285_v6  ;;  %16787 = vst [vmem:[#allocation32_spill] sm:$0xff] %v13297_v54  ;;  %v4961_v61 = vmul.f32 %v13274_v22, %v10616_v32  ;;  %5253 = vperm.xlu1 %10164, %v10238_v62   ;;  %v13311_v50 = vmul.f32 %v13274_v22, %v16647_v36  ;;  %v3830_v23 = vmul.f32 %v16701_v45, %v16766_v57 }
 0x286   : >> { %16786 = vst [vmem:[#allocation60_spill] sm:$0xff] %v13291_v0  ;;  %16788 = vst [vmem:[#allocation30_spill] sm:$0xff] %v13301_v21  ;;  %v4959_v21 = vmul.f32 %v13307_v43, %v10616_v32  ;;  %v13321_v42 = vmul.f32 %v13274_v22, %v10621_v33  ;;  %v13328_v9 = vsel %vm517_vm0, %v16793_v38, %v4490_v10  ;;  %v3837_v58 = vrot.slane %v3829_v15, 2  ;;  %v16799_v0 = vld [vmem:[#allocation34_spill] sm:$0xff] }
 0x287   : >> { %16789 = vst [vmem:[#allocation61_spill] sm:$0xff] %v13307_v43  ;;  %16790 = vst [vmem:[#allocation38_spill] sm:$0xff] %v13311_v50  ;;  %v13330_v35 = vadd.f32 %v4490_v10, %v4476_v1  ;;  %v13334_v54 = vmul.f32 %v13307_v43, %v16647_v36  ;;  %v13339_v62 = vmul.f32 %v13307_v43, %v10621_v33  ;;  %v3836_v1 = vrot.slane %v13197_v48, 2  ;;  %v13350_v10 = vpop.permute.xlu1 %4586  ;;  %v13365_v43 = vpop.permute.xlu0 %4271 }
 0x288   : >> { %16791 = vst [vmem:[#allocation62_spill] sm:$0xff] %v13321_v42  ;;  %16792 = vst [vmem:[#allocation74_spill] sm:$0xff] %v13323_v19  ;;  %v13342_v6 = vadd.f32 %v16409_v4, %v4961_v61  ;;  %v13346_v19 = vmul.f32 %v16701_v45, %v12603_v3  ;;  %v3498_v22 = vadd.f32 %v16409_v4, %v16799_v0 }
 0x289   : >> { %16794 = vst [vmem:[#allocation75_spill] sm:$0xff] %v13328_v9  ;;  %16795 = vst [vmem:[#allocation76_spill] sm:$0xff] %v13330_v35  ;;  %5257 = vperm.xlu1 %10164, %v13202_v25   ;;  %v3839_v35 = vrot.slane %v3830_v23, 2  ;;  %v13356_v61 = vadd.f32 %v16409_v4, %v4959_v21  ;;  %v13362_v48 = vmul.f32 %v13350_v10, %v16647_v36  ;;  %v16802_v21 = vrot.slane %v16734_v56, 1 }
 0x28a   : >> { %16796 = vst [vmem:[#allocation77_spill] sm:$0xff] %v13334_v54  ;;  %16797 = vst [vmem:[#allocation78_spill] sm:$0xff] %v13339_v62  ;;  %v3838_v15 = vsel %vm545_vm1, %v3836_v1, %v3837_v58  ;;  %v16326_v0 = vrot.slane %v13346_v19, 2  ;;  %v13376_v9 = vmul.f32 %v13350_v10, %v10636_v47  ;;  %v4651_v25 = vmul.f32 %v13365_v43, %v10616_v32 }
 0x28b   : >> { %16798 = vst [vmem:[#allocation79_spill] sm:$0xff] %v13342_v6  ;;  %16800 = vst [vmem:[#allocation34_spill] sm:$0xff] %v13356_v61  ;;  %v4960_v6 = vmul.f32 %v13350_v10, %v10616_v32  ;;  %v3840_v23 = vsel %vm545_vm1, %v3837_v58, %v3839_v35  ;;  %v3521_v38 = vadd.f32 %v16802_v21, %v3498_v22  ;;  %v13401_v61 = vpop.permute.xlu1 %4760 }
 0x28c   : >> { %16801 = vst [vmem:[#allocation80_spill] sm:$0xff] %v13362_v48  ;;  %16803 = vst [vmem:[#allocation81_spill] sm:$0xff] %v13376_v9  ;;  %v13384_v58 = vmul.f32 %v13365_v43, %v16647_v36  ;;  %v13388_v56 = vmul.f32 %v13365_v43, %v10621_v33  ;;  %v3842_v22 = vsel %vm545_vm1, %v3839_v35, %v16326_v0  ;;  %v13409_v35 = vpop.permute.xlu0 %4283 }
 0x28d   : >> { %10166 = vrot.lane.b32.xlu1 %v12859_v27, %s16370_s16  ;;  %v3847_v1 = vadd.f32 %v3838_v15, %v13247_v49  ;;  %v13395_v21 = vadd.f32 %v16409_v4, %v4960_v6  ;;  %v13399_v27 = vmul.f32 %v13350_v10, %v10621_v33  ;;  %16807 = vst [vmem:[#allocation85_spill] sm:$0xff] %v13401_v61  ;;  %v16808_v6 = vrot.slane %v16741_v7, 2 }
 0x28e   : >> { %16804 = vst [vmem:[#allocation82_spill] sm:$0xff] %v13388_v56  ;;  %v3848_v50 = vadd.f32 %v3840_v23, %v13249_v20  ;;  %v3849_v42 = vadd.f32 %v3842_v22, %v13259_v37  ;;  %v13407_v54 = vadd.f32 %v16409_v4, %v4651_v25  ;;  %v13417_v20 = vmul.f32 %v13409_v35, %v10649_v63 }
 0x28f   : >> { %16805 = vst [vmem:[#allocation83_spill] sm:$0xff] %v13395_v21  ;;  %16806 = vst [vmem:[#allocation84_spill] sm:$0xff] %v13399_v27  ;;  %v3851_v49 = vmax.f32 %v3847_v1, 0.0  ;;  %v3544_v15 = vadd.f32 %v16808_v6, %v3521_v38  ;;  %v13421_v37 = vmul.f32 %v13409_v35, %v10654_v12  ;;  %v13427_v25 = vmul.f32 %v13409_v35, %v16647_v36  ;;  %v13433_v22 = vpop.permute.xlu1 %4768 }
 0x290   : >> { %v13431_v7 = vmul.f32 %v13409_v35, %v10621_v33  ;;  %v3852_v38 = vmax.f32 %v3848_v50, 0.0  ;;  %v3853_v23 = vmax.f32 %v3849_v42, 0.0  ;;  %16811 = vst [vmem:[#allocation88_spill] sm:$0xff] %v13433_v22  ;;  %v13438_v6 = vmul.f32 %v13409_v35, %v10616_v32 }
 0x291   : >> { %1525 = vrot.lane.b32.xlu1 %v12864_v60, %s16368_s27  ;;  %16809 = vst [vmem:[#allocation86_spill] sm:$0xff] %v13427_v25  ;;  %v16813_v60 = vmax.f32 %v13095_v26, 0.0  ;;  %v3618_v21 = vmul.f32 %v16748_v53, %v10670_v39  ;;  %v16814_v42 = vmax.f32 %v13097_v2, 0.0  ;;  %v16815_v27 = vmax.f32 %v13138_v28, 0.0 }
 0x292   : >> { %16810 = vst [vmem:[#allocation87_spill] sm:$0xff] %v13431_v7  ;;  %16812 = vst [vmem:[#allocation89_spill] sm:$0xff] %v13438_v6  ;;  %v3552_v26 = vadd.f32 %v12916_v41, %v3544_v15  ;;  %v3800_v2 = vmul.f32 %v12603_v3, %v10670_v39  ;;  %v3981_v28 = vmul.f32 %v16746_v24, %v10616_v32  ;;  %v16820_v15 = vld [vmem:[#allocation64_spill] sm:$0xff]  ;;  %v16827_v7 = vld [vmem:[#allocation45_spill] sm:$0xff] }
 0x293   : >> { %v3855_v62 = vmax.f32 %v16813_v60, %v3851_v49  ;;  %v3856_v50 = vmax.f32 %v16814_v42, %v3852_v38  ;;  %v13450_v1 = vmax.f32 %v16815_v27, %v3853_v23  ;;  %v16816_v49 = vrot.slane %v12929_v17, 2  ;;  %v13462_v27 = vpop.permute.xlu1 %4772  ;;  %v16819_v42 = vld [vmem:[#allocation66_spill] sm:$0xff]  ;;  %v16821_v17 = vld [vmem:[#allocation21_spill] sm:$0xff] }
 0x294   : >> { %16817 = vst [vmem:[#allocation90_spill] sm:$0xff] %v13462_v27  ;;  %v16818_v38 = vrot.slane %v12905_v31, 1  ;;  %v3997_v22 = vrot.slane %v16820_v15, 1  ;;  %v3985_v6 = vadd.f32 %v16409_v4, %v3981_v28  ;;  %v4012_v27 = vmul.f32 %v16746_v24, %v10621_v33 }
 0x295   : >> { %v3863_v61 = vrot.slane %v3855_v62, 1  ;;  %v3726_v53 = vadd.f32 %v16816_v49, %v13079_v44  ;;  %v3864_v60 = vrot.slane %v3856_v50, 1  ;;  %v3866_v0 = vrot.slane %v13450_v1, 1  ;;  %v16822_v44 = vld [vmem:[#allocation29_spill] sm:$0xff] }
 0x296   : >> { %v3575_v23 = vadd.f32 %v16818_v38, %v3552_v26  ;;  %v4009_v49 = vadd.f32 %v16822_v44, %v16821_v17  ;;  %v16825_v17 = vld [vmem:[#allocation48_spill] sm:$0xff]  ;;  %v16828_v56 = vrot.slane %v16827_v7, 1  ;;  %v4013_v28 = vmul.f32 %v16747_v46, %v10621_v33 }
 0x297   : >> { %v3734_v41 = vadd.f32 %v16819_v42, %v3726_v53  ;;  %v3865_v48 = vsel %vm517_vm0, %v3863_v61, %v3864_v60  ;;  %v3867_v9 = vsel %vm517_vm0, %v3864_v60, %v3866_v0  ;;  %v16823_v53 = vrot.slane %v12908_v11, 2 }
 0x298   : >> { %v3874_v31 = vmax.f32 %v3855_v62, %v3865_v48  ;;  %v3875_v26 = vmax.f32 %v3856_v50, %v3867_v9  ;;  %v16824_v42 = vrot.slane %v16760_v40, 1  ;;  %v16826_v44 = vrot.slane %v16825_v17, 1  ;;  %v16830_v50 = vld [vmem:[#allocation63_spill] sm:$0xff] }
 0x299   : >> { %v3598_v38 = vadd.f32 %v16823_v53, %v3575_v23  ;;  %v4000_v60 = vsel %vm517_vm0, %v3997_v22, %v16828_v56  ;;  %v4020_v24 = vrot.slane %v4012_v27, 2  ;;  %v16829_v11 = vrot.slane %v16763_v29, 2  ;;  %v13492_v23 = vpop.permute.xlu1 %4275  ;;  %v16831_v53 = vld [vmem:[#allocation53_spill] sm:$0xff] }
 0x29a   : >> { %v3757_v15 = vadd.f32 %v16824_v42, %v3734_v41  ;;  %v3998_v61 = vsel %vm517_vm0, %v16826_v44, %v3997_v22  ;;  %v9380_v62 = vpack.c.bf16 %v3875_v26, %v3874_v31  ;;  %v4008_v41 = vadd.f32 %v4000_v60, %v3985_v6  ;;  %v16835_v26 = vld [vmem:[#allocation22_spill] sm:$0xff] }
 0x29b   : >> { %v3622_v9 = vadd.f32 %v3618_v21, %v3598_v38  ;;  %v4007_v40 = vadd.f32 %v3998_v61, %v16830_v50  ;;  %v16832_v42 = vrot.slane %v16831_v53, 2  ;;  %v4022_v17 = vrot.slane %v4013_v28, 2 }
 0x29c   : >> { %v3780_v48 = vadd.f32 %v16829_v11, %v3757_v15  ;;  %v4034_v56 = vmul.f32 %v16762_v14, %v10636_v47  ;;  %v4652_v46 = vmul.f32 %v13492_v23, %v10616_v32  ;;  %v13503_v29 = vmul.f32 %v13492_v23, %v16647_v36  ;;  %9381 = vmatprep.subr.bf16.mxu0 %v9380_v62 }
 0x29d   : >> { %v4021_v7 = vsel %vm545_vm1, %v16832_v42, %v4020_v24  ;;  %v13507_v21 = vmul.f32 %v13492_v23, %v10621_v33  ;;  %v16834_v22 = vrot.slane %v13034_v30, 1  ;;  %9383 = vmatpush3.bf16.msra.mxu0 %v9380_v62  ;;  %v4023_v31 = vsel %vm545_vm1, %v4020_v24, %v4022_v17 }
 0x29e   : >> { %v3804_v27 = vadd.f32 %v3800_v2, %v3780_v48  ;;  %v16836_v38 = vrot.slane %v16835_v26, 2  ;;  %v4030_v44 = vadd.f32 %v4021_v7, %v4007_v40  ;;  %v13516_v61 = vadd.f32 %v16409_v4, %v4652_v46 }
 0x29f   : >> { %16833 = vst [vmem:[#allocation66_spill] sm:$0xff] %v13507_v21  ;;  %v3645_v6 = vadd.f32 %v16834_v22, %v3622_v9  ;;  %v16838_v11 = vrot.slane %v13059_v13, 2  ;;  %v13522_v9 = vpop.permute.xlu1 %4279  ;;  %v16839_v2 = vrot.slane %v13164_v55, 1  ;;  %v4031_v62 = vadd.f32 %v4023_v31, %v4008_v41 }
 0x2a0   : >> { %v4025_v15 = vsel %vm545_vm1, %v4022_v17, %v16836_v38  ;;  %16837 = vst [vmem:[#allocation64_spill] sm:$0xff] %v13516_v61  ;;  %v4035_v50 = vmul.f32 %v16765_v59, %v10636_v47  ;;  %v13530_v40 = vmul.f32 %v13522_v9, %v10636_v47  ;;  %v4653_v53 = vmul.f32 %v13522_v9, %v10616_v32 }
 0x2a1   : >> { %v3668_v30 = vadd.f32 %v16838_v11, %v3645_v6  ;;  %v3827_v24 = vadd.f32 %v16839_v2, %v3804_v27  ;;  %v4032_v48 = vadd.f32 %v4025_v15, %v4009_v49  ;;  %v13536_v13 = vmul.f32 %v13522_v9, %v16647_v36 }
 0x2a2   : >> { %v13540_v55 = vmul.f32 %v13522_v9, %v10621_v33  ;;  %v16841_v49 = vrot.slane %v13346_v19, 2  ;;  %v4036_v7 = vmul.f32 %v16766_v57, %v10636_v47  ;;  %v4038_v17 = vadd.f32 %v4034_v56, %v4030_v44 }
 0x2a3   : >> { %v3672_v41 = vmax.f32 %v3668_v30, 0.0  ;;  %v13547_v46 = vadd.f32 %v16409_v4, %v4653_v53  ;;  %v16336_v22 = vrot.slane %v13536_v13, 1  ;;  %v4039_v27 = vadd.f32 %v4035_v50, %v4031_v62  ;;  %v16843_v30 = vld [vmem:[#allocation35_spill] sm:$0xff] }
 0x2a4   : >> { %16840 = vst [vmem:[#allocation21_spill] sm:$0xff] %v13540_v55  ;;  %v3850_v42 = vadd.f32 %v16841_v49, %v3827_v24  ;;  %v4040_v38 = vadd.f32 %v4036_v7, %v4032_v48  ;;  %v4042_v15 = vmul.f32 %v16762_v14, %v10649_v63  ;;  %v4043_v19 = vmul.f32 %v16765_v59, %v10649_v63 }
 0x2a5   : >> { %v16842_v11 = vrot.slane %v13427_v25, 1  ;;  %v4044_v44 = vmul.f32 %v16766_v57, %v10649_v63  ;;  %v16345_v2 = vrot.slane %v16843_v30, 1  ;;  %v4065_v24 = vmul.f32 %v16762_v14, %v10654_v12 }
 0x2a6   : >> { %v3854_v31 = vmax.f32 %v3850_v42, 0.0  ;;  %v4050_v48 = vrot.slane %v4042_v15, 1  ;;  %v4051_v50 = vrot.slane %v4043_v19, 1  ;;  %v4066_v53 = vmul.f32 %v16765_v59, %v10654_v12 }
 0x2a7   : >> { %v13560_v56 = vsel %vm517_vm0, %v16336_v22, %v16842_v11  ;;  %v4053_v49 = vrot.slane %v4044_v44, 1  ;;  %v4067_v42 = vmul.f32 %v16766_v57, %v10654_v12  ;;  %v13573_v7 = vmul.f32 %v12603_v3, %v10654_v12 }
 0x2a8   : >> { %v3858_v62 = vmax.f32 %v3672_v41, %v3854_v31  ;;  %v4073_v11 = vrot.slane %v4065_v24, 2  ;;  %v4052_v28 = vsel %vm517_vm0, %v4050_v48, %v4051_v50  ;;  %v4074_v22 = vrot.slane %v4066_v53, 2 }
 0x2a9   : >> { %v4104_v41 = vmul.f32 %v13167_v34, %v10670_v39  ;;  %v4054_v31 = vsel %vm517_vm0, %v4051_v50, %v4053_v49  ;;  %v4056_v59 = vsel %vm517_vm0, %v4053_v49, %v16345_v2  ;;  %v4061_v15 = vadd.f32 %v4052_v28, %v4038_v17 }
 0x2aa   : >> { %v3868_v6 = vrot.slane %v3858_v62, 1  ;;  %v4076_v19 = vrot.slane %v4067_v42, 2  ;;  %v4062_v60 = vadd.f32 %v4054_v31, %v4039_v27  ;;  %v4063_v36 = vadd.f32 %v4056_v59, %v4040_v38 }
 0x2ab   : >> { %v4075_v53 = vsel %vm545_vm1, %v4073_v11, %v4074_v22  ;;  %v16344_v50 = vrot.slane %v13573_v7, 2  ;;  %v4105_v28 = vmul.f32 %v13169_v5, %v10670_v39  ;;  %v4106_v17 = vmul.f32 %v13210_v8, %v10670_v39 }
 0x2ac   : >> { %v3869_v44 = vsel %vm517_vm0, %v3866_v0, %v3868_v6  ;;  %v3877_v24 = vmax.f32 %v3858_v62, %v3868_v6  ;;  %v4077_v25 = vsel %vm545_vm1, %v4074_v22, %v4076_v19  ;;  %v4084_v55 = vadd.f32 %v4075_v53, %v4061_v15 }
 0x2ad   : >> { %v3876_v48 = vmax.f32 %v13450_v1, %v3869_v44  ;;  %v4085_v21 = vadd.f32 %v4077_v25, %v4062_v60  ;;  %v4079_v6 = vsel %vm545_vm1, %v4076_v19, %v16344_v50  ;;  %v4112_v1 = vmul.f32 %v13167_v34, %v10683_v52  ;;  %v13622_v44 = vpop.f32.mrb[2].mxu1 }
 0x2ae   : >> { %v4113_v22 = vmul.f32 %v13169_v5, %v10683_v52  ;;  %v4086_v27 = vadd.f32 %v4079_v6, %v4063_v36  ;;  %v4108_v38 = vadd.f32 %v4104_v41, %v4084_v55  ;;  %v4114_v60 = vmul.f32 %v13210_v8, %v10683_v52  ;;  %16844 = vst [vmem:[#allocation29_spill] sm:$0xff] %v13622_v44  ;;  %v13627_v6 = vpop.f32.mrb[3].mxu1 }
 0x2af   : >> { %v9384_v0 = vpack.c.bf16 %v3877_v24, %v3876_v48  ;;  %v4109_v25 = vadd.f32 %v4105_v28, %v4085_v21  ;;  %v13606_v62 = vmul.f32 %v13257_v18, %v10683_v52  ;;  %v4120_v49 = vrot.slane %v4112_v1, 1  ;;  %16845 = vst [vmem:[#allocation48_spill] sm:$0xff] %v13627_v6 }
 0x2b0   : >> { %v4121_v42 = vrot.slane %v4113_v22, 1  ;;  %v4135_v11 = vmul.f32 %v16701_v45, %v13167_v34  ;;  %v4110_v36 = vadd.f32 %v4106_v17, %v4086_v27  ;;  %v4123_v21 = vrot.slane %v4114_v60, 1  ;;  %v16846_v27 = vld [vmem:[#allocation13_spill] sm:$0xff] }
 0x2b1   : >> { %9386 = vmatprep.subr.msk.bf16.mxu0 %vm11185_vm4, %v9384_v0  ;;  %v4136_v55 = vmul.f32 %v16701_v45, %v13169_v5  ;;  %v4137_v41 = vmul.f32 %v16701_v45, %v13210_v8  ;;  %v16343_v59 = vrot.slane %v13606_v62, 1  ;;  %v13620_v15 = vmul.f32 %v16701_v45, %v13257_v18 }
 0x2b2   : >> { %9389 = vmatpush3.bf16.msk.msra.mxu0 %vm11185_vm4, %v9384_v0  ;;  %v4122_v31 = vsel %vm517_vm0, %v4120_v49, %v4121_v42  ;;  %v4143_v19 = vrot.slane %v4135_v11, 2  ;;  %v4124_v24 = vsel %vm517_vm0, %v4121_v42, %v4123_v21  ;;  %v2492_v17 = vrot.slane %v13622_v44, 1  ;;  %v16847_v11 = vld [vmem:[#allocation9_spill] sm:$0xff] }
 0x2b3   : >> { %v4131_v48 = vadd.f32 %v4122_v31, %v4108_v38  ;;  %v4144_v53 = vrot.slane %v4136_v55, 2  ;;  %v4146_v28 = vrot.slane %v4137_v41, 2  ;;  %v2501_v0 = vrot.slane %v13622_v44, 2 }
 0x2b4   : >> { %v4126_v1 = vsel %vm517_vm0, %v4123_v21, %v16343_v59  ;;  %v4132_v22 = vadd.f32 %v4124_v24, %v4109_v25  ;;  %v2491_v60 = vrot.slane %v13627_v6, 1  ;;  %v2500_v38 = vrot.slane %v13627_v6, 2  ;;  %2496 = vrot.lane.b32.xlu1 %v2492_v17, %s16370_s16  ;;  %v16849_v59 = vld [vmem:[#allocation26_spill] sm:$0xff] }
 0x2b5   : >> { %9131 = vmatmul.mubr.msk.f32.vlgmr.msra.gmra.mrb[6].mxu0 %vm934_vm5, %v16846_v27  ;;  %v4133_v49 = vadd.f32 %v4126_v1, %v4110_v36  ;;  %v4145_v42 = vsel %vm545_vm1, %v4143_v19, %v4144_v53  ;;  %v4147_v55 = vsel %vm545_vm1, %v4144_v53, %v4146_v28  ;;  %v16346_v21 = vrot.slane %v13620_v15, 2  ;;  %v16848_v19 = vld [vmem:[#allocation54_spill] sm:$0xff] }
 0x2b6   : >> { %9152 = vmatprep.mubr.msk.f32.mxu0 %vm934_vm5, %v16847_v11  ;;  %v13642_v25 = vadd.f32 %v4145_v42, %v4131_v48  ;;  %v4162_v41 = vmul.f32 %v16762_v14, %v10616_v32  ;;  %v2493_v31 = vsel %vm517_vm0, %v2491_v60, %v2492_v17  ;;  %v2502_v36 = vsel %vm545_vm1, %v2500_v38, %v2501_v0  ;;  %v16856_v17 = vld [vmem:[#allocation73_spill] sm:$0xff] }
 0x2b7   : >> { %v13648_v24 = vadd.f32 %v4147_v55, %v4132_v22  ;;  %v4178_v1 = vrot.slane %v16848_v19, 1  ;;  %2494 = vrot.lane.b32.xlu0 %v2493_v31, %s16370_s16  ;;  %v4149_v53 = vsel %vm545_vm1, %v4146_v28, %v16346_v21  ;;  %v4181_v50 = vrot.slane %v16849_v59, 1  ;;  %v16850_v22 = vld [vmem:[#allocation49_spill] sm:$0xff] }
 0x2b8   : >> { %v4166_v42 = vadd.f32 %v16409_v4, %v4162_v41  ;;  %v13658_v2 = vadd.f32 %v4149_v53, %v4133_v49  ;;  %v16851_v60 = vrot.slane %v16850_v22, 1  ;;  %v4193_v55 = vmul.f32 %v16762_v14, %v10621_v33  ;;  %2505 = vrot.lane.b32.xlu1 %v2501_v0, %s16368_s27  ;;  %v16853_v41 = vld [vmem:[#allocation40_spill] sm:$0xff]  ;;  %v16862_v32 = vld [vmem:[#allocation37_spill] sm:$0xff] }
 0x2b9   : >> { %v16854_v19 = vrot.slane %v16853_v41, 1  ;;  %v4195_v53 = vmul.f32 %v16766_v57, %v10621_v33  ;;  %v4216_v22 = vmul.f32 %v13167_v34, %v10636_v47  ;;  %v16857_v57 = vld [vmem:[#allocation24_spill] sm:$0xff]  ;;  %v16863_v11 = vrot.slane %v16862_v32, 2 }
 0x2ba   : >> { %v4180_v38 = vsel %vm517_vm0, %v4178_v1, %v16851_v60  ;;  %v16852_v28 = vmov %v16851_v60  ;;  %v16855_v1 = vld [vmem:[#allocation65_spill] sm:$0xff]  ;;  %v4201_v48 = vrot.slane %v4193_v55, 2  ;;  %v4247_v55 = vmul.f32 %v13167_v34, %v10654_v12 }
 0x2bb   : >> { %v4182_v31 = vsel %vm517_vm0, %v16852_v28, %v4181_v50  ;;  %v4184_v59 = vsel %vm517_vm0, %v4181_v50, %v16854_v19  ;;  %v4189_v49 = vadd.f32 %v4180_v38, %v4166_v42  ;;  %2503 = vrot.lane.b32.xlu0 %v2502_v36, %s16368_s27  ;;  %v4204_v0 = vrot.slane %v4195_v53, 2 }
 0x2bc   : >> { %v4190_v60 = vadd.f32 %v4182_v31, %v16855_v1  ;;  %v4191_v14 = vadd.f32 %v4184_v59, %v16856_v17  ;;  %v4217_v50 = vmul.f32 %v13169_v5, %v10636_v47  ;;  %v4224_v42 = vmul.f32 %v13167_v34, %v10649_v63  ;;  %v16860_v59 = vld [vmem:[#allocation68_spill] sm:$0xff] }
 0x2bd   : >> { %v16858_v38 = vrot.slane %v16857_v57, 2  ;;  %v4225_v17 = vmul.f32 %v13169_v5, %v10649_v63  ;;  %v4226_v36 = vmul.f32 %v13210_v8, %v10649_v63  ;;  %v16861_v53 = vrot.slane %v16860_v59, 2 }
 0x2be   : >> { %v4232_v44 = vrot.slane %v4224_v42, 1  ;;  %v4248_v34 = vmul.f32 %v13169_v5, %v10654_v12  ;;  %v4249_v57 = vmul.f32 %v13210_v8, %v10654_v12  ;;  %v16865_v42 = vld [vmem:[#allocation58_spill] sm:$0xff]  ;;  %v4286_v8 = vmul.f32 %v13365_v43, %v10670_v39 }
 0x2bf   : >> { %v4203_v28 = vsel %vm545_vm1, %v4201_v48, %v16858_v38  ;;  %v16859_v31 = vmov %v16858_v38  ;;  %v4207_v1 = vsel %vm545_vm1, %v4204_v0, %v16861_v53  ;;  %v4233_v6 = vrot.slane %v4225_v17, 1  ;;  %1527 = vrot.lane.b32.xlu0 %v16863_v11, %s16368_s27 }
 0x2c0   : >> { %v4205_v19 = vsel %vm545_vm1, %v16859_v31, %v4204_v0  ;;  %v4212_v21 = vadd.f32 %v4203_v28, %v4189_v49  ;;  %v4214_v38 = vadd.f32 %v4207_v1, %v4191_v14  ;;  %v4235_v33 = vrot.slane %v4226_v36, 1  ;;  %v16864_v0 = vld [vmem:[#allocation46_spill] sm:$0xff] }
 0x2c1   : >> { %v4213_v48 = vadd.f32 %v4205_v19, %v4190_v60  ;;  %v4255_v31 = vrot.slane %v4247_v55, 2  ;;  %v4234_v60 = vsel %vm517_vm0, %v4232_v44, %v4233_v6  ;;  %v16866_v28 = vrot.slane %v16865_v42, 1 }
 0x2c2   : >> { %v4220_v27 = vadd.f32 %v4216_v22, %v4212_v21  ;;  %v4222_v49 = vadd.f32 %v16864_v0, %v4214_v38  ;;  %v4236_v14 = vsel %vm517_vm0, %v4233_v6, %v4235_v33  ;;  %v4256_v21 = vrot.slane %v4248_v34, 2  ;;  %v16867_v6 = vld [vmem:[#allocation23_spill] sm:$0xff] }
 0x2c3   : >> { %v4221_v61 = vadd.f32 %v4217_v50, %v4213_v48  ;;  %v4238_v17 = vsel %vm517_vm0, %v4235_v33, %v16866_v28  ;;  %v4258_v22 = vrot.slane %v4249_v57, 2  ;;  %v4287_v50 = vmul.f32 %v13492_v23, %v10670_v39 }
 0x2c4   : >> { %v4243_v11 = vadd.f32 %v4234_v60, %v4220_v27  ;;  %v4245_v5 = vadd.f32 %v4238_v17, %v4222_v49  ;;  %v4257_v55 = vsel %vm545_vm1, %v4255_v31, %v4256_v21  ;;  %v16868_v19 = vrot.slane %v16867_v6, 2 }
 0x2c5   : >> { %v4244_v36 = vadd.f32 %v4236_v14, %v4221_v61  ;;  %v4259_v44 = vsel %vm545_vm1, %v4256_v21, %v4258_v22  ;;  %v4288_v33 = vmul.f32 %v13522_v9, %v10670_v39  ;;  %v4294_v48 = vmul.f32 %v13365_v43, %v10683_v52 }
 0x2c6   : >> { %v4261_v53 = vsel %vm545_vm1, %v4258_v22, %v16868_v19  ;;  %v4266_v27 = vadd.f32 %v4257_v55, %v4243_v11  ;;  %v4295_v38 = vmul.f32 %v13492_v23, %v10683_v52  ;;  %v4296_v34 = vmul.f32 %v13522_v9, %v10683_v52  ;;  %v16869_v55 = vld [vmem:[#allocation72_spill] sm:$0xff] }
 0x2c7   : >> { %v4267_v61 = vadd.f32 %v4259_v44, %v4244_v36  ;;  %v4268_v1 = vadd.f32 %v4261_v53, %v4245_v5  ;;  %v13732_v57 = vmul.f32 %v13409_v35, %v10683_v52  ;;  %v4317_v31 = vmul.f32 %v16701_v45, %v13365_v43 }
 0x2c8   : >> { %v4290_v0 = vadd.f32 %v4286_v8, %v4266_v27  ;;  %v4302_v14 = vrot.slane %v4294_v48, 1  ;;  %v4303_v28 = vrot.slane %v4295_v38, 1  ;;  %v4305_v17 = vrot.slane %v4296_v34, 1 }
 0x2c9   : >> { %v4291_v49 = vadd.f32 %v4287_v50, %v4267_v61  ;;  %v4292_v60 = vadd.f32 %v4288_v33, %v4268_v1  ;;  %v4307_v11 = vrot.slane %v13732_v57, 1  ;;  %v4318_v21 = vmul.f32 %v16701_v45, %v13492_v23 }
 0x2ca   : >> { %v4319_v22 = vmul.f32 %v16701_v45, %v13522_v9  ;;  %v13743_v36 = vmul.f32 %v16701_v45, %v13409_v35  ;;  %v4325_v5 = vrot.slane %v4317_v31, 2  ;;  %v16870_v8 = vrot.slane %v16835_v26, 2 }
 0x2cb   : >> { %v4304_v44 = vsel %vm517_vm0, %v4302_v14, %v4303_v28  ;;  %v4306_v19 = vsel %vm517_vm0, %v4303_v28, %v4305_v17  ;;  %v4308_v53 = vsel %vm517_vm0, %v4305_v17, %v4307_v11  ;;  %v4326_v33 = vrot.slane %v4318_v21, 2 }
 0x2cc   : >> { %v4033_v50 = vadd.f32 %v16870_v8, %v16869_v55  ;;  %v4313_v27 = vadd.f32 %v4304_v44, %v4290_v0  ;;  %v4314_v61 = vadd.f32 %v4306_v19, %v4291_v49  ;;  %v4315_v1 = vadd.f32 %v4308_v53, %v4292_v60  ;;  %v16871_v55 = vld [vmem:[#allocation44_spill] sm:$0xff] }
 0x2cd   : >> { %v4328_v48 = vrot.slane %v4319_v22, 2  ;;  %v4327_v38 = vsel %vm545_vm1, %v4325_v5, %v4326_v33  ;;  %v16353_v34 = vrot.slane %v13743_v36, 2  ;;  %v4037_v26 = vmul.f32 %v12603_v3, %v10636_v47  ;;  %v16872_v22 = vld [vmem:[#allocation71_spill] sm:$0xff]  ;;  %v16874_v5 = vld [vmem:[#allocation57_spill] sm:$0xff] }
 0x2ce   : >> { %v4107_v31 = vmul.f32 %v13257_v18, %v10670_v39  ;;  %v4336_v28 = vadd.f32 %v4327_v38, %v4313_v27  ;;  %v4169_v17 = vadd.f32 %v16409_v4, %v16871_v55  ;;  %v4289_v0 = vmul.f32 %v13409_v35, %v10670_v39 }
 0x2cf   : >> { %v4329_v14 = vsel %vm545_vm1, %v4326_v33, %v4328_v48  ;;  %v4331_v49 = vsel %vm545_vm1, %v4328_v48, %v16353_v34  ;;  %v4041_v21 = vadd.f32 %v4037_v26, %v4033_v50  ;;  %v16873_v3 = vrot.slane %v16872_v22, 1  ;;  %v16880_v26 = vld [vmem:[#allocation69_spill] sm:$0xff] }
 0x2d0   : >> { %v4337_v60 = vadd.f32 %v4329_v14, %v4314_v61  ;;  %v16875_v8 = vrot.slane %v16874_v5, 1  ;;  %v4338_v44 = vadd.f32 %v4331_v49, %v4315_v1  ;;  %v4340_v19 = vmax.f32 %v4336_v28, 0.0  ;;  %v16881_v5 = vld [vmem:[#allocation25_spill] sm:$0xff]  ;;  %v16885_v49 = vld [vmem:[#allocation75_spill] sm:$0xff] }
 0x2d1   : >> { %v16876_v53 = vrot.slane %v16853_v41, 1  ;;  %v16877_v27 = vrot.slane %v13219_v51, 1  ;;  %v16878_v38 = vmov %v16873_v3  ;;  %v16879_v50 = vrot.slane %v16843_v30, 1  ;;  %v16884_v51 = vld [vmem:[#allocation28_spill] sm:$0xff] }
 0x2d2   : >> { %v4487_v18 = vsel %vm517_vm0, %v16875_v8, %v16873_v3  ;;  %v4341_v48 = vmax.f32 %v4337_v60, 0.0  ;;  %v4342_v3 = vmax.f32 %v4338_v44, 0.0  ;;  %v16882_v1 = vmax.f32 %v13642_v25, 0.0  ;;  %v16892_v25 = vld [vmem:[#allocation70_spill] sm:$0xff] }
 0x2d3   : >> { %v4192_v33 = vadd.f32 %v16876_v53, %v4169_v17  ;;  %v4489_v55 = vsel %vm517_vm0, %v16878_v38, %v16877_v27  ;;  %v4064_v61 = vadd.f32 %v16879_v50, %v4041_v21  ;;  %v4496_v14 = vadd.f32 %v4487_v18, %v16880_v26  ;;  %v16888_v53 = vld [vmem:[#allocation41_spill] sm:$0xff] }
 0x2d4   : >> { %v4497_v34 = vadd.f32 %v4489_v55, %v16881_v5  ;;  %v4344_v28 = vmax.f32 %v16882_v1, %v4340_v19  ;;  %v16883_v41 = vrot.slane %v16860_v59, 2  ;;  %v4498_v22 = vadd.f32 %v16885_v49, %v16884_v51  ;;  %v16890_v27 = vld [vmem:[#allocation33_spill] sm:$0xff] }
 0x2d5   : >> { %v16886_v8 = vmax.f32 %v13648_v24, 0.0  ;;  %v16887_v30 = vrot.slane %v13573_v7, 2  ;;  %v16889_v18 = vrot.slane %v16888_v53, 2  ;;  %v16891_v38 = vrot.slane %v16890_v27, 2 }
 0x2d6   : >> { %v4215_v17 = vadd.f32 %v16883_v41, %v4192_v33  ;;  %v16893_v19 = vrot.slane %v16892_v25, 2  ;;  %v16895_v55 = vmax.f32 %v13658_v2, 0.0  ;;  %v4352_v24 = vrot.slane %v4344_v28, 1 }
 0x2d7   : >> { %v4345_v60 = vmax.f32 %v16886_v8, %v4341_v48  ;;  %v4087_v21 = vadd.f32 %v16887_v30, %v4064_v61  ;;  %v4510_v44 = vsel %vm545_vm1, %v16891_v38, %v16889_v18  ;;  %v16894_v59 = vmov %v16889_v18  ;;  %v16896_v48 = vld [vmem:[#allocation32_spill] sm:$0xff]  ;;  %v16897_v61 = vld [vmem:[#allocation50_spill] sm:$0xff] }
 0x2d8   : >> { %v4512_v33 = vsel %vm545_vm1, %v16894_v59, %v16893_v19  ;;  %v13805_v50 = vmax.f32 %v16895_v55, %v4342_v3  ;;  %v4223_v7 = vadd.f32 %v16896_v48, %v4215_v17  ;;  %v16898_v26 = vrot.slane %v16897_v61, 2 }
 0x2d9   : >> { %v16899_v5 = vmov %v16893_v19  ;;  %v4353_v41 = vrot.slane %v4345_v60, 1  ;;  %v4111_v51 = vadd.f32 %v4107_v31, %v4087_v21  ;;  %v4519_v49 = vadd.f32 %v4510_v44, %v4496_v14 }
 0x2da   : >> { %v4514_v1 = vsel %vm545_vm1, %v16899_v5, %v16898_v26  ;;  %v4520_v8 = vadd.f32 %v4512_v33, %v4497_v34  ;;  %v4355_v30 = vrot.slane %v13805_v50, 1  ;;  %v16900_v53 = vrot.slane %v16865_v42, 1 }
 0x2db   : >> { %v4521_v3 = vadd.f32 %v4514_v1, %v4498_v22  ;;  %v4523_v18 = vmul.f32 %v13365_v43, %v10636_v47  ;;  %v4354_v17 = vsel %vm517_vm0, %v4352_v24, %v4353_v41  ;;  %v16901_v27 = vrot.slane %v13606_v62, 1 }
 0x2dc   : >> { %v4246_v2 = vadd.f32 %v16900_v53, %v4223_v7  ;;  %v4524_v25 = vmul.f32 %v13492_v23, %v10636_v47  ;;  %v4531_v34 = vmul.f32 %v13365_v43, %v10649_v63  ;;  %v4356_v42 = vsel %vm517_vm0, %v4353_v41, %v4355_v30 }
 0x2dd   : >> { %v4134_v38 = vadd.f32 %v16901_v27, %v4111_v51  ;;  %v4363_v31 = vmax.f32 %v4344_v28, %v4354_v17  ;;  %v16902_v14 = vrot.slane %v16867_v6, 2  ;;  %v4527_v21 = vadd.f32 %v4523_v18, %v4519_v49  ;;  %v16904_v51 = vld [vmem:[#allocation55_spill] sm:$0xff] }
 0x2de   : >> { %v4364_v44 = vmax.f32 %v4345_v60, %v4356_v42  ;;  %v16903_v19 = vrot.slane %v13620_v15, 2  ;;  %v4528_v59 = vadd.f32 %v4524_v25, %v4520_v8  ;;  %v4529_v33 = vadd.f32 %v13530_v40, %v4521_v3  ;;  %v16905_v8 = vld [vmem:[#allocation61_spill] sm:$0xff] }
 0x2df   : >> { %v4269_v22 = vadd.f32 %v16902_v14, %v4246_v2  ;;  %v4532_v24 = vmul.f32 %v13492_v23, %v10649_v63  ;;  %v4533_v48 = vmul.f32 %v13522_v9, %v10649_v63  ;;  %v4539_v7 = vrot.slane %v4531_v34, 1 }
 0x2e0   : >> { %v4157_v62 = vadd.f32 %v16903_v19, %v4134_v38  ;;  %v9390_v28 = vpack.c.bf16 %v4364_v44, %v4363_v31  ;;  %v4554_v6 = vmul.f32 %v13365_v43, %v10654_v12  ;;  %v4555_v15 = vmul.f32 %v13492_v23, %v10654_v12 }
 0x2e1   : >> { %v4293_v55 = vadd.f32 %v4289_v0, %v4269_v22  ;;  %v4540_v40 = vrot.slane %v4532_v24, 1  ;;  %v4542_v0 = vrot.slane %v4533_v48, 1  ;;  %v4556_v5 = vmul.f32 %v13522_v9, %v10654_v12  ;;  %v16908_v22 = vld [vmem:[#allocation56_spill] sm:$0xff] }
 0x2e2   : >> { %v4161_v26 = vmax.f32 %v4157_v62, 0.0  ;;  %9391 = vmatprep.subr.bf16.mxu1 %v9390_v28  ;;  %v4562_v1 = vrot.slane %v4554_v6, 2  ;;  %v4563_v41 = vrot.slane %v4555_v15, 2  ;;  %v4593_v49 = vmul.f32 %v16904_v51, %v10670_v39 }
 0x2e3   : >> { %v4316_v60 = vadd.f32 %v4307_v11, %v4293_v55  ;;  %v4594_v43 = vmul.f32 %v16905_v8, %v10670_v39  ;;  %9393 = vmatpush3.bf16.msra.mxu1 %v9390_v28  ;;  %v16906_v23 = vrot.slane %v13743_v36, 2  ;;  %v4541_v57 = vsel %vm517_vm0, %v4539_v7, %v4540_v40 }
 0x2e4   : >> { %v4543_v11 = vsel %vm517_vm0, %v4540_v40, %v4542_v0  ;;  %v16907_v2 = vrot.slane %v13417_v20, 1  ;;  %v4550_v3 = vadd.f32 %v4541_v57, %v4527_v21  ;;  %v4564_v27 = vsel %vm545_vm1, %v4562_v1, %v4563_v41 }
 0x2e5   : >> { %v4339_v53 = vadd.f32 %v16906_v23, %v4316_v60  ;;  %v4551_v18 = vadd.f32 %v4543_v11, %v4528_v59  ;;  %v4565_v25 = vrot.slane %v4556_v5, 2  ;;  %v4595_v34 = vmul.f32 %v13350_v10, %v10670_v39 }
 0x2e6   : >> { %v4545_v9 = vsel %vm517_vm0, %v4542_v0, %v16907_v2  ;;  %v4601_v36 = vmul.f32 %v16904_v51, %v10683_v52  ;;  %v4573_v42 = vadd.f32 %v4564_v27, %v4550_v3  ;;  %v4602_v31 = vmul.f32 %v16905_v8, %v10683_v52 }
 0x2e7   : >> { %v4552_v17 = vadd.f32 %v4545_v9, %v4529_v33  ;;  %v4343_v38 = vmax.f32 %v4339_v53, 0.0  ;;  %v4603_v14 = vmul.f32 %v13350_v10, %v10683_v52  ;;  %v13867_v21 = vmul.f32 %v16908_v22, %v10683_v52 }
 0x2e8   : >> { %v4566_v19 = vsel %vm545_vm1, %v4563_v41, %v4565_v25  ;;  %v16909_v62 = vrot.slane %v13421_v37, 2  ;;  %v4609_v33 = vrot.slane %v4601_v36, 1  ;;  %v4597_v48 = vadd.f32 %v4593_v49, %v4573_v42 }
 0x2e9   : >> { %v4347_v44 = vmax.f32 %v4161_v26, %v4343_v38  ;;  %v4574_v55 = vadd.f32 %v4566_v19, %v4551_v18  ;;  %v4610_v7 = vrot.slane %v4602_v31, 1  ;;  %v4612_v6 = vrot.slane %v4603_v14, 1 }
 0x2ea   : >> { %v4568_v59 = vsel %vm545_vm1, %v4565_v25, %v16909_v62  ;;  %v4614_v15 = vrot.slane %v13867_v21, 1  ;;  %v4624_v60 = vmul.f32 %v16701_v45, %v16904_v51  ;;  %v4625_v5 = vmul.f32 %v16701_v45, %v16905_v8  ;;  %v16980_v21 = vld [vmem:[#allocation62_spill] sm:$0xff] }
 0x2eb   : >> { %v4575_v24 = vadd.f32 %v4568_v59, %v4552_v17  ;;  %v4357_v28 = vrot.slane %v4347_v44, 1  ;;  %v4598_v40 = vadd.f32 %v4594_v43, %v4574_v55  ;;  %v4611_v0 = vsel %vm517_vm0, %v4609_v33, %v4610_v7  ;;  %v16917_v59 = vld [vmem:[#allocation82_spill] sm:$0xff] }
 0x2ec   : >> { %v4613_v49 = vsel %vm517_vm0, %v4610_v7, %v4612_v6  ;;  %v4615_v23 = vsel %vm517_vm0, %v4612_v6, %v4614_v15  ;;  %v4620_v43 = vadd.f32 %v4611_v0, %v4597_v48  ;;  %v4626_v2 = vmul.f32 %v16701_v45, %v13350_v10  ;;  %v13934_v0 = vpop.f32.mrb[4].mxu0 }
 0x2ed   : >> { %v4599_v26 = vadd.f32 %v4595_v34, %v4575_v24  ;;  %v4358_v1 = vsel %vm517_vm0, %v4355_v30, %v4357_v28  ;;  %v4366_v41 = vmax.f32 %v4347_v44, %v4357_v28  ;;  %v4621_v57 = vadd.f32 %v4613_v49, %v4598_v40  ;;  %v16922_v28 = vld [vmem:[#allocation87_spill] sm:$0xff] }
 0x2ee   : >> { %v4365_v53 = vmax.f32 %v13805_v50, %v4358_v1  ;;  %v13891_v9 = vmul.f32 %v16701_v45, %v16908_v22  ;;  %v4632_v30 = vrot.slane %v4624_v60, 2  ;;  %v4633_v3 = vrot.slane %v4625_v5, 2  ;;  %v16925_v5 = vld [vmem:[#allocation89_spill] sm:$0xff] }
 0x2ef   : >> { %v4622_v11 = vadd.f32 %v4615_v23, %v4599_v26  ;;  %v16910_v17 = vrot.slane %v13503_v29, 1  ;;  %v16911_v27 = vrot.slane %v13384_v58, 1  ;;  %v16912_v50 = vrot.slane %v13536_v13, 1  ;;  %v16914_v13 = vld [vmem:[#allocation64_spill] sm:$0xff]  ;;  %v16915_v29 = vld [vmem:[#allocation66_spill] sm:$0xff] }
 0x2f0   : >> { %v9394_v18 = vpack.c.bf16 %v4366_v41, %v4365_v53  ;;  %v4680_v36 = vadd.f32 %v13560_v56, %v13547_v46  ;;  %v4634_v42 = vsel %vm545_vm1, %v4632_v30, %v4633_v3  ;;  %v4635_v31 = vrot.slane %v4626_v2, 2  ;;  %v16919_v56 = vld [vmem:[#allocation21_spill] sm:$0xff]  ;;  %v13944_v53 = vpop.f32.mrb[5].mxu0 }
 0x2f1   : >> { %v4669_v38 = vsel %vm517_vm0, %v16911_v27, %v16910_v17  ;;  %v16913_v25 = vmov %v16910_v17  ;;  %v16358_v14 = vrot.slane %v13891_v9, 2  ;;  %v13910_v58 = vadd.f32 %v4634_v42, %v4620_v43  ;;  %v16928_v42 = vld [vmem:[#allocation9_spill] sm:$0xff] }
 0x2f2   : >> { %v4671_v34 = vsel %vm517_vm0, %v16913_v25, %v16912_v50  ;;  %v4678_v44 = vadd.f32 %v4669_v38, %v13407_v54  ;;  %9396 = vmatprep.subr.msk.bf16.mxu1 %vm11185_vm4, %v9394_v18  ;;  %v16916_v62 = vrot.slane %v16915_v29, 2  ;;  %v16918_v33 = vrot.slane %v16917_v59, 2  ;;  %v16927_v25 = vld [vmem:[#allocation81_spill] sm:$0xff] }
 0x2f3   : >> { %v4679_v19 = vadd.f32 %v4671_v34, %v16914_v13  ;;  %v16920_v55 = vrot.slane %v16919_v56, 2  ;;  %9399 = vmatpush3.bf16.msk.msra.mxu1 %vm11185_vm4, %v9394_v18  ;;  %v4636_v54 = vsel %vm545_vm1, %v4633_v3, %v4635_v31  ;;  %v4638_v7 = vsel %vm545_vm1, %v4635_v31, %v16358_v14  ;;  %v16926_v18 = vld [vmem:[#allocation13_spill] sm:$0xff]  ;;  %v16931_v56 = vld [vmem:[#allocation88_spill] sm:$0xff] }
 0x2f4   : >> { %v4692_v46 = vsel %vm545_vm1, %v16918_v33, %v16916_v62  ;;  %v16921_v24 = vmov %v16916_v62  ;;  %v16923_v6 = vrot.slane %v16922_v28, 2  ;;  %v13938_v1 = vadd.f32 %v16409_v4, %v16925_v5  ;;  %v16929_v62 = vld [vmem:[#allocation85_spill] sm:$0xff]  ;;  %v16930_v33 = vld [vmem:[#allocation74_spill] sm:$0xff] }
 0x2f5   : >> { %v4694_v48 = vsel %vm545_vm1, %v16921_v24, %v16920_v55  ;;  %v16924_v60 = vmov %v16920_v55  ;;  %v4701_v26 = vadd.f32 %v4692_v46, %v4678_v44  ;;  %v13940_v41 = vadd.f32 %v4636_v54, %v4621_v57 }
 0x2f6   : >> { %v4696_v40 = vsel %vm545_vm1, %v16924_v60, %v16923_v6  ;;  %v13942_v49 = vadd.f32 %v4638_v7, %v4622_v11  ;;  %v4702_v23 = vadd.f32 %v4694_v48, %v4679_v19  ;;  %v4705_v2 = vmul.f32 %v16904_v51, %v10636_v47  ;;  %9142 = vmatmul.mubr.msk.f32.vlgmr.msra.gmra.mrb[6].mxu1 %vm934_vm5, %v16926_v18 }
 0x2f7   : >> { %v4703_v43 = vadd.f32 %v4696_v40, %v4680_v36  ;;  %v4706_v30 = vmul.f32 %v16905_v8, %v10636_v47  ;;  %v4713_v3 = vmul.f32 %v16904_v51, %v10649_v63  ;;  %v4647_v57 = vmax.f32 %v13910_v58, 0.0  ;;  %9163 = vmatprep.mubr.msk.f32.mxu1 %vm934_vm5, %v16928_v42 }
 0x2f8   : >> { %v4648_v11 = vmax.f32 %v13940_v41, 0.0  ;;  %v4714_v17 = vmul.f32 %v16905_v8, %v10649_v63  ;;  %v4715_v27 = vmul.f32 %v13350_v10, %v10649_v63  ;;  %v4709_v38 = vadd.f32 %v4705_v2, %v4701_v26 }
 0x2f9   : >> { %v4710_v50 = vadd.f32 %v4706_v30, %v4702_v23  ;;  %v4711_v34 = vadd.f32 %v16927_v25, %v4703_v43  ;;  %v4721_v36 = vrot.slane %v4713_v3, 1  ;;  %v4736_v13 = vmul.f32 %v16904_v51, %v10654_v12  ;;  %v16932_v51 = vld [vmem:[#allocation52_spill] sm:$0xff]  ;;  %v16934_v30 = vld [vmem:[#allocation90_spill] sm:$0xff] }
 0x2fa   : >> { %v4722_v31 = vrot.slane %v4714_v17, 1  ;;  %v4724_v44 = vrot.slane %v4715_v27, 1  ;;  %v4737_v19 = vmul.f32 %v16905_v8, %v10654_v12  ;;  %v4738_v29 = vmul.f32 %v13350_v10, %v10654_v12 }
 0x2fb   : >> { %v4775_v59 = vmul.f32 %v16929_v62, %v10670_v39  ;;  %v4776_v46 = vmul.f32 %v16930_v33, %v10670_v39  ;;  %v4777_v55 = vmul.f32 %v16931_v56, %v10670_v39  ;;  %v16933_v54 = vrot.slane %v16932_v51, 1 }
 0x2fc   : >> { %v4723_v24 = vsel %vm517_vm0, %v4721_v36, %v4722_v31  ;;  %v4725_v48 = vsel %vm517_vm0, %v4722_v31, %v4724_v44  ;;  %v4744_v7 = vrot.slane %v4736_v13, 2  ;;  %v4745_v40 = vrot.slane %v4737_v19, 2 }
 0x2fd   : >> { %v4727_v8 = vsel %vm517_vm0, %v4724_v44, %v16933_v54  ;;  %v4732_v6 = vadd.f32 %v4723_v24, %v4709_v38  ;;  %v4733_v10 = vadd.f32 %v4725_v48, %v4710_v50  ;;  %v4747_v26 = vrot.slane %v4738_v29, 2  ;;  %v16935_v50 = vld [vmem:[#allocation60_spill] sm:$0xff] }
 0x2fe   : >> { %v4734_v60 = vadd.f32 %v4727_v8, %v4711_v34  ;;  %v4783_v5 = vmul.f32 %v16929_v62, %v10683_v52  ;;  %v4784_v23 = vmul.f32 %v16930_v33, %v10683_v52  ;;  %v4785_v43 = vmul.f32 %v16931_v56, %v10683_v52 }
 0x2ff   : >> { %v4746_v2 = vsel %vm545_vm1, %v4744_v7, %v4745_v40  ;;  %v13989_v3 = vmul.f32 %v16934_v30, %v10683_v52  ;;  %v4806_v17 = vmul.f32 %v16701_v45, %v16929_v62  ;;  %v4807_v27 = vmul.f32 %v16701_v45, %v16930_v33 }
 0x300   : >> { %v4748_v38 = vsel %vm545_vm1, %v4745_v40, %v4747_v26  ;;  %v16936_v25 = vrot.slane %v16935_v50, 2  ;;  %v4755_v36 = vadd.f32 %v4746_v2, %v4732_v6  ;;  %v4791_v42 = vrot.slane %v4783_v5, 1 }
 0x301   : >> { %v4756_v31 = vadd.f32 %v4748_v38, %v4733_v10  ;;  %v4792_v13 = vrot.slane %v4784_v23, 1  ;;  %v4794_v19 = vrot.slane %v4785_v43, 1  ;;  %v16357_v24 = vrot.slane %v13989_v3, 1 }
 0x302   : >> { %v4750_v34 = vsel %vm545_vm1, %v4747_v26, %v16936_v25  ;;  %v4779_v29 = vadd.f32 %v4775_v59, %v4755_v36  ;;  %v4808_v48 = vmul.f32 %v16701_v45, %v16931_v56  ;;  %v14004_v54 = vmul.f32 %v16701_v45, %v16934_v30  ;;  %v16937_v36 = vld [vmem:[#allocation77_spill] sm:$0xff] }
 0x303   : >> { %v4757_v44 = vadd.f32 %v4750_v34, %v4734_v60  ;;  %v4780_v8 = vadd.f32 %v4776_v46, %v4756_v31  ;;  %v4793_v40 = vsel %vm517_vm0, %v4791_v42, %v4792_v13  ;;  %v4795_v6 = vsel %vm517_vm0, %v4792_v13, %v4794_v19  ;;  %v16939_v31 = vld [vmem:[#allocation51_spill] sm:$0xff] }
 0x304   : >> { %v4797_v10 = vsel %vm517_vm0, %v4794_v19, %v16357_v24  ;;  %v4802_v59 = vadd.f32 %v4793_v40, %v4779_v29  ;;  %v4814_v60 = vrot.slane %v4806_v17, 2  ;;  %v4815_v26 = vrot.slane %v4807_v27, 2  ;;  %v16941_v40 = vld [vmem:[#allocation43_spill] sm:$0xff] }
 0x305   : >> { %v4781_v7 = vadd.f32 %v4777_v55, %v4757_v44  ;;  %v4803_v5 = vadd.f32 %v4795_v6, %v4780_v8  ;;  %v4817_v43 = vrot.slane %v4808_v48, 2  ;;  %v16354_v2 = vrot.slane %v14004_v54, 2  ;;  %v5068_v8 = vpop.permute.xlu1 %5067 }
 0x306   : >> { %v4649_v38 = vmax.f32 %v13942_v49, 0.0  ;;  %v4816_v46 = vsel %vm545_vm1, %v4814_v60, %v4815_v26  ;;  %v5020_v55 = vmul.f32 %v16929_v62, %v10649_v63  ;;  %v5043_v25 = vmul.f32 %v16929_v62, %v10654_v12 }
 0x307   : >> { %v4804_v23 = vadd.f32 %v4797_v10, %v4781_v7  ;;  %v4818_v34 = vsel %vm545_vm1, %v4815_v26, %v4817_v43  ;;  %v4820_v17 = vsel %vm545_vm1, %v4817_v43, %v16354_v2  ;;  %v4825_v27 = vadd.f32 %v4816_v46, %v4802_v59  ;;  %v16942_v10 = vld [vmem:[#allocation78_spill] sm:$0xff]  ;;  %v16944_v26 = vld [vmem:[#allocation47_spill] sm:$0xff] }
 0x308   : >> { %v16938_v42 = vrot.slane %v16937_v36, 1  ;;  %v16940_v44 = vrot.slane %v16939_v31, 1  ;;  %v4826_v13 = vadd.f32 %v4818_v34, %v4803_v5  ;;  %v5012_v29 = vmul.f32 %v16929_v62, %v10636_v47 }
 0x309   : >> { %v4827_v19 = vadd.f32 %v4820_v17, %v4804_v23  ;;  %v5028_v48 = vrot.slane %v5020_v55, 1  ;;  %v4829_v7 = vmax.f32 %v4825_v27, 0.0  ;;  %v16943_v60 = vrot.slane %v16942_v10, 2 }
 0x30a   : >> { %v4976_v49 = vsel %vm517_vm0, %v16940_v44, %v16938_v42  ;;  %v16945_v59 = vrot.slane %v16944_v26, 2  ;;  %v14037_v46 = vmul.f32 %v16930_v33, %v10649_v63  ;;  %v4830_v5 = vmax.f32 %v4826_v13, 0.0  ;;  %v16946_v44 = vld [vmem:[#allocation84_spill] sm:$0xff]  ;;  %v16947_v26 = vld [vmem:[#allocation86_spill] sm:$0xff] }
 0x30b   : >> { %v4985_v6 = vadd.f32 %v4976_v49, %v16941_v40  ;;  %v4831_v23 = vmax.f32 %v4827_v19, 0.0  ;;  %v5051_v34 = vrot.slane %v5043_v25, 2  ;;  %v14041_v55 = vmul.f32 %v16930_v33, %v10654_v12  ;;  %v2008_v40 = vpop.permute.xlu0 %2007 }
 0x30c   : >> { %v4999_v43 = vsel %vm545_vm1, %v16945_v59, %v16943_v60  ;;  %v4833_v17 = vmax.f32 %v4647_v57, %v4829_v7  ;;  %v16359_v42 = vrot.slane %v14037_v46, 1  ;;  %v14047_v31 = vmul.f32 %v5068_v8, %v10683_v52  ;;  %v2006_v60 = vpop.permute.xlu1 %2005 }
 0x30d   : >> { %v5008_v27 = vadd.f32 %v4999_v43, %v4985_v6  ;;  %v5000_v49 = vrot.slane %v16946_v44, 2  ;;  %v4834_v13 = vmax.f32 %v4648_v11, %v4830_v5  ;;  %v14052_v19 = vmax.f32 %v4649_v38, %v4831_v23 }
 0x30e   : >> { %v16355_v25 = vrot.slane %v14041_v55, 2  ;;  %v4526_v58 = vmul.f32 %v13409_v35, %v10636_v47  ;;  %v4841_v57 = vrot.slane %v4833_v17, 1  ;;  %v5030_v6 = vsel %vm517_vm0, %v5028_v48, %v16359_v42 }
 0x30f   : >> { %v5016_v7 = vadd.f32 %v5012_v29, %v5008_v27  ;;  %v16948_v59 = vrot.slane %v16947_v26, 1  ;;  %v4842_v11 = vrot.slane %v4834_v13, 1  ;;  %v16356_v38 = vrot.slane %v14052_v19, 1  ;;  %v16949_v26 = vld [vmem:[#allocation76_spill] sm:$0xff]  ;;  %v2017_v14 = vpop.permute.xlu0 %2016 }
 0x310   : >> { %v5082_v43 = vmul.f32 %v5068_v8, %v10670_v39  ;;  %v5053_v35 = vsel %vm545_vm1, %v5051_v34, %v16355_v25  ;;  %v14070_v23 = vmul.f32 %v16701_v45, %v5068_v8  ;;  %v14077_v27 = vmul.f32 %v5068_v8, %v10636_v47  ;;  %v2015_v42 = vpop.permute.xlu1 %2014 }
 0x311   : >> { %v4681_v41 = vadd.f32 %v16948_v59, %v13938_v1  ;;  %v5039_v5 = vadd.f32 %v5030_v6, %v5016_v7  ;;  %v4843_v48 = vsel %vm517_vm0, %v4841_v57, %v4842_v11  ;;  %v4845_v1 = vsel %vm517_vm0, %v4842_v11, %v16356_v38 }
 0x312   : >> { %v16950_v7 = vrot.slane %v16897_v61, 2  ;;  %v4852_v59 = vmax.f32 %v4833_v17, %v4843_v48  ;;  %v4853_v34 = vmax.f32 %v4834_v13, %v4845_v1  ;;  %v14083_v29 = vmul.f32 %v5068_v8, %v10649_v63  ;;  %v16953_v48 = vld [vmem:[#allocation30_spill] sm:$0xff] }
 0x313   : >> { %v14086_v2 = vmul.f32 %v5068_v8, %v10654_v12  ;;  %v5062_v57 = vadd.f32 %v5053_v35, %v5039_v5  ;;  %v4596_v11 = vmul.f32 %v16908_v22, %v10670_v39  ;;  %v16951_v38 = vrot.slane %v16922_v28, 2  ;;  %v16955_v22 = vld [vmem:[#allocation27_spill] sm:$0xff]  ;;  %v16956_v1 = vld [vmem:[#allocation42_spill] sm:$0xff] }
 0x314   : >> { %v4522_v6 = vadd.f32 %v16950_v7, %v16949_v26  ;;  %v9400_v61 = vpack.c.bf16 %v4853_v34, %v4852_v59  ;;  %v4778_v17 = vmul.f32 %v16934_v30, %v10670_v39  ;;  %v16952_v13 = vrot.slane %v13417_v20, 1  ;;  %v16957_v26 = vld [vmem:[#allocation31_spill] sm:$0xff] }
 0x315   : >> { %v4704_v24 = vadd.f32 %v16951_v38, %v4681_v41  ;;  %v2020_v28 = vsel %vm1040_vm6, %v16955_v22, %v2006_v60  ;;  %v16958_v7 = vrot.slane %v16957_v26, 2  ;;  %v16962_v59 = vrot.slane %v13421_v37, 2 }
 0x316   : >> { %v4530_v25 = vadd.f32 %v4526_v58, %v4522_v6  ;;  %v16954_v58 = vld [vmem:[#allocation39_spill] sm:$0xff]  ;;  %9401 = vmatprep.subr.bf16.mxu0 %v9400_v61  ;;  %v14105_v38 = vsel %vm1043_vm7, %v2020_v28, %v2015_v42  ;;  %v16963_v34 = vrot.slane %v16932_v51, 1  ;;  %v16968_v37 = vrot.slane %v16942_v10, 2 }
 0x317   : >> { %v4712_v5 = vadd.f32 %v16953_v48, %v4704_v24  ;;  %v2021_v35 = vsel %vm1040_vm6, %v16954_v58, %v2008_v40  ;;  %v10175_v20 = vpack.i.bf16 %v16958_v7, %v16956_v1  ;;  %v16960_v24 = vld [vmem:[#allocation67_spill] sm:$0xff]  ;;  %9403 = vmatpush3.bf16.msra.mxu0 %v9400_v61  ;;  %5457 = vrot.lane.b32.xlu0 %v14105_v38, %s16368_s27  ;;  %v16965_v58 = vld [vmem:[#allocation80_spill] sm:$0xff]  ;;  %v16967_v61 = vrot.slane %v16937_v36, 1 }
 0x318   : >> { %v4553_v8 = vadd.f32 %v16952_v13, %v4530_v25  ;;  %v14102_v41 = vsel %vm1043_vm7, %v2021_v35, %v2017_v14  ;;  %v16959_v25 = vrot.slane %v16957_v26, 1  ;;  %v16961_v6 = vrot.slane %v16960_v24, 1 }
 0x319   : >> { %v4735_v42 = vadd.f32 %v16963_v34, %v4712_v5  ;;  %5459 = vrot.lane.b32.xlu1 %v14102_v41, %s16368_s27  ;;  %v16966_v35 = vrot.slane %v16965_v58, 1  ;;  %v5001_v51 = vsel %vm545_vm1, %v16968_v37, %v5000_v49  ;;  %v5022_v5 = vmul.f32 %v16931_v56, %v10649_v63 }
 0x31a   : >> { %v1024_v40 = vsel %vm517_vm0, %v16961_v6, %v16959_v25  ;;  %v4576_v14 = vadd.f32 %v16962_v59, %v4553_v8  ;;  %v16964_v13 = vmov %v16959_v25  ;;  %v5013_v8 = vmul.f32 %v16930_v33, %v10636_v47  ;;  %v16970_v25 = vld [vmem:[#allocation34_spill] sm:$0xff] }
 0x31b   : >> { %v10170_v48 = vpack.i.bf16 %v16964_v13, %v1024_v40  ;;  %v4978_v22 = vsel %vm517_vm0, %v16967_v61, %v16966_v35  ;;  %v16969_v1 = vrot.slane %v16935_v50, 2  ;;  %v5045_v6 = vmul.f32 %v16931_v56, %v10654_v12  ;;  %v5072_v40 = vpop.permute.xlu0 %5071 }
 0x31c   : >> { %v4600_v28 = vadd.f32 %v4596_v11, %v4576_v14  ;;  %v4986_v36 = vadd.f32 %v4978_v22, %v16970_v25  ;;  %v14145_v59 = vadd.f32 %v5082_v43, %v5062_v57  ;;  %v5031_v13 = vrot.slane %v5022_v5, 1  ;;  %v5076_v22 = vpop.permute.xlu1 %5075 }
 0x31d   : >> { %v4758_v7 = vadd.f32 %v16969_v1, %v4735_v42  ;;  %10176 = vrot.lane.b32.xlu1 %v10175_v20, %s16368_s27  ;;  %v5054_v14 = vrot.slane %v5045_v6, 2  ;;  %10171 = vrot.lane.b32.xlu0 %v10170_v48, %s16370_s16  ;;  %v16971_v42 = vrot.slane %v14037_v46, 1  ;;  %v14157_v57 = vmul.f32 %v5072_v40, %v10683_v52 }
 0x31e   : >> { %v4623_v35 = vadd.f32 %v4614_v15, %v4600_v28  ;;  %v5009_v50 = vadd.f32 %v5001_v51, %v4986_v36  ;;  %v14160_v61 = vmul.f32 %v16701_v45, %v5072_v40  ;;  %v16972_v15 = vrot.slane %v13891_v9, 2 }
 0x31f   : >> { %v4782_v11 = vadd.f32 %v4778_v17, %v4758_v7  ;;  %v5032_v43 = vsel %vm517_vm0, %v16971_v42, %v5031_v13  ;;  %v16973_v20 = vrot.slane %v13989_v3, 1  ;;  %v5083_v46 = vmul.f32 %v5072_v40, %v10670_v39  ;;  %v5250_v26 = vpop.permute.xlu0 %5249 }
 0x320   : >> { %v4646_v17 = vadd.f32 %v16972_v15, %v4623_v35  ;;  %v5017_v48 = vadd.f32 %v5013_v8, %v5009_v50  ;;  %v16974_v51 = vrot.slane %v14041_v55, 2  ;;  %v14172_v28 = vmul.f32 %v5072_v40, %v10649_v63 }
 0x321   : >> { %v4805_v37 = vadd.f32 %v16973_v20, %v4782_v11  ;;  %v14175_v1 = vmul.f32 %v5072_v40, %v10654_v12  ;;  %v14179_v9 = vmul.f32 %v16934_v30, %v10649_v63  ;;  %v16975_v3 = vrot.slane %v14004_v54, 2  ;;  %v16976_v11 = vld [vmem:[#allocation38_spill] sm:$0xff]  ;;  %v16979_v20 = vld [vmem:[#allocation83_spill] sm:$0xff] }
 0x322   : >> { %v5055_v5 = vsel %vm545_vm1, %v16974_v51, %v5054_v14  ;;  %v4650_v7 = vmax.f32 %v4646_v17, 0.0  ;;  %v5040_v25 = vadd.f32 %v5032_v43, %v5017_v48  ;;  %v14185_v55 = vmul.f32 %v16934_v30, %v10654_v12 }
 0x323   : >> { %v4828_v8 = vadd.f32 %v16975_v3, %v4805_v37  ;;  %v16361_v35 = vrot.slane %v14179_v9, 1  ;;  %v16977_v50 = vrot.slane %v16976_v11, 1  ;;  %v16978_v42 = vrot.slane %v16965_v58, 1 }
 0x324   : >> { %v5014_v54 = vmul.f32 %v16931_v56, %v10636_v47  ;;  %v16360_v43 = vrot.slane %v14185_v55, 2  ;;  %v5063_v48 = vadd.f32 %v5055_v5, %v5040_v25  ;;  %v14200_v51 = vmul.f32 %v5072_v40, %v10636_v47 }
 0x325   : >> { %v4980_v15 = vsel %vm517_vm0, %v16978_v42, %v16977_v50  ;;  %v4832_v17 = vmax.f32 %v4828_v8, 0.0  ;;  %v16981_v60 = vrot.slane %v16980_v21, 2  ;;  %v14208_v8 = vpop.permute.xlu1 %5079  ;;  %v5034_v40 = vsel %vm517_vm0, %v5031_v13, %v16361_v35  ;;  %v16984_v13 = vld [vmem:[#allocation18_spill] sm:$0xff] }
 0x326   : >> { %v4987_v37 = vadd.f32 %v4980_v15, %v16979_v20  ;;  %v14212_v15 = vmul.f32 %v5076_v22, %v10683_v52  ;;  %v14214_v5 = vadd.f32 %v5083_v46, %v5063_v48  ;;  %v5057_v44 = vsel %vm545_vm1, %v5054_v14, %v16360_v43 }
 0x327   : >> { %v5003_v58 = vsel %vm545_vm1, %v5000_v49, %v16981_v60  ;;  %v4836_v50 = vmax.f32 %v4650_v7, %v4832_v17  ;;  %v5084_v49 = vmul.f32 %v5076_v22, %v10670_v39  ;;  %v14224_v25 = vmul.f32 %v16701_v45, %v5076_v22  ;;  %v16983_v17 = vld [vmem:[#allocation19_spill] sm:$0xff] }
 0x328   : >> { %v5010_v6 = vadd.f32 %v5003_v58, %v4987_v37  ;;  %16982 = vst [vmem:[#allocation45_spill] sm:$0xff] %v14214_v5  ;;  %v5140_v20 = vmul.f32 %v16929_v62, %v16983_v17  ;;  %v14229_v46 = vmul.f32 %v5076_v22, %v10649_v63  ;;  %v14232_v37 = vmul.f32 %v5076_v22, %v10654_v12  ;;  %v16986_v5 = vld [vmem:[#allocation20_spill] sm:$0xff] }
 0x329   : >> { %v4846_v60 = vrot.slane %v4836_v50, 1  ;;  %v5148_v48 = vmul.f32 %v16929_v62, %v16984_v13  ;;  %v14238_v14 = vmul.f32 %v16930_v33, %v16984_v13  ;;  %v16366_v43 = vrot.slane %v14212_v15, 1  ;;  %v14247_v3 = vpop.permute.xlu1 %5253 }
 0x32a   : >> { %v5018_v7 = vadd.f32 %v5014_v54, %v5010_v6  ;;  %v16985_v6 = vrot.slane %v14052_v19, 1  ;;  %v5144_v34 = vadd.f32 %v16409_v4, %v5140_v20  ;;  %v14251_v24 = vmul.f32 %v5076_v22, %v10636_v47 }
 0x32b   : >> { %v4855_v58 = vmax.f32 %v4836_v50, %v4846_v60  ;;  %v5156_v42 = vrot.slane %v5148_v48, 1  ;;  %v16364_v10 = vrot.slane %v14238_v14, 1  ;;  %v5171_v50 = vmul.f32 %v16929_v62, %v16986_v5 }
 0x32c   : >> { %v4847_v54 = vsel %vm517_vm0, %v16985_v6, %v4846_v60  ;;  %v5041_v36 = vadd.f32 %v5034_v40, %v5018_v7  ;;  %v14257_v40 = vmul.f32 %v16930_v33, %v16986_v5  ;;  %v16987_v62 = vrot.slane %v14172_v28, 1 }
 0x32d   : >> { %v4854_v35 = vmax.f32 %v14052_v19, %v4847_v54  ;;  %v5158_v20 = vsel %vm517_vm0, %v5156_v42, %v16364_v10  ;;  %v5179_v22 = vrot.slane %v5171_v50, 2  ;;  %v14273_v7 = vmul.f32 %v5250_v26, %v10683_v52 }
 0x32e   : >> { %v5064_v48 = vadd.f32 %v5057_v44, %v5041_v36  ;;  %v5167_v6 = vadd.f32 %v5158_v20, %v5144_v34  ;;  %v16363_v54 = vrot.slane %v14257_v40, 2  ;;  %v5015_v36 = vmul.f32 %v16934_v30, %v10636_v47  ;;  %v16989_v34 = vld [vmem:[#allocation79_spill] sm:$0xff] }
 0x32f   : >> { %v9404_v19 = vpack.c.bf16 %v4855_v58, %v4854_v35  ;;  %v16988_v35 = vrot.slane %v14083_v29, 1  ;;  %v16990_v42 = vrot.slane %v16976_v11, 1  ;;  %v16991_v29 = vrot.slane %v14175_v1, 2 }
 0x330   : >> { %v5181_v50 = vsel %vm545_vm1, %v5179_v22, %v16363_v54  ;;  %v16992_v20 = vrot.slane %v14086_v2, 2  ;;  %v5093_v11 = vmul.f32 %v14208_v8, %v10683_v52  ;;  %v16993_v60 = vrot.slane %v16980_v21, 2  ;;  %v14300_v54 = vpop.permute.xlu1 %5257 }
 0x331   : >> { %9406 = vmatprep.subr.msk.bf16.mxu0 %vm11185_vm4, %v9404_v19  ;;  %v5212_v58 = vsel %vm517_vm0, %v16988_v35, %v16987_v62  ;;  %v4988_v44 = vadd.f32 %v16990_v42, %v16989_v34  ;;  %v14291_v35 = vmul.f32 %v16701_v45, %v5250_v26  ;;  %v14295_v34 = vadd.f32 %v5084_v49, %v5064_v48 }
 0x332   : >> { %9409 = vmatpush3.bf16.msk.msra.mxu0 %vm11185_vm4, %v9404_v19  ;;  %v5235_v62 = vsel %vm545_vm1, %v16992_v20, %v16991_v29  ;;  %v5190_v42 = vadd.f32 %v5181_v50, %v5167_v6  ;;  %v5264_v19 = vmul.f32 %v5250_v26, %v10670_v39  ;;  %v5085_v29 = vmul.f32 %v14208_v8, %v10670_v39 }
 0x333   : >> { %v5011_v22 = vadd.f32 %v16993_v60, %v4988_v44  ;;  %v5103_v20 = vrot.slane %v5093_v11, 1  ;;  %v14307_v10 = vmul.f32 %v16701_v45, %v14208_v8  ;;  %v5143_v26 = vmul.f32 %v16934_v30, %v16983_v17 }
 0x334   : >> { %v5198_v49 = vadd.f32 %v14077_v27, %v5190_v42  ;;  %v5151_v21 = vmul.f32 %v16934_v30, %v16984_v13  ;;  %v14319_v6 = vmul.f32 %v14208_v8, %v10649_v63  ;;  %v5174_v44 = vmul.f32 %v16934_v30, %v16986_v5 }
 0x335   : >> { %v5019_v48 = vadd.f32 %v5015_v36, %v5011_v22  ;;  %9153 = vmatmul.mubr.msk.f32.vlgmr.msra.gmra.mrb[8].mxu0 %vm934_vm5, %v16926_v18  ;;  %v14325_v27 = vmul.f32 %v14208_v8, %v10654_v12  ;;  %v5262_v36 = vpop.permute.xlu0 %5261  ;;  %v16994_v11 = vrot.slane %v14179_v9, 1  ;;  %v5147_v22 = vadd.f32 %v16409_v4, %v5143_v26  ;;  %v14343_v26 = vpop.permute.xlu1 %10166 }
 0x336   : >> { %v5221_v50 = vadd.f32 %v5212_v58, %v5198_v49  ;;  %v5161_v2 = vrot.slane %v5151_v21, 1  ;;  %v14333_v63 = vsel %vm517_vm0, %v16366_v43, %v5103_v20  ;;  %v5126_v60 = vrot.slane %v14307_v10, 2 }
 0x337   : >> { %v5042_v42 = vadd.f32 %v16994_v11, %v5019_v48  ;;  %v5197_v30 = vmul.f32 %v14208_v8, %v10636_v47  ;;  %v5184_v12 = vrot.slane %v5174_v44, 2  ;;  %v16995_v58 = vrot.slane %v14185_v55, 2 }
 0x338   : >> { %v5244_v18 = vadd.f32 %v5235_v62, %v5221_v50  ;;  %v5170_v9 = vadd.f32 %v5161_v2, %v5147_v22  ;;  %v14341_v48 = vmul.f32 %v5262_v36, %v10683_v52  ;;  %v5215_v21 = vrot.slane %v14319_v6, 1 }
 0x339   : >> { %v5065_v49 = vadd.f32 %v16995_v58, %v5042_v42  ;;  %v5150_v11 = vmul.f32 %v16931_v56, %v16984_v13  ;;  %v5173_v10 = vmul.f32 %v16931_v56, %v16986_v5  ;;  %v5141_v47 = vmul.f32 %v16930_v33, %v16983_v17  ;;  %v2495_v13 = vpop.permute.xlu0 %2494 }
 0x33a   : >> { %v5193_v55 = vadd.f32 %v5184_v12, %v5170_v9  ;;  %v5238_v62 = vrot.slane %v14325_v27, 2  ;;  %v14354_v44 = vmul.f32 %v16701_v45, %v5262_v36  ;;  %v5267_v50 = vmul.f32 %v5262_v36, %v10670_v39 }
 0x33b   : >> { %v5089_v8 = vadd.f32 %v5085_v29, %v5065_v49  ;;  %v5159_v42 = vrot.slane %v5150_v11, 1  ;;  %v5182_v6 = vrot.slane %v5173_v10, 2  ;;  %v5145_v22 = vadd.f32 %v16409_v4, %v5141_v47 }
 0x33c   : >> { %v5268_v58 = vadd.f32 %v5264_v19, %v5244_v18  ;;  %v5201_v5 = vadd.f32 %v5197_v30, %v5193_v55  ;;  %v5285_v16 = vrot.slane %v14341_v48, 1  ;;  %v16996_v33 = vrot.slane %v14238_v14, 1 }
 0x33d   : >> { %v5112_v43 = vadd.f32 %v5103_v20, %v5089_v8  ;;  %v16997_v27 = vrot.slane %v14257_v40, 2  ;;  %v5273_v36 = vmul.f32 %v14247_v3, %v10683_v52  ;;  %v14369_v9 = vmul.f32 %v16701_v45, %v14247_v3  ;;  %v1526_v40 = vpop.permute.xlu1 %1525 }
 0x33e   : >> { %v5160_v29 = vsel %vm517_vm0, %v16996_v33, %v5159_v42  ;;  %v5224_v18 = vadd.f32 %v5215_v21, %v5201_v5  ;;  %v5308_v19 = vrot.slane %v14354_v44, 2  ;;  %v16998_v30 = vrot.slane %v14229_v46, 1 }
 0x33f   : >> { %v5183_v49 = vsel %vm545_vm1, %v16997_v27, %v5182_v6  ;;  %v5168_v20 = vadd.f32 %v5160_v29, %v5145_v22  ;;  %v16999_v14 = vrot.slane %v14172_v28, 1  ;;  %v14377_v11 = vadd.f32 %v5126_v60, %v5112_v43 }
 0x340   : >> { %v5281_v10 = vrot.slane %v5273_v36, 1  ;;  %v5304_v47 = vrot.slane %v14369_v9, 2  ;;  %v5142_v8 = vmul.f32 %v16931_v56, %v16983_v17  ;;  %v5247_v55 = vadd.f32 %v5238_v62, %v5224_v18  ;;  %v17003_v36 = vld [vmem:[#allocation48_spill] sm:$0xff] }
 0x341   : >> { %v5214_v48 = vsel %vm517_vm0, %v16999_v14, %v16998_v30  ;;  %v5191_v5 = vadd.f32 %v5183_v49, %v5168_v20  ;;  %v17000_v44 = vrot.slane %v14232_v37, 2  ;;  %v17001_v22 = vrot.slane %v14175_v1, 2  ;;  %v2504_v49 = vpop.permute.xlu0 %2503 }
 0x342   : >> { %v5162_v28 = vsel %vm517_vm0, %v5159_v42, %v5161_v2  ;;  %v5265_v43 = vmul.f32 %v14247_v3, %v10670_v39  ;;  %v17002_v29 = vrot.slane %v14273_v7, 1  ;;  %v2509_v56 = vsel %vm1040_vm6, %v17003_v36, %v2495_v13 }
 0x343   : >> { %v5237_v33 = vsel %vm545_vm1, %v17001_v22, %v17000_v44  ;;  %v5146_v17 = vadd.f32 %v16409_v4, %v5142_v8  ;;  %v5271_v9 = vadd.f32 %v5267_v50, %v5247_v55  ;;  %v5199_v1 = vadd.f32 %v14200_v51, %v5191_v5  ;;  %v14410_v5 = vpop.f32.mrb[4].mxu1 }
 0x344   : >> { %v5282_v27 = vsel %vm517_vm0, %v17002_v29, %v5281_v10  ;;  %v17004_v18 = vrot.slane %v14224_v25, 2  ;;  %v5185_v42 = vsel %vm545_vm1, %v5182_v6, %v5184_v12  ;;  %v5139_v3 = vmax.f32 %v14377_v11, 0.0 }
 0x345   : >> { %v5291_v7 = vadd.f32 %v5282_v27, %v5268_v58  ;;  %v17005_v20 = vrot.slane %v14291_v35, 2  ;;  %v5169_v13 = vadd.f32 %v5162_v28, %v5146_v17  ;;  %v5294_v14 = vadd.f32 %v5285_v16, %v5271_v9  ;;  %v1528_v29 = vpop.permute.xlu0 %1527 }
 0x346   : >> { %v5127_v2 = vsel %vm545_vm1, %v17004_v18, %v5126_v60  ;;  %v5222_v8 = vadd.f32 %v5214_v48, %v5199_v1  ;;  %v17006_v50 = vrot.slane %v14229_v46, 1  ;;  %v5274_v55 = vmul.f32 %v14300_v54, %v10683_v52  ;;  %v2497_v60 = vpop.permute.xlu1 %2496  ;;  %v14419_v48 = vpop.f32.mrb[5].mxu1 }
 0x347   : >> { %v5305_v30 = vsel %vm545_vm1, %v17005_v20, %v5304_v47  ;;  %v5192_v12 = vadd.f32 %v5185_v42, %v5169_v13  ;;  %v5111_v6 = vadd.f32 %v14333_v63, %v14295_v34  ;;  %v5297_v35 = vmul.f32 %v16701_v45, %v14300_v54 }
 0x348   : >> { %v5216_v51 = vsel %vm517_vm0, %v17006_v50, %v5215_v21  ;;  %v14417_v58 = vsel %vm1043_vm7, %v2509_v56, %v2504_v49  ;;  %v14421_v46 = vadd.f32 %v5308_v19, %v5294_v14  ;;  %v5245_v21 = vadd.f32 %v5237_v33, %v5222_v8 }
 0x349   : >> { %v5283_v44 = vrot.slane %v5274_v55, 1  ;;  %v10169_v52 = vunpack.i.h.bf16 %v14343_v26  ;;  %5674 = vrot.lane.b32.xlu1 %v14417_v58, %s16368_s27  ;;  %v5200_v22 = vadd.f32 %v14251_v24, %v5192_v12  ;;  %v17007_v34 = vrot.slane %v14232_v37, 2 }
 0x34a   : >> { %v5306_v63 = vrot.slane %v5297_v35, 2  ;;  %v10168_v28 = vunpack.i.l.bf16 %v14343_v26  ;;  %v5269_v27 = vadd.f32 %v5265_v43, %v5245_v21  ;;  %v14431_v36 = vadd.f32 %v5305_v30, %v5291_v7  ;;  %v17008_v43 = vld [vmem:[#allocation36_spill] sm:$0xff]  ;;  %v2506_v18 = vpop.permute.xlu1 %2505  ;;  %v17009_v7 = vld [vmem:[#allocation29_spill] sm:$0xff] }
 0x34b   : >> { %v5239_v45 = vsel %vm545_vm1, %v17007_v34, %v5238_v62  ;;  %v5266_v33 = vmul.f32 %v14300_v54, %v10670_v39  ;;  %v5284_v56 = vsel %vm517_vm0, %v5281_v10, %v5283_v44  ;;  %v5321_v17 = vmax.f32 %v14421_v46, 0.0 }
 0x34c   : >> { %v5223_v49 = vadd.f32 %v5216_v51, %v5200_v22  ;;  %v5134_v24 = vadd.f32 %v5127_v2, %v5111_v6  ;;  %v1532_v37 = vsel %vm1040_vm6, %v16862_v32, %v10169_v52  ;;  %v5286_v62 = vsel %vm517_vm0, %v5283_v44, %v5285_v16  ;;  %v17017_v52 = vld [vmem:[#allocation45_spill] sm:$0xff] }
 0x34d   : >> { %v5292_v9 = vadd.f32 %v5284_v56, %v5269_v27  ;;  %v14441_v26 = vsel %vm1043_vm7, %v1532_v37, %v1528_v29  ;;  %v1531_v1 = vsel %vm1040_vm6, %v17008_v43, %v10168_v28  ;;  %v5307_v54 = vsel %vm545_vm1, %v5304_v47, %v5306_v63  ;;  %v5484_v28 = vld [vmem:[%s16103_s3 + $0x80] sm:$0xff]  ;;  %v5486_v43 = vld [vmem:[%s16103_s3 + $0x90] sm:$0xff] }
 0x34e   : >> { %v5246_v39 = vadd.f32 %v5239_v45, %v5223_v49  ;;  %v5309_v10 = vsel %vm545_vm1, %v5306_v63, %v5308_v19  ;;  %v14448_v2 = vsel %vm1043_vm7, %v1531_v1, %v1526_v40  ;;  %v10185_v32 = vpack.i.bf16 %v14102_v41, %v14441_v26 }
 0x34f   : >> { %v5315_v42 = vadd.f32 %v5307_v54, %v5292_v9  ;;  %v10180_v16 = vpack.i.bf16 %v14105_v38, %v14448_v2  ;;  %v2510_v20 = vsel %vm1040_vm6, %v17009_v7, %v2497_v60  ;;  %v2990_v13 = vrot.slane %v13934_v0, 2 }
 0x350   : >> { %v5270_v30 = vadd.f32 %v5266_v33, %v5246_v39  ;;  %v14458_v47 = vsel %vm1043_vm7, %v2510_v20, %v2506_v18  ;;  %v2980_v19 = vrot.slane %v13944_v53, 1  ;;  %v2989_v40 = vrot.slane %v13944_v53, 2 }
 0x351   : >> { %10181 = vrot.lane.b32.xlu0 %v10180_v16, %s16372_s22  ;;  %5676 = vrot.lane.b32.xlu1 %v14458_v47, %s16368_s27  ;;  %v17010_v14 = vrot.slane %v14157_v57, 1  ;;  %v17011_v8 = vrot.slane %v14047_v31, 1  ;;  %v17012_v51 = vrot.slane %v14212_v15, 1  ;;  %v17014_v12 = vrot.slane %v14160_v61, 2  ;;  %v5485_v61 = vld [vmem:[%s16103_s3 + $0x88] sm:$0xff]  ;;  %s17023_s27 = smov 64  }
 0x352   : >> { %v17015_v6 = vrot.slane %v14070_v23, 2  ;;  %v5293_v46 = vadd.f32 %v5286_v62, %v5270_v30  ;;  %v17016_v21 = vrot.slane %v13934_v0, 1  ;;  %v17018_v15 = vrot.slane %v14224_v25, 2  ;;  %v5468_v25 = vld [vmem:[%s16103_s3] sm:$0xff] }
 0x353   : >> { %v5100_v50 = vsel %vm517_vm0, %v17011_v8, %v17010_v14  ;;  %v17013_v55 = vmov %v17010_v14  ;;  %v17019_v57 = vmov %v17014_v12  ;;  %v5318_v45 = vmax.f32 %v14431_v36, 0.0  ;;  %v5469_v36 = vld [vmem:[%s16103_s3 + $0x8] sm:$0xff] }
 0x354   : >> { %v5102_v60 = vsel %vm517_vm0, %v17013_v55, %v17012_v51  ;;  %v5123_v35 = vsel %vm545_vm1, %v17015_v6, %v17014_v12  ;;  %v2982_v44 = vsel %vm517_vm0, %v2980_v19, %v17016_v21  ;;  %v5109_v31 = vadd.f32 %v5100_v50, %v14145_v59  ;;  %v5488_v19 = vld [vmem:[%s16103_s3 + $0xa0] sm:$0xff] }
 0x355   : >> { %v5110_v22 = vadd.f32 %v5102_v60, %v17017_v52  ;;  %v5125_v34 = vsel %vm545_vm1, %v17019_v57, %v17018_v15  ;;  %v5319_v23 = vmax.f32 %v5315_v42, 0.0  ;;  %v3470_v63 = vrot.slane %v14410_v5, 1  ;;  %10186 = vrot.lane.b32.xlu0 %v10185_v32, %s17020_s23  ;;  %v5490_v52 = vld [vmem:[%s16103_s3 + $0xb0] sm:$0xff] }
 0x356   : >> { %v5316_v29 = vadd.f32 %v5309_v10, %v5293_v46  ;;  %v5132_v27 = vadd.f32 %v5123_v35, %v5109_v31  ;;  %v3479_v33 = vrot.slane %v14410_v5, 2  ;;  %v5138_v56 = vmax.f32 %v5134_v24, 0.0  ;;  %v5487_v24 = vld [vmem:[%s16103_s3 + $0x98] sm:$0xff]  ;;  %v5472_v35 = vld [vmem:[%s16103_s3 + $0x20] sm:$0xff]  ;;  %v5473_v46 = vld [vmem:[%s16103_s3 + $0x28] sm:$0xff] }
 0x357   : >> { %v5133_v59 = vadd.f32 %v5125_v34, %v5110_v22  ;;  %v17022_v49 = vmov %v17016_v21  ;;  %v2991_v37 = vsel %vm545_vm1, %v2989_v40, %v2990_v13  ;;  %v3469_v62 = vrot.slane %v14419_v48, 1  ;;  %v5489_v40 = vld [vmem:[%s16103_s3 + $0xa8] sm:$0xff]  ;;  %v5491_v22 = vld [vmem:[%s16103_s3 + $0xb8] sm:$0xff]  ;;  %v5500_v34 = vld [vmem:[%s16103_s3 + $0x100] sm:$0xff] }
 0x358   : >> { %2985 = vrot.lane.b32.xlu1 %v17022_v49, %s17021_s24  ;;  %v3478_v9 = vrot.slane %v14419_v48, 2  ;;  %v5325_v1 = vmax.f32 %v5139_v3, %v5321_v17  ;;  %v5320_v18 = vmax.f32 %v5316_v29, 0.0  ;;  %v5136_v39 = vmax.f32 %v5132_v27, 0.0  ;;  %v5470_v3 = vld [vmem:[%s16103_s3 + $0x10] sm:$0xff]  ;;  %v5471_v17 = vld [vmem:[%s16103_s3 + $0x18] sm:$0xff] }
 0x359   : >> { %v5137_v54 = vmax.f32 %v5133_v59, 0.0  ;;  %v3471_v10 = vsel %vm517_vm0, %v3469_v62, %v3470_v63  ;;  %v14526_v32 = vpack.c.bf16 %v5485_v61, %v5484_v28  ;;  %v14528_v16 = vpack.c.bf16 %v5469_v36, %v5468_v25  ;;  %2983 = vrot.lane.b32.xlu0 %v2982_v44, %s17021_s24  ;;  %v5474_v29 = vld [vmem:[%s16103_s3 + $0x30] sm:$0xff]  ;;  %v5475_v27 = vld [vmem:[%s16103_s3 + $0x38] sm:$0xff]  ;;  %v5492_v61 = vld [vmem:[%s16103_s3 + $0xc0] sm:$0xff] }
 0x35a   : >> { %v3480_v42 = vsel %vm545_vm1, %v3478_v9, %v3479_v33  ;;  %v5324_v7 = vmax.f32 %v5138_v56, %v5320_v18  ;;  %v5322_v20 = vmax.f32 %v5136_v39, %v5318_v45  ;;  %v14530_v11 = vpack.c.bf16 %v5487_v24, %v5486_v43  ;;  %v5493_v25 = vld [vmem:[%s16103_s3 + $0xc8] sm:$0xff]  ;;  %v5502_v49 = vld [vmem:[%s16103_s3 + $0x110] sm:$0xff]  ;;  %v5503_v62 = vld [vmem:[%s16103_s3 + $0x118] sm:$0xff] }
 0x35b   : >> { %v5323_v30 = vmax.f32 %v5137_v54, %v5319_v23  ;;  %v5335_v14 = vrot.slane %v5325_v1, 1  ;;  %9421 = vmatprep.subr.bf16.mxu0 %v14526_v32  ;;  %v14548_v55 = vpack.c.bf16 %v5471_v17, %v5470_v3  ;;  %v14554_v6 = vpack.c.bf16 %v5489_v40, %v5488_v19  ;;  %v5501_v23 = vld [vmem:[%s16103_s3 + $0x108] sm:$0xff]  ;;  %v5476_v9 = vld [vmem:[%s16103_s3 + $0x40] sm:$0xff]  ;;  %v5494_v24 = vld [vmem:[%s16103_s3 + $0xd0] sm:$0xff] }
 0x35c   : >> { %2994 = vrot.lane.b32.xlu1 %v2990_v13, %s17023_s27  ;;  %v5330_v8 = vrot.slane %v5322_v20, 1  ;;  %v5333_v51 = vrot.slane %v5324_v7, 1  ;;  %9423 = vmatpush3.bf16.msra.mxu0 %v14528_v16  ;;  %v14574_v45 = vpack.c.bf16 %v5473_v46, %v5472_v35  ;;  %v14580_v28 = vpack.c.bf16 %v5491_v22, %v5490_v52  ;;  %v5477_v43 = vld [vmem:[%s16103_s3 + $0x48] sm:$0xff]  ;;  %v5478_v54 = vld [vmem:[%s16103_s3 + $0x50] sm:$0xff]  ;;  %v5480_v17 = vld [vmem:[%s16103_s3 + $0x60] sm:$0xff] }
 0x35d   : >> { %v5331_v50 = vrot.slane %v5323_v30, 1  ;;  %9425 = vmatprep.subr.bf16.mxu0 %v14530_v11  ;;  %2992 = vrot.lane.b32.xlu0 %v2991_v37, %s17023_s27  ;;  %v5344_v57 = vmax.f32 %v5325_v1, %v5335_v14  ;;  %v14600_v56 = vpack.c.bf16 %v5501_v23, %v5500_v34  ;;  %v14606_v37 = vpack.c.bf16 %v5475_v27, %v5474_v29  ;;  %v5495_v1 = vld [vmem:[%s16103_s3 + $0xd8] sm:$0xff]  ;;  %v5481_v19 = vld [vmem:[%s16103_s3 + $0x68] sm:$0xff]  ;;  %v5498_v40 = vld [vmem:[%s16103_s3 + $0xf0] sm:$0xff] }
 0x35e   : >> { %v5336_v12 = vsel %vm517_vm0, %v5333_v51, %v5335_v14  ;;  %v14632_v18 = vpack.c.bf16 %v5503_v62, %v5502_v49  ;;  %v14635_v39 = vpack.c.bf16 %v5477_v43, %v5476_v9  ;;  %v5499_v14 = vld [vmem:[%s16103_s3 + $0xf8] sm:$0xff] }
 0x35f   : >> { %v5332_v13 = vsel %vm517_vm0, %v5330_v8, %v5331_v50  ;;  %v5334_v60 = vsel %vm517_vm0, %v5331_v50, %v5333_v51  ;;  %v5343_v31 = vmax.f32 %v5324_v7, %v5336_v12  ;;  %v5496_v7 = vld [vmem:[%s16103_s3 + $0xe0] sm:$0xff]  ;;  %v14677_v8 = vpack.c.bf16 %v5481_v19, %v5480_v17  ;;  %v5482_v51 = vld [vmem:[%s16103_s3 + $0x70] sm:$0xff] }
 0x360   : >> { %v5341_v21 = vmax.f32 %v5322_v20, %v5332_v13  ;;  %v5342_v44 = vmax.f32 %v5323_v30, %v5334_v60  ;;  %3481 = vrot.lane.b32.xlu1 %v3480_v42, %s17023_s27  ;;  %9427 = vmatpush3.bf16.msra.mxu0 %v14548_v55  ;;  %v17025_v42 = vld [vmem:[#allocation13_spill] sm:$0xff]  ;;  %v5497_v20 = vld [vmem:[%s16103_s3 + $0xe8] sm:$0xff]  ;;  %v14680_v50 = vpack.c.bf16 %v5499_v14, %v5498_v40  ;;  %v5483_v13 = vld [vmem:[%s16103_s3 + $0x78] sm:$0xff] }
 0x361   : >> { %9429 = vmatprep.subr.bf16.mxu0 %v14554_v6  ;;  %v9414_v59 = vpack.c.bf16 %v5344_v57, %v5343_v31  ;;  %3472 = vrot.lane.b32.xlu0 %v3471_v10, %s17021_s24  ;;  %v5479_v10 = vld [vmem:[%s16103_s3 + $0x58] sm:$0xff]  ;;  %v14660_v3 = vpack.c.bf16 %v5497_v20, %v5496_v7  ;;  %v14689_v60 = vpack.c.bf16 %v5483_v13, %v5482_v51 }
 0x362   : >> { %v9410_v15 = vpack.c.bf16 %v5342_v44, %v5341_v21  ;;  %v14657_v30 = vpack.c.bf16 %v5479_v10, %v5478_v54 }
 0x364   : >> { %9411 = vmatprep.subr.bf16.mxu1 %v9410_v15  ;;  %3483 = vrot.lane.b32.xlu1 %v3479_v33, %s17023_s27  ;;  %v14612_v33 = vpack.c.bf16 %v5493_v25, %v5492_v61  ;;  %v17026_v61 = vld [vmem:[#allocation67_spill] sm:$0xff] }
 0x365   : >> { %9413 = vmatpush3.bf16.msra.mxu1 %v9410_v15  ;;  %9431 = vmatpush3.bf16.msra.mxu0 %v14574_v45 }
 0x366   : >> { %9416 = vmatprep.subr.msk.bf16.mxu1 %vm11185_vm4, %v9414_v59  ;;  %9433 = vmatprep.subr.bf16.mxu0 %v14580_v28 }
 0x367   : >> { %3474 = vrot.lane.b32.xlu0 %v3470_v63, %s17021_s24  ;;  %v14638_v63 = vpack.c.bf16 %v5495_v1, %v5494_v24  ;;  %v17027_v1 = vld [vmem:[#allocation31_spill] sm:$0xff] }
 0x369   : >> { %9419 = vmatpush3.bf16.msk.msra.mxu1 %vm11185_vm4, %v9414_v59  ;;  %9435 = vmatpush3.bf16.msra.mxu0 %v14606_v37 }
 0x36a   : >> { %9453 = vmatprep.subr.bf16.mxu1 %v14600_v56  ;;  %9437 = vmatprep.subr.bf16.mxu0 %v14612_v33 }
 0x36c   : >> { %9164 = vmatmul.mubr.msk.f32.vlgmr.msra.gmra.mrb[8].mxu1 %vm934_vm5, %v17025_v42 }
 0x36d   : >> { %9455 = vmatpush3.bf16.msra.mxu1 %v14600_v56  ;;  %9439 = vmatpush3.bf16.msra.mxu0 %v14635_v39 }
 0x36e   : >> { %9457 = vmatprep.subr.bf16.mxu1 %v14632_v18  ;;  %9441 = vmatprep.subr.bf16.mxu0 %v14638_v63 }
 0x371   : >> { %9459 = vmatpush3.bf16.msra.mxu1 %v14632_v18  ;;  %9443 = vmatpush3.bf16.msra.mxu0 %v14657_v30 }
 0x372   : >> { %9461 = vmatprep.subr.bf16.mxu1 %v14526_v32  ;;  %9445 = vmatprep.subr.bf16.mxu0 %v14660_v3 }
 0x375   : >> { %9447 = vmatpush3.bf16.msra.mxu0 %v14677_v8 }
 0x376   : >> { %9449 = vmatprep.subr.bf16.mxu0 %v14680_v50 }
 0x379   : >> { %9451 = vmatpush3.bf16.msra.mxu0 %v14689_v60 }
 0x37a   : >> { %9493 = vmatprep.subr.bf16.mxu0 %v14600_v56 }
 0x388   : >> { %v14700_v46 = vpop.f32.mrb[6].mxu0 }
 0x389   : >> { %v5458_v12 = vpop.permute.xlu0 %5457  ;;  %v3959_v21 = vrot.slane %v14700_v46, 1  ;;  %v3968_v44 = vrot.slane %v14700_v46, 2  ;;  %v14704_v31 = vpop.f32.mrb[7].mxu0 }
 0x38a   : >> { %9174 = vmatprep.mubr.msk.f32.mxu1 %vm1040_vm6, %v5458_v12  ;;  %v3958_v52 = vrot.slane %v14704_v31, 1  ;;  %v3967_v22 = vrot.slane %v14704_v31, 2 }
 0x38b   : >> { %v5460_v35 = vpop.permute.xlu1 %5459 }
 0x38c   : >> { %9175 = vmatmul.mubr.msk.f32.vlgmr.msra.gmra.mrb[10].mxu1 %vm1040_vm6, %v5460_v35  ;;  %v14713_v15 = vsel %vm517_vm0, %v3958_v52, %v3959_v21  ;;  %v14718_v57 = vsel %vm545_vm1, %v3967_v22, %v3968_v44 }
 0x38d   : >> { %9463 = vmatpush3.bf16.msra.mxu1 %v14528_v16 }
 0x38e   : >> { %9465 = vmatprep.subr.bf16.mxu1 %v14530_v11 }
 0x38f   : >> { %v10177_v34 = vpop.permute.xlu1 %10176  ;;  %v10172_v23 = vpop.permute.xlu0 %10171 }
 0x390   : >> { %v10173_v29 = vunpack.i.l.bf16 %v10172_v23  ;;  %v10174_v59 = vunpack.i.h.bf16 %v10172_v23  ;;  %v10178_v36 = vunpack.i.l.bf16 %v10177_v34  ;;  %v10179_v17 = vunpack.i.h.bf16 %v10177_v34 }
 0x391   : >> { %9467 = vmatpush3.bf16.msra.mxu1 %v14548_v55 }
 0x392   : >> { %9469 = vmatprep.subr.bf16.mxu1 %v14554_v6  ;;  %v1041_v25 = vsel %vm1040_vm6, %v17026_v61, %v10173_v29  ;;  %v1042_v54 = vsel %vm1040_vm6, %v17027_v1, %v10174_v59 }
 0x393   : >> { %v1044_v24 = vsel %vm1043_vm7, %v1041_v25, %v10178_v36  ;;  %v1045_v13 = vsel %vm1043_vm7, %v1042_v54, %v10179_v17 }
 0x395   : >> { %9471 = vmatpush3.bf16.msra.mxu1 %v14574_v45 }
 0x396   : >> { %9473 = vmatprep.subr.bf16.mxu1 %v14580_v28 }
 0x399   : >> { %9475 = vmatpush3.bf16.msra.mxu1 %v14606_v37 }
 0x39a   : >> { %9477 = vmatprep.subr.bf16.mxu1 %v14612_v33 }
 0x39d   : >> { %9479 = vmatpush3.bf16.msra.mxu1 %v14635_v39 }
 0x39e   : >> { %9481 = vmatprep.subr.bf16.mxu1 %v14638_v63 }
 0x3a1   : >> { %9483 = vmatpush3.bf16.msra.mxu1 %v14657_v30 }
 0x3a2   : >> { %9485 = vmatprep.subr.bf16.mxu1 %v14660_v3 }
 0x3a5   : >> { %9487 = vmatpush3.bf16.msra.mxu1 %v14677_v8 }
 0x3a6   : >> { %9489 = vmatprep.subr.bf16.mxu1 %v14680_v50 }
 0x3a9   : >> { %9491 = vmatpush3.bf16.msra.mxu1 %v14689_v60 }
 0x3aa   : >> { %9505 = vmatprep.subr.bf16.mxu1 %v14526_v32 }
 0x3bb   : >> { %v5675_v27 = vpop.permute.xlu1 %5674 }
 0x3c3   : >> { %v10182_v49 = vpop.permute.xlu0 %10181  ;;  %v5677_v62 = vpop.permute.xlu1 %5676 }
 0x3c4   : >> { %v10184_v9 = vunpack.i.h.bf16 %v10182_v49  ;;  %v10183_v43 = vunpack.i.l.bf16 %v10182_v49 }
 0x3c6   : >> { %v5466_v10 = vsel %vm1043_vm7, %v10183_v43, %v5458_v12  ;;  %v5682_v42 = vsel %vm1043_vm7, %v10184_v9, %v5675_v27  ;;  %v5464_v7 = vsel %vm5463_vm8, %v1044_v24, %v10183_v43  ;;  %v5680_v20 = vsel %vm5463_vm8, %v14448_v2, %v10184_v9 }
 0x3c7   : >> { %v10187_v19 = vpop.permute.xlu0 %10186  ;;  %5578 = vmatprep.mubr.f32.mxu0 %v5466_v10  ;;  %5752 = vmatprep.mubr.f32.mxu1 %v5682_v42 }
 0x3c8   : >> { %v10189_v14 = vunpack.i.h.bf16 %v10187_v19  ;;  %v10188_v51 = vunpack.i.l.bf16 %v10187_v19  ;;  %5579 = vmatmul.mubr.f32.vlgmr.msra.gmra.mrb[10].mxu0 %v5464_v7  ;;  %5753 = vmatmul.mubr.f32.vlgmr.msra.gmra.mrb[12].mxu1 %v5680_v20 }
 0x3c9   : >> { %9495 = vmatpush3.bf16.msra.mxu0 %v14600_v56  ;;  %9507 = vmatpush3.bf16.msra.mxu1 %v14528_v16  ;;  %v14771_v25 = vpop.f32.mrb[6].mxu1 }
 0x3ca   : >> { %v2986_v40 = vpop.permute.xlu1 %2985  ;;  %v5467_v12 = vsel %vm1043_vm7, %v10188_v51, %v5460_v35  ;;  %v5683_v52 = vsel %vm1043_vm7, %v10189_v14, %v5677_v62  ;;  %v5465_v2 = vsel %vm5463_vm8, %v1045_v13, %v10188_v51  ;;  %v5681_v22 = vsel %vm5463_vm8, %v14441_v26, %v10189_v14  ;;  %9497 = vmatprep.subr.bf16.mxu0 %v14632_v18  ;;  %v14778_v9 = vpop.f32.mrb[7].mxu1 }
 0x3cb   : >> { %v2984_v34 = vpop.permute.xlu0 %2983  ;;  %5583 = vmatprep.mubr.f32.mxu0 %v5467_v12  ;;  %5757 = vmatprep.mubr.f32.mxu1 %v5683_v52  ;;  %v2999_v23 = vsel %vm1040_vm6, %v13934_v0, %v2986_v40  ;;  %v4448_v49 = vrot.slane %v14771_v25, 1  ;;  %v4447_v24 = vrot.slane %v14778_v9, 1  ;;  %v4456_v1 = vrot.slane %v14778_v9, 2 }
 0x3cc   : >> { %5584 = vmatmul.mubr.f32.gmra.mrb[12].mxu0 %v5465_v2  ;;  %5758 = vmatmul.mubr.f32.gmra.mrb[14].mxu1 %v5681_v22  ;;  %v2998_v59 = vsel %vm1040_vm6, %v13944_v53, %v2984_v34  ;;  %v16376_v51 = vmov 0.0|0.0   ;;  %v16374_v13 = vmov 0.0  }
 0x3cd   : >> { %9499 = vmatpush3.bf16.msra.mxu0 %v14632_v18  ;;  %9185 = vmatprep.mubr.msk.f32.mxu0 %vm1040_vm6, %v5675_v27  ;;  %v4449_v42 = vsel %vm517_vm0, %v4447_v24, %v4448_v49 }
 0x3ce   : >> { %v2995_v29 = vpop.permute.xlu1 %2994  ;;  %9509 = vmatprep.subr.bf16.mxu1 %v14530_v11  ;;  %9500 = vmatprep.subr.bf16.mxu0 %v16376_v51 }
 0x3cf   : >> { %v14752_v35 = vsel %vm1043_vm7, %v2999_v23, %v2995_v29  ;;  %v2993_v26 = vpop.permute.xlu0 %2992  ;;  %9511 = vmatpush3.bf16.msra.mxu1 %v14548_v55 }
 0x3d0   : >> { %5947 = vrot.lane.b32.xlu1 %v14752_v35, %s17023_s27  ;;  %9186 = vmatmul.mubr.msk.f32.vlgmr.msra.gmra.mrb[14].mxu0 %vm1040_vm6, %v5677_v62  ;;  %v14764_v0 = vsel %vm1043_vm7, %v2998_v59, %v2993_v26  ;;  %v4457_v62 = vrot.slane %v14771_v25, 2  ;;  %v10195_v54 = vpack.i.bf16 %v14752_v35, %v14458_v47 }
 0x3d1   : >> { %9513 = vmatprep.subr.bf16.mxu1 %v14554_v6  ;;  %5945 = vrot.lane.b32.xlu0 %v14764_v0, %s17023_s27  ;;  %v10190_v27 = vpack.i.bf16 %v14764_v0, %v14417_v58 }
 0x3d2   : >> { %v3482_v61 = vpop.permute.xlu1 %3481  ;;  %v4458_v7 = vsel %vm545_vm1, %v4456_v1, %v4457_v62  ;;  %9192 = vmatprep.mubr.msk.f32.mxu0 %vm10353_vm9, %v16374_v13 }
 0x3d3   : >> { %v3473_v53 = vpop.permute.xlu0 %3472  ;;  %9515 = vmatpush3.bf16.msra.mxu1 %v14574_v45 }
 0x3d4   : >> { %v3487_v36 = vsel %vm1040_vm6, %v14419_v48, %v3473_v53  ;;  %9517 = vmatprep.subr.bf16.mxu1 %v14580_v28 }
 0x3d5   : >> { %v14782_v43 = vsel %vm1043_vm7, %v3487_v36, %v3482_v61  ;;  %10191 = vrot.lane.b32.xlu0 %v10190_v27, %s17020_s23 }
 0x3d6   : >> { %6119 = vrot.lane.b32.xlu1 %v14782_v43, %s17023_s27  ;;  %v3484_v48 = vpop.permute.xlu1 %3483 }
 0x3d7   : >> { %9519 = vmatpush3.bf16.msra.mxu1 %v14606_v37 }
 0x3d8   : >> { %9521 = vmatprep.subr.bf16.mxu1 %v14612_v33 }
 0x3d9   : >> { %v3475_v10 = vpop.permute.xlu0 %3474  ;;  %10196 = vrot.lane.b32.xlu0 %v10195_v54, %s17020_s23 }
 0x3da   : >> { %v3488_v20 = vsel %vm1040_vm6, %v14410_v5, %v3475_v10 }
 0x3db   : >> { %v14798_v17 = vsel %vm1043_vm7, %v3488_v20, %v3484_v48  ;;  %9523 = vmatpush3.bf16.msra.mxu1 %v14635_v39 }
 0x3dc   : >> { %6121 = vrot.lane.b32.xlu1 %v14798_v17, %s17023_s27  ;;  %9525 = vmatprep.subr.bf16.mxu1 %v14638_v63 }
 0x3dd   : >> { %3961 = vrot.lane.b32.xlu0 %v14713_v15, %s17021_s24 }
 0x3df   : >> { %9527 = vmatpush3.bf16.msra.mxu1 %v14657_v30 }
 0x3e0   : >> { %3963 = vrot.lane.b32.xlu1 %v3959_v21, %s17021_s24  ;;  %9529 = vmatprep.subr.bf16.mxu1 %v14660_v3 }
 0x3e1   : >> { %3970 = vrot.lane.b32.xlu0 %v14718_v57, %s17023_s27 }
 0x3e3   : >> { %9531 = vmatpush3.bf16.msra.mxu1 %v14677_v8 }
 0x3e4   : >> { %3972 = vrot.lane.b32.xlu1 %v3968_v44, %s17023_s27  ;;  %9533 = vmatprep.subr.bf16.mxu1 %v14680_v50 }
 0x3e5   : >> { %4450 = vrot.lane.b32.xlu0 %v4449_v42, %s17021_s24 }
 0x3e7   : >> { %9535 = vmatpush3.bf16.msra.mxu1 %v14689_v60 }
 0x3e8   : >> { %4459 = vrot.lane.b32.xlu1 %v4458_v7, %s17023_s27  ;;  %9577 = vmatprep.subr.bf16.mxu1 %v14600_v56 }
 0x3e9   : >> { %4452 = vrot.lane.b32.xlu0 %v4448_v49, %s17021_s24 }
 0x3ec   : >> { %4461 = vrot.lane.b32.xlu1 %v4457_v62, %s17023_s27 }
 0x408   : >> { %v14825_v5 = vpop.f32.mrb[8].mxu0 }
 0x409   : >> { %v4937_v21 = vrot.slane %v14825_v5, 1  ;;  %v4946_v44 = vrot.slane %v14825_v5, 2  ;;  %v14829_v15 = vpop.f32.mrb[9].mxu0 }
 0x40a   : >> { %v4936_v57 = vrot.slane %v14829_v15, 1  ;;  %v4945_v19 = vrot.slane %v14829_v15, 2 }
 0x40c   : >> { %v14836_v40 = vsel %vm517_vm0, %v4936_v57, %v4937_v21  ;;  %v14841_v14 = vsel %vm545_vm1, %v4945_v19, %v4946_v44 }
 0x43f   : >> { %v14846_v12 = vpop.f32.mrb[8].mxu1 }
 0x440   : >> { %v5426_v52 = vrot.slane %v14846_v12, 1  ;;  %v5435_v2 = vrot.slane %v14846_v12, 2  ;;  %v14850_v22 = vpop.f32.mrb[9].mxu1 }
 0x441   : >> { %v5425_v34 = vrot.slane %v14850_v22, 1  ;;  %v5434_v23 = vrot.slane %v14850_v22, 2 }
 0x442   : >> { %v14860_v26 = vpop.permute.xlu1 %5947 }
 0x443   : >> { %v5427_v29 = vsel %vm517_vm0, %v5425_v34, %v5426_v52  ;;  %v5436_v59 = vsel %vm545_vm1, %v5434_v23, %v5435_v2  ;;  %v14862_v61 = vpop.permute.xlu0 %5945 }
 0x447   : >> { %v14864_v53 = vpop.permute.xlu0 %10191 }
 0x448   : >> { %v16379_v27 = vunpack.i.h.bf16 %v14864_v53  ;;  %v10193_v36 = vunpack.i.l.bf16 %v14864_v53  ;;  %v6120_v49 = vpop.permute.xlu1 %6119 }
 0x44a   : >> { %v5953_v62 = vsel %vm1043_vm7, %v10193_v36, %v14862_v61  ;;  %v5951_v24 = vsel %vm5463_vm8, %v14105_v38, %v10193_v36  ;;  %v14875_v1 = vsel %vm1043_vm7, %v16379_v27, %v6120_v49 }
 0x44b   : >> { %v14877_v48 = vpop.permute.xlu0 %10196  ;;  %6023 = vmatprep.mubr.f32.mxu1 %v5953_v62 }
 0x44c   : >> { %v16378_v54 = vunpack.i.h.bf16 %v14877_v48  ;;  %v10198_v10 = vunpack.i.l.bf16 %v14877_v48  ;;  %6024 = vmatmul.mubr.f32.vlgmr.msra.gmra.mrb[16].mxu1 %v5951_v24 }
 0x44d   : >> { %9579 = vmatpush3.bf16.msra.mxu1 %v14600_v56 }
 0x44e   : >> { %v6122_v42 = vpop.permute.xlu1 %6121  ;;  %v5954_v7 = vsel %vm1043_vm7, %v10198_v10, %v14860_v26  ;;  %v5952_v38 = vsel %vm5463_vm8, %v14102_v41, %v10198_v10  ;;  %9581 = vmatprep.subr.bf16.mxu1 %v14632_v18 }
 0x44f   : >> { %v14890_v20 = vsel %vm1043_vm7, %v16378_v54, %v6122_v42  ;;  %v3962_v57 = vpop.permute.xlu0 %3961  ;;  %6028 = vmatprep.mubr.f32.mxu1 %v5954_v7 }
 0x450   : >> { %6029 = vmatmul.mubr.f32.gmra.mrb[18].mxu1 %v5952_v38  ;;  %v3976_v34 = vsel %vm1040_vm6, %v14704_v31, %v3962_v57 }
 0x451   : >> { %9583 = vmatpush3.bf16.msra.mxu1 %v14632_v18  ;;  %9214 = vmatprep.mubr.msk.f32.mxu1 %vm1040_vm6, %v6120_v49 }
 0x452   : >> { %v3964_v19 = vpop.permute.xlu1 %3963  ;;  %9584 = vmatprep.subr.bf16.mxu1 %v16376_v51 }
 0x453   : >> { %v3977_v41 = vsel %vm1040_vm6, %v14700_v46, %v3964_v19  ;;  %v3971_v23 = vpop.permute.xlu0 %3970 }
 0x454   : >> { %v14900_v36 = vsel %vm1043_vm7, %v3976_v34, %v3971_v23  ;;  %9215 = vmatmul.mubr.msk.f32.vlgmr.msra.gmra.mrb[20].mxu1 %vm1040_vm6, %v6122_v42 }
 0x455   : >> { %6385 = vrot.lane.b32.xlu0 %v14900_v36, %s17023_s27  ;;  %9221 = vmatprep.mubr.msk.f32.mxu1 %vm10353_vm9, %v16374_v13  ;;  %v10200_v46 = vpack.i.bf16 %v14900_v36, %v14782_v43 }
 0x456   : >> { %v3973_v62 = vpop.permute.xlu1 %3972 }
 0x457   : >> { %v14904_v24 = vsel %vm1043_vm7, %v3977_v41, %v3973_v62  ;;  %v4451_v31 = vpop.permute.xlu0 %4450  ;;  %v17028_v62 = vld [vmem:[#allocation11_spill] sm:$0xff] }
 0x458   : >> { %6387 = vrot.lane.b32.xlu1 %v14904_v24, %s17023_s27  ;;  %v4465_v49 = vsel %vm1040_vm6, %v14778_v9, %v4451_v31  ;;  %v10205_v7 = vpack.i.bf16 %v14904_v24, %v14798_v17 }
 0x459   : >> { %10201 = vrot.lane.b32.xlu0 %v10200_v46, %s17020_s23 }
 0x45a   : >> { %v4460_v10 = vpop.permute.xlu1 %4459 }
 0x45b   : >> { %v14917_v42 = vsel %vm1043_vm7, %v4465_v49, %v4460_v10  ;;  %v4453_v38 = vpop.permute.xlu0 %4452 }
 0x45c   : >> { %6559 = vrot.lane.b32.xlu1 %v14917_v42, %s17023_s27  ;;  %v4466_v57 = vsel %vm1040_vm6, %v14771_v25, %v4453_v38 }
 0x45d   : >> { %10206 = vrot.lane.b32.xlu0 %v10205_v7, %s17020_s23 }
 0x45e   : >> { %v4462_v19 = vpop.permute.xlu1 %4461 }
 0x45f   : >> { %v14927_v34 = vsel %vm1043_vm7, %v4466_v57, %v4462_v19  ;;  %v9176_v25 = vpop.f32.mrb[10].mxu1 }
 0x460   : >> { %6561 = vrot.lane.b32.xlu1 %v14927_v34, %s17023_s27  ;;  %v5655_v9 = vpop.f32.mrb[11].mxu1 }
 0x461   : >> { %4939 = vrot.lane.b32.xlu0 %v14836_v40, %s17021_s24 }
 0x464   : >> { %4941 = vrot.lane.b32.xlu1 %v4937_v21, %s17021_s24 }
 0x465   : >> { %4948 = vrot.lane.b32.xlu0 %v14841_v14, %s17023_s27 }
 0x468   : >> { %4950 = vrot.lane.b32.xlu1 %v4946_v44, %s17023_s27 }
 0x469   : >> { %5428 = vrot.lane.b32.xlu0 %v5427_v29, %s17021_s24 }
 0x46c   : >> { %5437 = vrot.lane.b32.xlu1 %v5436_v59, %s17023_s27 }
 0x46d   : >> { %5430 = vrot.lane.b32.xlu0 %v5426_v52, %s17021_s24 }
 0x470   : >> { %5439 = vrot.lane.b32.xlu1 %v5435_v2, %s17023_s27 }
 0x49b   : >> { %v8496_v21 = vpop.f32.mrb[10].mxu0  ;;  %v8540_v40 = vpop.f32.mrb[12].mxu1 }
 0x49c   : >> { %v8497_v14 = vpop.f32.mrb[11].mxu0  ;;  %v8541_v41 = vpop.f32.mrb[13].mxu1 }
 0x49d   : >> { %v8498_v23 = vadd.f32 %v8497_v14, %v8496_v21  ;;  %v8542_v44 = vadd.f32 %v8541_v41, %v8540_v40 }
 0x49f   : >> { %v5581_v46 = vadd.f32 %v8498_v23, %v17028_v62  ;;  %v8499_v31 = vpop.f32.mrb[12].mxu0  ;;  %v8543_v29 = vpop.f32.mrb[14].mxu1  ;;  %v5755_v52 = vadd.f32 %v8542_v44, %v17028_v62 }
 0x4a0   : >> { %v8500_v49 = vpop.f32.mrb[13].mxu0  ;;  %v8544_v59 = vpop.f32.mrb[15].mxu1 }
 0x4a1   : >> { %v5656_v10 = vadd.f32 %v5655_v9, %v5581_v46  ;;  %v8501_v7 = vadd.f32 %v8500_v49, %v8499_v31  ;;  %v8545_v38 = vadd.f32 %v8544_v59, %v8543_v29 }
 0x4a3   : >> { %v5586_v57 = vadd.f32 %v8501_v7, %v17028_v62  ;;  %v5760_v2 = vadd.f32 %v8545_v38, %v17028_v62  ;;  %v9187_v19 = vpop.f32.mrb[14].mxu0  ;;  %v5664_v14 = vmax.f32 %v5656_v10, 0.0 }
 0x4a4   : >> { %v5829_v13 = vpop.f32.mrb[15].mxu0 }
 0x4a5   : >> { %v5661_v51 = vadd.f32 %v9176_v25, %v5586_v57  ;;  %v5835_v21 = vadd.f32 %v9187_v19, %v5760_v2  ;;  %v5830_v40 = vadd.f32 %v5829_v13, %v5755_v52 }
 0x4a7   : >> { %v5665_v41 = vmax.f32 %v5661_v51, 0.0  ;;  %v5839_v23 = vmax.f32 %v5835_v21, 0.0  ;;  %v5838_v54 = vmax.f32 %v5830_v40, 0.0  ;;  %v17031_v51 = vld [vmem:[#allocation15_spill] sm:$0xff] }
 0x4a9   : >> { %v5841_v27 = vmax.f32 %v5665_v41, %v5839_v23  ;;  %v5840_v4 = vmax.f32 %v5664_v14, %v5838_v54 }
 0x4ab   : >> { %v5845_v9 = vrot.slane %v5841_v27, 1  ;;  %v5844_v46 = vrot.slane %v5840_v4, 1 }
 0x4ad   : >> { %v5850_v31 = vmax.f32 %v5841_v27, %v5845_v9  ;;  %v5846_v44 = vsel %vm517_vm0, %v5844_v46, %v5845_v9  ;;  %v17032_v9 = vunpack.i.h.bf16 %v14864_v53 }
 0x4ae   : >> { %v5849_v29 = vmax.f32 %v5840_v4, %v5846_v44 }
 0x4af   : >> { %v6125_v46 = vsel %vm5463_vm8, %v14417_v58, %v17032_v9 }
 0x4b0   : >> { %v9501_v25 = vpack.c.bf16 %v5850_v31, %v5849_v29 }
 0x4b2   : >> { %9503 = vmatpush3.bf16.msk.msra.mxu0 %vm14956_vm11, %v9501_v25  ;;  %v17033_v25 = vunpack.i.h.bf16 %v14877_v48 }
 0x4b3   : >> { %9537 = vmatprep.subr.bf16.mxu0 %v14600_v56 }
 0x4b5   : >> { %9193 = vmatmul.mubr.msk.f32.vlgmr.msra.gmra.mrb[16].mxu0 %vm5851_vm12, %v17031_v51 }
 0x4b6   : >> { %9539 = vmatpush3.bf16.msra.mxu0 %v14600_v56  ;;  %9203 = vmatprep.mubr.msk.f32.mxu0 %vm1040_vm6, %v14862_v61 }
 0x4b7   : >> { %9541 = vmatprep.subr.bf16.mxu0 %v14632_v18 }
 0x4ba   : >> { %9543 = vmatpush3.bf16.msra.mxu0 %v14632_v18 }
 0x4bb   : >> { %9545 = vmatprep.subr.bf16.mxu0 %v14526_v32 }
 0x4bd   : >> { %9204 = vmatmul.mubr.msk.f32.vlgmr.msra.gmra.mrb[18].mxu0 %vm1040_vm6, %v14860_v26 }
 0x4be   : >> { %9547 = vmatpush3.bf16.msra.mxu0 %v14528_v16  ;;  %6197 = vmatprep.mubr.f32.mxu0 %v14875_v1 }
 0x4bf   : >> { %9549 = vmatprep.subr.bf16.mxu0 %v14530_v11 }
 0x4c2   : >> { %9551 = vmatpush3.bf16.msra.mxu0 %v14548_v55 }
 0x4c3   : >> { %9553 = vmatprep.subr.bf16.mxu0 %v14554_v6 }
 0x4c6   : >> { %9555 = vmatpush3.bf16.msra.mxu0 %v14574_v45 }
 0x4c7   : >> { %v14979_v4 = vpop.permute.xlu0 %6385  ;;  %9557 = vmatprep.subr.bf16.mxu0 %v14580_v28 }
 0x4ca   : >> { %v14982_v13 = vpop.permute.xlu1 %6387  ;;  %9559 = vmatpush3.bf16.msra.mxu0 %v14606_v37 }
 0x4cb   : >> { %v14985_v26 = vpop.permute.xlu0 %10201  ;;  %9561 = vmatprep.subr.bf16.mxu0 %v14612_v33 }
 0x4cc   : >> { %v10204_v61 = vunpack.i.h.bf16 %v14985_v26  ;;  %v10203_v31 = vunpack.i.l.bf16 %v14985_v26 }
 0x4ce   : >> { %v14989_v27 = vpop.permute.xlu1 %6559  ;;  %9563 = vmatpush3.bf16.msra.mxu0 %v14635_v39 }
 0x4cf   : >> { %v14996_v1 = vsel %vm1043_vm7, %v10204_v61, %v14989_v27  ;;  %v14998_v54 = vpop.permute.xlu0 %10206  ;;  %9565 = vmatprep.subr.bf16.mxu0 %v14638_v63 }
 0x4d0   : >> { %v10209_v59 = vunpack.i.h.bf16 %v14998_v54 }
 0x4d2   : >> { %v15002_v10 = vpop.permute.xlu1 %6561  ;;  %9567 = vmatpush3.bf16.msra.mxu0 %v14657_v30 }
 0x4d3   : >> { %v15009_v7 = vsel %vm1043_vm7, %v10209_v59, %v15002_v10  ;;  %v4940_v38 = vpop.permute.xlu0 %4939  ;;  %9569 = vmatprep.subr.bf16.mxu0 %v14660_v3 }
 0x4d4   : >> { %v4954_v57 = vsel %vm1040_vm6, %v14829_v15, %v4940_v38  ;;  %v6126_v38 = vsel %vm5463_vm8, %v14458_v47, %v17033_v25  ;;  %v10208_v47 = vunpack.i.l.bf16 %v14998_v54 }
 0x4d6   : >> { %v4942_v52 = vpop.permute.xlu1 %4941  ;;  %9571 = vmatpush3.bf16.msra.mxu0 %v14677_v8  ;;  %v6394_v48 = vsel %vm1043_vm7, %v10208_v47, %v14982_v13 }
 0x4d7   : >> { %v4949_v2 = vpop.permute.xlu0 %4948  ;;  %9573 = vmatprep.subr.bf16.mxu0 %v14680_v50  ;;  %v4955_v19 = vsel %vm1040_vm6, %v14825_v5, %v4942_v52  ;;  %v6393_v52 = vsel %vm1043_vm7, %v10203_v31, %v14979_v4 }
 0x4d8   : >> { %v4956_v21 = vsel %vm1043_vm7, %v4954_v57, %v4949_v2  ;;  %v6392_v57 = vsel %vm5463_vm8, %v14752_v35, %v10208_v47  ;;  %v17034_v2 = vmov 0.0|0.0  }
 0x4d9   : >> { %6824 = vrot.lane.b32.xlu0 %v4956_v21, %s17023_s27  ;;  %v10210_v41 = vpack.i.bf16 %v4956_v21, %v14917_v42 }
 0x4da   : >> { %v4951_v40 = vpop.permute.xlu1 %4950  ;;  %9575 = vmatpush3.bf16.msra.mxu0 %v14689_v60 }
 0x4db   : >> { %v4957_v14 = vsel %vm1043_vm7, %v4955_v19, %v4951_v40  ;;  %v5429_v15 = vpop.permute.xlu0 %5428  ;;  %9589 = vmatprep.subr.bf16.mxu0 %v14526_v32 }
 0x4dc   : >> { %6826 = vrot.lane.b32.xlu1 %v4957_v14, %s17023_s27  ;;  %v5443_v23 = vsel %vm1040_vm6, %v14850_v22, %v5429_v15  ;;  %v10215_v29 = vpack.i.bf16 %v4957_v14, %v14927_v34 }
 0x4dd   : >> { %10211 = vrot.lane.b32.xlu0 %v10210_v41, %s17020_s23  ;;  %6198 = vmatmul.mubr.f32.vlgmr.msra.gmra.mrb[20].mxu0 %v6125_v46 }
 0x4de   : >> { %v5438_v5 = vpop.permute.xlu1 %5437  ;;  %6202 = vmatprep.mubr.f32.mxu0 %v14890_v20  ;;  %9591 = vmatpush3.bf16.msra.mxu0 %v14528_v16 }
 0x4df   : >> { %v5445_v44 = vsel %vm1043_vm7, %v5443_v23, %v5438_v5  ;;  %v5431_v22 = vpop.permute.xlu0 %5430  ;;  %9593 = vmatprep.subr.bf16.mxu0 %v14530_v11 }
 0x4e0   : >> { %6998 = vrot.lane.b32.xlu1 %v5445_v44, %s17023_s27  ;;  %v5444_v58 = vsel %vm1040_vm6, %v14846_v12, %v5431_v22  ;;  %v6391_v12 = vsel %vm5463_vm8, %v14764_v0, %v10203_v31  ;;  %v17035_v0 = vmov 0.0  }
 0x4e1   : >> { %10216 = vrot.lane.b32.xlu0 %v10215_v29, %s17020_s23  ;;  %6203 = vmatmul.mubr.f32.gmra.mrb[22].mxu0 %v6126_v38 }
 0x4e2   : >> { %v5440_v53 = vpop.permute.xlu1 %5439  ;;  %9595 = vmatpush3.bf16.msra.mxu0 %v14548_v55  ;;  %6463 = vmatprep.mubr.f32.mxu0 %v6393_v52 }
 0x4e3   : >> { %v5446_v20 = vsel %vm1043_vm7, %v5444_v58, %v5440_v53  ;;  %9597 = vmatprep.subr.bf16.mxu0 %v14554_v6 }
 0x4e4   : >> { %7000 = vrot.lane.b32.xlu1 %v5446_v20, %s17023_s27 }
 0x4e6   : >> { %9599 = vmatpush3.bf16.msra.mxu0 %v14574_v45 }
 0x4e7   : >> { %9601 = vmatprep.subr.bf16.mxu0 %v14580_v28 }
 0x4ea   : >> { %9603 = vmatpush3.bf16.msra.mxu0 %v14606_v37 }
 0x4eb   : >> { %9605 = vmatprep.subr.bf16.mxu0 %v14612_v33 }
 0x4ee   : >> { %9607 = vmatpush3.bf16.msra.mxu0 %v14635_v39 }
 0x4ef   : >> { %9609 = vmatprep.subr.bf16.mxu0 %v14638_v63 }
 0x4f2   : >> { %9611 = vmatpush3.bf16.msra.mxu0 %v14657_v30 }
 0x4f3   : >> { %9613 = vmatprep.subr.bf16.mxu0 %v14660_v3 }
 0x4f6   : >> { %9615 = vmatpush3.bf16.msra.mxu0 %v14677_v8 }
 0x4f7   : >> { %9617 = vmatprep.subr.bf16.mxu0 %v14680_v50 }
 0x4fa   : >> { %9619 = vmatpush3.bf16.msra.mxu0 %v14689_v60 }
 0x4fb   : >> { %9661 = vmatprep.subr.bf16.mxu0 %v14600_v56 }
 0x4fd   : >> { %6464 = vmatmul.mubr.f32.vlgmr.msra.gmra.mrb[24].mxu0 %v6391_v12 }
 0x4fe   : >> { %6468 = vmatprep.mubr.f32.mxu0 %v6394_v48  ;;  %9663 = vmatpush3.bf16.msra.mxu0 %v14600_v56 }
 0x4ff   : >> { %9665 = vmatprep.subr.bf16.mxu0 %v14632_v18 }
 0x501   : >> { %6469 = vmatmul.mubr.f32.gmra.mrb[26].mxu0 %v6392_v57 }
 0x502   : >> { %9667 = vmatpush3.bf16.msra.mxu0 %v14632_v18  ;;  %9243 = vmatprep.mubr.msk.f32.mxu0 %vm1040_vm6, %v14989_v27 }
 0x503   : >> { %9668 = vmatprep.subr.bf16.mxu0 %v17034_v2 }
 0x505   : >> { %9244 = vmatmul.mubr.msk.f32.vlgmr.msra.gmra.mrb[28].mxu0 %vm1040_vm6, %v15002_v10 }
 0x506   : >> { %9250 = vmatprep.mubr.msk.f32.mxu0 %vm10353_vm9, %v17035_v0 }
 0x51f   : >> { %v8587_v19 = vpop.f32.mrb[16].mxu1 }
 0x520   : >> { %v8588_v21 = vpop.f32.mrb[17].mxu1 }
 0x521   : >> { %v8589_v40 = vadd.f32 %v8588_v21, %v8587_v19 }
 0x523   : >> { %v8590_v14 = vpop.f32.mrb[18].mxu1  ;;  %v6026_v46 = vadd.f32 %v8589_v40, %v17028_v62 }
 0x524   : >> { %v8591_v41 = vpop.f32.mrb[19].mxu1 }
 0x525   : >> { %v8592_v35 = vadd.f32 %v8591_v41, %v8590_v14 }
 0x527   : >> { %v9216_v15 = vpop.f32.mrb[20].mxu1  ;;  %v6031_v27 = vadd.f32 %v8592_v35, %v17028_v62 }
 0x528   : >> { %v6274_v23 = vpop.f32.mrb[21].mxu1 }
 0x588   : >> { %v15081_v5 = vpop.f32.mrb[16].mxu0 }
 0x589   : >> { %v9194_v9 = vpop.f32.mrb[17].mxu0 }
 0x590   : >> { %v9205_v31 = vpop.f32.mrb[18].mxu0 }
 0x591   : >> { %v6106_v10 = vadd.f32 %v9205_v31, %v6031_v27  ;;  %v6100_v44 = vpop.f32.mrb[19].mxu0 }
 0x592   : >> { %v6101_v29 = vadd.f32 %v6100_v44, %v6026_v46 }
 0x593   : >> { %v6110_v40 = vmax.f32 %v6106_v10, 0.0 }
 0x594   : >> { %v6109_v12 = vmax.f32 %v6101_v29, 0.0 }
 0x5b0   : >> { %v8631_v22 = vpop.f32.mrb[20].mxu0 }
 0x5b1   : >> { %v8632_v58 = vpop.f32.mrb[21].mxu0 }
 0x5b2   : >> { %v8633_v53 = vadd.f32 %v8632_v58, %v8631_v22 }
 0x5b4   : >> { %v6200_v25 = vadd.f32 %v8633_v53, %v17028_v62  ;;  %v8634_v38 = vpop.f32.mrb[22].mxu0 }
 0x5b5   : >> { %v8635_v20 = vpop.f32.mrb[23].mxu0 }
 0x5b6   : >> { %v6275_v52 = vadd.f32 %v6274_v23, %v6200_v25  ;;  %v8636_v47 = vadd.f32 %v8635_v20, %v8634_v38  ;;  %v6565_v25 = vsel %vm5463_vm8, %v14782_v43, %v10204_v61  ;;  %v6566_v20 = vsel %vm5463_vm8, %v14798_v17, %v10209_v59  ;;  %v15158_v17 = vpop.permute.xlu1 %6826 }
 0x5b8   : >> { %v6283_v48 = vmax.f32 %v6275_v52, 0.0  ;;  %v6205_v57 = vadd.f32 %v8636_v47, %v17028_v62 }
 0x5ba   : >> { %v6285_v19 = vmax.f32 %v6109_v12, %v6283_v48  ;;  %v6280_v21 = vadd.f32 %v9216_v15, %v6205_v57 }
 0x5bc   : >> { %v6284_v14 = vmax.f32 %v6280_v21, 0.0  ;;  %v6289_v35 = vrot.slane %v6285_v19, 1 }
 0x5be   : >> { %v6286_v41 = vmax.f32 %v6110_v40, %v6284_v14 }
 0x5c0   : >> { %v6290_v9 = vrot.slane %v6286_v41, 1 }
 0x5c2   : >> { %v6291_v27 = vsel %vm517_vm0, %v6289_v35, %v6290_v9  ;;  %v6295_v46 = vmax.f32 %v6286_v41, %v6290_v9 }
 0x5c3   : >> { %v6294_v31 = vmax.f32 %v6285_v19, %v6291_v27 }
 0x5c5   : >> { %v9585_v44 = vpack.c.bf16 %v6295_v46, %v6294_v31 }
 0x5c7   : >> { %9587 = vmatpush3.bf16.msk.msra.mxu1 %vm14956_vm11, %v9585_v44 }
 0x5c8   : >> { %9621 = vmatprep.subr.bf16.mxu1 %v14600_v56 }
 0x5ca   : >> { %9222 = vmatmul.mubr.msk.f32.vlgmr.msra.gmra.mrb[22].mxu1 %vm5851_vm12, %v17031_v51 }
 0x5cb   : >> { %9623 = vmatpush3.bf16.msra.mxu1 %v14600_v56  ;;  %9232 = vmatprep.mubr.msk.f32.mxu1 %vm1040_vm6, %v14979_v4 }
 0x5cc   : >> { %9625 = vmatprep.subr.bf16.mxu1 %v14632_v18 }
 0x5cf   : >> { %9627 = vmatpush3.bf16.msra.mxu1 %v14632_v18 }
 0x5d0   : >> { %v8678_v15 = vpop.f32.mrb[24].mxu0  ;;  %9629 = vmatprep.subr.bf16.mxu1 %v14526_v32 }
 0x5d1   : >> { %v8679_v23 = vpop.f32.mrb[25].mxu0 }
 0x5d2   : >> { %v15099_v10 = vadd.f32 %v8679_v23, %v8678_v15  ;;  %9233 = vmatmul.mubr.msk.f32.vlgmr.msra.gmra.mrb[24].mxu1 %vm1040_vm6, %v14982_v13  ;;  %v15122_v13 = vpop.permute.xlu0 %6824 }
 0x5d3   : >> { %9631 = vmatpush3.bf16.msra.mxu1 %v14528_v16  ;;  %6637 = vmatprep.mubr.f32.mxu1 %v14996_v1 }
 0x5d4   : >> { %v8681_v29 = vpop.f32.mrb[26].mxu0  ;;  %9633 = vmatprep.subr.bf16.mxu1 %v14530_v11  ;;  %v6466_v57 = vadd.f32 %v15099_v10, %v17028_v62 }
 0x5d5   : >> { %v8682_v4 = vpop.f32.mrb[27].mxu0 }
 0x5d6   : >> { %v15106_v22 = vadd.f32 %v8682_v4, %v8681_v29  ;;  %v15126_v1 = vpop.permute.xlu0 %10211 }
 0x5d7   : >> { %9635 = vmatpush3.bf16.msra.mxu1 %v14548_v55  ;;  %v10213_v38 = vunpack.i.l.bf16 %v15126_v1 }
 0x5d8   : >> { %v15109_v58 = vpop.f32.mrb[28].mxu0  ;;  %9637 = vmatprep.subr.bf16.mxu1 %v14554_v6  ;;  %v6471_v48 = vadd.f32 %v15106_v22, %v17028_v62 }
 0x5d9   : >> { %v15112_v53 = vpop.f32.mrb[29].mxu0  ;;  %v6832_v26 = vsel %vm1043_vm7, %v10213_v38, %v15122_v13  ;;  %v6830_v54 = vsel %vm5463_vm8, %v14900_v36, %v10213_v38 }
 0x5da   : >> { %v15154_v43 = vpop.permute.xlu0 %10216 }
 0x5db   : >> { %9639 = vmatpush3.bf16.msra.mxu1 %v14574_v45  ;;  %v10218_v61 = vunpack.i.l.bf16 %v15154_v43 }
 0x5dc   : >> { %9641 = vmatprep.subr.bf16.mxu1 %v14580_v28 }
 0x5dd   : >> { %v6833_v59 = vsel %vm1043_vm7, %v10218_v61, %v15158_v17  ;;  %v6831_v52 = vsel %vm5463_vm8, %v14904_v24, %v10218_v61 }
 0x5df   : >> { %9643 = vmatpush3.bf16.msra.mxu1 %v14606_v37 }
 0x5e0   : >> { %9645 = vmatprep.subr.bf16.mxu1 %v14612_v33 }
 0x5e3   : >> { %9647 = vmatpush3.bf16.msra.mxu1 %v14635_v39 }
 0x5e4   : >> { %9649 = vmatprep.subr.bf16.mxu1 %v14638_v63 }
 0x5e7   : >> { %9651 = vmatpush3.bf16.msra.mxu1 %v14657_v30 }
 0x5e8   : >> { %9653 = vmatprep.subr.bf16.mxu1 %v14660_v3 }
 0x5eb   : >> { %9655 = vmatpush3.bf16.msra.mxu1 %v14677_v8 }
 0x5ec   : >> { %9657 = vmatprep.subr.bf16.mxu1 %v14680_v50 }
 0x5ef   : >> { %9659 = vmatpush3.bf16.msra.mxu1 %v14689_v60 }
 0x5f0   : >> { %9673 = vmatprep.subr.bf16.mxu1 %v14526_v32 }
 0x5f2   : >> { %6638 = vmatmul.mubr.f32.vlgmr.msra.gmra.mrb[26].mxu1 %v6565_v25 }
 0x5f3   : >> { %6642 = vmatprep.mubr.f32.mxu1 %v15009_v7  ;;  %9675 = vmatpush3.bf16.msra.mxu1 %v14528_v16  ;;  %v6999_v7 = vpop.permute.xlu1 %6998 }
 0x5f4   : >> { %9677 = vmatprep.subr.bf16.mxu1 %v14530_v11 }
 0x5f6   : >> { %6643 = vmatmul.mubr.f32.gmra.mrb[28].mxu1 %v6566_v20 }
 0x5f7   : >> { %9679 = vmatpush3.bf16.msra.mxu1 %v14548_v55  ;;  %6902 = vmatprep.mubr.f32.mxu1 %v6832_v26  ;;  %v15174_v36 = vpop.permute.xlu1 %7000 }
 0x5f8   : >> { %9681 = vmatprep.subr.bf16.mxu1 %v14554_v6 }
 0x5fb   : >> { %9683 = vmatpush3.bf16.msra.mxu1 %v14574_v45 }
 0x5fc   : >> { %9685 = vmatprep.subr.bf16.mxu1 %v14580_v28 }
 0x5ff   : >> { %9687 = vmatpush3.bf16.msra.mxu1 %v14606_v37 }
 0x600   : >> { %9689 = vmatprep.subr.bf16.mxu1 %v14612_v33 }
 0x603   : >> { %9691 = vmatpush3.bf16.msra.mxu1 %v14635_v39 }
 0x604   : >> { %9693 = vmatprep.subr.bf16.mxu1 %v14638_v63 }
 0x607   : >> { %9695 = vmatpush3.bf16.msra.mxu1 %v14657_v30 }
 0x608   : >> { %9697 = vmatprep.subr.bf16.mxu1 %v14660_v3 }
 0x60b   : >> { %9699 = vmatpush3.bf16.msra.mxu1 %v14677_v8 }
 0x60c   : >> { %9701 = vmatprep.subr.bf16.mxu1 %v14680_v50 }
 0x60f   : >> { %9703 = vmatpush3.bf16.msra.mxu1 %v14689_v60 }
 0x610   : >> { %9745 = vmatprep.subr.bf16.mxu1 %v14600_v56 }
 0x612   : >> { %6903 = vmatmul.mubr.f32.vlgmr.msra.gmra.mrb[30].mxu1 %v6830_v54 }
 0x613   : >> { %6907 = vmatprep.mubr.f32.mxu1 %v6833_v59  ;;  %9747 = vmatpush3.bf16.msra.mxu1 %v14600_v56 }
 0x614   : >> { %9749 = vmatprep.subr.bf16.mxu1 %v14632_v18 }
 0x616   : >> { %6908 = vmatmul.mubr.f32.gmra.mrb[32].mxu1 %v6831_v52 }
 0x617   : >> { %9751 = vmatpush3.bf16.msra.mxu1 %v14632_v18  ;;  %9272 = vmatprep.mubr.msk.f32.mxu1 %vm1040_vm6, %v6999_v7 }
 0x618   : >> { %9752 = vmatprep.subr.bf16.mxu1 %v17034_v2 }
 0x61a   : >> { %9273 = vmatmul.mubr.msk.f32.vlgmr.msra.gmra.mrb[34].mxu1 %vm1040_vm6, %v15174_v36 }
 0x61b   : >> { %9279 = vmatprep.mubr.msk.f32.mxu1 %vm10353_vm9, %v17035_v0 }
 0x69d   : >> { %v15180_v47 = vpop.f32.mrb[22].mxu1 }
 0x69e   : >> { %v6370_v12 = vrot.slane %v15180_v47, 1  ;;  %v9223_v24 = vpop.f32.mrb[23].mxu1 }
 0x6a0   : >> { %6371 = vrot.lane.b32.xlu0 %v6370_v12, %s17023_s27 }
 0x6a5   : >> { %v9234_v19 = vpop.f32.mrb[24].mxu1 }
 0x6a6   : >> { %v6546_v21 = vadd.f32 %v9234_v19, %v6471_v48  ;;  %v6540_v40 = vpop.f32.mrb[25].mxu1  ;;  %v7269_v19 = vld [vmem:[%s16105_s5 + $0x28] sm:$0xff] }
 0x6a7   : >> { %v6541_v14 = vadd.f32 %v6540_v40, %v6466_v57  ;;  %v7287_v40 = vld [vmem:[%s16105_s5 + $0xb8] sm:$0xff] }
 0x6a8   : >> { %v6550_v25 = vmax.f32 %v6546_v21, 0.0  ;;  %v7286_v21 = vld [vmem:[%s16105_s5 + $0xb0] sm:$0xff] }
 0x6a9   : >> { %v6549_v23 = vmax.f32 %v6541_v14, 0.0 }
 0x6c5   : >> { %v8722_v41 = vpop.f32.mrb[26].mxu1 }
 0x6c6   : >> { %v8723_v35 = vpop.f32.mrb[27].mxu1 }
 0x6c7   : >> { %v8724_v9 = vadd.f32 %v8723_v35, %v8722_v41  ;;  %v15297_v41 = vpack.c.bf16 %v7287_v40, %v7286_v21  ;;  %v7271_v35 = vld [vmem:[%s16105_s5 + $0x38] sm:$0xff]  ;;  %v7334_v40 = vld [vmem:[%s16105_s5 + $0x230] sm:$0xff] }
 0x6c9   : >> { %v6640_v27 = vadd.f32 %v8724_v9, %v17028_v62  ;;  %v8725_v46 = vpop.f32.mrb[28].mxu1  ;;  %v7288_v9 = vld [vmem:[%s16105_s5 + $0xc0] sm:$0xff] }
 0x6ca   : >> { %v8726_v31 = vpop.f32.mrb[29].mxu1 }
 0x6cb   : >> { %v6715_v44 = vadd.f32 %v15112_v53, %v6640_v27  ;;  %v8727_v15 = vadd.f32 %v8726_v31, %v8725_v46  ;;  %v7289_v27 = vld [vmem:[%s16105_s5 + $0xc8] sm:$0xff] }
 0x6cc   : >> { %v15315_v31 = vpack.c.bf16 %v7289_v27, %v7288_v9  ;;  %v7312_v9 = vld [vmem:[%s16105_s5 + $0x180] sm:$0xff]  ;;  %v7313_v27 = vld [vmem:[%s16105_s5 + $0x188] sm:$0xff] }
 0x6cd   : >> { %v6723_v29 = vmax.f32 %v6715_v44, 0.0  ;;  %v6645_v4 = vadd.f32 %v8727_v15, %v17028_v62  ;;  %v7272_v44 = vld [vmem:[%s16105_s5 + $0x40] sm:$0xff]  ;;  %v7273_v15 = vld [vmem:[%s16105_s5 + $0x48] sm:$0xff] }
 0x6cf   : >> { %v6725_v22 = vmax.f32 %v6549_v23, %v6723_v29  ;;  %v6720_v10 = vadd.f32 %v15109_v58, %v6645_v4  ;;  %v10214_v58 = vunpack.i.h.bf16 %v15126_v1  ;;  %v5930_v23 = vrot.slane %v15081_v5, 1  ;;  %v7290_v4 = vld [vmem:[%s16105_s5 + $0xd0] sm:$0xff] }
 0x6d1   : >> { %v6724_v38 = vmax.f32 %v6720_v10, 0.0  ;;  %v6729_v26 = vrot.slane %v6725_v22, 1 }
 0x6d3   : >> { %v6726_v20 = vmax.f32 %v6550_v25, %v6724_v38  ;;  %v15336_v38 = vpack.c.bf16 %v7273_v15, %v7272_v44  ;;  %v15446_v44 = vpack.c.bf16 %v7313_v27, %v7312_v9  ;;  %v7296_v15 = vld [vmem:[%s16105_s5 + $0x100] sm:$0xff]  ;;  %v7303_v9 = vld [vmem:[%s16105_s5 + $0x138] sm:$0xff] }
 0x6d4   : >> { %v7320_v27 = vld [vmem:[%s16105_s5 + $0x1c0] sm:$0xff] }
 0x6d5   : >> { %v6730_v61 = vrot.slane %v6726_v20, 1 }
 0x6d7   : >> { %v6731_v54 = vsel %vm517_vm0, %v6729_v26, %v6730_v61  ;;  %v6735_v59 = vmax.f32 %v6726_v20, %v6730_v61  ;;  %v7274_v26 = vld [vmem:[%s16105_s5 + $0x50] sm:$0xff]  ;;  %v7275_v61 = vld [vmem:[%s16105_s5 + $0x58] sm:$0xff] }
 0x6d8   : >> { %v6734_v52 = vmax.f32 %v6725_v22, %v6731_v54  ;;  %v7291_v22 = vld [vmem:[%s16105_s5 + $0xd8] sm:$0xff]  ;;  %v7292_v54 = vld [vmem:[%s16105_s5 + $0xe0] sm:$0xff] }
 0x6d9   : >> { %v15339_v20 = vpack.c.bf16 %v7291_v22, %v7290_v4  ;;  %v7314_v4 = vld [vmem:[%s16105_s5 + $0x190] sm:$0xff]  ;;  %v7315_v22 = vld [vmem:[%s16105_s5 + $0x198] sm:$0xff] }
 0x6da   : >> { %v9669_v12 = vpack.c.bf16 %v6735_v59, %v6734_v52  ;;  %v7293_v59 = vld [vmem:[%s16105_s5 + $0xe8] sm:$0xff]  ;;  %v15355_v52 = vpack.c.bf16 %v7275_v61, %v7274_v26 }
 0x6dc   : >> { %9671 = vmatpush3.bf16.msk.msra.mxu0 %vm14956_vm11, %v9669_v12  ;;  %v15358_v12 = vpack.c.bf16 %v7293_v59, %v7292_v54  ;;  %v15472_v59 = vpack.c.bf16 %v7315_v22, %v7314_v4  ;;  %v7304_v22 = vld [vmem:[%s16105_s5 + $0x140] sm:$0xff] }
 0x6dd   : >> { %9705 = vmatprep.subr.bf16.mxu0 %v14600_v56 }
 0x6df   : >> { %9251 = vmatmul.mubr.msk.f32.vlgmr.msra.gmra.mrb[30].mxu0 %vm5851_vm12, %v17031_v51 }
 0x6e0   : >> { %9707 = vmatpush3.bf16.msra.mxu0 %v14600_v56  ;;  %9261 = vmatprep.mubr.msk.f32.mxu0 %vm1040_vm6, %v15122_v13  ;;  %v7006_v56 = vsel %vm1043_vm7, %v10214_v58, %v6999_v7  ;;  %v7268_v7 = vld [vmem:[%s16105_s5 + $0x20] sm:$0xff] }
 0x6e1   : >> { %9709 = vmatprep.subr.bf16.mxu0 %v14632_v18  ;;  %v15294_v14 = vpack.c.bf16 %v7269_v19, %v7268_v7  ;;  %v7331_v7 = vld [vmem:[%s16105_s5 + $0x218] sm:$0xff] }
 0x6e4   : >> { %9711 = vmatpush3.bf16.msra.mxu0 %v14632_v18 }
 0x6e5   : >> { %v8769_v53 = vpop.f32.mrb[30].mxu1  ;;  %9713 = vmatprep.subr.bf16.mxu0 %v14526_v32 }
 0x6e6   : >> { %v8770_v24 = vpop.f32.mrb[31].mxu1 }
 0x6e7   : >> { %v15205_v48 = vadd.f32 %v8770_v24, %v8769_v53  ;;  %9262 = vmatmul.mubr.msk.f32.vlgmr.msra.gmra.mrb[32].mxu0 %vm1040_vm6, %v15158_v17  ;;  %v7277_v53 = vld [vmem:[%s16105_s5 + $0x68] sm:$0xff]  ;;  %v7294_v24 = vld [vmem:[%s16105_s5 + $0xf0] sm:$0xff] }
 0x6e8   : >> { %9715 = vmatpush3.bf16.msra.mxu0 %v14528_v16  ;;  %7076 = vmatprep.mubr.f32.mxu0 %v7006_v56  ;;  %v7280_v16 = vld [vmem:[%s16105_s5 + $0x80] sm:$0xff]  ;;  %v7295_v56 = vld [vmem:[%s16105_s5 + $0xf8] sm:$0xff] }
 0x6e9   : >> { %v8772_v13 = vpop.f32.mrb[32].mxu1  ;;  %9717 = vmatprep.subr.bf16.mxu0 %v14530_v11  ;;  %v7281_v11 = vld [vmem:[%s16105_s5 + $0x88] sm:$0xff] }
 0x6ea   : >> { %v8773_v1 = vpop.f32.mrb[33].mxu1 }
 0x6eb   : >> { %v15212_v57 = vadd.f32 %v8773_v1, %v8772_v13  ;;  %v15376_v1 = vpack.c.bf16 %v7295_v56, %v7294_v24  ;;  %v7316_v24 = vld [vmem:[%s16105_s5 + $0x1a0] sm:$0xff]  ;;  %v7317_v56 = vld [vmem:[%s16105_s5 + $0x1a8] sm:$0xff] }
 0x6ec   : >> { %9719 = vmatpush3.bf16.msra.mxu0 %v14548_v55  ;;  %v15236_v55 = vpack.c.bf16 %v7281_v11, %v7280_v16  ;;  %v7278_v16 = vld [vmem:[%s16105_s5 + $0x70] sm:$0xff]  ;;  %v7279_v11 = vld [vmem:[%s16105_s5 + $0x78] sm:$0xff] }
 0x6ed   : >> { %v15215_v32 = vpop.f32.mrb[34].mxu1  ;;  %9721 = vmatprep.subr.bf16.mxu0 %v14554_v6  ;;  %v7264_v6 = vld [vmem:[%s16105_s5] sm:$0xff] }
 0x6ee   : >> { %v15218_v18 = vpop.f32.mrb[35].mxu1 }
 0x6f0   : >> { %9723 = vmatpush3.bf16.msra.mxu0 %v14574_v45  ;;  %v7265_v45 = vld [vmem:[%s16105_s5 + $0x8] sm:$0xff] }
 0x6f1   : >> { %9725 = vmatprep.subr.bf16.mxu0 %v14580_v28  ;;  %v7282_v28 = vld [vmem:[%s16105_s5 + $0x90] sm:$0xff] }
 0x6f4   : >> { %9727 = vmatpush3.bf16.msra.mxu0 %v14606_v37  ;;  %v7283_v37 = vld [vmem:[%s16105_s5 + $0x98] sm:$0xff] }
 0x6f5   : >> { %9729 = vmatprep.subr.bf16.mxu0 %v14612_v33  ;;  %v10219_v33 = vunpack.i.h.bf16 %v15154_v43 }
 0x6f7   : >> { %v7007_v43 = vsel %vm1043_vm7, %v10219_v33, %v15174_v36  ;;  %v7005_v36 = vsel %vm5463_vm8, %v14927_v34, %v10219_v33  ;;  %v7270_v34 = vld [vmem:[%s16105_s5 + $0x30] sm:$0xff]  ;;  %v5934_v33 = vrot.slane %v15081_v5, 2 }
 0x6f8   : >> { %9731 = vmatpush3.bf16.msra.mxu0 %v14635_v39  ;;  %v15252_v39 = vpack.c.bf16 %v7265_v45, %v7264_v6  ;;  %v15312_v46 = vpack.c.bf16 %v7271_v35, %v7270_v34  ;;  %v15385_v6 = vpack.c.bf16 %v7279_v11, %v7278_v16  ;;  %v7328_v45 = vld [vmem:[%s16105_s5 + $0x200] sm:$0xff]  ;;  %v7335_v34 = vld [vmem:[%s16105_s5 + $0x238] sm:$0xff]  ;;  %v16382_v16 = vrot.slane %v15180_v47, 2 }
 0x6f9   : >> { %9733 = vmatprep.subr.bf16.mxu0 %v14638_v63  ;;  %v15255_v63 = vpack.c.bf16 %v7283_v37, %v7282_v28  ;;  %v7329_v28 = vld [vmem:[%s16105_s5 + $0x208] sm:$0xff]  ;;  %v15437_v35 = vpack.c.bf16 %v7335_v34, %v7334_v40 }
 0x6fb   : >> { %17038 = vst [vmem:[#allocation22_spill] sm:$0xff] %v15437_v35 }
 0x6fc   : >> { %9735 = vmatpush3.bf16.msra.mxu0 %v14657_v30  ;;  %v7266_v30 = vld [vmem:[%s16105_s5 + $0x10] sm:$0xff] }
 0x6fd   : >> { %9737 = vmatprep.subr.bf16.mxu0 %v14660_v3  ;;  %v7267_v3 = vld [vmem:[%s16105_s5 + $0x18] sm:$0xff] }
 0x6fe   : >> { %v15274_v17 = vpack.c.bf16 %v7267_v3, %v7266_v30 }
 0x700   : >> { %9739 = vmatpush3.bf16.msra.mxu0 %v14677_v8  ;;  %v7004_v8 = vsel %vm5463_vm8, %v14917_v42, %v10214_v58  ;;  %v7276_v58 = vld [vmem:[%s16105_s5 + $0x60] sm:$0xff] }
 0x701   : >> { %9741 = vmatprep.subr.bf16.mxu0 %v14680_v50  ;;  %v7284_v50 = vld [vmem:[%s16105_s5 + $0xa0] sm:$0xff]  ;;  %v15373_v13 = vpack.c.bf16 %v7277_v53, %v7276_v58  ;;  %v7298_v58 = vld [vmem:[%s16105_s5 + $0x110] sm:$0xff]  ;;  %v7299_v53 = vld [vmem:[%s16105_s5 + $0x118] sm:$0xff] }
 0x702   : >> { %v15489_v11 = vpack.c.bf16 %v7299_v53, %v7298_v58  ;;  %v7323_v58 = vld [vmem:[%s16105_s5 + $0x1d8] sm:$0xff] }
 0x704   : >> { %9743 = vmatpush3.bf16.msra.mxu0 %v14689_v60  ;;  %v7285_v60 = vld [vmem:[%s16105_s5 + $0xa8] sm:$0xff] }
 0x705   : >> { %9757 = vmatprep.subr.bf16.mxu0 %v15236_v55  ;;  %v15277_v42 = vpack.c.bf16 %v7285_v60, %v7284_v50 }
 0x707   : >> { %7077 = vmatmul.mubr.f32.vlgmr.msra.gmra.mrb[34].mxu0 %v7004_v8  ;;  %v15401_v8 = vpack.c.bf16 %v7329_v28, %v7328_v45  ;;  %v6910_v45 = vadd.f32 %v15212_v57, %v17028_v62  ;;  %v15496_v28 = vpack.c.bf16 %v7317_v56, %v7316_v24  ;;  %v7318_v57 = vld [vmem:[%s16105_s5 + $0x1b0] sm:$0xff] }
 0x708   : >> { %7081 = vmatprep.mubr.f32.mxu0 %v7007_v43  ;;  %9759 = vmatpush3.bf16.msra.mxu0 %v15252_v39  ;;  %v7330_v43 = vld [vmem:[%s16105_s5 + $0x210] sm:$0xff] }
 0x709   : >> { %9761 = vmatprep.subr.bf16.mxu0 %v15255_v63  ;;  %v15415_v19 = vpack.c.bf16 %v7331_v7, %v7330_v43  ;;  %v7319_v43 = vld [vmem:[%s16105_s5 + $0x1b8] sm:$0xff]  ;;  %v7306_v56 = vld [vmem:[%s16105_s5 + $0x150] sm:$0xff] }
 0x70a   : >> { %v15516_v34 = vpack.c.bf16 %v7319_v43, %v7318_v57  ;;  %v7308_v57 = vld [vmem:[%s16105_s5 + $0x160] sm:$0xff]  ;;  %v7309_v43 = vld [vmem:[%s16105_s5 + $0x168] sm:$0xff] }
 0x70b   : >> { %7082 = vmatmul.mubr.f32.gmra.mrb[36].mxu0 %v7005_v36  ;;  %17036 = vst [vmem:[#allocation63_spill] sm:$0xff] %v15415_v19  ;;  %v7333_v36 = vld [vmem:[%s16105_s5 + $0x228] sm:$0xff] }
 0x70c   : >> { %9763 = vmatpush3.bf16.msra.mxu0 %v15274_v17 }
 0x70d   : >> { %9765 = vmatprep.subr.bf16.mxu0 %v15277_v42 }
 0x710   : >> { %9767 = vmatpush3.bf16.msra.mxu0 %v15294_v14 }
 0x711   : >> { %9769 = vmatprep.subr.bf16.mxu0 %v15297_v41 }
 0x712   : >> { %v6372_v29 = vpop.permute.xlu0 %6371 }
 0x713   : >> { %v15332_v10 = vsel %vm1043_vm7, %v15180_v47, %v6372_v29 }
 0x714   : >> { %v10220_v25 = vpack.i.bf16 %v5930_v23, %v15332_v10  ;;  %9771 = vmatpush3.bf16.msra.mxu0 %v15312_v46  ;;  %v7297_v23 = vld [vmem:[%s16105_s5 + $0x108] sm:$0xff] }
 0x715   : >> { %9773 = vmatprep.subr.bf16.mxu0 %v15315_v31  ;;  %v15466_v54 = vpack.c.bf16 %v7297_v23, %v7296_v15  ;;  %v7321_v15 = vld [vmem:[%s16105_s5 + $0x1c8] sm:$0xff] }
 0x716   : >> { %10221 = vrot.lane.b32.xlu0 %v10220_v25, %s17023_s27  ;;  %v9804_v4 = vpack.c.bf16 %v7321_v15, %v7320_v27  ;;  %v7310_v15 = vld [vmem:[%s16105_s5 + $0x170] sm:$0xff] }
 0x718   : >> { %9775 = vmatpush3.bf16.msra.mxu0 %v15336_v38 }
 0x719   : >> { %9777 = vmatprep.subr.bf16.mxu0 %v15339_v20 }
 0x71c   : >> { %9779 = vmatpush3.bf16.msra.mxu0 %v15355_v52 }
 0x71d   : >> { %9781 = vmatprep.subr.bf16.mxu0 %v15358_v12 }
 0x720   : >> { %9783 = vmatpush3.bf16.msra.mxu0 %v15373_v13 }
 0x721   : >> { %9785 = vmatprep.subr.bf16.mxu0 %v15376_v1 }
 0x724   : >> { %9787 = vmatpush3.bf16.msra.mxu0 %v15385_v6 }
 0x725   : >> { %9820 = vmatprep.subr.bf16.mxu0 %v17034_v2 }
 0x788   : >> { %v15396_v37 = vpop.permute.xlu0 %10221 }
 0x789   : >> { %v10224_v30 = vunpack.i.h.bf16 %v15396_v37  ;;  %v16383_v3 = vunpack.i.l.bf16 %v15396_v37 }
 0x78b   : >> { %v7263_v50 = vsel %vm1043_vm7, %v5934_v33, %v16383_v3  ;;  %v5936_v60 = vsel %vm1043_vm7, %v15081_v5, %v10224_v30  ;;  %v7332_v5 = vld [vmem:[%s16105_s5 + $0x220] sm:$0xff]  ;;  %v7301_v30 = vld [vmem:[%s16105_s5 + $0x128] sm:$0xff] }
 0x78c   : >> { %7408 = vmatprep.mubr.f32.mxu0 %v7263_v50  ;;  %v15427_v21 = vpack.c.bf16 %v7333_v36, %v7332_v5  ;;  %v7300_v33 = vld [vmem:[%s16105_s5 + $0x120] sm:$0xff]  ;;  %v6905_v50 = vadd.f32 %v15205_v48, %v17028_v62  ;;  %v7302_v48 = vld [vmem:[%s16105_s5 + $0x130] sm:$0xff] }
 0x78d   : >> { %7409 = vmatmul.mubr.f32.vlgmr.msra.gmra.mrb[38].mxu0 %v5936_v60  ;;  %v15514_v40 = vpack.c.bf16 %v7301_v30, %v7300_v33  ;;  %v9802_v23 = vpack.c.bf16 %v7303_v9, %v7302_v48  ;;  %v7324_v33 = vld [vmem:[%s16105_s5 + $0x1e0] sm:$0xff]  ;;  %v7325_v30 = vld [vmem:[%s16105_s5 + $0x1e8] sm:$0xff]  ;;  %v7327_v48 = vld [vmem:[%s16105_s5 + $0x1f8] sm:$0xff]  ;;  %v9814_v9 = vpack.c.bf16 %v7309_v43, %v7308_v57 }
 0x78e   : >> { %9822 = vmatpush3.bf16.msra.mxu0 %v15401_v8  ;;  %9298 = vmatprep.mubr.msk.f32.mxu0 %vm10353_vm9, %v17035_v0  ;;  %17037 = vst [vmem:[#allocation53_spill] sm:$0xff] %v15427_v21 }
 0x78f   : >> { %9823 = vmatprep.subr.bf16.mxu0 %v17034_v2 }
 0x792   : >> { %9825 = vmatpush3.bf16.msra.mxu0 %v15415_v19 }
 0x793   : >> { %9826 = vmatprep.subr.bf16.mxu0 %v17034_v2 }
 0x796   : >> { %9828 = vmatpush3.bf16.msra.mxu0 %v15427_v21 }
 0x797   : >> { %9829 = vmatprep.subr.bf16.mxu0 %v17034_v2 }
 0x79a   : >> { %9831 = vmatpush3.bf16.msra.mxu0 %v15437_v35 }
 0x79b   : >> { %9865 = vmatprep.subr.bf16.mxu0 %v15446_v44 }
 0x7b2   : >> { %v15456_v29 = vpop.f32.mrb[30].mxu0 }
 0x7b3   : >> { %v6810_v25 = vrot.slane %v15456_v29, 1  ;;  %v16381_v26 = vrot.slane %v15456_v29, 2  ;;  %v9252_v61 = vpop.f32.mrb[31].mxu0 }
 0x7b4   : >> { %v7322_v61 = vld [vmem:[%s16105_s5 + $0x1d0] sm:$0xff] }
 0x7b5   : >> { %9299 = vmatmul.mubr.msk.f32.vlgmr.msra.gmra.mrb[40].mxu0 %vm1043_vm7, %v16381_v26  ;;  %6811 = vrot.lane.b32.xlu1 %v6810_v25, %s17023_s27  ;;  %v7305_v25 = vld [vmem:[%s16105_s5 + $0x148] sm:$0xff]  ;;  %v9808_v24 = vpack.c.bf16 %v7323_v58, %v7322_v61 }
 0x7b6   : >> { %9867 = vmatpush3.bf16.msra.mxu0 %v15466_v54  ;;  %v9806_v53 = vpack.c.bf16 %v7305_v25, %v7304_v22  ;;  %v7311_v22 = vld [vmem:[%s16105_s5 + $0x178] sm:$0xff] }
 0x7b7   : >> { %9869 = vmatprep.subr.bf16.mxu0 %v15472_v59  ;;  %v9818_v25 = vpack.c.bf16 %v7311_v22, %v7310_v15 }
 0x7b9   : >> { %7258 = vrot.lane.b32.xlu1 %v16382_v16, %s17023_s27 }
 0x7ba   : >> { %v9263_v60 = vpop.f32.mrb[32].mxu0  ;;  %9871 = vmatpush3.bf16.msra.mxu0 %v15489_v11 }
 0x7bb   : >> { %v6985_v7 = vadd.f32 %v9263_v60, %v6910_v45  ;;  %v6979_v5 = vpop.f32.mrb[33].mxu0  ;;  %9873 = vmatprep.subr.bf16.mxu0 %v15496_v28  ;;  %v7307_v45 = vld [vmem:[%s16105_s5 + $0x158] sm:$0xff]  ;;  %v9812_v60 = vpack.c.bf16 %v7325_v30, %v7324_v33 }
 0x7bc   : >> { %v6980_v36 = vadd.f32 %v6979_v5, %v6905_v50  ;;  %v9810_v50 = vpack.c.bf16 %v7307_v45, %v7306_v56  ;;  %v7326_v5 = vld [vmem:[%s16105_s5 + $0x1f0] sm:$0xff] }
 0x7bd   : >> { %v9816_v27 = vpack.c.bf16 %v7327_v48, %v7326_v5  ;;  %v6989_v35 = vmax.f32 %v6985_v7, 0.0 }
 0x7be   : >> { %9875 = vmatpush3.bf16.msra.mxu0 %v15514_v40  ;;  %v6988_v5 = vmax.f32 %v6980_v36, 0.0 }
 0x7bf   : >> { %9877 = vmatprep.subr.bf16.mxu0 %v15516_v34 }
 0x7c2   : >> { %9879 = vmatpush3.bf16.msra.mxu0 %v9802_v23 }
 0x7c3   : >> { %9881 = vmatprep.subr.bf16.mxu0 %v9804_v4 }
 0x7c6   : >> { %9883 = vmatpush3.bf16.msra.mxu0 %v9806_v53 }
 0x7c7   : >> { %9885 = vmatprep.subr.bf16.mxu0 %v9808_v24 }
 0x7ca   : >> { %9887 = vmatpush3.bf16.msra.mxu0 %v9810_v50 }
 0x7cb   : >> { %9889 = vmatprep.subr.bf16.mxu0 %v9812_v60 }
 0x7ce   : >> { %9891 = vmatpush3.bf16.msra.mxu0 %v9814_v9 }
 0x7cf   : >> { %9893 = vmatprep.subr.bf16.mxu0 %v9816_v27 }
 0x7d2   : >> { %9895 = vmatpush3.bf16.msra.mxu0 %v9818_v25 }
 0x7da   : >> { %v8813_v61 = vpop.f32.mrb[34].mxu0 }
 0x7db   : >> { %v8814_v58 = vpop.f32.mrb[35].mxu0 }
 0x7dc   : >> { %v8815_v56 = vadd.f32 %v8814_v58, %v8813_v61 }
 0x7de   : >> { %v7079_v45 = vadd.f32 %v8815_v56, %v17028_v62  ;;  %v8816_v33 = vpop.f32.mrb[36].mxu0 }
 0x7df   : >> { %v8817_v30 = vpop.f32.mrb[37].mxu0 }
 0x7e0   : >> { %v7154_v57 = vadd.f32 %v15218_v18, %v7079_v45  ;;  %v8818_v43 = vadd.f32 %v8817_v30, %v8816_v33  ;;  %v17039_v18 = vunpack.i.l.bf16 %v15396_v37  ;;  %v7782_v45 = vstv %s10324_s20  ;;  %v17047_v30 = vld [vmem:[#allocation14_spill] sm:$0xff]  ;;  %s459_s20 = sadd.s32 1, %s10324_s20  }
 0x7e1   : >> { %vm7783_vm13 = vcmp.eq.s32.totalorder %v17047_v30, %v7782_v45  ;;  %p456_p11 = scmp.ge.s32.totalorder %s459_s20, 8  }
 0x7e2   : >> { %v7162_v48 = vmax.f32 %v7154_v57, 0.0  ;;  %v7084_v26 = vadd.f32 %v8818_v43, %v17028_v62  ;;  %v17048_v57 = vld [vmem:[#allocation17_spill] sm:$0xff]  ;;  %v7789_v62 = vld [vmem:[%s16107_s7] sm:$0xff] (%p456_p11)  ;;  %v7830_v30 = vld [vmem:[%s16107_s7 + $0x148] sm:$0xff] (%p456_p11)  ;;  %s17057_s15 = scalar_lea.vmem (%p456_p11), [#allocation2], %s10494_s17  ;;  %s17059_s23 = sand.u32 (%p456_p11), 1, %s10308_s26  }
 0x7e3   : > { %s8260_s16 = sshll.u32 (%p456_p11), %s17057_s15, 4  ;;  %s17058_s22 = smov (%p456_p11), %s17057_s15  ;;  %s16055_s16 = int_to_ptr.vmem [resolvable:$true] %s8260_s16 }
 0x7e4   : >> { %v7164_v16 = vmax.f32 %v6988_v5, %v7162_v48  ;;  %v7159_v3 = vadd.f32 %v15215_v32, %v7084_v26  ;;  %v17049_v5 = vld [vmem:[#allocation16_spill] sm:$0xff]  ;;  %s8247_s24 = scalar_lea.sflag (%p456_p11), [#allocation3], %s17059_s23  ;;  %s10356_s20 = smov (%p456_p11), [#allocation2]  }
 0x7e5   : > { %s10250_s30 = sshll.u32 (%p456_p11), %s10356_s20, 4  ;;  %s10251_s30 = int_to_ptr.vmem [resolvable:$false] %s10250_s30 }
 0x7e6   : >> { %v7163_v15 = vmax.f32 %v7159_v3, 0.0  ;;  %v7168_v21 = vrot.slane %v7164_v16, 1  ;;  %s10252_s21 = scalar_lea.vmem (%p456_p11), %s10251_s30, 256  ;;  %p10253_p1 = scmp.lt.s32.totalorder (%p456_p11), %s16055_s16, %s10251_s30 }
 0x7e8   : >> { %v7165_v22 = vmax.f32 %v6989_v35, %v7163_v15  ;;  %v7790_v15 = vld [vmem:[%s16107_s7 + $0x8] sm:$0xff] (%p456_p11) }
 0x7ea   : >> { %v7169_v19 = vrot.slane %v7165_v22, 1 }
 0x7ec   : >> { %v7170_v61 = vsel %vm517_vm0, %v7168_v21, %v7169_v19  ;;  %v7174_v58 = vmax.f32 %v7165_v22, %v7169_v19  ;;  %v17046_v19 = vld [vmem:[#allocation12_spill] sm:$0xff]  ;;  %v7794_v22 = vld [vmem:[%s16107_s7 + $0x28] sm:$0xff] (%p456_p11) }
 0x7ed   : >> { %v7173_v56 = vmax.f32 %v7164_v16, %v7170_v61  ;;  %v7792_v61 = vld [vmem:[%s16107_s7 + $0x18] sm:$0xff] (%p456_p11) }
 0x7ef   : >> { %v9753_v0 = vpack.c.bf16 %v7174_v58, %v7173_v56  ;;  %v9908_v58 = vpack.c.bf16 (%p456_p11), %v7794_v22, %v7790_v15  ;;  %v7796_v56 = vld [vmem:[%s16107_s7 + $0x38] sm:$0xff] (%p456_p11) }
 0x7f1   : >> { %9755 = vmatpush3.bf16.msk.msra.mxu1 %vm14956_vm11, %v9753_v0  ;;  %9909 = vmatprep.subr.bf16.mxu0 (%p456_p11), %v9908_v58  ;;  %v7829_v58 = vld [vmem:[%s16107_s7 + $0x140] sm:$0xff] (%p456_p11) }
 0x7f2   : >> { %9789 = vmatprep.subr.bf16.mxu1 %v15446_v44 }
 0x7f4   : >> { %9280 = vmatmul.mubr.msk.f32.vlgmr.msra.gmra.mrb[36].mxu1 %vm5851_vm12, %v17031_v51  ;;  %v7793_v51 = vld [vmem:[%s16107_s7 + $0x20] sm:$0xff] (%p456_p11) }
 0x7f5   : >> { %9791 = vmatpush3.bf16.msra.mxu1 %v15466_v54 }
 0x7f6   : >> { %9793 = vmatprep.subr.bf16.mxu1 %v15472_v59 }
 0x7f9   : >> { %9795 = vmatpush3.bf16.msra.mxu1 %v15489_v11 }
 0x7fa   : >> { %9797 = vmatprep.subr.bf16.mxu1 %v15496_v28 }
 0x7fd   : >> { %9799 = vmatpush3.bf16.msra.mxu1 %v15514_v40 }
 0x7fe   : >> { %9801 = vmatprep.subr.bf16.mxu1 %v15516_v34 }
 0x801   : >> { %9803 = vmatpush3.bf16.msra.mxu1 %v9802_v23 }
 0x802   : >> { %9805 = vmatprep.subr.bf16.mxu1 %v9804_v4 }
 0x805   : >> { %9807 = vmatpush3.bf16.msra.mxu1 %v9806_v53 }
 0x806   : >> { %9809 = vmatprep.subr.bf16.mxu1 %v9808_v24 }
 0x809   : >> { %9811 = vmatpush3.bf16.msra.mxu1 %v9810_v50 }
 0x80a   : >> { %9813 = vmatprep.subr.bf16.mxu1 %v9812_v60 }
 0x80d   : >> { %9815 = vmatpush3.bf16.msra.mxu1 %v9814_v9 }
 0x80e   : >> { %9817 = vmatprep.subr.bf16.mxu1 %v9816_v27 }
 0x811   : >> { %9819 = vmatpush3.bf16.msra.mxu1 %v9818_v25 }
 0x812   : >> { %9833 = vmatprep.subr.bf16.mxu1 %v15236_v55 }
 0x827   : >> { %v6812_v49 = vpop.permute.xlu1 %6811 }
 0x828   : >> { %v6815_v0 = vsel %vm1043_vm7, %v15456_v29, %v6812_v49  ;;  %v10355_v49 = vmov (%p456_p11), 0.0  }
 0x829   : >> { %7556 = vrot.lane.b32.xlu0 %v6815_v0, %s17023_s27  ;;  %7478 = vmatprep.mubr.f32.mxu1 %v6815_v0  ;;  %v9940_v0 = vpack.c.bf16 (%p456_p11), %v7796_v56, %v7792_v61  ;;  %v7833_v56 = vld [vmem:[%s16107_s7 + $0x160] sm:$0xff] (%p456_p11) }
 0x82b   : >> { %v7259_v32 = vpop.permute.xlu1 %7258 }
 0x82c   : >> { %v7260_v3 = vsel %vm1043_vm7, %v17039_v18, %v7259_v32  ;;  %v9910_v32 = vpack.c.bf16 (%p456_p11), %v7793_v51, %v7789_v62  ;;  %v7791_v18 = vld [vmem:[%s16107_s7 + $0x10] sm:$0xff] (%p456_p11) }
 0x82d   : >> { %7479 = vmatmul.mubr.f32.vlgmr.msra.gmra.mrb[38].mxu1 %v7260_v3  ;;  %v7795_v3 = vld [vmem:[%s16107_s7 + $0x30] sm:$0xff] (%p456_p11) }
 0x82e   : >> { %9835 = vmatpush3.bf16.msra.mxu1 %v15252_v39  ;;  %v7831_v62 = vld [vmem:[%s16107_s7 + $0x150] sm:$0xff] (%p456_p11) }
 0x82f   : >> { %9837 = vmatprep.subr.bf16.mxu1 %v15255_v63 }
 0x832   : >> { %9839 = vmatpush3.bf16.msra.mxu1 %v15274_v17 }
 0x833   : >> { %9841 = vmatprep.subr.bf16.mxu1 %v15277_v42 }
 0x836   : >> { %9843 = vmatpush3.bf16.msra.mxu1 %v15294_v14 }
 0x837   : >> { %9845 = vmatprep.subr.bf16.mxu1 %v15297_v41  ;;  %v17040_v41 = vrot.slane %v15180_v47, 2  ;;  %v17044_v47 = vld [vmem:[#allocation22_spill] sm:$0xff] }
 0x83a   : >> { %9847 = vmatpush3.bf16.msra.mxu1 %v15312_v46 }
 0x83b   : >> { %9849 = vmatprep.subr.bf16.mxu1 %v15315_v31  ;;  %v17041_v31 = vmov 0.0  }
 0x83e   : >> { %9851 = vmatpush3.bf16.msra.mxu1 %v15336_v38  ;;  %v17042_v38 = vld [vmem:[#allocation63_spill] sm:$0xff] }
 0x83f   : >> { %9853 = vmatprep.subr.bf16.mxu1 %v15339_v20  ;;  %v17043_v20 = vld [vmem:[#allocation53_spill] sm:$0xff] }
 0x842   : >> { %9855 = vmatpush3.bf16.msra.mxu1 %v15355_v52 }
 0x843   : >> { %9857 = vmatprep.subr.bf16.mxu1 %v15358_v12 }
 0x846   : >> { %9859 = vmatpush3.bf16.msra.mxu1 %v15373_v13 }
 0x847   : >> { %9861 = vmatprep.subr.bf16.mxu1 %v15376_v1  ;;  %v17045_v1 = vrot.slane %v15456_v29, 2 }
 0x84a   : >> { %9863 = vmatpush3.bf16.msra.mxu1 %v15385_v6 }
 0x84b   : >> { %9896 = vmatprep.subr.bf16.mxu1 %v17034_v2 }
 0x860   : >> { %v8860_v55 = vpop.f32.mrb[38].mxu0 }
 0x861   : >> { %v8861_v39 = vpop.f32.mrb[39].mxu0 }
 0x862   : >> { %v8862_v63 = vadd.f32 %v8861_v39, %v8860_v55  ;;  %v7798_v55 = vld [vmem:[%s16107_s7 + $0x48] sm:$0xff] (%p456_p11)  ;;  %v9942_v39 = vpack.c.bf16 (%p456_p11), %v7795_v3, %v7791_v18  ;;  %v7840_v18 = vld [vmem:[%s16107_s7 + $0x198] sm:$0xff] (%p456_p11) }
 0x863   : > { %v7844_v3 = vld [vmem:[%s16107_s7 + $0x1b8] sm:$0xff] (%p456_p11) }
 0x864   : >> { %v7411_v21 = vadd.f32 %v8862_v63, %v17046_v19  ;;  %v7802_v63 = vld [vmem:[%s16107_s7 + $0x68] sm:$0xff] (%p456_p11) }
 0x888   : >> { %v7550_v17 = vpop.f32.mrb[40].mxu0 }
 0x889   : >> { %v9300_v42 = vpop.f32.mrb[41].mxu0 }
 0x88a   : > { %v7804_v42 = vld [vmem:[%s16107_s7 + $0x78] sm:$0xff] (%p456_p11) }
 0x89b   : >> { %v7557_v14 = vpop.permute.xlu0 %7556 }
 0x89c   : >> { %v7563_v46 = vsel %vm1043_vm7, %v17040_v41, %v7557_v14 }
 0x89d   : >> { %7630 = vmatprep.mubr.f32.mxu1 %v7563_v46  ;;  %v7797_v46 = vld [vmem:[%s16107_s7 + $0x40] sm:$0xff] (%p456_p11) }
 0x89e   : >> { %7631 = vmatmul.mubr.f32.vlgmr.msra.gmra.mrb[40].mxu1 %v15332_v10 }
 0x89f   : >> { %9898 = vmatpush3.bf16.msra.mxu1 %v15401_v8  ;;  %9317 = vmatprep.mubr.msk.f32.mxu1 %vm10353_vm9, %v17041_v31  ;;  %v7801_v31 = vld [vmem:[%s16107_s7 + $0x60] sm:$0xff] (%p456_p11) }
 0x8a0   : >> { %9899 = vmatprep.subr.bf16.mxu1 %v17034_v2 }
 0x8a3   : >> { %9901 = vmatpush3.bf16.msra.mxu1 %v17042_v38  ;;  %v7799_v38 = vld [vmem:[%s16107_s7 + $0x50] sm:$0xff] (%p456_p11) }
 0x8a4   : >> { %9902 = vmatprep.subr.bf16.mxu1 %v17034_v2 }
 0x8a7   : >> { %9904 = vmatpush3.bf16.msra.mxu1 %v17043_v20  ;;  %v9914_v20 = vpack.c.bf16 (%p456_p11), %v7801_v31, %v7797_v46  ;;  %v7843_v46 = vld [vmem:[%s16107_s7 + $0x1b0] sm:$0xff] (%p456_p11)  ;;  %v7846_v31 = vld [vmem:[%s16107_s7 + $0x1c8] sm:$0xff] (%p456_p11) }
 0x8a8   : >> { %9905 = vmatprep.subr.bf16.mxu1 %v17034_v2 }
 0x8ab   : >> { %9907 = vmatpush3.bf16.msra.mxu1 %v17044_v47  ;;  %v7803_v47 = vld [vmem:[%s16107_s7 + $0x70] sm:$0xff] (%p456_p11) }
 0x8ac   : > { %9941 = vmatprep.subr.bf16.mxu1 (%p456_p11), %v9940_v0  ;;  %v7838_v0 = vld [vmem:[%s16107_s7 + $0x188] sm:$0xff] (%p456_p11) }
 0x8c7   : >> { %v7244_v52 = vpop.f32.mrb[36].mxu1 }
 0x8c8   : >> { %v7249_v12 = vrot.slane %v7244_v52, 1  ;;  %v7253_v10 = vrot.slane %v7244_v52, 2  ;;  %v9281_v13 = vpop.f32.mrb[37].mxu1 }
 0x8ca   : >> { %v10225_v6 = vpack.i.bf16 %v17045_v1, %v7249_v12  ;;  %9318 = vmatmul.mubr.msk.f32.vlgmr.msra.gmra.mrb[42].mxu1 %vm1043_vm7, %v7253_v10  ;;  %v7810_v12 = vld [vmem:[%s16107_s7 + $0xa8] sm:$0xff] (%p456_p11)  ;;  %v7808_v1 = vld [vmem:[%s16107_s7 + $0x98] sm:$0xff] (%p456_p11) }
 0x8cb   : > { %8010 = vmatprep.mubr.f32.mxu1 (%p456_p11), %v10355_v49  ;;  %9943 = vmatpush1.bf16.msra.mxu1 (%p456_p11), %v9942_v39 }
 0x8cc   : >> { %10226 = vrot.lane.b32.xlu1 %v10225_v6, %s17023_s27  ;;  %v7812_v6 = vld [vmem:[%s16107_s7 + $0xb8] sm:$0xff] (%p456_p11)  ;;  %s8400_s27 = sshll.u32 (%p456_p11), %s10448_s29, 7  ;;  %s10246_s29 = scalar_lea.vmem (%p456_p11), %s16055_s16, 128 }
 0x8cd   : > { %s16053_s4 = scalar_lea.hbm (%p456_p11), %s16113_s13, %s8400_s27  ;;  %p10247_p12 = scmp.ne.s32.totalorder (%p456_p11), %s16055_s16, %s10246_s29 }
 0x8ce   : > { %p10254_p2 = scmp.lt.s32.totalorder (%p456_p11), %s10252_s21, %s10246_s29 }
 0x8cf   : > { %p10248_p13 = pnand (%p456_p11), %p10247_p12, %p10465_p5 }
 0x8d0   : > { %p10255_p3 = por (%p456_p11), %p10254_p2, %p10253_p1 }
 0x8d1   : > { %p10249_p0 = pneg (%p456_p11), %p10248_p13 }
 0x8d3   : > { %p10256_p4 = pnand (%p456_p11), %p10255_p3, %p10249_p0 }
 0x900   : >> { %v8895_v37 = vpop.f32.mrb[38].mxu1 }
 0x901   : >> { %v8896_v8 = vpop.f32.mrb[39].mxu1 }
 0x902   : >> { %v8897_v35 = vadd.f32 %v8896_v8, %v8895_v37  ;;  %v7805_v37 = vld [vmem:[%s16107_s7 + $0x80] sm:$0xff] (%p456_p11)  ;;  %v9948_v8 = vpack.c.bf16 (%p456_p11), %v7812_v6, %v7808_v1  ;;  %v7847_v6 = vld [vmem:[%s16107_s7 + $0x1d0] sm:$0xff] (%p456_p11) }
 0x903   : > { %v7849_v1 = vld [vmem:[%s16107_s7 + $0x1e0] sm:$0xff] (%p456_p11) }
 0x904   : >> { %v7481_v44 = vadd.f32 %v8897_v35, %v7411_v21  ;;  %v7807_v21 = vld [vmem:[%s16107_s7 + $0x90] sm:$0xff] (%p456_p11) }
 0x905   : > { %v7811_v35 = vld [vmem:[%s16107_s7 + $0xb0] sm:$0xff] (%p456_p11) }
 0x906   : >> { %v7551_v2 = vadd.f32 %v7550_v17, %v7481_v44  ;;  %v7800_v17 = vld [vmem:[%s16107_s7 + $0x58] sm:$0xff] (%p456_p11) }
 0x907   : > { %v9944_v41 = vpack.c.bf16 (%p456_p11), %v7804_v42, %v7800_v17  ;;  %v7837_v17 = vld [vmem:[%s16107_s7 + $0x180] sm:$0xff] (%p456_p11) }
 0x908   : >> { %v7554_v60 = vmax.f32 %v7551_v2, 0.0  ;;  %v7814_v2 = vld [vmem:[%s16107_s7 + $0xc8] sm:$0xff] (%p456_p11)  ;;  %v7841_v42 = vld [vmem:[%s16107_s7 + $0x1a0] sm:$0xff] (%p456_p11) }
 0x909   : > { %9945 = vmatprep.subr.bf16.mxu1 (%p456_p11), %v9944_v41  ;;  %v9964_v41 = vpack.c.bf16 (%p456_p11), %v7844_v3, %v7840_v18  ;;  %v8027_v3 = vld [vmem:[%s16109_s9 + $0x30] sm:$0xff] (%p456_p11) }
 0x93e   : >> { %v10227_v26 = vpop.permute.xlu1 %10226 }
 0x93f   : >> { %v10229_v54 = vunpack.i.h.bf16 %v10227_v26  ;;  %v10228_v59 = vunpack.i.l.bf16 %v10227_v26  ;;  %v7818_v26 = vld [vmem:[%s16107_s7 + $0xe8] sm:$0xff] (%p456_p11) }
 0x941   : >> { %v7254_v16 = vsel %vm1043_vm7, %v7244_v52, %v10228_v59  ;;  %v7560_v11 = vsel %vm1043_vm7, %v7557_v14, %v10229_v54  ;;  %v9912_v14 = vpack.c.bf16 (%p456_p11), %v7802_v63, %v7798_v55  ;;  %v7806_v52 = vld [vmem:[%s16107_s7 + $0x88] sm:$0xff] (%p456_p11)  ;;  %v7816_v54 = vld [vmem:[%s16107_s7 + $0xd8] sm:$0xff] (%p456_p11)  ;;  %v9950_v59 = vpack.c.bf16 (%p456_p11), %v7811_v35, %v7807_v21  ;;  %v8069_v35 = vld [vmem:[%s16109_s9 + $0x180] sm:$0xff] (%p456_p11) }
 0x942   : >> { %7700 = vmatprep.mubr.f32.mxu0 %v7254_v16  ;;  %v9916_v13 = vpack.c.bf16 (%p456_p11), %v7810_v12, %v7806_v52  ;;  %v9920_v16 = vpack.c.bf16 (%p456_p11), %v7818_v26, %v7814_v2  ;;  %v9930_v55 = vpack.c.bf16 (%p456_p11), %v7833_v56, %v7829_v58  ;;  %v9934_v52 = vpack.c.bf16 (%p456_p11), %v7841_v42, %v7837_v17  ;;  %v8038_v21 = vld [vmem:[%s16109_s9 + $0x88] sm:$0xff] (%p456_p11)  ;;  %v8043_v56 = vld [vmem:[%s16109_s9 + $0xb0] sm:$0xff] (%p456_p11)  ;;  %v8060_v17 = vld [vmem:[%s16109_s9 + $0x138] sm:$0xff] (%p456_p11) }
 0x943   : >> { %7701 = vmatmul.mubr.f32.vlgmr.msra.gmra.mrb[42].mxu0 %v7560_v11  ;;  %v7820_v11 = vld [vmem:[%s16107_s7 + $0xf8] sm:$0xff] (%p456_p11)  ;;  %v8058_v58 = vld [vmem:[%s16109_s9 + $0x128] sm:$0xff] (%p456_p11)  ;;  %v8045_v42 = vld [vmem:[%s16109_s9 + $0xc0] sm:$0xff] (%p456_p11) }
 0x944   : > { %7939 = vmatprep.mubr.f32.mxu0 (%p456_p11), %v10355_v49  ;;  %9911 = vmatpush1.bf16.msra.mxu0 (%p456_p11), %v9910_v32  ;;  %v7835_v49 = vld [vmem:[%s16107_s7 + $0x170] sm:$0xff] (%p456_p11)  ;;  %v7842_v32 = vld [vmem:[%s16107_s7 + $0x1a8] sm:$0xff] (%p456_p11) }
 0x945   : > { %9913 = vmatprep.subr.bf16.mxu0 (%p456_p11), %v9912_v14  ;;  %v9962_v39 = vpack.c.bf16 (%p456_p11), %v7835_v49, %v7831_v62  ;;  %v9932_v63 = vpack.c.bf16 (%p456_p11), %v7842_v32, %v7838_v0  ;;  %v7839_v14 = vld [vmem:[%s16107_s7 + $0x190] sm:$0xff] (%p456_p11)  ;;  %v8044_v62 = vld [vmem:[%s16109_s9 + $0xb8] sm:$0xff] (%p456_p11) }
 0x946   : > { %v9966_v12 = vpack.c.bf16 (%p456_p11), %v7843_v46, %v7839_v14  ;;  %v8076_v49 = vld [vmem:[%s16109_s9 + $0x1b8] sm:$0xff] (%p456_p11)  ;;  %v9984_v18 = vpack.c.bf16 (%p456_p11), %v8044_v62, %v8043_v56  ;;  %v8046_v14 = vld [vmem:[%s16109_s9 + $0xc8] sm:$0xff] (%p456_p11) }
 0x947   : > { %v8078_v46 = vld [vmem:[%s16109_s9 + $0x1c8] sm:$0xff] (%p456_p11) }
 0x948   : > { %9915 = vmatpush1.bf16.msra.mxu0 (%p456_p11), %v9914_v20  ;;  %v7848_v20 = vld [vmem:[%s16107_s7 + $0x1d8] sm:$0xff] (%p456_p11)  ;;  %v17053_v62 = vld [vmem:[#allocation14_spill] sm:$0xff] (%p456_p11) }
 0x949   : > { %9917 = vmatprep.subr.bf16.mxu0 (%p456_p11), %v9916_v13  ;;  %v7845_v13 = vld [vmem:[%s16107_s7 + $0x1c0] sm:$0xff] (%p456_p11) }
 0x94a   : > { %v9938_v2 = vpack.c.bf16 (%p456_p11), %v7849_v1, %v7845_v13  ;;  %v8062_v13 = vld [vmem:[%s16109_s9 + $0x148] sm:$0xff] (%p456_p11)  ;;  %v8047_v1 = vld [vmem:[%s16109_s9 + $0xd0] sm:$0xff] (%p456_p11) }
 0x971   : >> { %v8939_v29 = vpop.f32.mrb[40].mxu1 }
 0x972   : >> { %v8940_v28 = vpop.f32.mrb[41].mxu1 }
 0x973   : >> { %v8941_v7 = vadd.f32 %v8940_v28, %v8939_v29  ;;  %v7813_v29 = vld [vmem:[%s16107_s7 + $0xc0] sm:$0xff] (%p456_p11) }
 0x974   : > { %v7817_v28 = vld [vmem:[%s16107_s7 + $0xe0] sm:$0xff] (%p456_p11) }
 0x975   : >> { %v7633_v4 = vadd.f32 %v8941_v7, %v17046_v19  ;;  %v7809_v19 = vld [vmem:[%s16107_s7 + $0xa0] sm:$0xff] (%p456_p11)  ;;  %v9952_v7 = vpack.c.bf16 (%p456_p11), %v7820_v11, %v7816_v54 }
 0x976   : > { %v9918_v44 = vpack.c.bf16 (%p456_p11), %v7809_v19, %v7805_v37  ;;  %v8037_v19 = vld [vmem:[%s16109_s9 + $0x80] sm:$0xff] (%p456_p11) }
 0x977   : > { %v9972_v54 = vpack.c.bf16 (%p456_p11), %v8038_v21, %v8037_v19  ;;  %v8053_v11 = vld [vmem:[%s16109_s9 + $0x100] sm:$0xff] (%p456_p11) }
 0x978   : > { %9919 = vmatpush1.bf16.msra.mxu0 (%p456_p11), %v9918_v44  ;;  %v8070_v44 = vld [vmem:[%s16109_s9 + $0x188] sm:$0xff] (%p456_p11) }
 0x979   : > { %9921 = vmatprep.subr.bf16.mxu0 (%p456_p11), %v9920_v16  ;;  %v8022_v16 = vld [vmem:[%s16109_s9 + $0x8] sm:$0xff] (%p456_p11) }
 0x99d   : >> { %v7772_v36 = vpop.f32.mrb[42].mxu1 }
 0x99e   : >> { %v9319_v40 = vpop.f32.mrb[43].mxu1 }
 0x99f   : > { %v7819_v40 = vld [vmem:[%s16107_s7 + $0xf0] sm:$0xff] (%p456_p11) }
 0xa16   : >> { %v8974_v34 = vpop.f32.mrb[42].mxu0 }
 0xa17   : >> { %v8975_v23 = vpop.f32.mrb[43].mxu0 }
 0xa18   : >> { %v8976_v53 = vadd.f32 %v8975_v23, %v8974_v34  ;;  %v7822_v34 = vld [vmem:[%s16107_s7 + $0x108] sm:$0xff] (%p456_p11) }
 0xa19   : > { %v7826_v23 = vld [vmem:[%s16107_s7 + $0x128] sm:$0xff] (%p456_p11) }
 0xa1a   : >> { %v7703_v24 = vadd.f32 %v8976_v53, %v7633_v4  ;;  %v7824_v4 = vld [vmem:[%s16107_s7 + $0x118] sm:$0xff] (%p456_p11) }
 0xa1b   : > { %v7828_v53 = vld [vmem:[%s16107_s7 + $0x138] sm:$0xff] (%p456_p11) }
 0xa1c   : >> { %v7773_v50 = vadd.f32 %v7772_v36, %v7703_v24  ;;  %v7815_v36 = vld [vmem:[%s16107_s7 + $0xd0] sm:$0xff] (%p456_p11)  ;;  %v9922_v24 = vpack.c.bf16 (%p456_p11), %v7817_v28, %v7813_v29  ;;  %v9956_v45 = vpack.c.bf16 (%p456_p11), %v7828_v53, %v7824_v4  ;;  %v10004_v29 = vpack.c.bf16 (%p456_p11), %v8070_v44, %v8069_v35  ;;  %v8054_v28 = vld [vmem:[%s16109_s9 + $0x108] sm:$0xff] (%p456_p11) }
 0xa1d   : > { %v10006_v4 = vpack.c.bf16 (%p456_p11), %v8054_v28, %v8053_v11  ;;  %v8031_v44 = vld [vmem:[%s16109_s9 + $0x50] sm:$0xff] (%p456_p11)  ;;  %v8050_v11 = vld [vmem:[%s16109_s9 + $0xe8] sm:$0xff] (%p456_p11) }
 0xa1e   : >> { %v7776_v9 = vmax.f32 %v7773_v50, 0.0  ;;  %v9954_v50 = vpack.c.bf16 (%p456_p11), %v7819_v40, %v7815_v36  ;;  %9923 = vmatpush1.bf16.msra.mxu0 (%p456_p11), %v9922_v24  ;;  %v8040_v36 = vld [vmem:[%s16109_s9 + $0x98] sm:$0xff] (%p456_p11)  ;;  %v8071_v40 = vld [vmem:[%s16109_s9 + $0x190] sm:$0xff] (%p456_p11)  ;;  %v8082_v28 = vld [vmem:[%s16109_s9 + $0x1e8] sm:$0xff] (%p456_p11) }
 0xa1f   : > { %v8023_v24 = vld [vmem:[%s16109_s9 + $0x10] sm:$0xff] (%p456_p11) }
 0xa20   : >> { %v7777_v27 = vmax.f32 %v7554_v60, %v7776_v9  ;;  %v9924_v60 = vpack.c.bf16 (%p456_p11), %v7826_v23, %v7822_v34  ;;  %v7821_v9 = vld [vmem:[%s16107_s7 + $0x100] sm:$0xff] (%p456_p11)  ;;  %v8072_v34 = vld [vmem:[%s16109_s9 + $0x198] sm:$0xff] (%p456_p11) }
 0xa22   : >> { %v7779_v25 = vrot.slane %v7777_v27, 1  ;;  %9925 = vmatprep.subr.bf16.mxu0 (%p456_p11), %v9924_v60  ;;  %v8055_v60 = vld [vmem:[%s16109_s9 + $0x110] sm:$0xff] (%p456_p11) }
 0xa24   : >> { %v7781_v33 = vmax.f32 %v7777_v27, %v7779_v25  ;;  %458 = sbr.rel (!%p456_p11) target bundleno = 38 (0x26), region = 115  ;;  %v7825_v27 = vld [vmem:[%s16107_s7 + $0x120] sm:$0xff] (%p456_p11)  ;;  %v7823_v25 = vld [vmem:[%s16107_s7 + $0x110] sm:$0xff] (%p456_p11) }
 0xa25   : > { %v9926_v15 = vpack.c.bf16 (%p456_p11), %v7825_v27, %v7821_v9  ;;  %v10008_v9 = vpack.c.bf16 (%p456_p11), %v8072_v34, %v8071_v40  ;;  %v8056_v27 = vld [vmem:[%s16109_s9 + $0x118] sm:$0xff] (%p456_p11) }
 0xa26   : >> { %v7787_v43 = vrot.slane %v7781_v33, %v17048_v57  ;;  %v7827_v33 = vld [vmem:[%s16107_s7 + $0x130] sm:$0xff] (%p456_p11)  ;;  %v7834_v57 = vld [vmem:[%s16107_s7 + $0x168] sm:$0xff] (%p456_p11) }
 0xa27   : > { %v9958_v22 = vpack.c.bf16 (%p456_p11), %v7827_v33, %v7823_v25  ;;  %v9928_v61 = vpack.c.bf16 (%p456_p11), %v7834_v57, %v7830_v30  ;;  %9927 = vmatpush1.bf16.msra.mxu0 (%p456_p11), %v9926_v15  ;;  %v8041_v25 = vld [vmem:[%s16109_s9 + $0xa0] sm:$0xff] (%p456_p11)  ;;  %v8074_v30 = vld [vmem:[%s16109_s9 + $0x1a8] sm:$0xff] (%p456_p11) }
 0xa28   : >> { %v15638_v10 = vsel %vm7783_vm13, %v7787_v43, %v17049_v5   ;;  %v7832_v43 = vld [vmem:[%s16107_s7 + $0x158] sm:$0xff] (%p456_p11)  ;;  %v8073_v33 = vld [vmem:[%s16109_s9 + $0x1a0] sm:$0xff] (%p456_p11) }
 0xa29   : >> { %v17050_v48 = vmov %v15638_v10  ;;  %v7836_v5 = vld [vmem:[%s16107_s7 + $0x178] sm:$0xff] (%p456_p11)  ;;  %9929 = vmatprep.subr.bf16.mxu0 (%p456_p11), %v9928_v61  ;;  %v8025_v15 = vld [vmem:[%s16109_s9 + $0x20] sm:$0xff] (%p456_p11) }
 0xa2a   : >> { %v17051_v10 = vmov %v17050_v48  ;;  %v9960_v51 = vpack.c.bf16 (%p456_p11), %v7836_v5, %v7832_v43  ;;  %v10010_v43 = vpack.c.bf16 (%p456_p11), %v8056_v27, %v8055_v60  ;;  %v8057_v61 = vld [vmem:[%s16109_s9 + $0x120] sm:$0xff] (%p456_p11)  ;;  %v8052_v27 = vld [vmem:[%s16109_s9 + $0xf8] sm:$0xff] (%p456_p11) }
 0xa2b   : > { %v9946_v10 = vpack.c.bf16 %v7803_v47, %v7799_v38  ;;  %v7850_v38 = vld [vmem:[%s16107_s7 + $0x1e8] sm:$0xff]  ;;  %v7852_v47 = vld [vmem:[%s16107_s7 + $0x1f8] sm:$0xff]  ;;  %9931 = vmatpush1.bf16.msra.mxu0 %v9930_v55  ;;  %v10014_v32 = vpack.c.bf16 %v8058_v58, %v8057_v61 }
 0xa2c   : > { %9933 = vmatprep.subr.bf16.mxu0 %v9932_v63  ;;  %v9968_v37 = vpack.c.bf16 %v7852_v47, %v7848_v20  ;;  %v8028_v55 = vld [vmem:[%s16109_s9 + $0x38] sm:$0xff]  ;;  %v9988_v20 = vpack.c.bf16 %v8046_v14, %v8045_v42  ;;  %v8029_v47 = vld [vmem:[%s16109_s9 + $0x40] sm:$0xff] }
 0xa2d   : > { %9947 = vmatpush1.bf16.msra.mxu1 %v9946_v10  ;;  %v9936_v10 = vpack.c.bf16 %v7850_v38, %v7846_v31  ;;  %v9986_v31 = vpack.c.bf16 %v8028_v55, %v8027_v3  ;;  %v17052_v58 = vld [vmem:[#allocation17_spill] sm:$0xff] }
 0xa2e   : > { %9949 = vmatprep.subr.bf16.mxu1 %v9948_v8  ;;  %v7851_v8 = vld [vmem:[%s16107_s7 + $0x1f0] sm:$0xff] }
 0xa2f   : > { %9935 = vmatpush1.bf16.msra.mxu0 %v9934_v52  ;;  %v9970_v26 = vpack.c.bf16 %v7851_v8, %v7847_v6  ;;  %v8030_v52 = vld [vmem:[%s16109_s9 + $0x48] sm:$0xff]  ;;  %v8048_v6 = vld [vmem:[%s16109_s9 + $0xd8] sm:$0xff] }
 0xa30   : > { %9937 = vmatprep.subr.bf16.mxu0 %v9936_v10  ;;  %v8080_v8 = vld [vmem:[%s16109_s9 + $0x1d8] sm:$0xff]  ;;  %v9990_v19 = vpack.c.bf16 %v8030_v52, %v8029_v47  ;;  %v9992_v35 = vpack.c.bf16 %v8048_v6, %v8047_v1 }
 0xa31   : > { %9951 = vmatpush1.bf16.msra.mxu1 %v9950_v59  ;;  %v8021_v59 = vld [vmem:[%s16109_s9] sm:$0xff] }
 0xa32   : > { %9953 = vmatprep.subr.bf16.mxu1 %v9952_v7  ;;  %v8039_v7 = vld [vmem:[%s16109_s9 + $0x90] sm:$0xff]  ;;  %v9974_v23 = vpack.c.bf16 %v8022_v16, %v8021_v59  ;;  %v8064_v59 = vld [vmem:[%s16109_s9 + $0x158] sm:$0xff]  ;;  %v8049_v16 = vld [vmem:[%s16109_s9 + $0xe0] sm:$0xff] }
 0xa33   : > { %9939 = vmatpush1.bf16.msra.mxu0 %v9938_v2  ;;  %v9976_v53 = vpack.c.bf16 %v8040_v36, %v8039_v7  ;;  %v8032_v2 = vld [vmem:[%s16109_s9 + $0x58] sm:$0xff]  ;;  %v9996_v40 = vpack.c.bf16 %v8050_v11, %v8049_v16 }
 0xa34   : > { %9973 = vmatprep.subr.bf16.mxu0 %v9972_v54  ;;  %v9994_v7 = vpack.c.bf16 %v8032_v2, %v8031_v44 }
 0xa35   : > { %9955 = vmatpush1.bf16.msra.mxu1 %v9954_v50  ;;  %v8024_v50 = vld [vmem:[%s16109_s9 + $0x18] sm:$0xff] }
 0xa36   : > { %9957 = vmatprep.subr.bf16.mxu1 %v9956_v45  ;;  %v8042_v45 = vld [vmem:[%s16109_s9 + $0xa8] sm:$0xff]  ;;  %7940 = vmatmul.mubr.f32.vlgmr.msra.gmra.mrb[0].mxu0 %v17050_v48  ;;  %v9978_v57 = vpack.c.bf16 %v8024_v50, %v8023_v24 }
 0xa37   : > { %9975 = vmatpush3.bf16.msra.mxu0 %v9974_v23  ;;  %v9980_v5 = vpack.c.bf16 %v8042_v45, %v8041_v25  ;;  %v8033_v23 = vld [vmem:[%s16109_s9 + $0x60] sm:$0xff]  ;;  %v8066_v50 = vld [vmem:[%s16109_s9 + $0x168] sm:$0xff]  ;;  %v8083_v25 = vld [vmem:[%s16109_s9 + $0x1f0] sm:$0xff] }
 0xa38   : > { %9977 = vmatprep.subr.bf16.mxu0 %v9976_v53  ;;  %v8065_v53 = vld [vmem:[%s16109_s9 + $0x160] sm:$0xff] }
 0xa39   : > { %9959 = vmatpush1.bf16.msra.mxu1 %v9958_v22  ;;  %v8026_v22 = vld [vmem:[%s16109_s9 + $0x28] sm:$0xff]  ;;  %v10030_v60 = vpack.c.bf16 %v8066_v50, %v8065_v53 }
 0xa3a   : > { %9961 = vmatprep.subr.bf16.mxu1 %v9960_v51  ;;  %v8075_v51 = vld [vmem:[%s16109_s9 + $0x1b0] sm:$0xff]  ;;  %v9982_v0 = vpack.c.bf16 %v8026_v22, %v8025_v15  ;;  %v8068_v22 = vld [vmem:[%s16109_s9 + $0x178] sm:$0xff] }
 0xa3b   : > { %9979 = vmatpush3.bf16.msra.mxu0 %v9978_v57  ;;  %v10016_v63 = vpack.c.bf16 %v8076_v49, %v8075_v51  ;;  %v8036_v57 = vld [vmem:[%s16109_s9 + $0x78] sm:$0xff]  ;;  %v8067_v15 = vld [vmem:[%s16109_s9 + $0x170] sm:$0xff]  ;;  %v17054_v51 = vsub.s32 2, %v17053_v62 }
 0xa3c   : > { %9981 = vmatprep.subr.bf16.mxu0 %v9980_v5  ;;  %v10034_v61 = vpack.c.bf16 %v8068_v22, %v8067_v15 }
 0xa3d   : > { %9963 = vmatpush1.bf16.msra.mxu1 %v9962_v39  ;;  %v8059_v39 = vld [vmem:[%s16109_s9 + $0x130] sm:$0xff] }
 0xa3e   : > { %9965 = vmatprep.subr.bf16.mxu1 %v9964_v41  ;;  %v8077_v41 = vld [vmem:[%s16109_s9 + $0x1c0] sm:$0xff]  ;;  %v10018_v38 = vpack.c.bf16 %v8060_v17, %v8059_v39 }
 0xa3f   : > { %9983 = vmatpush3.bf16.msra.mxu0 %v9982_v0  ;;  %v10020_v10 = vpack.c.bf16 %v8078_v46, %v8077_v41  ;;  %v17055_v0 = vsub.s32 1, %v17053_v62 }
 0xa40   : > { %9985 = vmatprep.subr.bf16.mxu0 %v9984_v18  ;;  %v17056_v18 = vsub.s32 3, %v17053_v62 }
 0xa41   : > { %9967 = vmatpush1.bf16.msra.mxu1 %v9966_v12  ;;  %v8061_v12 = vld [vmem:[%s16109_s9 + $0x140] sm:$0xff] }
 0xa42   : > { %9969 = vmatprep.subr.bf16.mxu1 %v9968_v37  ;;  %v8079_v37 = vld [vmem:[%s16109_s9 + $0x1d0] sm:$0xff]  ;;  %v10022_v21 = vpack.c.bf16 %v8062_v13, %v8061_v12 }
 0xa43   : > { %9987 = vmatpush3.bf16.msra.mxu0 %v9986_v31  ;;  %v10024_v54 = vpack.c.bf16 %v8080_v8, %v8079_v37 }
 0xa44   : > { %9989 = vmatprep.subr.bf16.mxu0 %v9988_v20 }
 0xa45   : > { %9971 = vmatpush1.bf16.msra.mxu1 %v9970_v26  ;;  %v8063_v26 = vld [vmem:[%s16109_s9 + $0x150] sm:$0xff] }
 0xa46   : > { %10005 = vmatprep.subr.bf16.mxu1 %v10004_v29  ;;  %v8081_v29 = vld [vmem:[%s16109_s9 + $0x1e0] sm:$0xff]  ;;  %v10026_v36 = vpack.c.bf16 %v8064_v59, %v8063_v26 }
 0xa47   : > { %9991 = vmatpush3.bf16.msra.mxu0 %v9990_v19  ;;  %v10028_v34 = vpack.c.bf16 %v8082_v28, %v8081_v29 }
 0xa48   : > { %8011 = vmatmul.mubr.f32.vlgmr.msra.gmra.mrb[0].mxu1 %v17050_v48  ;;  %v10012_v48 = vpack.c.bf16 %v8074_v30, %v8073_v33  ;;  %9993 = vmatprep.subr.bf16.mxu0 %v9992_v35  ;;  %v8084_v33 = vld [vmem:[%s16109_s9 + $0x1f8] sm:$0xff]  ;;  %v8035_v30 = vld [vmem:[%s16109_s9 + $0x70] sm:$0xff] }
 0xa49   : > { %10007 = vmatpush3.bf16.msra.mxu1 %v10006_v4  ;;  %v8034_v4 = vld [vmem:[%s16109_s9 + $0x68] sm:$0xff]  ;;  %v10002_v5 = vpack.c.bf16 %v8036_v57, %v8035_v30 }
 0xa4a   : > { %10009 = vmatprep.subr.bf16.mxu1 %v10008_v9  ;;  %v9998_v24 = vpack.c.bf16 %v8034_v4, %v8033_v23  ;;  %v8051_v9 = vld [vmem:[%s16109_s9 + $0xf0] sm:$0xff] }
 0xa4b   : > { %9995 = vmatpush3.bf16.msra.mxu0 %v9994_v7  ;;  %v10000_v45 = vpack.c.bf16 %v8052_v27, %v8051_v9 }
 0xa4c   : > { %9997 = vmatprep.subr.bf16.mxu0 %v9996_v40 }
 0xa4d   : > { %10011 = vmatpush3.bf16.msra.mxu1 %v10010_v43  ;;  %v10032_v43 = vpack.c.bf16 %v8084_v33, %v8083_v25 }
 0xa4e   : > { %10013 = vmatprep.subr.bf16.mxu1 %v10012_v48  ;;  %v7853_v48 = vld [vmem:[%s16108_s8] sm:$0xf] }
 0xa4f   : > { %9999 = vmatpush3.bf16.msra.mxu0 %v9998_v24  ;;  %v7858_v56 = vrot.slane %v7853_v48, %v17052_v58  ;;  %v7866_v49 = vrot.slane %v7853_v48, %v17054_v51  ;;  %v7870_v3 = vrot.slane %v7853_v48, %v17056_v18 }
 0xa50   : > { %10001 = vmatprep.subr.bf16.mxu0 %v10000_v45 }
 0xa51   : > { %10015 = vmatpush3.bf16.msra.mxu1 %v10014_v32  ;;  %v7862_v32 = vrot.slane %v7853_v48, %v17055_v0 }
 0xa52   : > { %10017 = vmatprep.subr.bf16.mxu1 %v10016_v63 }
 0xa53   : > { %10003 = vmatpush3.bf16.msra.mxu0 %v10002_v5 }
 0xa55   : > { %10019 = vmatpush3.bf16.msra.mxu1 %v10018_v38 }
 0xa56   : > { %10021 = vmatprep.subr.bf16.mxu1 %v10020_v10  ;;  %v8398_v10 = vld [vmem:[%s16110_s10] ss:$0 sm:$0xff] }
 0xa59   : > { %10023 = vmatpush3.bf16.msra.mxu1 %v10022_v21 }
 0xa5a   : > { %10025 = vmatprep.subr.bf16.mxu1 %v10024_v54 }
 0xa5d   : > { %10027 = vmatpush3.bf16.msra.mxu1 %v10026_v36 }
 0xa5e   : > { %10029 = vmatprep.subr.bf16.mxu1 %v10028_v34 }
 0xa61   : > { %10031 = vmatpush3.bf16.msra.mxu1 %v10030_v60 }
 0xa62   : > { %10033 = vmatprep.subr.bf16.mxu1 %v10032_v43 }
 0xa65   : > { %10035 = vmatpush3.bf16.msra.mxu1 %v10034_v61 }
 0xb09   : > { %v7941_v55 = vpop.f32.mrb[0].mxu0 }
 0xb0a   : > { %v7942_v39 = vadd.f32 %v7941_v55, %v7858_v56  ;;  %v7943_v17 = vpop.f32.mrb[1].mxu0 }
 0xb0b   : > { %v7944_v14 = vadd.f32 %v7943_v17, %v7862_v32 }
 0xb0c   : > { %v8017_v20 = vmax.f32 %v7942_v39, 0.0 }
 0xb0d   : > { %v8018_v38 = vmax.f32 %v7944_v14, 0.0 }
 0xb0f   : > { %8156 = vmatprep.mubr.f32.mxu0 %v8018_v38 }
 0xb10   : > { %8157 = vmatmul.mubr.f32.vlgmr.msra.gmra.mrb[2].mxu0 %v8017_v20 }
 0xb1b   : > { %v8012_v63 = vpop.f32.mrb[0].mxu1 }
 0xb1c   : > { %v8013_v42 = vadd.f32 %v8012_v63, %v7866_v49  ;;  %v8014_v41 = vpop.f32.mrb[1].mxu1 }
 0xb1d   : > { %v8015_v46 = vadd.f32 %v8014_v41, %v7870_v3 }
 0xb1e   : > { %v8019_v31 = vmax.f32 %v8013_v42, 0.0 }
 0xb1f   : > { %v8020_v47 = vmax.f32 %v8015_v46, 0.0 }
 0xb21   : > { %8226 = vmatprep.mubr.f32.mxu1 %v8020_v47 }
 0xb22   : > { %8227 = vmatmul.mubr.f32.vlgmr.msra.gmra.mrb[2].mxu1 %v8019_v31 }
 0xbe3   : > { %v9018_v52 = vpop.f32.mrb[2].mxu0 }
 0xbe4   : > { %v9019_v13 = vpop.f32.mrb[3].mxu0 }
 0xbe5   : > { %v9020_v1 = vadd.f32 %v9019_v13, %v9018_v52 }
 0xbe7   : > { %v8159_v8 = vadd.f32 %v9020_v1, %v8398_v10 }
 0xbf5   : > { %v9053_v12 = vpop.f32.mrb[2].mxu1 }
 0xbf6   : > { %v9054_v6 = vpop.f32.mrb[3].mxu1 }
 0xbf7   : > { %v9055_v37 = vadd.f32 %v9054_v6, %v9053_v12 }
 0xbf9   : > { %v8229_v19 = vadd.f32 %v9055_v37, %v8159_v8 }
 0xbfb   : > { %v8233_v21 = vsel %vm5851_vm12, %v8229_v19, -inf }
 0xbfc   : > { %8234 = vmax.xlane.f32.xlu0 %v8233_v21 }
 0xc89   : > { %v8235_v35 = vpop.xlane.xlu0 %8234 }
 0xc8a   : > { %v8236_v44 = vsub.f32 %v8229_v19, %v8235_v35 }
 0xc8c   : > { %v8237_v2 = vmul.f32 1.442695, %v8236_v44 }
 0xc8e   : > { %10242 = vpow2.f32 %v8237_v2 }
 0xc98   : > { %v10243_v26 = vpop.eup %10242 }
 0xc99   : > { %v8239_v54 = vsel %vm5851_vm12, %v10243_v26, 0.0 }
 0xc9a   : > { %8240 = vadd.xlane.f32.xlu0 %v8239_v54 }
 0xd27   : > { %v8241_v59 = vpop.xlane.xlu0 %8240 }
 0xd28   : > { %10244 = vlog2.f32 %v8241_v59 }
 0xd32   : > { %v10245_v16 = vpop.eup %10244 }
 0xd33   : > { %v8243_v11 = vmul.f32 0.6931472, %v10245_v16 }
 0xd35   : > { %v8244_v29 = vsub.f32 %v8236_v44, %v8243_v11 }
 0xd37   : > { %8245 = vst.msk [vmem:[%s17058_s22] sm:$0xff] %vm5851_vm12, %v8244_v29 }
 0xd38   : > { %10259 = shalt.err (!%p10256_p4)
}
 0xd39   : > { %s10260_s17 = scalar_lea.hbm %s16053_s4, 128  ;;  %s10264_s15 = scalar_lea.hbm %s16113_s13, 256 }
 0xd3a   : > { %p10261_p7 = scmp.ne.s32.totalorder %s16053_s4, %s10260_s17  ;;  %p10265_p10 = scmp.lt.u32.totalorder %s16053_s4, %s16113_s13 }
 0xd3b   : > { %p10266_p11 = scmp.lt.u32.totalorder %s10264_s15, %s10260_s17  ;;  %p10268_p13 = scmp.lt.u32.totalorder %s10260_s17, %s16053_s4 }
 0xd3c   : > { %p10262_p8 = pnand %p10261_p7, %p10465_p5 }
 0xd3d   : > { %p10267_p12 = por %p10266_p11, %p10265_p10 }
 0xd3e   : > { %p10263_p9 = pneg %p10262_p8 }
 0xd3f   : > { %p10269_p0 = por %p10268_p13, %p10267_p12 }
 0xd41   : > { %p10270_p1 = pnand %p10269_p0, %p10263_p9 }
 0xd43   : > { %10273 = shalt.err (!%p10270_p1)
}
 0xd44   : > { %10036 = dma.vmem_to_hbm [thread:$0]  (%p10465_p5), %s16055_s16, 128, %s16053_s4, %s8247_s24  }
 0xd45 PF: > { %p10042_p2 = scmp.ge.s32.totalorder %s10316_s28, 2  ;;  %s8272_s22 = sand.u32 1, %s10304_s25  }
 0xd46   : > { %s8273_s23 = scalar_lea.sflag [#allocation3], %s8272_s22 }
 0xd47   : > { %p10039_p3 = pnand %p10042_p2, %p10469_p6 }
 0xd49   : > { %10299 = dma.done.wait (!%p10039_p3), %s8273_s23, 128  }
 0xd4a   : > { %10301 = vsyncadd (!%p10039_p3), %s8273_s23, 4294967168  ;;  %s17060_s29 = sld [smem:[#allocation5_spill]]  ;;  %s17061_s27 = sld [smem:[#allocation6_spill]] }
 0xd4b   : > { %p23_p4 = scmp.ge.s32.totalorder %s10452_s14, 4   ;;  %s17062_s25 = smov %s10308_s26 }
 0xd4c   : > { %s17064_s28 = smov %s10452_s14 }
 0xd4d   :  { %25 = sbr.rel (!%p23_p4) target bundleno = 8 (0x8), region = 126 }
 0xd50   : > { %s17063_s26 = smov %s17060_s29 }
 0xd54   :  { %8278 = vsyncpa [#allocation3], 1 }
 0xd55   :  { %8280 = vsyncpa [#allocation3 + $0x1], 1 }

</bundles_post_ra>
